<compile_context>
chip_gen: v7x
topology: tpu7x:2x2x1
jax: 0.10.0
libtpu: 0.0.40
codegen_flags: <defaults>
</compile_context>

<pallas_src>
import jax
import jax.numpy as jnp
from jax.experimental import pallas as pl
from jax.experimental.pallas import tpu as pltpu


# ------------------------------ Pallas kernel ------------------------------- #
def _make_conv_kernel(n_ins, n_mul, has_proj):
    """Fused banded-GEMM conv kernel factory.

    Ref order (all blocks are full-extent on their tiled dims):
      x_refs   : sum(n_ins) row-padded inputs, each (1, H+2, W*cin_i)
      mul_refs : n_mul multipliers,            each (1, H,   W*Cout)
      k_refs   : sum(n_ins) banded weights,    each (3, W*cin_i, W*Cout)
      b_refs   : len(n_ins) biases,            each (1, W*Cout)
      [p_ref (W*Cout, W), pb_ref (1, 1)]       optional fused 1x1 conv5
      o_ref    : (1, H, out_lanes)
    """
    n_x = sum(n_ins)
    n_br = len(n_ins)

    def kernel(*refs):
        pos = 0
        x_refs = refs[pos:pos + n_x]; pos += n_x
        mul_refs = refs[pos:pos + n_mul]; pos += n_mul
        k_refs = refs[pos:pos + n_x]; pos += n_x
        b_refs = refs[pos:pos + n_br]; pos += n_br
        if has_proj:
            p_ref = refs[pos]
            pb_ref = refs[pos + 1]
            pos += 2
        o_ref = refs[pos]

        H = o_ref.shape[1]

        y = None
        xi = 0
        for bi, n_in in enumerate(n_ins):
            wc = b_refs[bi].shape[-1]
            acc = jnp.zeros((H, wc), jnp.float32) + b_refs[bi][...]
            for _ in range(n_in):
                x_ref, k_ref = x_refs[xi], k_refs[xi]
                xi += 1
                for ky in range(3):  # static row-windows of the padded image
                    acc = acc + jnp.dot(x_ref[0, ky:ky + H, :], k_ref[ky],
                                        preferred_element_type=jnp.float32)
            y = acc if y is None else y * acc          # product of conv branches
        if has_proj:                                    # fused 1x1 conv (conv5)
            y = jnp.dot(y, p_ref[...],
                        preferred_element_type=jnp.float32) + pb_ref[...]
        for m_ref in mul_refs:                          # fused elementwise muls
            y = y * m_ref[0]
        o_ref[...] = y.reshape(o_ref.shape).astype(o_ref.dtype)

    return kernel


# ------------------------------ Pallas wrapper ------------------------------ #
def fused_conv3x3(branches, muls=(), proj=None, compute_dtype=jnp.float32):
    """Product of 3x3 'same' conv branches, NHWC in / NHWC out (f32).

    branches : list of (inputs, w, b).  Each branch is a 3x3 conv (padding=1)
        over the channel-concatenation of `inputs` (the concat is handled as a
        weight split, never materialised); all branch outputs are multiplied
        together elementwise.
    muls     : extra elementwise multipliers fused into the epilogue (f32).
    proj     : optional (w1x1, b1x1) 1x1 conv fused after the single branch.
    compute_dtype : dtype of the MXU operands (bf16 recommended on v6e/v7x);
        accumulation and the epilogue stay f32.
    """
    assert len(branches) >= 1
    if proj is not None:
        assert len(branches) == 1 and len(muls) == 0, \
            "fused 1x1 projection only supported for a single branch w/o muls"

    N, H, W, _ = branches[0][0][0].shape
    f32 = jnp.float32
    item_c = 2 if compute_dtype == jnp.bfloat16 else 4

    # S[kx, x_in, x_out] = 1 iff x_in == x_out + kx - 1.  Zero 'same' padding
    # in the width direction is encoded by the missing out-of-range rows.
    S = (jnp.arange(W)[None, :, None]
         == (jnp.arange(W)[None, None, :] + jnp.arange(3)[:, None, None] - 1)
         ).astype(f32)

    # TODO(synk): at production resolutions W*Cin outgrows the 128-lane budget
    # and the banded weights grow O(W^2); block W with a +1-column halo there
    # (the band trick is meant for the small-W regime exercised here).
    x_args, k_args, b_args = [], [], []
    x_specs, k_specs, b_specs = [], [], []
    n_ins, couts = [], []
    blk_bytes = 0
    for inputs, w, b in branches:
        w = w.astype(f32)
        Cout = int(w.shape[-1])
        couts.append(Cout)
        n_ins.append(len(inputs))
        off = 0
        for x in inputs:
            cin = int(x.shape[-1])
            assert x.shape == (N, H, W, cin)
            # (N, H, W, cin) -> (N, H+2, W*cin): rows zero-padded, width*channels
            # flattened onto the lane axis (lane-dense, block-aligned).
            xp = jnp.pad(x.astype(compute_dtype).reshape(N, H, W * cin),
                         ((0, 0), (1, 1), (0, 0)))
            x_args.append(xp)
            x_specs.append(pl.BlockSpec((1, H + 2, W * cin),
                                        lambda n: (n, 0, 0)))
            blk_bytes += (H + 2) * W * cin * item_c
            # Banded GEMM weight:
            #   band[ky, x_in*cin+ci, x_out*Cout+co] = w[ky, x_out-x_in+1, ci, co]
            # for |x_out - x_in| <= 1, else 0.
            band = jnp.einsum('ykic,kpq->ypiqc', w[:, :, off:off + cin, :], S)
            k_args.append(band.reshape(3, W * cin, W * Cout).astype(compute_dtype))
            k_specs.append(pl.BlockSpec((3, W * cin, W * Cout),
                                        lambda n: (0, 0, 0)))
            blk_bytes += 3 * W * cin * W * Cout * item_c
            off += cin
        b_args.append(jnp.broadcast_to(b.astype(f32).reshape(1, Cout),
                                       (W, Cout)).reshape(1, W * Cout))
        b_specs.append(pl.BlockSpec((1, W * Cout), lambda n: (0, 0)))
        blk_bytes += W * Cout * 4

    Cout = couts[0]
    assert all(c == Cout for c in couts)

    mul_args, mul_specs = [], []
    for m in muls:
        assert m.shape == (N, H, W, Cout)
        # Epilogue math stays f32 (v5e VPU has no bf16).
        mul_args.append(m.astype(f32).reshape(N, H, W * Cout))
        mul_specs.append(pl.BlockSpec((1, H, W * Cout), lambda n: (n, 0, 0)))
        blk_bytes += H * W * Cout * 4

    proj_args, proj_specs = [], []
    out_c = Cout
    if proj is not None:
        pw, pb = proj
        pvec = pw.reshape(Cout).astype(f32)
        # Block-diagonal 1x1-conv matrix: P[x*Cout+co, x'] = pw[co] * (x == x').
        P = (jnp.eye(W, dtype=f32)[:, None, :] * pvec[None, :, None]
             ).reshape(W * Cout, W)
        proj_args = [P, pb.reshape(1, 1).astype(f32)]
        proj_specs = [pl.BlockSpec((W * Cout, W), lambda n: (0, 0)),
                      pl.BlockSpec((1, 1), lambda n: (0, 0))]
        blk_bytes += W * Cout * W * 4 + 4
        out_c = 1

    out_lanes = W * out_c
    blk_bytes += H * out_lanes * 4

    # Explicit VMEM budget: per-step blocks, double-buffered, plus headroom.
    vmem_limit = int(min(max(2 * blk_bytes + (4 << 20), 16 << 20), 64 << 20))

    out_flat = pl.pallas_call(
        _make_conv_kernel(tuple(n_ins), len(muls), proj is not None),
        out_shape=jax.ShapeDtypeStruct((N, H, out_lanes), jnp.float32),
        grid=(N,),
        in_specs=x_specs + mul_specs + k_specs + b_specs + proj_specs,
        out_specs=pl.BlockSpec((1, H, out_lanes), lambda n: (n, 0, 0)),
        compiler_params=pltpu.CompilerParams(
            dimension_semantics=("parallel",),   # v7x: one image per TensorCore
            vmem_limit_bytes=vmem_limit),
    )(*(x_args + mul_args + k_args + b_args + proj_args))

    return out_flat.reshape(N, H, W, out_c)


# ------------------------------ JAX glue ops -------------------------------- #
def _up_matrix(n_in):
    n_out = 2 * n_in
    if n_in == 1:
        return jnp.ones((n_out, 1), jnp.float32)
    src = jnp.arange(n_out, dtype=jnp.float32) * (n_in - 1) / (n_out - 1)
    i0 = jnp.clip(jnp.floor(src), 0, n_in - 2).astype(jnp.int32)
    frac = src - i0.astype(jnp.float32)
    oh0 = jax.nn.one_hot(i0, n_in, dtype=jnp.float32)
    oh1 = jax.nn.one_hot(i0 + 1, n_in, dtype=jnp.float32)
    return (1.0 - frac)[:, None] * oh0 + frac[:, None] * oh1


# TODO(synk): fuse the 2x bilinear upsample (fixed (2H,H)/(2W,W) matrices,
# align_corners=True) into the consuming conv's prologue so u1/u11/u2 never
# round-trip HBM; kept as two XLA interpolation einsums for now.
def upsample2x(x):
    N, H, W, C = x.shape
    Mh = _up_matrix(H)
    Mw = _up_matrix(W)
    y = jnp.einsum('oh,nhwc->nowc', Mh, x)
    y = jnp.einsum('pw,nowc->nopc', Mw, y)
    return y


# --------------------------- parameters / forward --------------------------- #
def init_params(key, channel):
    keys = jax.random.split(key, 9)
    c = channel

    def conv_w(k, cin, cout, ksize=3):
        return 0.01 * jax.random.normal(k, (ksize, ksize, cin, cout), jnp.float32)

    return {
        'up1':   (conv_w(keys[0], c, c),              jnp.zeros((c,), jnp.float32)),
        'up2':   (conv_w(keys[1], c, c),              jnp.zeros((c,), jnp.float32)),
        'up3':   (conv_w(keys[2], c, c),              jnp.zeros((c,), jnp.float32)),
        'up4':   (conv_w(keys[3], c, c),              jnp.zeros((c,), jnp.float32)),
        'up5':   (conv_w(keys[4], 2 * c, 2 * c),      jnp.zeros((2 * c,), jnp.float32)),
        'cat2':  (conv_w(keys[5], 2 * c, 2 * c),      jnp.zeros((2 * c,), jnp.float32)),
        'cat3':  (conv_w(keys[6], 3 * c, 3 * c),      jnp.zeros((3 * c,), jnp.float32)),
        'conv4': (conv_w(keys[7], 3 * c, 3 * c),      jnp.zeros((3 * c,), jnp.float32)),
        'conv5': (conv_w(keys[8], 3 * c, 1, ksize=1), jnp.zeros((1,), jnp.float32)),
    }


def aggregation_forward(params, x1, x2, x3, compute_dtype=jnp.float32):
    # x1: (N, H, W, C), x2: (N, 2H, 2W, C), x3: (N, 4H, 4W, C)
    u1 = upsample2x(x1)            # (N, 2H, 2W, C)
    u11 = upsample2x(u1)           # (N, 4H, 4W, C)
    u2 = upsample2x(x2)            # (N, 4H, 4W, C)
    cd = compute_dtype

    # x2_1 = conv_upsample1(up(x1)) * x2                (mul fused in epilogue)
    x2_1 = fused_conv3x3([([u1], *params['up1'])], muls=[x2], compute_dtype=cd)

    # x3_1 = conv_upsample2(up(up(x1))) * conv_upsample3(up(x2)) * x3
    #   -> both conv branches and the multiplies fused into ONE kernel
    x3_1 = fused_conv3x3([([u11], *params['up2']),
                          ([u2],  *params['up3'])], muls=[x3], compute_dtype=cd)

    # x2_2 = conv_concat2(cat(x2_1, conv_upsample4(up(x1))))   (concat = weight split)
    d = fused_conv3x3([([u1], *params['up4'])], compute_dtype=cd)
    x2_2 = fused_conv3x3([([x2_1, d], *params['cat2'])], compute_dtype=cd)

    # x3_2 = conv_concat3(cat(x3_1, conv_upsample5(up(x2_2))))
    e = fused_conv3x3([([upsample2x(x2_2)], *params['up5'])], compute_dtype=cd)
    x3_2 = fused_conv3x3([([x3_1, e], *params['cat3'])], compute_dtype=cd)

    # out = conv5(conv4(x3_2)) — 1x1 conv5 fused as a projection in the conv4 kernel
    return fused_conv3x3([([x3_2], *params['conv4'])], proj=params['conv5'],
                         compute_dtype=cd)


# ------------------------------ pure-JAX reference --------------------------- #
def _conv_ref(x, w, b):
    y = jax.lax.conv_general_dilated(
        x, w, window_strides=(1, 1), padding=((1, 1), (1, 1)),
        dimension_numbers=('NHWC', 'HWIO', 'NHWC'),
        precision=jax.lax.Precision.HIGHEST)
    return y + b.reshape(1, 1, 1, -1)


def aggregation_reference(params, x1, x2, x3):
    u1 = upsample2x(x1)
    u11 = upsample2x(u1)
    u2 = upsample2x(x2)
    x2_1 = _conv_ref(u1, *params['up1']) * x2
    x3_1 = _conv_ref(u11, *params['up2']) * _conv_ref(u2, *params['up3']) * x3
    x2_2 = _conv_ref(jnp.concatenate(
        [x2_1, _conv_ref(u1, *params['up4'])], axis=-1), *params['cat2'])
    x3_2 = _conv_ref(jnp.concatenate(
        [x3_1, _conv_ref(upsample2x(x2_2), *params['up5'])], axis=-1),
        *params['cat3'])
    x = _conv_ref(x3_2, *params['conv4'])
    w5, b5 = params['conv5']
    return jnp.einsum('nhwc,co->nhwo', x, w5[0, 0]) + b5.reshape(1, 1, 1, 1)


if __name__ == "__main__":
    key = jax.random.PRNGKey(0)
    k1, k2, k3, kp = jax.random.split(key, 4)
    channel = 4
    N, H, W = 2, 8, 8
    x1 = jax.random.normal(k1, (N, H, W, channel), jnp.float32)
    x2 = jax.random.normal(k2, (N, 2 * H, 2 * W, channel), jnp.float32)
    x3 = jax.random.normal(k3, (N, 4 * H, 4 * W, channel), jnp.float32)
    params = init_params(kp, channel)

    out = jax.jit(aggregation_forward)(params, x1, x2, x3)
    jax.block_until_ready(out)
    assert out.shape == (N, 4 * H, 4 * W, 1), out.shape

    ref = jax.jit(aggregation_reference)(params, x1, x2, x3)
    jax.block_until_ready(ref)
    err = float(jnp.max(jnp.abs(out - ref)))
    scale = float(jnp.max(jnp.abs(ref)))
    assert err <= 2e-2 * scale + 1e-12, (err, scale)

    print("KERNEL_OK")
</pallas_src>

<mosaic_0001>
module attributes {stable_mosaic.version = 11 : i64} {
  func.func @kernel(%arg0: i32, %arg1: memref<1x18x64xf32, #tpu.memory_space<vmem>>, %arg2: memref<1x16x64xf32, #tpu.memory_space<vmem>>, %arg3: memref<3x64x64xf32, #tpu.memory_space<vmem>>, %arg4: memref<1x64xf32, #tpu.memory_space<vmem>>, %arg5: memref<1x16x64xf32, #tpu.memory_space<vmem>>) attributes {dimension_semantics = [#tpu.dimension_semantics<parallel>], iteration_bounds = array<i64: 2>, scalar_prefetch = 0 : i64, scratch_operands = 0 : i64, tpu.core_type = #tpu.core_type<tc>, window_params = [{transform_indices = @transform_0, window_bounds = array<i64: 1, 18, 64>}, {transform_indices = @transform_1, window_bounds = array<i64: 1, 16, 64>}, {pipeline_mode = #tpu.pipeline_mode<synchronous>, transform_indices = @transform_2, window_bounds = array<i64: 3, 64, 64>}, {pipeline_mode = #tpu.pipeline_mode<synchronous>, transform_indices = @transform_3, window_bounds = array<i64: 1, 64>}, {transform_indices = @transform_4, window_bounds = array<i64: 1, 16, 64>}]} {
    %cst = arith.constant 0.000000e+00 : f32
    %0 = vector.broadcast %cst : f32 to vector<16x64xf32>
    %c0 = arith.constant 0 : index
    %c0_0 = arith.constant 0 : index
    %1 = vector.load %arg4[%c0, %c0_0] : memref<1x64xf32, #tpu.memory_space<vmem>>, vector<1x64xf32>
    %2 = vector.broadcast %1 : vector<1x64xf32> to vector<16x64xf32>
    %3 = arith.addf %0, %2 : vector<16x64xf32>
    %c0_1 = arith.constant 0 : index
    %c0_2 = arith.constant 0 : index
    %c0_3 = arith.constant 0 : index
    %4 = vector.load %arg1[%c0_1, %c0_2, %c0_3] : memref<1x18x64xf32, #tpu.memory_space<vmem>>, vector<1x16x64xf32>
    %5 = vector.shape_cast %4 : vector<1x16x64xf32> to vector<16x64xf32>
    %c0_4 = arith.constant 0 : index
    %c0_5 = arith.constant 0 : index
    %c0_6 = arith.constant 0 : index
    %6 = vector.load %arg3[%c0_4, %c0_5, %c0_6] : memref<3x64x64xf32, #tpu.memory_space<vmem>>, vector<1x64x64xf32>
    %7 = vector.shape_cast %6 : vector<1x64x64xf32> to vector<64x64xf32>
    %cst_7 = arith.constant dense<0.000000e+00> : vector<16x64xf32>
    %8 = tpu.matmul %5, %7, %cst_7 {dimension_numbers = #tpu.dot_dimension_numbers<[1], [0], [0], [1], [0, 0, 1, 1], [], []>} : vector<16x64xf32>, vector<64x64xf32>, vector<16x64xf32> -> vector<16x64xf32>
    %9 = arith.addf %3, %8 : vector<16x64xf32>
    %c0_8 = arith.constant 0 : index
    %c1 = arith.constant 1 : index
    %c0_9 = arith.constant 0 : index
    %10 = vector.load %arg1[%c0_8, %c1, %c0_9] : memref<1x18x64xf32, #tpu.memory_space<vmem>>, vector<1x16x64xf32>
    %11 = vector.shape_cast %10 : vector<1x16x64xf32> to vector<16x64xf32>
    %c1_10 = arith.constant 1 : index
    %c0_11 = arith.constant 0 : index
    %c0_12 = arith.constant 0 : index
    %12 = vector.load %arg3[%c1_10, %c0_11, %c0_12] : memref<3x64x64xf32, #tpu.memory_space<vmem>>, vector<1x64x64xf32>
    %13 = vector.shape_cast %12 : vector<1x64x64xf32> to vector<64x64xf32>
    %cst_13 = arith.constant dense<0.000000e+00> : vector<16x64xf32>
    %14 = tpu.matmul %11, %13, %cst_13 {dimension_numbers = #tpu.dot_dimension_numbers<[1], [0], [0], [1], [0, 0, 1, 1], [], []>} : vector<16x64xf32>, vector<64x64xf32>, vector<16x64xf32> -> vector<16x64xf32>
    %15 = arith.addf %9, %14 : vector<16x64xf32>
    %c0_14 = arith.constant 0 : index
    %c2 = arith.constant 2 : index
    %c0_15 = arith.constant 0 : index
    %16 = vector.load %arg1[%c0_14, %c2, %c0_15] : memref<1x18x64xf32, #tpu.memory_space<vmem>>, vector<1x16x64xf32>
    %17 = vector.shape_cast %16 : vector<1x16x64xf32> to vector<16x64xf32>
    %c2_16 = arith.constant 2 : index
    %c0_17 = arith.constant 0 : index
    %c0_18 = arith.constant 0 : index
    %18 = vector.load %arg3[%c2_16, %c0_17, %c0_18] : memref<3x64x64xf32, #tpu.memory_space<vmem>>, vector<1x64x64xf32>
    %19 = vector.shape_cast %18 : vector<1x64x64xf32> to vector<64x64xf32>
    %cst_19 = arith.constant dense<0.000000e+00> : vector<16x64xf32>
    %20 = tpu.matmul %17, %19, %cst_19 {dimension_numbers = #tpu.dot_dimension_numbers<[1], [0], [0], [1], [0, 0, 1, 1], [], []>} : vector<16x64xf32>, vector<64x64xf32>, vector<16x64xf32> -> vector<16x64xf32>
    %21 = arith.addf %15, %20 : vector<16x64xf32>
    %c0_20 = arith.constant 0 : index
    %c0_21 = arith.constant 0 : index
    %c0_22 = arith.constant 0 : index
    %22 = vector.load %arg2[%c0_20, %c0_21, %c0_22] : memref<1x16x64xf32, #tpu.memory_space<vmem>>, vector<1x16x64xf32>
    %23 = vector.shape_cast %22 : vector<1x16x64xf32> to vector<16x64xf32>
    %24 = arith.mulf %21, %23 : vector<16x64xf32>
    %25 = vector.shape_cast %24 : vector<16x64xf32> to vector<1x16x64xf32>
    %c0_23 = arith.constant 0 : index
    %c0_24 = arith.constant 0 : index
    %c0_25 = arith.constant 0 : index
    %26 = vector.load %arg5[%c0_23, %c0_24, %c0_25] : memref<1x16x64xf32, #tpu.memory_space<vmem>>, vector<1x16x64xf32>
    tpu.vector_store %arg5[%c0_23, %c0_24, %c0_25], %25 {strides = array<i32>} : memref<1x16x64xf32, #tpu.memory_space<vmem>>, vector<1x16x64xf32>,
    return
  }
  func.func @transform_0(%arg0: i32) -> (i32, i32, i32) {
    %c0_i32 = arith.constant 0 : i32
    %c0_i32_0 = arith.constant 0 : i32
    %c0_i32_1 = arith.constant 0 : i32
    return %arg0, %c0_i32, %c0_i32_0 : i32, i32, i32
  }
  func.func @transform_1(%arg0: i32) -> (i32, i32, i32) {
    %c0_i32 = arith.constant 0 : i32
    %c0_i32_0 = arith.constant 0 : i32
    %c0_i32_1 = arith.constant 0 : i32
    return %arg0, %c0_i32, %c0_i32_0 : i32, i32, i32
  }
  func.func @transform_2(%arg0: i32) -> (i32, i32, i32) {
    %c0_i32 = arith.constant 0 : i32
    %c0_i32_0 = arith.constant 0 : i32
    %c0_i32_1 = arith.constant 0 : i32
    %c0_i32_2 = arith.constant 0 : i32
    return %c0_i32, %c0_i32_0, %c0_i32_1 : i32, i32, i32
  }
  func.func @transform_3(%arg0: i32) -> (i32, i32) {
    %c0_i32 = arith.constant 0 : i32
    %c0_i32_0 = arith.constant 0 : i32
    %c0_i32_1 = arith.constant 0 : i32
    return %c0_i32, %c0_i32_0 : i32, i32
  }
  func.func @transform_4(%arg0: i32) -> (i32, i32, i32) {
    %c0_i32 = arith.constant 0 : i32
    %c0_i32_0 = arith.constant 0 : i32
    %c0_i32_1 = arith.constant 0 : i32
    return %arg0, %c0_i32, %c0_i32_0 : i32, i32, i32
  }
}

module attributes {stable_mosaic.version = 11 : i64} {
  func.func @kernel(%arg0: i32, %arg1: memref<1x18x64xf32, #tpu.memory_space<vmem>>, %arg2: memref<3x64x64xf32, #tpu.memory_space<vmem>>, %arg3: memref<1x64xf32, #tpu.memory_space<vmem>>, %arg4: memref<1x16x64xf32, #tpu.memory_space<vmem>>) attributes {dimension_semantics = [#tpu.dimension_semantics<parallel>], iteration_bounds = array<i64: 2>, scalar_prefetch = 0 : i64, scratch_operands = 0 : i64, tpu.core_type = #tpu.core_type<tc>, window_params = [{transform_indices = @transform_0, window_bounds = array<i64: 1, 18, 64>}, {pipeline_mode = #tpu.pipeline_mode<synchronous>, transform_indices = @transform_1, window_bounds = array<i64: 3, 64, 64>}, {pipeline_mode = #tpu.pipeline_mode<synchronous>, transform_indices = @transform_2, window_bounds = array<i64: 1, 64>}, {transform_indices = @transform_3, window_bounds = array<i64: 1, 16, 64>}]} {
    %cst = arith.constant 0.000000e+00 : f32
    %0 = vector.broadcast %cst : f32 to vector<16x64xf32>
    %c0 = arith.constant 0 : index
    %c0_0 = arith.constant 0 : index
    %1 = vector.load %arg3[%c0, %c0_0] : memref<1x64xf32, #tpu.memory_space<vmem>>, vector<1x64xf32>
    %2 = vector.broadcast %1 : vector<1x64xf32> to vector<16x64xf32>
    %3 = arith.addf %0, %2 : vector<16x64xf32>
    %c0_1 = arith.constant 0 : index
    %c0_2 = arith.constant 0 : index
    %c0_3 = arith.constant 0 : index
    %4 = vector.load %arg1[%c0_1, %c0_2, %c0_3] : memref<1x18x64xf32, #tpu.memory_space<vmem>>, vector<1x16x64xf32>
    %5 = vector.shape_cast %4 : vector<1x16x64xf32> to vector<16x64xf32>
    %c0_4 = arith.constant 0 : index
    %c0_5 = arith.constant 0 : index
    %c0_6 = arith.constant 0 : index
    %6 = vector.load %arg2[%c0_4, %c0_5, %c0_6] : memref<3x64x64xf32, #tpu.memory_space<vmem>>, vector<1x64x64xf32>
    %7 = vector.shape_cast %6 : vector<1x64x64xf32> to vector<64x64xf32>
    %cst_7 = arith.constant dense<0.000000e+00> : vector<16x64xf32>
    %8 = tpu.matmul %5, %7, %cst_7 {dimension_numbers = #tpu.dot_dimension_numbers<[1], [0], [0], [1], [0, 0, 1, 1], [], []>} : vector<16x64xf32>, vector<64x64xf32>, vector<16x64xf32> -> vector<16x64xf32>
    %9 = arith.addf %3, %8 : vector<16x64xf32>
    %c0_8 = arith.constant 0 : index
    %c1 = arith.constant 1 : index
    %c0_9 = arith.constant 0 : index
    %10 = vector.load %arg1[%c0_8, %c1, %c0_9] : memref<1x18x64xf32, #tpu.memory_space<vmem>>, vector<1x16x64xf32>
    %11 = vector.shape_cast %10 : vector<1x16x64xf32> to vector<16x64xf32>
    %c1_10 = arith.constant 1 : index
    %c0_11 = arith.constant 0 : index
    %c0_12 = arith.constant 0 : index
    %12 = vector.load %arg2[%c1_10, %c0_11, %c0_12] : memref<3x64x64xf32, #tpu.memory_space<vmem>>, vector<1x64x64xf32>
    %13 = vector.shape_cast %12 : vector<1x64x64xf32> to vector<64x64xf32>
    %cst_13 = arith.constant dense<0.000000e+00> : vector<16x64xf32>
    %14 = tpu.matmul %11, %13, %cst_13 {dimension_numbers = #tpu.dot_dimension_numbers<[1], [0], [0], [1], [0, 0, 1, 1], [], []>} : vector<16x64xf32>, vector<64x64xf32>, vector<16x64xf32> -> vector<16x64xf32>
    %15 = arith.addf %9, %14 : vector<16x64xf32>
    %c0_14 = arith.constant 0 : index
    %c2 = arith.constant 2 : index
    %c0_15 = arith.constant 0 : index
    %16 = vector.load %arg1[%c0_14, %c2, %c0_15] : memref<1x18x64xf32, #tpu.memory_space<vmem>>, vector<1x16x64xf32>
    %17 = vector.shape_cast %16 : vector<1x16x64xf32> to vector<16x64xf32>
    %c2_16 = arith.constant 2 : index
    %c0_17 = arith.constant 0 : index
    %c0_18 = arith.constant 0 : index
    %18 = vector.load %arg2[%c2_16, %c0_17, %c0_18] : memref<3x64x64xf32, #tpu.memory_space<vmem>>, vector<1x64x64xf32>
    %19 = vector.shape_cast %18 : vector<1x64x64xf32> to vector<64x64xf32>
    %cst_19 = arith.constant dense<0.000000e+00> : vector<16x64xf32>
    %20 = tpu.matmul %17, %19, %cst_19 {dimension_numbers = #tpu.dot_dimension_numbers<[1], [0], [0], [1], [0, 0, 1, 1], [], []>} : vector<16x64xf32>, vector<64x64xf32>, vector<16x64xf32> -> vector<16x64xf32>
    %21 = arith.addf %15, %20 : vector<16x64xf32>
    %22 = vector.shape_cast %21 : vector<16x64xf32> to vector<1x16x64xf32>
    %c0_20 = arith.constant 0 : index
    %c0_21 = arith.constant 0 : index
    %c0_22 = arith.constant 0 : index
    %23 = vector.load %arg4[%c0_20, %c0_21, %c0_22] : memref<1x16x64xf32, #tpu.memory_space<vmem>>, vector<1x16x64xf32>
    tpu.vector_store %arg4[%c0_20, %c0_21, %c0_22], %22 {strides = array<i32>} : memref<1x16x64xf32, #tpu.memory_space<vmem>>, vector<1x16x64xf32>,
    return
  }
  func.func @transform_0(%arg0: i32) -> (i32, i32, i32) {
    %c0_i32 = arith.constant 0 : i32
    %c0_i32_0 = arith.constant 0 : i32
    %c0_i32_1 = arith.constant 0 : i32
    return %arg0, %c0_i32, %c0_i32_0 : i32, i32, i32
  }
  func.func @transform_1(%arg0: i32) -> (i32, i32, i32) {
    %c0_i32 = arith.constant 0 : i32
    %c0_i32_0 = arith.constant 0 : i32
    %c0_i32_1 = arith.constant 0 : i32
    %c0_i32_2 = arith.constant 0 : i32
    return %c0_i32, %c0_i32_0, %c0_i32_1 : i32, i32, i32
  }
  func.func @transform_2(%arg0: i32) -> (i32, i32) {
    %c0_i32 = arith.constant 0 : i32
    %c0_i32_0 = arith.constant 0 : i32
    %c0_i32_1 = arith.constant 0 : i32
    return %c0_i32, %c0_i32_0 : i32, i32
  }
  func.func @transform_3(%arg0: i32) -> (i32, i32, i32) {
    %c0_i32 = arith.constant 0 : i32
    %c0_i32_0 = arith.constant 0 : i32
    %c0_i32_1 = arith.constant 0 : i32
    return %arg0, %c0_i32, %c0_i32_0 : i32, i32, i32
  }
}

module attributes {stable_mosaic.version = 11 : i64} {
  func.func @kernel(%arg0: i32, %arg1: memref<1x18x64xf32, #tpu.memory_space<vmem>>, %arg2: memref<1x18x64xf32, #tpu.memory_space<vmem>>, %arg3: memref<3x64x128xf32, #tpu.memory_space<vmem>>, %arg4: memref<3x64x128xf32, #tpu.memory_space<vmem>>, %arg5: memref<1x128xf32, #tpu.memory_space<vmem>>, %arg6: memref<1x16x128xf32, #tpu.memory_space<vmem>>) attributes {dimension_semantics = [#tpu.dimension_semantics<parallel>], iteration_bounds = array<i64: 2>, scalar_prefetch = 0 : i64, scratch_operands = 0 : i64, tpu.core_type = #tpu.core_type<tc>, window_params = [{transform_indices = @transform_0, window_bounds = array<i64: 1, 18, 64>}, {transform_indices = @transform_1, window_bounds = array<i64: 1, 18, 64>}, {pipeline_mode = #tpu.pipeline_mode<synchronous>, transform_indices = @transform_2, window_bounds = array<i64: 3, 64, 128>}, {pipeline_mode = #tpu.pipeline_mode<synchronous>, transform_indices = @transform_3, window_bounds = array<i64: 3, 64, 128>}, {pipeline_mode = #tpu.pipeline_mode<synchronous>, transform_indices = @transform_4, window_bounds = array<i64: 1, 128>}, {transform_indices = @transform_5, window_bounds = array<i64: 1, 16, 128>}]} {
    %cst = arith.constant 0.000000e+00 : f32
    %0 = vector.broadcast %cst : f32 to vector<16x128xf32>
    %c0 = arith.constant 0 : index
    %c0_0 = arith.constant 0 : index
    %1 = vector.load %arg5[%c0, %c0_0] : memref<1x128xf32, #tpu.memory_space<vmem>>, vector<1x128xf32>
    %2 = vector.broadcast %1 : vector<1x128xf32> to vector<16x128xf32>
    %3 = arith.addf %0, %2 : vector<16x128xf32>
    %c0_1 = arith.constant 0 : index
    %c0_2 = arith.constant 0 : index
    %c0_3 = arith.constant 0 : index
    %4 = vector.load %arg1[%c0_1, %c0_2, %c0_3] : memref<1x18x64xf32, #tpu.memory_space<vmem>>, vector<1x16x64xf32>
    %5 = vector.shape_cast %4 : vector<1x16x64xf32> to vector<16x64xf32>
    %c0_4 = arith.constant 0 : index
    %c0_5 = arith.constant 0 : index
    %c0_6 = arith.constant 0 : index
    %6 = vector.load %arg3[%c0_4, %c0_5, %c0_6] : memref<3x64x128xf32, #tpu.memory_space<vmem>>, vector<1x64x128xf32>
    %7 = vector.shape_cast %6 : vector<1x64x128xf32> to vector<64x128xf32>
    %cst_7 = arith.constant dense<0.000000e+00> : vector<16x128xf32>
    %8 = tpu.matmul %5, %7, %cst_7 {dimension_numbers = #tpu.dot_dimension_numbers<[1], [0], [0], [1], [0, 0, 1, 1], [], []>} : vector<16x64xf32>, vector<64x128xf32>, vector<16x128xf32> -> vector<16x128xf32>
    %9 = arith.addf %3, %8 : vector<16x128xf32>
    %c0_8 = arith.constant 0 : index
    %c1 = arith.constant 1 : index
    %c0_9 = arith.constant 0 : index
    %10 = vector.load %arg1[%c0_8, %c1, %c0_9] : memref<1x18x64xf32, #tpu.memory_space<vmem>>, vector<1x16x64xf32>
    %11 = vector.shape_cast %10 : vector<1x16x64xf32> to vector<16x64xf32>
    %c1_10 = arith.constant 1 : index
    %c0_11 = arith.constant 0 : index
    %c0_12 = arith.constant 0 : index
    %12 = vector.load %arg3[%c1_10, %c0_11, %c0_12] : memref<3x64x128xf32, #tpu.memory_space<vmem>>, vector<1x64x128xf32>
    %13 = vector.shape_cast %12 : vector<1x64x128xf32> to vector<64x128xf32>
    %cst_13 = arith.constant dense<0.000000e+00> : vector<16x128xf32>
    %14 = tpu.matmul %11, %13, %cst_13 {dimension_numbers = #tpu.dot_dimension_numbers<[1], [0], [0], [1], [0, 0, 1, 1], [], []>} : vector<16x64xf32>, vector<64x128xf32>, vector<16x128xf32> -> vector<16x128xf32>
    %15 = arith.addf %9, %14 : vector<16x128xf32>
    %c0_14 = arith.constant 0 : index
    %c2 = arith.constant 2 : index
    %c0_15 = arith.constant 0 : index
    %16 = vector.load %arg1[%c0_14, %c2, %c0_15] : memref<1x18x64xf32, #tpu.memory_space<vmem>>, vector<1x16x64xf32>
    %17 = vector.shape_cast %16 : vector<1x16x64xf32> to vector<16x64xf32>
    %c2_16 = arith.constant 2 : index
    %c0_17 = arith.constant 0 : index
    %c0_18 = arith.constant 0 : index
    %18 = vector.load %arg3[%c2_16, %c0_17, %c0_18] : memref<3x64x128xf32, #tpu.memory_space<vmem>>, vector<1x64x128xf32>
    %19 = vector.shape_cast %18 : vector<1x64x128xf32> to vector<64x128xf32>
    %cst_19 = arith.constant dense<0.000000e+00> : vector<16x128xf32>
    %20 = tpu.matmul %17, %19, %cst_19 {dimension_numbers = #tpu.dot_dimension_numbers<[1], [0], [0], [1], [0, 0, 1, 1], [], []>} : vector<16x64xf32>, vector<64x128xf32>, vector<16x128xf32> -> vector<16x128xf32>
    %21 = arith.addf %15, %20 : vector<16x128xf32>
    %c0_20 = arith.constant 0 : index
    %c0_21 = arith.constant 0 : index
    %c0_22 = arith.constant 0 : index
    %22 = vector.load %arg2[%c0_20, %c0_21, %c0_22] : memref<1x18x64xf32, #tpu.memory_space<vmem>>, vector<1x16x64xf32>
    %23 = vector.shape_cast %22 : vector<1x16x64xf32> to vector<16x64xf32>
    %c0_23 = arith.constant 0 : index
    %c0_24 = arith.constant 0 : index
    %c0_25 = arith.constant 0 : index
    %24 = vector.load %arg4[%c0_23, %c0_24, %c0_25] : memref<3x64x128xf32, #tpu.memory_space<vmem>>, vector<1x64x128xf32>
    %25 = vector.shape_cast %24 : vector<1x64x128xf32> to vector<64x128xf32>
    %cst_26 = arith.constant dense<0.000000e+00> : vector<16x128xf32>
    %26 = tpu.matmul %23, %25, %cst_26 {dimension_numbers = #tpu.dot_dimension_numbers<[1], [0], [0], [1], [0, 0, 1, 1], [], []>} : vector<16x64xf32>, vector<64x128xf32>, vector<16x128xf32> -> vector<16x128xf32>
    %27 = arith.addf %21, %26 : vector<16x128xf32>
    %c0_27 = arith.constant 0 : index
    %c1_28 = arith.constant 1 : index
    %c0_29 = arith.constant 0 : index
    %28 = vector.load %arg2[%c0_27, %c1_28, %c0_29] : memref<1x18x64xf32, #tpu.memory_space<vmem>>, vector<1x16x64xf32>
    %29 = vector.shape_cast %28 : vector<1x16x64xf32> to vector<16x64xf32>
    %c1_30 = arith.constant 1 : index
    %c0_31 = arith.constant 0 : index
    %c0_32 = arith.constant 0 : index
    %30 = vector.load %arg4[%c1_30, %c0_31, %c0_32] : memref<3x64x128xf32, #tpu.memory_space<vmem>>, vector<1x64x128xf32>
    %31 = vector.shape_cast %30 : vector<1x64x128xf32> to vector<64x128xf32>
    %cst_33 = arith.constant dense<0.000000e+00> : vector<16x128xf32>
    %32 = tpu.matmul %29, %31, %cst_33 {dimension_numbers = #tpu.dot_dimension_numbers<[1], [0], [0], [1], [0, 0, 1, 1], [], []>} : vector<16x64xf32>, vector<64x128xf32>, vector<16x128xf32> -> vector<16x128xf32>
    %33 = arith.addf %27, %32 : vector<16x128xf32>
    %c0_34 = arith.constant 0 : index
    %c2_35 = arith.constant 2 : index
    %c0_36 = arith.constant 0 : index
    %34 = vector.load %arg2[%c0_34, %c2_35, %c0_36] : memref<1x18x64xf32, #tpu.memory_space<vmem>>, vector<1x16x64xf32>
    %35 = vector.shape_cast %34 : vector<1x16x64xf32> to vector<16x64xf32>
    %c2_37 = arith.constant 2 : index
    %c0_38 = arith.constant 0 : index
    %c0_39 = arith.constant 0 : index
    %36 = vector.load %arg4[%c2_37, %c0_38, %c0_39] : memref<3x64x128xf32, #tpu.memory_space<vmem>>, vector<1x64x128xf32>
    %37 = vector.shape_cast %36 : vector<1x64x128xf32> to vector<64x128xf32>
    %cst_40 = arith.constant dense<0.000000e+00> : vector<16x128xf32>
    %38 = tpu.matmul %35, %37, %cst_40 {dimension_numbers = #tpu.dot_dimension_numbers<[1], [0], [0], [1], [0, 0, 1, 1], [], []>} : vector<16x64xf32>, vector<64x128xf32>, vector<16x128xf32> -> vector<16x128xf32>
    %39 = arith.addf %33, %38 : vector<16x128xf32>
    %40 = vector.shape_cast %39 : vector<16x128xf32> to vector<1x16x128xf32>
    %c0_41 = arith.constant 0 : index
    %c0_42 = arith.constant 0 : index
    %c0_43 = arith.constant 0 : index
    %41 = vector.load %arg6[%c0_41, %c0_42, %c0_43] : memref<1x16x128xf32, #tpu.memory_space<vmem>>, vector<1x16x128xf32>
    tpu.vector_store %arg6[%c0_41, %c0_42, %c0_43], %40 {strides = array<i32>} : memref<1x16x128xf32, #tpu.memory_space<vmem>>, vector<1x16x128xf32>,
    return
  }
  func.func @transform_0(%arg0: i32) -> (i32, i32, i32) {
    %c0_i32 = arith.constant 0 : i32
    %c0_i32_0 = arith.constant 0 : i32
    %c0_i32_1 = arith.constant 0 : i32
    return %arg0, %c0_i32, %c0_i32_0 : i32, i32, i32
  }
  func.func @transform_1(%arg0: i32) -> (i32, i32, i32) {
    %c0_i32 = arith.constant 0 : i32
    %c0_i32_0 = arith.constant 0 : i32
    %c0_i32_1 = arith.constant 0 : i32
    return %arg0, %c0_i32, %c0_i32_0 : i32, i32, i32
  }
  func.func @transform_2(%arg0: i32) -> (i32, i32, i32) {
    %c0_i32 = arith.constant 0 : i32
    %c0_i32_0 = arith.constant 0 : i32
    %c0_i32_1 = arith.constant 0 : i32
    %c0_i32_2 = arith.constant 0 : i32
    return %c0_i32, %c0_i32_0, %c0_i32_1 : i32, i32, i32
  }
  func.func @transform_3(%arg0: i32) -> (i32, i32, i32) {
    %c0_i32 = arith.constant 0 : i32
    %c0_i32_0 = arith.constant 0 : i32
    %c0_i32_1 = arith.constant 0 : i32
    %c0_i32_2 = arith.constant 0 : i32
    return %c0_i32, %c0_i32_0, %c0_i32_1 : i32, i32, i32
  }
  func.func @transform_4(%arg0: i32) -> (i32, i32) {
    %c0_i32 = arith.constant 0 : i32
    %c0_i32_0 = arith.constant 0 : i32
    %c0_i32_1 = arith.constant 0 : i32
    return %c0_i32, %c0_i32_0 : i32, i32
  }
  func.func @transform_5(%arg0: i32) -> (i32, i32, i32) {
    %c0_i32 = arith.constant 0 : i32
    %c0_i32_0 = arith.constant 0 : i32
    %c0_i32_1 = arith.constant 0 : i32
    return %arg0, %c0_i32, %c0_i32_0 : i32, i32, i32
  }
}

module attributes {stable_mosaic.version = 11 : i64} {
  func.func @kernel(%arg0: i32, %arg1: memref<1x34x256xf32, #tpu.memory_space<vmem>>, %arg2: memref<3x256x256xf32, #tpu.memory_space<vmem>>, %arg3: memref<1x256xf32, #tpu.memory_space<vmem>>, %arg4: memref<1x32x256xf32, #tpu.memory_space<vmem>>) attributes {dimension_semantics = [#tpu.dimension_semantics<parallel>], iteration_bounds = array<i64: 2>, scalar_prefetch = 0 : i64, scratch_operands = 0 : i64, tpu.core_type = #tpu.core_type<tc>, window_params = [{transform_indices = @transform_0, window_bounds = array<i64: 1, 34, 256>}, {pipeline_mode = #tpu.pipeline_mode<synchronous>, transform_indices = @transform_1, window_bounds = array<i64: 3, 256, 256>}, {pipeline_mode = #tpu.pipeline_mode<synchronous>, transform_indices = @transform_2, window_bounds = array<i64: 1, 256>}, {transform_indices = @transform_3, window_bounds = array<i64: 1, 32, 256>}]} {
    %cst = arith.constant 0.000000e+00 : f32
    %0 = vector.broadcast %cst : f32 to vector<32x256xf32>
    %c0 = arith.constant 0 : index
    %c0_0 = arith.constant 0 : index
    %1 = vector.load %arg3[%c0, %c0_0] : memref<1x256xf32, #tpu.memory_space<vmem>>, vector<1x256xf32>
    %2 = vector.broadcast %1 : vector<1x256xf32> to vector<32x256xf32>
    %3 = arith.addf %0, %2 : vector<32x256xf32>
    %c0_1 = arith.constant 0 : index
    %c0_2 = arith.constant 0 : index
    %c0_3 = arith.constant 0 : index
    %4 = vector.load %arg1[%c0_1, %c0_2, %c0_3] : memref<1x34x256xf32, #tpu.memory_space<vmem>>, vector<1x32x256xf32>
    %5 = vector.shape_cast %4 : vector<1x32x256xf32> to vector<32x256xf32>
    %c0_4 = arith.constant 0 : index
    %c0_5 = arith.constant 0 : index
    %c0_6 = arith.constant 0 : index
    %6 = vector.load %arg2[%c0_4, %c0_5, %c0_6] : memref<3x256x256xf32, #tpu.memory_space<vmem>>, vector<1x256x256xf32>
    %7 = vector.shape_cast %6 : vector<1x256x256xf32> to vector<256x256xf32>
    %cst_7 = arith.constant dense<0.000000e+00> : vector<32x256xf32>
    %8 = tpu.matmul %5, %7, %cst_7 {dimension_numbers = #tpu.dot_dimension_numbers<[1], [0], [0], [1], [0, 0, 1, 1], [], []>} : vector<32x256xf32>, vector<256x256xf32>, vector<32x256xf32> -> vector<32x256xf32>
    %9 = arith.addf %3, %8 : vector<32x256xf32>
    %c0_8 = arith.constant 0 : index
    %c1 = arith.constant 1 : index
    %c0_9 = arith.constant 0 : index
    %10 = vector.load %arg1[%c0_8, %c1, %c0_9] : memref<1x34x256xf32, #tpu.memory_space<vmem>>, vector<1x32x256xf32>
    %11 = vector.shape_cast %10 : vector<1x32x256xf32> to vector<32x256xf32>
    %c1_10 = arith.constant 1 : index
    %c0_11 = arith.constant 0 : index
    %c0_12 = arith.constant 0 : index
    %12 = vector.load %arg2[%c1_10, %c0_11, %c0_12] : memref<3x256x256xf32, #tpu.memory_space<vmem>>, vector<1x256x256xf32>
    %13 = vector.shape_cast %12 : vector<1x256x256xf32> to vector<256x256xf32>
    %cst_13 = arith.constant dense<0.000000e+00> : vector<32x256xf32>
    %14 = tpu.matmul %11, %13, %cst_13 {dimension_numbers = #tpu.dot_dimension_numbers<[1], [0], [0], [1], [0, 0, 1, 1], [], []>} : vector<32x256xf32>, vector<256x256xf32>, vector<32x256xf32> -> vector<32x256xf32>
    %15 = arith.addf %9, %14 : vector<32x256xf32>
    %c0_14 = arith.constant 0 : index
    %c2 = arith.constant 2 : index
    %c0_15 = arith.constant 0 : index
    %16 = vector.load %arg1[%c0_14, %c2, %c0_15] : memref<1x34x256xf32, #tpu.memory_space<vmem>>, vector<1x32x256xf32>
    %17 = vector.shape_cast %16 : vector<1x32x256xf32> to vector<32x256xf32>
    %c2_16 = arith.constant 2 : index
    %c0_17 = arith.constant 0 : index
    %c0_18 = arith.constant 0 : index
    %18 = vector.load %arg2[%c2_16, %c0_17, %c0_18] : memref<3x256x256xf32, #tpu.memory_space<vmem>>, vector<1x256x256xf32>
    %19 = vector.shape_cast %18 : vector<1x256x256xf32> to vector<256x256xf32>
    %cst_19 = arith.constant dense<0.000000e+00> : vector<32x256xf32>
    %20 = tpu.matmul %17, %19, %cst_19 {dimension_numbers = #tpu.dot_dimension_numbers<[1], [0], [0], [1], [0, 0, 1, 1], [], []>} : vector<32x256xf32>, vector<256x256xf32>, vector<32x256xf32> -> vector<32x256xf32>
    %21 = arith.addf %15, %20 : vector<32x256xf32>
    %22 = vector.shape_cast %21 : vector<32x256xf32> to vector<1x32x256xf32>
    %c0_20 = arith.constant 0 : index
    %c0_21 = arith.constant 0 : index
    %c0_22 = arith.constant 0 : index
    %23 = vector.load %arg4[%c0_20, %c0_21, %c0_22] : memref<1x32x256xf32, #tpu.memory_space<vmem>>, vector<1x32x256xf32>
    tpu.vector_store %arg4[%c0_20, %c0_21, %c0_22], %22 {strides = array<i32>} : memref<1x32x256xf32, #tpu.memory_space<vmem>>, vector<1x32x256xf32>,
    return
  }
  func.func @transform_0(%arg0: i32) -> (i32, i32, i32) {
    %c0_i32 = arith.constant 0 : i32
    %c0_i32_0 = arith.constant 0 : i32
    %c0_i32_1 = arith.constant 0 : i32
    return %arg0, %c0_i32, %c0_i32_0 : i32, i32, i32
  }
  func.func @transform_1(%arg0: i32) -> (i32, i32, i32) {
    %c0_i32 = arith.constant 0 : i32
    %c0_i32_0 = arith.constant 0 : i32
    %c0_i32_1 = arith.constant 0 : i32
    %c0_i32_2 = arith.constant 0 : i32
    return %c0_i32, %c0_i32_0, %c0_i32_1 : i32, i32, i32
  }
  func.func @transform_2(%arg0: i32) -> (i32, i32) {
    %c0_i32 = arith.constant 0 : i32
    %c0_i32_0 = arith.constant 0 : i32
    %c0_i32_1 = arith.constant 0 : i32
    return %c0_i32, %c0_i32_0 : i32, i32
  }
  func.func @transform_3(%arg0: i32) -> (i32, i32, i32) {
    %c0_i32 = arith.constant 0 : i32
    %c0_i32_0 = arith.constant 0 : i32
    %c0_i32_1 = arith.constant 0 : i32
    return %arg0, %c0_i32, %c0_i32_0 : i32, i32, i32
  }
}

module attributes {stable_mosaic.version = 11 : i64} {
  func.func @kernel(%arg0: i32, %arg1: memref<1x34x128xf32, #tpu.memory_space<vmem>>, %arg2: memref<1x34x128xf32, #tpu.memory_space<vmem>>, %arg3: memref<1x32x128xf32, #tpu.memory_space<vmem>>, %arg4: memref<3x128x128xf32, #tpu.memory_space<vmem>>, %arg5: memref<3x128x128xf32, #tpu.memory_space<vmem>>, %arg6: memref<1x128xf32, #tpu.memory_space<vmem>>, %arg7: memref<1x128xf32, #tpu.memory_space<vmem>>, %arg8: memref<1x32x128xf32, #tpu.memory_space<vmem>>) attributes {dimension_semantics = [#tpu.dimension_semantics<parallel>], iteration_bounds = array<i64: 2>, scalar_prefetch = 0 : i64, scratch_operands = 0 : i64, tpu.core_type = #tpu.core_type<tc>, window_params = [{transform_indices = @transform_0, window_bounds = array<i64: 1, 34, 128>}, {transform_indices = @transform_1, window_bounds = array<i64: 1, 34, 128>}, {transform_indices = @transform_2, window_bounds = array<i64: 1, 32, 128>}, {pipeline_mode = #tpu.pipeline_mode<synchronous>, transform_indices = @transform_3, window_bounds = array<i64: 3, 128, 128>}, {pipeline_mode = #tpu.pipeline_mode<synchronous>, transform_indices = @transform_4, window_bounds = array<i64: 3, 128, 128>}, {pipeline_mode = #tpu.pipeline_mode<synchronous>, transform_indices = @transform_5, window_bounds = array<i64: 1, 128>}, {pipeline_mode = #tpu.pipeline_mode<synchronous>, transform_indices = @transform_6, window_bounds = array<i64: 1, 128>}, {transform_indices = @transform_7, window_bounds = array<i64: 1, 32, 128>}]} {
    %cst = arith.constant 0.000000e+00 : f32
    %0 = vector.broadcast %cst : f32 to vector<32x128xf32>
    %c0 = arith.constant 0 : index
    %c0_0 = arith.constant 0 : index
    %1 = vector.load %arg6[%c0, %c0_0] : memref<1x128xf32, #tpu.memory_space<vmem>>, vector<1x128xf32>
    %2 = vector.broadcast %1 : vector<1x128xf32> to vector<32x128xf32>
    %3 = arith.addf %0, %2 : vector<32x128xf32>
    %c0_1 = arith.constant 0 : index
    %c0_2 = arith.constant 0 : index
    %c0_3 = arith.constant 0 : index
    %4 = vector.load %arg1[%c0_1, %c0_2, %c0_3] : memref<1x34x128xf32, #tpu.memory_space<vmem>>, vector<1x32x128xf32>
    %5 = vector.shape_cast %4 : vector<1x32x128xf32> to vector<32x128xf32>
    %c0_4 = arith.constant 0 : index
    %c0_5 = arith.constant 0 : index
    %c0_6 = arith.constant 0 : index
    %6 = vector.load %arg4[%c0_4, %c0_5, %c0_6] : memref<3x128x128xf32, #tpu.memory_space<vmem>>, vector<1x128x128xf32>
    %7 = vector.shape_cast %6 : vector<1x128x128xf32> to vector<128x128xf32>
    %cst_7 = arith.constant dense<0.000000e+00> : vector<32x128xf32>
    %8 = tpu.matmul %5, %7, %cst_7 {dimension_numbers = #tpu.dot_dimension_numbers<[1], [0], [0], [1], [0, 0, 1, 1], [], []>} : vector<32x128xf32>, vector<128x128xf32>, vector<32x128xf32> -> vector<32x128xf32>
    %9 = arith.addf %3, %8 : vector<32x128xf32>
    %c0_8 = arith.constant 0 : index
    %c1 = arith.constant 1 : index
    %c0_9 = arith.constant 0 : index
    %10 = vector.load %arg1[%c0_8, %c1, %c0_9] : memref<1x34x128xf32, #tpu.memory_space<vmem>>, vector<1x32x128xf32>
    %11 = vector.shape_cast %10 : vector<1x32x128xf32> to vector<32x128xf32>
    %c1_10 = arith.constant 1 : index
    %c0_11 = arith.constant 0 : index
    %c0_12 = arith.constant 0 : index
    %12 = vector.load %arg4[%c1_10, %c0_11, %c0_12] : memref<3x128x128xf32, #tpu.memory_space<vmem>>, vector<1x128x128xf32>
    %13 = vector.shape_cast %12 : vector<1x128x128xf32> to vector<128x128xf32>
    %cst_13 = arith.constant dense<0.000000e+00> : vector<32x128xf32>
    %14 = tpu.matmul %11, %13, %cst_13 {dimension_numbers = #tpu.dot_dimension_numbers<[1], [0], [0], [1], [0, 0, 1, 1], [], []>} : vector<32x128xf32>, vector<128x128xf32>, vector<32x128xf32> -> vector<32x128xf32>
    %15 = arith.addf %9, %14 : vector<32x128xf32>
    %c0_14 = arith.constant 0 : index
    %c2 = arith.constant 2 : index
    %c0_15 = arith.constant 0 : index
    %16 = vector.load %arg1[%c0_14, %c2, %c0_15] : memref<1x34x128xf32, #tpu.memory_space<vmem>>, vector<1x32x128xf32>
    %17 = vector.shape_cast %16 : vector<1x32x128xf32> to vector<32x128xf32>
    %c2_16 = arith.constant 2 : index
    %c0_17 = arith.constant 0 : index
    %c0_18 = arith.constant 0 : index
    %18 = vector.load %arg4[%c2_16, %c0_17, %c0_18] : memref<3x128x128xf32, #tpu.memory_space<vmem>>, vector<1x128x128xf32>
    %19 = vector.shape_cast %18 : vector<1x128x128xf32> to vector<128x128xf32>
    %cst_19 = arith.constant dense<0.000000e+00> : vector<32x128xf32>
    %20 = tpu.matmul %17, %19, %cst_19 {dimension_numbers = #tpu.dot_dimension_numbers<[1], [0], [0], [1], [0, 0, 1, 1], [], []>} : vector<32x128xf32>, vector<128x128xf32>, vector<32x128xf32> -> vector<32x128xf32>
    %21 = arith.addf %15, %20 : vector<32x128xf32>
    %cst_20 = arith.constant 0.000000e+00 : f32
    %22 = vector.broadcast %cst_20 : f32 to vector<32x128xf32>
    %c0_21 = arith.constant 0 : index
    %c0_22 = arith.constant 0 : index
    %23 = vector.load %arg7[%c0_21, %c0_22] : memref<1x128xf32, #tpu.memory_space<vmem>>, vector<1x128xf32>
    %24 = vector.broadcast %23 : vector<1x128xf32> to vector<32x128xf32>
    %25 = arith.addf %22, %24 : vector<32x128xf32>
    %c0_23 = arith.constant 0 : index
    %c0_24 = arith.constant 0 : index
    %c0_25 = arith.constant 0 : index
    %26 = vector.load %arg2[%c0_23, %c0_24, %c0_25] : memref<1x34x128xf32, #tpu.memory_space<vmem>>, vector<1x32x128xf32>
    %27 = vector.shape_cast %26 : vector<1x32x128xf32> to vector<32x128xf32>
    %c0_26 = arith.constant 0 : index
    %c0_27 = arith.constant 0 : index
    %c0_28 = arith.constant 0 : index
    %28 = vector.load %arg5[%c0_26, %c0_27, %c0_28] : memref<3x128x128xf32, #tpu.memory_space<vmem>>, vector<1x128x128xf32>
    %29 = vector.shape_cast %28 : vector<1x128x128xf32> to vector<128x128xf32>
    %cst_29 = arith.constant dense<0.000000e+00> : vector<32x128xf32>
    %30 = tpu.matmul %27, %29, %cst_29 {dimension_numbers = #tpu.dot_dimension_numbers<[1], [0], [0], [1], [0, 0, 1, 1], [], []>} : vector<32x128xf32>, vector<128x128xf32>, vector<32x128xf32> -> vector<32x128xf32>
    %31 = arith.addf %25, %30 : vector<32x128xf32>
    %c0_30 = arith.constant 0 : index
    %c1_31 = arith.constant 1 : index
    %c0_32 = arith.constant 0 : index
    %32 = vector.load %arg2[%c0_30, %c1_31, %c0_32] : memref<1x34x128xf32, #tpu.memory_space<vmem>>, vector<1x32x128xf32>
    %33 = vector.shape_cast %32 : vector<1x32x128xf32> to vector<32x128xf32>
    %c1_33 = arith.constant 1 : index
    %c0_34 = arith.constant 0 : index
    %c0_35 = arith.constant 0 : index
    %34 = vector.load %arg5[%c1_33, %c0_34, %c0_35] : memref<3x128x128xf32, #tpu.memory_space<vmem>>, vector<1x128x128xf32>
    %35 = vector.shape_cast %34 : vector<1x128x128xf32> to vector<128x128xf32>
    %cst_36 = arith.constant dense<0.000000e+00> : vector<32x128xf32>
    %36 = tpu.matmul %33, %35, %cst_36 {dimension_numbers = #tpu.dot_dimension_numbers<[1], [0], [0], [1], [0, 0, 1, 1], [], []>} : vector<32x128xf32>, vector<128x128xf32>, vector<32x128xf32> -> vector<32x128xf32>
    %37 = arith.addf %31, %36 : vector<32x128xf32>
    %c0_37 = arith.constant 0 : index
    %c2_38 = arith.constant 2 : index
    %c0_39 = arith.constant 0 : index
    %38 = vector.load %arg2[%c0_37, %c2_38, %c0_39] : memref<1x34x128xf32, #tpu.memory_space<vmem>>, vector<1x32x128xf32>
    %39 = vector.shape_cast %38 : vector<1x32x128xf32> to vector<32x128xf32>
    %c2_40 = arith.constant 2 : index
    %c0_41 = arith.constant 0 : index
    %c0_42 = arith.constant 0 : index
    %40 = vector.load %arg5[%c2_40, %c0_41, %c0_42] : memref<3x128x128xf32, #tpu.memory_space<vmem>>, vector<1x128x128xf32>
    %41 = vector.shape_cast %40 : vector<1x128x128xf32> to vector<128x128xf32>
    %cst_43 = arith.constant dense<0.000000e+00> : vector<32x128xf32>
    %42 = tpu.matmul %39, %41, %cst_43 {dimension_numbers = #tpu.dot_dimension_numbers<[1], [0], [0], [1], [0, 0, 1, 1], [], []>} : vector<32x128xf32>, vector<128x128xf32>, vector<32x128xf32> -> vector<32x128xf32>
    %43 = arith.addf %37, %42 : vector<32x128xf32>
    %44 = arith.mulf %21, %43 : vector<32x128xf32>
    %c0_44 = arith.constant 0 : index
    %c0_45 = arith.constant 0 : index
    %c0_46 = arith.constant 0 : index
    %45 = vector.load %arg3[%c0_44, %c0_45, %c0_46] : memref<1x32x128xf32, #tpu.memory_space<vmem>>, vector<1x32x128xf32>
    %46 = vector.shape_cast %45 : vector<1x32x128xf32> to vector<32x128xf32>
    %47 = arith.mulf %44, %46 : vector<32x128xf32>
    %48 = vector.shape_cast %47 : vector<32x128xf32> to vector<1x32x128xf32>
    %c0_47 = arith.constant 0 : index
    %c0_48 = arith.constant 0 : index
    %c0_49 = arith.constant 0 : index
    %49 = vector.load %arg8[%c0_47, %c0_48, %c0_49] : memref<1x32x128xf32, #tpu.memory_space<vmem>>, vector<1x32x128xf32>
    tpu.vector_store %arg8[%c0_47, %c0_48, %c0_49], %48 {strides = array<i32>} : memref<1x32x128xf32, #tpu.memory_space<vmem>>, vector<1x32x128xf32>,
    return
  }
  func.func @transform_0(%arg0: i32) -> (i32, i32, i32) {
    %c0_i32 = arith.constant 0 : i32
    %c0_i32_0 = arith.constant 0 : i32
    %c0_i32_1 = arith.constant 0 : i32
    return %arg0, %c0_i32, %c0_i32_0 : i32, i32, i32
  }
  func.func @transform_1(%arg0: i32) -> (i32, i32, i32) {
    %c0_i32 = arith.constant 0 : i32
    %c0_i32_0 = arith.constant 0 : i32
    %c0_i32_1 = arith.constant 0 : i32
    return %arg0, %c0_i32, %c0_i32_0 : i32, i32, i32
  }
  func.func @transform_2(%arg0: i32) -> (i32, i32, i32) {
    %c0_i32 = arith.constant 0 : i32
    %c0_i32_0 = arith.constant 0 : i32
    %c0_i32_1 = arith.constant 0 : i32
    return %arg0, %c0_i32, %c0_i32_0 : i32, i32, i32
  }
  func.func @transform_3(%arg0: i32) -> (i32, i32, i32) {
    %c0_i32 = arith.constant 0 : i32
    %c0_i32_0 = arith.constant 0 : i32
    %c0_i32_1 = arith.constant 0 : i32
    %c0_i32_2 = arith.constant 0 : i32
    return %c0_i32, %c0_i32_0, %c0_i32_1 : i32, i32, i32
  }
  func.func @transform_4(%arg0: i32) -> (i32, i32, i32) {
    %c0_i32 = arith.constant 0 : i32
    %c0_i32_0 = arith.constant 0 : i32
    %c0_i32_1 = arith.constant 0 : i32
    %c0_i32_2 = arith.constant 0 : i32
    return %c0_i32, %c0_i32_0, %c0_i32_1 : i32, i32, i32
  }
  func.func @transform_5(%arg0: i32) -> (i32, i32) {
    %c0_i32 = arith.constant 0 : i32
    %c0_i32_0 = arith.constant 0 : i32
    %c0_i32_1 = arith.constant 0 : i32
    return %c0_i32, %c0_i32_0 : i32, i32
  }
  func.func @transform_6(%arg0: i32) -> (i32, i32) {
    %c0_i32 = arith.constant 0 : i32
    %c0_i32_0 = arith.constant 0 : i32
    %c0_i32_1 = arith.constant 0 : i32
    return %c0_i32, %c0_i32_0 : i32, i32
  }
  func.func @transform_7(%arg0: i32) -> (i32, i32, i32) {
    %c0_i32 = arith.constant 0 : i32
    %c0_i32_0 = arith.constant 0 : i32
    %c0_i32_1 = arith.constant 0 : i32
    return %arg0, %c0_i32, %c0_i32_0 : i32, i32, i32
  }
}

module attributes {stable_mosaic.version = 11 : i64} {
  func.func @kernel(%arg0: i32, %arg1: memref<1x34x128xf32, #tpu.memory_space<vmem>>, %arg2: memref<1x34x256xf32, #tpu.memory_space<vmem>>, %arg3: memref<3x128x384xf32, #tpu.memory_space<vmem>>, %arg4: memref<3x256x384xf32, #tpu.memory_space<vmem>>, %arg5: memref<1x384xf32, #tpu.memory_space<vmem>>, %arg6: memref<1x32x384xf32, #tpu.memory_space<vmem>>) attributes {dimension_semantics = [#tpu.dimension_semantics<parallel>], iteration_bounds = array<i64: 2>, scalar_prefetch = 0 : i64, scratch_operands = 0 : i64, tpu.core_type = #tpu.core_type<tc>, window_params = [{transform_indices = @transform_0, window_bounds = array<i64: 1, 34, 128>}, {transform_indices = @transform_1, window_bounds = array<i64: 1, 34, 256>}, {pipeline_mode = #tpu.pipeline_mode<synchronous>, transform_indices = @transform_2, window_bounds = array<i64: 3, 128, 384>}, {pipeline_mode = #tpu.pipeline_mode<synchronous>, transform_indices = @transform_3, window_bounds = array<i64: 3, 256, 384>}, {pipeline_mode = #tpu.pipeline_mode<synchronous>, transform_indices = @transform_4, window_bounds = array<i64: 1, 384>}, {transform_indices = @transform_5, window_bounds = array<i64: 1, 32, 384>}]} {
    %cst = arith.constant 0.000000e+00 : f32
    %0 = vector.broadcast %cst : f32 to vector<32x384xf32>
    %c0 = arith.constant 0 : index
    %c0_0 = arith.constant 0 : index
    %1 = vector.load %arg5[%c0, %c0_0] : memref<1x384xf32, #tpu.memory_space<vmem>>, vector<1x384xf32>
    %2 = vector.broadcast %1 : vector<1x384xf32> to vector<32x384xf32>
    %3 = arith.addf %0, %2 : vector<32x384xf32>
    %c0_1 = arith.constant 0 : index
    %c0_2 = arith.constant 0 : index
    %c0_3 = arith.constant 0 : index
    %4 = vector.load %arg1[%c0_1, %c0_2, %c0_3] : memref<1x34x128xf32, #tpu.memory_space<vmem>>, vector<1x32x128xf32>
    %5 = vector.shape_cast %4 : vector<1x32x128xf32> to vector<32x128xf32>
    %c0_4 = arith.constant 0 : index
    %c0_5 = arith.constant 0 : index
    %c0_6 = arith.constant 0 : index
    %6 = vector.load %arg3[%c0_4, %c0_5, %c0_6] : memref<3x128x384xf32, #tpu.memory_space<vmem>>, vector<1x128x384xf32>
    %7 = vector.shape_cast %6 : vector<1x128x384xf32> to vector<128x384xf32>
    %cst_7 = arith.constant dense<0.000000e+00> : vector<32x384xf32>
    %8 = tpu.matmul %5, %7, %cst_7 {dimension_numbers = #tpu.dot_dimension_numbers<[1], [0], [0], [1], [0, 0, 1, 1], [], []>} : vector<32x128xf32>, vector<128x384xf32>, vector<32x384xf32> -> vector<32x384xf32>
    %9 = arith.addf %3, %8 : vector<32x384xf32>
    %c0_8 = arith.constant 0 : index
    %c1 = arith.constant 1 : index
    %c0_9 = arith.constant 0 : index
    %10 = vector.load %arg1[%c0_8, %c1, %c0_9] : memref<1x34x128xf32, #tpu.memory_space<vmem>>, vector<1x32x128xf32>
    %11 = vector.shape_cast %10 : vector<1x32x128xf32> to vector<32x128xf32>
    %c1_10 = arith.constant 1 : index
    %c0_11 = arith.constant 0 : index
    %c0_12 = arith.constant 0 : index
    %12 = vector.load %arg3[%c1_10, %c0_11, %c0_12] : memref<3x128x384xf32, #tpu.memory_space<vmem>>, vector<1x128x384xf32>
    %13 = vector.shape_cast %12 : vector<1x128x384xf32> to vector<128x384xf32>
    %cst_13 = arith.constant dense<0.000000e+00> : vector<32x384xf32>
    %14 = tpu.matmul %11, %13, %cst_13 {dimension_numbers = #tpu.dot_dimension_numbers<[1], [0], [0], [1], [0, 0, 1, 1], [], []>} : vector<32x128xf32>, vector<128x384xf32>, vector<32x384xf32> -> vector<32x384xf32>
    %15 = arith.addf %9, %14 : vector<32x384xf32>
    %c0_14 = arith.constant 0 : index
    %c2 = arith.constant 2 : index
    %c0_15 = arith.constant 0 : index
    %16 = vector.load %arg1[%c0_14, %c2, %c0_15] : memref<1x34x128xf32, #tpu.memory_space<vmem>>, vector<1x32x128xf32>
    %17 = vector.shape_cast %16 : vector<1x32x128xf32> to vector<32x128xf32>
    %c2_16 = arith.constant 2 : index
    %c0_17 = arith.constant 0 : index
    %c0_18 = arith.constant 0 : index
    %18 = vector.load %arg3[%c2_16, %c0_17, %c0_18] : memref<3x128x384xf32, #tpu.memory_space<vmem>>, vector<1x128x384xf32>
    %19 = vector.shape_cast %18 : vector<1x128x384xf32> to vector<128x384xf32>
    %cst_19 = arith.constant dense<0.000000e+00> : vector<32x384xf32>
    %20 = tpu.matmul %17, %19, %cst_19 {dimension_numbers = #tpu.dot_dimension_numbers<[1], [0], [0], [1], [0, 0, 1, 1], [], []>} : vector<32x128xf32>, vector<128x384xf32>, vector<32x384xf32> -> vector<32x384xf32>
    %21 = arith.addf %15, %20 : vector<32x384xf32>
    %c0_20 = arith.constant 0 : index
    %c0_21 = arith.constant 0 : index
    %c0_22 = arith.constant 0 : index
    %22 = vector.load %arg2[%c0_20, %c0_21, %c0_22] : memref<1x34x256xf32, #tpu.memory_space<vmem>>, vector<1x32x256xf32>
    %23 = vector.shape_cast %22 : vector<1x32x256xf32> to vector<32x256xf32>
    %c0_23 = arith.constant 0 : index
    %c0_24 = arith.constant 0 : index
    %c0_25 = arith.constant 0 : index
    %24 = vector.load %arg4[%c0_23, %c0_24, %c0_25] : memref<3x256x384xf32, #tpu.memory_space<vmem>>, vector<1x256x384xf32>
    %25 = vector.shape_cast %24 : vector<1x256x384xf32> to vector<256x384xf32>
    %cst_26 = arith.constant dense<0.000000e+00> : vector<32x384xf32>
    %26 = tpu.matmul %23, %25, %cst_26 {dimension_numbers = #tpu.dot_dimension_numbers<[1], [0], [0], [1], [0, 0, 1, 1], [], []>} : vector<32x256xf32>, vector<256x384xf32>, vector<32x384xf32> -> vector<32x384xf32>
    %27 = arith.addf %21, %26 : vector<32x384xf32>
    %c0_27 = arith.constant 0 : index
    %c1_28 = arith.constant 1 : index
    %c0_29 = arith.constant 0 : index
    %28 = vector.load %arg2[%c0_27, %c1_28, %c0_29] : memref<1x34x256xf32, #tpu.memory_space<vmem>>, vector<1x32x256xf32>
    %29 = vector.shape_cast %28 : vector<1x32x256xf32> to vector<32x256xf32>
    %c1_30 = arith.constant 1 : index
    %c0_31 = arith.constant 0 : index
    %c0_32 = arith.constant 0 : index
    %30 = vector.load %arg4[%c1_30, %c0_31, %c0_32] : memref<3x256x384xf32, #tpu.memory_space<vmem>>, vector<1x256x384xf32>
    %31 = vector.shape_cast %30 : vector<1x256x384xf32> to vector<256x384xf32>
    %cst_33 = arith.constant dense<0.000000e+00> : vector<32x384xf32>
    %32 = tpu.matmul %29, %31, %cst_33 {dimension_numbers = #tpu.dot_dimension_numbers<[1], [0], [0], [1], [0, 0, 1, 1], [], []>} : vector<32x256xf32>, vector<256x384xf32>, vector<32x384xf32> -> vector<32x384xf32>
    %33 = arith.addf %27, %32 : vector<32x384xf32>
    %c0_34 = arith.constant 0 : index
    %c2_35 = arith.constant 2 : index
    %c0_36 = arith.constant 0 : index
    %34 = vector.load %arg2[%c0_34, %c2_35, %c0_36] : memref<1x34x256xf32, #tpu.memory_space<vmem>>, vector<1x32x256xf32>
    %35 = vector.shape_cast %34 : vector<1x32x256xf32> to vector<32x256xf32>
    %c2_37 = arith.constant 2 : index
    %c0_38 = arith.constant 0 : index
    %c0_39 = arith.constant 0 : index
    %36 = vector.load %arg4[%c2_37, %c0_38, %c0_39] : memref<3x256x384xf32, #tpu.memory_space<vmem>>, vector<1x256x384xf32>
    %37 = vector.shape_cast %36 : vector<1x256x384xf32> to vector<256x384xf32>
    %cst_40 = arith.constant dense<0.000000e+00> : vector<32x384xf32>
    %38 = tpu.matmul %35, %37, %cst_40 {dimension_numbers = #tpu.dot_dimension_numbers<[1], [0], [0], [1], [0, 0, 1, 1], [], []>} : vector<32x256xf32>, vector<256x384xf32>, vector<32x384xf32> -> vector<32x384xf32>
    %39 = arith.addf %33, %38 : vector<32x384xf32>
    %40 = vector.shape_cast %39 : vector<32x384xf32> to vector<1x32x384xf32>
    %c0_41 = arith.constant 0 : index
    %c0_42 = arith.constant 0 : index
    %c0_43 = arith.constant 0 : index
    %41 = vector.load %arg6[%c0_41, %c0_42, %c0_43] : memref<1x32x384xf32, #tpu.memory_space<vmem>>, vector<1x32x384xf32>
    tpu.vector_store %arg6[%c0_41, %c0_42, %c0_43], %40 {strides = array<i32>} : memref<1x32x384xf32, #tpu.memory_space<vmem>>, vector<1x32x384xf32>,
    return
  }
  func.func @transform_0(%arg0: i32) -> (i32, i32, i32) {
    %c0_i32 = arith.constant 0 : i32
    %c0_i32_0 = arith.constant 0 : i32
    %c0_i32_1 = arith.constant 0 : i32
    return %arg0, %c0_i32, %c0_i32_0 : i32, i32, i32
  }
  func.func @transform_1(%arg0: i32) -> (i32, i32, i32) {
    %c0_i32 = arith.constant 0 : i32
    %c0_i32_0 = arith.constant 0 : i32
    %c0_i32_1 = arith.constant 0 : i32
    return %arg0, %c0_i32, %c0_i32_0 : i32, i32, i32
  }
  func.func @transform_2(%arg0: i32) -> (i32, i32, i32) {
    %c0_i32 = arith.constant 0 : i32
    %c0_i32_0 = arith.constant 0 : i32
    %c0_i32_1 = arith.constant 0 : i32
    %c0_i32_2 = arith.constant 0 : i32
    return %c0_i32, %c0_i32_0, %c0_i32_1 : i32, i32, i32
  }
  func.func @transform_3(%arg0: i32) -> (i32, i32, i32) {
    %c0_i32 = arith.constant 0 : i32
    %c0_i32_0 = arith.constant 0 : i32
    %c0_i32_1 = arith.constant 0 : i32
    %c0_i32_2 = arith.constant 0 : i32
    return %c0_i32, %c0_i32_0, %c0_i32_1 : i32, i32, i32
  }
  func.func @transform_4(%arg0: i32) -> (i32, i32) {
    %c0_i32 = arith.constant 0 : i32
    %c0_i32_0 = arith.constant 0 : i32
    %c0_i32_1 = arith.constant 0 : i32
    return %c0_i32, %c0_i32_0 : i32, i32
  }
  func.func @transform_5(%arg0: i32) -> (i32, i32, i32) {
    %c0_i32 = arith.constant 0 : i32
    %c0_i32_0 = arith.constant 0 : i32
    %c0_i32_1 = arith.constant 0 : i32
    return %arg0, %c0_i32, %c0_i32_0 : i32, i32, i32
  }
}

module attributes {stable_mosaic.version = 11 : i64} {
  func.func @kernel(%arg0: i32, %arg1: memref<1x34x384xf32, #tpu.memory_space<vmem>>, %arg2: memref<3x384x384xf32, #tpu.memory_space<vmem>>, %arg3: memref<1x384xf32, #tpu.memory_space<vmem>>, %arg4: memref<384x32xf32, #tpu.memory_space<vmem>>, %arg5: memref<1x1xf32, #tpu.memory_space<vmem>>, %arg6: memref<1x32x32xf32, #tpu.memory_space<vmem>>) attributes {dimension_semantics = [#tpu.dimension_semantics<parallel>], iteration_bounds = array<i64: 2>, scalar_prefetch = 0 : i64, scratch_operands = 0 : i64, tpu.core_type = #tpu.core_type<tc>, window_params = [{transform_indices = @transform_0, window_bounds = array<i64: 1, 34, 384>}, {pipeline_mode = #tpu.pipeline_mode<synchronous>, transform_indices = @transform_1, window_bounds = array<i64: 3, 384, 384>}, {pipeline_mode = #tpu.pipeline_mode<synchronous>, transform_indices = @transform_2, window_bounds = array<i64: 1, 384>}, {pipeline_mode = #tpu.pipeline_mode<synchronous>, transform_indices = @transform_3, window_bounds = array<i64: 384, 32>}, {pipeline_mode = #tpu.pipeline_mode<synchronous>, transform_indices = @transform_4, window_bounds = array<i64: 1, 1>}, {transform_indices = @transform_5, window_bounds = array<i64: 1, 32, 32>}]} {
    %cst = arith.constant 0.000000e+00 : f32
    %0 = vector.broadcast %cst : f32 to vector<32x384xf32>
    %c0 = arith.constant 0 : index
    %c0_0 = arith.constant 0 : index
    %1 = vector.load %arg3[%c0, %c0_0] : memref<1x384xf32, #tpu.memory_space<vmem>>, vector<1x384xf32>
    %2 = vector.broadcast %1 : vector<1x384xf32> to vector<32x384xf32>
    %3 = arith.addf %0, %2 : vector<32x384xf32>
    %c0_1 = arith.constant 0 : index
    %c0_2 = arith.constant 0 : index
    %c0_3 = arith.constant 0 : index
    %4 = vector.load %arg1[%c0_1, %c0_2, %c0_3] : memref<1x34x384xf32, #tpu.memory_space<vmem>>, vector<1x32x384xf32>
    %5 = vector.shape_cast %4 : vector<1x32x384xf32> to vector<32x384xf32>
    %c0_4 = arith.constant 0 : index
    %c0_5 = arith.constant 0 : index
    %c0_6 = arith.constant 0 : index
    %6 = vector.load %arg2[%c0_4, %c0_5, %c0_6] : memref<3x384x384xf32, #tpu.memory_space<vmem>>, vector<1x384x384xf32>
    %7 = vector.shape_cast %6 : vector<1x384x384xf32> to vector<384x384xf32>
    %cst_7 = arith.constant dense<0.000000e+00> : vector<32x384xf32>
    %8 = tpu.matmul %5, %7, %cst_7 {dimension_numbers = #tpu.dot_dimension_numbers<[1], [0], [0], [1], [0, 0, 1, 1], [], []>} : vector<32x384xf32>, vector<384x384xf32>, vector<32x384xf32> -> vector<32x384xf32>
    %9 = arith.addf %3, %8 : vector<32x384xf32>
    %c0_8 = arith.constant 0 : index
    %c1 = arith.constant 1 : index
    %c0_9 = arith.constant 0 : index
    %10 = vector.load %arg1[%c0_8, %c1, %c0_9] : memref<1x34x384xf32, #tpu.memory_space<vmem>>, vector<1x32x384xf32>
    %11 = vector.shape_cast %10 : vector<1x32x384xf32> to vector<32x384xf32>
    %c1_10 = arith.constant 1 : index
    %c0_11 = arith.constant 0 : index
    %c0_12 = arith.constant 0 : index
    %12 = vector.load %arg2[%c1_10, %c0_11, %c0_12] : memref<3x384x384xf32, #tpu.memory_space<vmem>>, vector<1x384x384xf32>
    %13 = vector.shape_cast %12 : vector<1x384x384xf32> to vector<384x384xf32>
    %cst_13 = arith.constant dense<0.000000e+00> : vector<32x384xf32>
    %14 = tpu.matmul %11, %13, %cst_13 {dimension_numbers = #tpu.dot_dimension_numbers<[1], [0], [0], [1], [0, 0, 1, 1], [], []>} : vector<32x384xf32>, vector<384x384xf32>, vector<32x384xf32> -> vector<32x384xf32>
    %15 = arith.addf %9, %14 : vector<32x384xf32>
    %c0_14 = arith.constant 0 : index
    %c2 = arith.constant 2 : index
    %c0_15 = arith.constant 0 : index
    %16 = vector.load %arg1[%c0_14, %c2, %c0_15] : memref<1x34x384xf32, #tpu.memory_space<vmem>>, vector<1x32x384xf32>
    %17 = vector.shape_cast %16 : vector<1x32x384xf32> to vector<32x384xf32>
    %c2_16 = arith.constant 2 : index
    %c0_17 = arith.constant 0 : index
    %c0_18 = arith.constant 0 : index
    %18 = vector.load %arg2[%c2_16, %c0_17, %c0_18] : memref<3x384x384xf32, #tpu.memory_space<vmem>>, vector<1x384x384xf32>
    %19 = vector.shape_cast %18 : vector<1x384x384xf32> to vector<384x384xf32>
    %cst_19 = arith.constant dense<0.000000e+00> : vector<32x384xf32>
    %20 = tpu.matmul %17, %19, %cst_19 {dimension_numbers = #tpu.dot_dimension_numbers<[1], [0], [0], [1], [0, 0, 1, 1], [], []>} : vector<32x384xf32>, vector<384x384xf32>, vector<32x384xf32> -> vector<32x384xf32>
    %21 = arith.addf %15, %20 : vector<32x384xf32>
    %c0_20 = arith.constant 0 : index
    %c0_21 = arith.constant 0 : index
    %22 = vector.load %arg4[%c0_20, %c0_21] : memref<384x32xf32, #tpu.memory_space<vmem>>, vector<384x32xf32>
    %cst_22 = arith.constant dense<0.000000e+00> : vector<32x32xf32>
    %23 = tpu.matmul %21, %22, %cst_22 {dimension_numbers = #tpu.dot_dimension_numbers<[1], [0], [0], [1], [0, 0, 1, 1], [], []>} : vector<32x384xf32>, vector<384x32xf32>, vector<32x32xf32> -> vector<32x32xf32>
    %c0_23 = arith.constant 0 : index
    %c0_24 = arith.constant 0 : index
    %24 = vector.load %arg5[%c0_23, %c0_24] : memref<1x1xf32, #tpu.memory_space<vmem>>, vector<1x1xf32>
    %25 = vector.broadcast %24 : vector<1x1xf32> to vector<32x32xf32>
    %26 = arith.addf %23, %25 : vector<32x32xf32>
    %27 = vector.shape_cast %26 : vector<32x32xf32> to vector<1x32x32xf32>
    %c0_25 = arith.constant 0 : index
    %c0_26 = arith.constant 0 : index
    %c0_27 = arith.constant 0 : index
    %28 = vector.load %arg6[%c0_25, %c0_26, %c0_27] : memref<1x32x32xf32, #tpu.memory_space<vmem>>, vector<1x32x32xf32>
    tpu.vector_store %arg6[%c0_25, %c0_26, %c0_27], %27 {strides = array<i32>} : memref<1x32x32xf32, #tpu.memory_space<vmem>>, vector<1x32x32xf32>,
    return
  }
  func.func @transform_0(%arg0: i32) -> (i32, i32, i32) {
    %c0_i32 = arith.constant 0 : i32
    %c0_i32_0 = arith.constant 0 : i32
    %c0_i32_1 = arith.constant 0 : i32
    return %arg0, %c0_i32, %c0_i32_0 : i32, i32, i32
  }
  func.func @transform_1(%arg0: i32) -> (i32, i32, i32) {
    %c0_i32 = arith.constant 0 : i32
    %c0_i32_0 = arith.constant 0 : i32
    %c0_i32_1 = arith.constant 0 : i32
    %c0_i32_2 = arith.constant 0 : i32
    return %c0_i32, %c0_i32_0, %c0_i32_1 : i32, i32, i32
  }
  func.func @transform_2(%arg0: i32) -> (i32, i32) {
    %c0_i32 = arith.constant 0 : i32
    %c0_i32_0 = arith.constant 0 : i32
    %c0_i32_1 = arith.constant 0 : i32
    return %c0_i32, %c0_i32_0 : i32, i32
  }
  func.func @transform_3(%arg0: i32) -> (i32, i32) {
    %c0_i32 = arith.constant 0 : i32
    %c0_i32_0 = arith.constant 0 : i32
    %c0_i32_1 = arith.constant 0 : i32
    return %c0_i32, %c0_i32_0 : i32, i32
  }
  func.func @transform_4(%arg0: i32) -> (i32, i32) {
    %c0_i32 = arith.constant 0 : i32
    %c0_i32_0 = arith.constant 0 : i32
    %c0_i32_1 = arith.constant 0 : i32
    return %c0_i32, %c0_i32_0 : i32, i32
  }
  func.func @transform_5(%arg0: i32) -> (i32, i32, i32) {
    %c0_i32 = arith.constant 0 : i32
    %c0_i32_0 = arith.constant 0 : i32
    %c0_i32_1 = arith.constant 0 : i32
    return %arg0, %c0_i32, %c0_i32_0 : i32, i32, i32
  }
}

</mosaic_0001>

<bundles_post_ra>
// kernel: aggregation_forward.9
= control target key start
LH: loop header
LB: loop body
LE: loop exit
PB: predicated region body
PF: predicated region fallthrough
CT: control target
= control target key end

     0   :  { %s730_s12 = smov 0   ;;  %s842_s0 = inlined_call_operand.vmem [shape: f32[2,18,64], index: 0, kind: input, shape index: {}]   ;;  %s843_s1 = inlined_call_operand.vmem [shape: f32[3,64,64], index: 1, kind: input, shape index: {}]   ;;  %s844_s2 = inlined_call_operand.vmem [shape: f32[1,64], index: 2, kind: input, shape index: {}]   ;;  %s845_s3 = inlined_call_operand.vmem [shape: f32[2,16,64], index: 3, kind: output, shape index: {}]  }
   0x1 LB: > { %s518_s13 = sadd.s32 4294967295, %s708_s12   ;;  %p522_p0 = scmp.ge.s32.totalorder %s708_s12, 1  ;;  %s708_s12 = sphi %s730_s12, %s13_s12  }
   0x2   : > { %p137_p1 = scmp.lt.s32.totalorder %s708_s12, 3 }
   0x4   : > { %p138_p2 = pnand %p522_p0, %p137_p1 }
   0x5   : > { %v529_v0 = vld [vmem:[%s843_s1 + $0x40] sm:$0xff] (!%p138_p2)  ;;  %v530_v1 = vld [vmem:[%s843_s1 + $0x48] sm:$0xff] (!%p138_p2)  ;;  %v531_v2 = vld [vmem:[%s843_s1 + $0x50] sm:$0xff] (!%p138_p2)  ;;  %p161_p3 = scmp.lt.s32.totalorder (!%p138_p2), %s518_s13, 1  ;;  %vm189_vm0 = vcmask (!%p138_p2), 523264  }
   0x6   : > { %141 = sbr.rel (%p138_p2) target bundleno = 256 (0x100), region = 32  ;;  %v655_v3 = vpack.c.bf16 (!%p138_p2), %v530_v1, %v529_v0  ;;  %v532_v4 = vld [vmem:[%s843_s1 + $0x58] sm:$0xff] (!%p138_p2)  ;;  %v533_v6 = vld [vmem:[%s843_s1 + $0x60] sm:$0xff] (!%p138_p2)  ;;  %v534_v7 = vld [vmem:[%s843_s1 + $0x68] sm:$0xff] (!%p138_p2) }
   0x7   : > { %v659_v5 = vpack.c.bf16 (!%p138_p2), %v532_v4, %v531_v2  ;;  %v181_v8 = vld [vmem:[%s843_s1] sm:$0xff] (!%p138_p2)  ;;  %v182_v9 = vld [vmem:[%s843_s1 + $0x8] sm:$0xff] (!%p138_p2)  ;;  %v183_v11 = vld [vmem:[%s843_s1 + $0x10] sm:$0xff] (!%p138_p2)  ;;  %v663_v13 = vpack.c.bf16 (!%p138_p2), %v534_v7, %v533_v6 }
   0x8   : > { %656 = vmatprep.subr.bf16.mxu0 (!%p138_p2), %v655_v3  ;;  %v639_v10 = vpack.c.bf16 (!%p138_p2), %v182_v9, %v181_v8  ;;  %v184_v12 = vld [vmem:[%s843_s1 + $0x18] sm:$0xff] (!%p138_p2)  ;;  %v185_v15 = vld [vmem:[%s843_s1 + $0x20] sm:$0xff] (!%p138_p2)  ;;  %v186_v16 = vld [vmem:[%s843_s1 + $0x28] sm:$0xff] (!%p138_p2) }
   0x9   : > { %658 = vmatpush3.bf16.msra.mxu0 (!%p138_p2), %v655_v3  ;;  %v643_v14 = vpack.c.bf16 (!%p138_p2), %v184_v12, %v183_v11  ;;  %v535_v17 = vld [vmem:[%s843_s1 + $0x70] sm:$0xff] (!%p138_p2)  ;;  %v536_v18 = vld [vmem:[%s843_s1 + $0x78] sm:$0xff] (!%p138_p2)  ;;  %v647_v20 = vpack.c.bf16 (!%p138_p2), %v186_v16, %v185_v15  ;;  %v539_v25 = vld [vmem:[%s843_s1 + $0x80] sm:$0xff] (!%p138_p2) }
   0xa   : > { %660 = vmatprep.subr.bf16.mxu0 (!%p138_p2), %v659_v5  ;;  %640 = vmatprep.subr.bf16.mxu1 (!%p138_p2), %v639_v10  ;;  %v667_v22 = vpack.c.bf16 (!%p138_p2), %v536_v18, %v535_v17  ;;  %v187_v23 = vld [vmem:[%s843_s1 + $0x30] sm:$0xff] (!%p138_p2)  ;;  %v188_v24 = vld [vmem:[%s843_s1 + $0x38] sm:$0xff] (!%p138_p2)  ;;  %v540_v26 = vld [vmem:[%s843_s1 + $0x88] sm:$0xff] (!%p138_p2) }
   0xb   : > { %642 = vmatpush3.bf16.msra.mxu1 (!%p138_p2), %v639_v10  ;;  %v651_v27 = vpack.c.bf16 (!%p138_p2), %v188_v24, %v187_v23  ;;  %v671_v28 = vpack.c.bf16 (!%p138_p2), %v540_v26, %v539_v25  ;;  %v541_v29 = vld [vmem:[%s843_s1 + $0x90] sm:$0xff] (!%p138_p2)  ;;  %v542_v30 = vld [vmem:[%s843_s1 + $0x98] sm:$0xff] (!%p138_p2)  ;;  %v543_v34 = vld [vmem:[%s843_s1 + $0xa0] sm:$0xff] (!%p138_p2) }
   0xc   : > { %644 = vmatprep.subr.bf16.mxu1 (!%p138_p2), %v643_v14  ;;  %v675_v32 = vpack.c.bf16 (!%p138_p2), %v542_v30, %v541_v29  ;;  %v544_v35 = vld [vmem:[%s843_s1 + $0xa8] sm:$0xff] (!%p138_p2)  ;;  %v545_v38 = vld [vmem:[%s843_s1 + $0xb0] sm:$0xff] (!%p138_p2)  ;;  %v546_v39 = vld [vmem:[%s843_s1 + $0xb8] sm:$0xff] (!%p138_p2) }
   0xd   : > { %s847_s13 = smov (!%p161_p3, %s518_s13), 1  ;;  %662 = vmatpush3.bf16.msra.mxu0 %v659_v5  ;;  %v679_v37 = vpack.c.bf16 %v544_v35, %v543_v34  ;;  %v683_v40 = vpack.c.bf16 %v546_v39, %v545_v38  ;;  %v526_v44 = vld [vmem:[%s844_s2] ss:$0 sm:$0xff] }
   0xe   : > { %s693_s30 = smul.u32 24, %s847_s13  ;;  %664 = vmatprep.subr.bf16.mxu0 %v663_v13  ;;  %s551_s18 = sshll.u32 %s847_s13, 4 }
   0xf   : > { %646 = vmatpush3.bf16.msra.mxu1 %v643_v14  ;;  %s170_s22 = scalar_lea.vmem %s845_s3, %s551_s18 }
  0x10   : > { %s786_s20 = scalar_lea.vmem %s842_s0, %s693_s30  ;;  %648 = vmatprep.subr.bf16.mxu1 %v647_v20 }
  0x11   : > { %v273_v19 = vld [vmem:[%s786_s20 + $0x1] sm:$0xff]  ;;  %666 = vmatpush3.bf16.msra.mxu0 %v663_v13  ;;  %v274_v31 = vld [vmem:[%s786_s20 + $0x9] sm:$0xff] }
  0x12   : > { %617 = vmatprep.mubr.msk.f32.mxu0 %vm189_vm0, %v273_v19  ;;  %v179_v21 = vld [vmem:[%s786_s20] sm:$0xff]  ;;  %668 = vmatprep.subr.bf16.mxu0 %v667_v22  ;;  %v180_v36 = vld [vmem:[%s786_s20 + $0x8] sm:$0xff] }
  0x13   : > { %598 = vmatprep.mubr.msk.f32.mxu1 %vm189_vm0, %v179_v21  ;;  %650 = vmatpush3.bf16.msra.mxu1 %v647_v20  ;;  %v367_v33 = vld [vmem:[%s786_s20 + $0x2] sm:$0xff]  ;;  %v368_v41 = vld [vmem:[%s786_s20 + $0xa] sm:$0xff] }
  0x14   : > { %652 = vmatprep.subr.bf16.mxu1 %v651_v27 }
  0x15   : > { %670 = vmatpush3.bf16.msra.mxu0 %v667_v22 }
  0x16   : > { %672 = vmatprep.subr.bf16.mxu0 %v671_v28 }
  0x17   : > { %654 = vmatpush3.bf16.msra.mxu1 %v651_v27 }
  0x18   : > { %618 = vmatmul.mubr.msk.f32.vlgmr.msra.gmra.mrb[0].mxu0 %vm189_vm0, %v274_v31 }
  0x19   : > { %674 = vmatpush3.bf16.msra.mxu0 %v671_v28  ;;  %636 = vmatprep.mubr.msk.f32.mxu0 %vm189_vm0, %v367_v33 }
  0x1a   : > { %676 = vmatprep.subr.bf16.mxu0 %v675_v32  ;;  %599 = vmatmul.mubr.msk.f32.vlgmr.msra.gmra.mrb[0].mxu1 %vm189_vm0, %v180_v36 }
  0x1d   : > { %678 = vmatpush3.bf16.msra.mxu0 %v675_v32 }
  0x1e   : > { %680 = vmatprep.subr.bf16.mxu0 %v679_v37 }
  0x21   : > { %682 = vmatpush3.bf16.msra.mxu0 %v679_v37 }
  0x22   : > { %684 = vmatprep.subr.bf16.mxu0 %v683_v40 }
  0x25   : > { %686 = vmatpush3.bf16.msra.mxu0 %v683_v40 }
  0x28   : > { %637 = vmatmul.mubr.msk.f32.vlgmr.msra.gmra.mrb[0].mxu0 %vm189_vm0, %v368_v41 }
  0xed   : > { %v600_v42 = vpop.f32.mrb[0].mxu1 }
  0xee   : > { %v262_v43 = vpop.f32.mrb[1].mxu1  ;;  %v272_v45 = vadd.f32 %v600_v42, %v526_v44 }
  0xef   : > { %v271_v46 = vadd.f32 %v526_v44, %v262_v43 }
  0xfb   : > { %v638_v47 = vpop.f32.mrb[0].mxu0 }
  0xfc   : > { %v688_v48 = vadd.f32 %v638_v47, %v272_v45  ;;  %v450_v49 = vpop.f32.mrb[1].mxu0 }
  0xfd   : > { %v690_v50 = vadd.f32 %v450_v49, %v271_v46 }
  0xfe   : > { %462 = vst.msk [vmem:[%s170_s22 + $0x8] sm:$0xff] %vm189_vm0, %v688_v48 }
  0xff   : > { %461 = vst.msk [vmem:[%s170_s22] sm:$0xff] %vm189_vm0, %v690_v50 }
 0x100 PF: > { %s13_s12 = sadd.s32 1, %s708_s12  }
 0x101   : > { %p10_p4 = scmp.ge.s32.totalorder %s13_s12, 4  }
 0x103   :  { %12 = sbr.rel (!%p10_p4) target bundleno = 1 (0x1), region = 64 }

// kernel: aggregation_forward.7
= control target key start
LH: loop header
LB: loop body
LE: loop exit
PB: predicated region body
PF: predicated region fallthrough
CT: control target
= control target key end

     0   :  { %s801_s15 = smov 0   ;;  %s916_s0 = inlined_call_operand.vmem [shape: f32[2,18,64], index: 0, kind: input, shape index: {}]   ;;  %s917_s1 = inlined_call_operand.vmem [shape: f32[2,16,64], index: 1, kind: input, shape index: {}]   ;;  %s918_s2 = inlined_call_operand.vmem [shape: f32[3,64,64], index: 2, kind: input, shape index: {}]   ;;  %s919_s3 = inlined_call_operand.vmem [shape: f32[1,64], index: 3, kind: input, shape index: {}]   ;;  %s920_s4 = inlined_call_operand.vmem [shape: f32[2,16,64], index: 4, kind: output, shape index: {}]  }
   0x1 LB: > { %s581_s16 = sadd.s32 4294967295, %s774_s15   ;;  %p585_p0 = scmp.ge.s32.totalorder %s774_s15, 1  ;;  %s774_s15 = sphi %s801_s15, %s14_s15  }
   0x2   : > { %p172_p1 = scmp.lt.s32.totalorder %s774_s15, 3 }
   0x4   : > { %p173_p2 = pnand %p585_p0, %p172_p1 }
   0x5   : > { %v594_v0 = vld [vmem:[%s918_s2 + $0x40] sm:$0xff] (!%p173_p2)  ;;  %v595_v1 = vld [vmem:[%s918_s2 + $0x48] sm:$0xff] (!%p173_p2)  ;;  %v596_v2 = vld [vmem:[%s918_s2 + $0x50] sm:$0xff] (!%p173_p2)  ;;  %p203_p3 = scmp.lt.s32.totalorder (!%p173_p2), %s581_s16, 1  ;;  %vm236_vm0 = vcmask (!%p173_p2), 523264  }
   0x6   : > { %176 = sbr.rel (%p173_p2) target bundleno = 258 (0x102), region = 36  ;;  %v721_v3 = vpack.c.bf16 (!%p173_p2), %v595_v1, %v594_v0  ;;  %v597_v4 = vld [vmem:[%s918_s2 + $0x58] sm:$0xff] (!%p173_p2)  ;;  %v598_v6 = vld [vmem:[%s918_s2 + $0x60] sm:$0xff] (!%p173_p2)  ;;  %v599_v7 = vld [vmem:[%s918_s2 + $0x68] sm:$0xff] (!%p173_p2) }
   0x7   : > { %v725_v5 = vpack.c.bf16 (!%p173_p2), %v597_v4, %v596_v2  ;;  %v228_v8 = vld [vmem:[%s918_s2] sm:$0xff] (!%p173_p2)  ;;  %v229_v9 = vld [vmem:[%s918_s2 + $0x8] sm:$0xff] (!%p173_p2)  ;;  %v230_v11 = vld [vmem:[%s918_s2 + $0x10] sm:$0xff] (!%p173_p2)  ;;  %v729_v13 = vpack.c.bf16 (!%p173_p2), %v599_v7, %v598_v6 }
   0x8   : > { %722 = vmatprep.subr.bf16.mxu0 (!%p173_p2), %v721_v3  ;;  %v705_v10 = vpack.c.bf16 (!%p173_p2), %v229_v9, %v228_v8  ;;  %v231_v12 = vld [vmem:[%s918_s2 + $0x18] sm:$0xff] (!%p173_p2)  ;;  %v232_v15 = vld [vmem:[%s918_s2 + $0x20] sm:$0xff] (!%p173_p2)  ;;  %v233_v16 = vld [vmem:[%s918_s2 + $0x28] sm:$0xff] (!%p173_p2) }
   0x9   : > { %724 = vmatpush3.bf16.msra.mxu0 (!%p173_p2), %v721_v3  ;;  %v709_v14 = vpack.c.bf16 (!%p173_p2), %v231_v12, %v230_v11  ;;  %v600_v17 = vld [vmem:[%s918_s2 + $0x70] sm:$0xff] (!%p173_p2)  ;;  %v601_v18 = vld [vmem:[%s918_s2 + $0x78] sm:$0xff] (!%p173_p2)  ;;  %v713_v20 = vpack.c.bf16 (!%p173_p2), %v233_v16, %v232_v15  ;;  %v604_v25 = vld [vmem:[%s918_s2 + $0x80] sm:$0xff] (!%p173_p2) }
   0xa   : > { %726 = vmatprep.subr.bf16.mxu0 (!%p173_p2), %v725_v5  ;;  %706 = vmatprep.subr.bf16.mxu1 (!%p173_p2), %v705_v10  ;;  %v733_v22 = vpack.c.bf16 (!%p173_p2), %v601_v18, %v600_v17  ;;  %v234_v23 = vld [vmem:[%s918_s2 + $0x30] sm:$0xff] (!%p173_p2)  ;;  %v235_v24 = vld [vmem:[%s918_s2 + $0x38] sm:$0xff] (!%p173_p2)  ;;  %v605_v26 = vld [vmem:[%s918_s2 + $0x88] sm:$0xff] (!%p173_p2) }
   0xb   : > { %708 = vmatpush3.bf16.msra.mxu1 (!%p173_p2), %v705_v10  ;;  %v717_v27 = vpack.c.bf16 (!%p173_p2), %v235_v24, %v234_v23  ;;  %v737_v28 = vpack.c.bf16 (!%p173_p2), %v605_v26, %v604_v25  ;;  %v606_v29 = vld [vmem:[%s918_s2 + $0x90] sm:$0xff] (!%p173_p2)  ;;  %v607_v30 = vld [vmem:[%s918_s2 + $0x98] sm:$0xff] (!%p173_p2)  ;;  %v608_v34 = vld [vmem:[%s918_s2 + $0xa0] sm:$0xff] (!%p173_p2) }
   0xc   : > { %710 = vmatprep.subr.bf16.mxu1 (!%p173_p2), %v709_v14  ;;  %v741_v32 = vpack.c.bf16 (!%p173_p2), %v607_v30, %v606_v29  ;;  %v609_v35 = vld [vmem:[%s918_s2 + $0xa8] sm:$0xff] (!%p173_p2)  ;;  %v610_v38 = vld [vmem:[%s918_s2 + $0xb0] sm:$0xff] (!%p173_p2)  ;;  %v611_v39 = vld [vmem:[%s918_s2 + $0xb8] sm:$0xff] (!%p173_p2) }
   0xd   : > { %s922_s16 = smov (!%p203_p3, %s581_s16), 1  ;;  %728 = vmatpush3.bf16.msra.mxu0 %v725_v5  ;;  %v745_v37 = vpack.c.bf16 %v609_v35, %v608_v34  ;;  %v749_v40 = vpack.c.bf16 %v611_v39, %v610_v38  ;;  %v591_v44 = vld [vmem:[%s919_s3] ss:$0 sm:$0xff] }
   0xe   : > { %s759_s7 = smul.u32 24, %s922_s16  ;;  %730 = vmatprep.subr.bf16.mxu0 %v729_v13  ;;  %s616_s23 = sshll.u32 %s922_s16, 4 }
   0xf   : > { %712 = vmatpush3.bf16.msra.mxu1 %v709_v14  ;;  %s212_s27 = scalar_lea.vmem %s917_s1, %s616_s23  ;;  %s217_s29 = scalar_lea.vmem %s920_s4, %s616_s23 }
  0x10   : > { %s857_s24 = scalar_lea.vmem %s916_s0, %s759_s7  ;;  %714 = vmatprep.subr.bf16.mxu1 %v713_v20  ;;  %v509_v48 = vld [vmem:[%s212_s27 + $0x8] sm:$0xff]  ;;  %v508_v51 = vld [vmem:[%s212_s27] sm:$0xff] }
  0x11   : > { %v320_v19 = vld [vmem:[%s857_s24 + $0x1] sm:$0xff]  ;;  %732 = vmatpush3.bf16.msra.mxu0 %v729_v13  ;;  %v321_v31 = vld [vmem:[%s857_s24 + $0x9] sm:$0xff] }
  0x12   : > { %683 = vmatprep.mubr.msk.f32.mxu0 %vm236_vm0, %v320_v19  ;;  %v226_v21 = vld [vmem:[%s857_s24] sm:$0xff]  ;;  %734 = vmatprep.subr.bf16.mxu0 %v733_v22  ;;  %v227_v36 = vld [vmem:[%s857_s24 + $0x8] sm:$0xff] }
  0x13   : > { %664 = vmatprep.mubr.msk.f32.mxu1 %vm236_vm0, %v226_v21  ;;  %716 = vmatpush3.bf16.msra.mxu1 %v713_v20  ;;  %v414_v33 = vld [vmem:[%s857_s24 + $0x2] sm:$0xff]  ;;  %v415_v41 = vld [vmem:[%s857_s24 + $0xa] sm:$0xff] }
  0x14   : > { %718 = vmatprep.subr.bf16.mxu1 %v717_v27 }
  0x15   : > { %736 = vmatpush3.bf16.msra.mxu0 %v733_v22 }
  0x16   : > { %738 = vmatprep.subr.bf16.mxu0 %v737_v28 }
  0x17   : > { %720 = vmatpush3.bf16.msra.mxu1 %v717_v27 }
  0x18   : > { %684 = vmatmul.mubr.msk.f32.vlgmr.msra.gmra.mrb[0].mxu0 %vm236_vm0, %v321_v31 }
  0x19   : > { %740 = vmatpush3.bf16.msra.mxu0 %v737_v28  ;;  %702 = vmatprep.mubr.msk.f32.mxu0 %vm236_vm0, %v414_v33 }
  0x1a   : > { %742 = vmatprep.subr.bf16.mxu0 %v741_v32  ;;  %665 = vmatmul.mubr.msk.f32.vlgmr.msra.gmra.mrb[0].mxu1 %vm236_vm0, %v227_v36 }
  0x1d   : > { %744 = vmatpush3.bf16.msra.mxu0 %v741_v32 }
  0x1e   : > { %746 = vmatprep.subr.bf16.mxu0 %v745_v37 }
  0x21   : > { %748 = vmatpush3.bf16.msra.mxu0 %v745_v37 }
  0x22   : > { %750 = vmatprep.subr.bf16.mxu0 %v749_v40 }
  0x25   : > { %752 = vmatpush3.bf16.msra.mxu0 %v749_v40 }
  0x28   : > { %703 = vmatmul.mubr.msk.f32.vlgmr.msra.gmra.mrb[0].mxu0 %vm236_vm0, %v415_v41 }
  0xed   : > { %v666_v42 = vpop.f32.mrb[0].mxu1 }
  0xee   : > { %v309_v43 = vpop.f32.mrb[1].mxu1  ;;  %v319_v45 = vadd.f32 %v666_v42, %v591_v44 }
  0xef   : > { %v318_v46 = vadd.f32 %v591_v44, %v309_v43 }
  0xfb   : > { %v704_v47 = vpop.f32.mrb[0].mxu0 }
  0xfc   : > { %v754_v49 = vadd.f32 %v704_v47, %v319_v45  ;;  %v497_v50 = vpop.f32.mrb[1].mxu0 }
  0xfd   : > { %v756_v52 = vadd.f32 %v497_v50, %v318_v46 }
  0xfe   : > { %v511_v53 = vmul.f32 %v754_v49, %v509_v48 }
  0xff   : > { %v510_v54 = vmul.f32 %v756_v52, %v508_v51 }
 0x100   : > { %513 = vst.msk [vmem:[%s217_s29 + $0x8] sm:$0xff] %vm236_vm0, %v511_v53 }
 0x101   : > { %512 = vst.msk [vmem:[%s217_s29] sm:$0xff] %vm236_vm0, %v510_v54 }
 0x102 PF: > { %s14_s15 = sadd.s32 1, %s774_s15  }
 0x103   : > { %p11_p4 = scmp.ge.s32.totalorder %s14_s15, 4  }
 0x105   :  { %13 = sbr.rel (!%p11_p4) target bundleno = 1 (0x1), region = 71 }

// kernel: aggregation_forward.10
= control target key start
LH: loop header
LB: loop body
LE: loop exit
PB: predicated region body
PF: predicated region fallthrough
CT: control target
= control target key end

     0   :  { %s1271_s18 = smov 0   ;;  %s1470_s0 = inlined_call_operand.vmem [shape: f32[2,18,64], index: 0, kind: input, shape index: {}]   ;;  %s1471_s1 = inlined_call_operand.vmem [shape: f32[2,18,64], index: 1, kind: input, shape index: {}]   ;;  %s1472_s2 = inlined_call_operand.vmem [shape: f32[3,64,128], index: 2, kind: input, shape index: {}]   ;;  %s1473_s3 = inlined_call_operand.vmem [shape: f32[3,64,128], index: 3, kind: input, shape index: {}]   ;;  %s1474_s4 = inlined_call_operand.vmem [shape: f32[1,128], index: 4, kind: input, shape index: {}]   ;;  %s1475_s5 = inlined_call_operand.vmem [shape: f32[2,16,128], index: 5, kind: output, shape index: {}]  }
   0x1 LB: > { %s885_s19 = sadd.s32 4294967295, %s1239_s18   ;;  %p889_p0 = scmp.ge.s32.totalorder %s1239_s18, 1  ;;  %s1239_s18 = sphi %s1271_s18, %s15_s18  }
   0x2   : > { %p197_p1 = scmp.lt.s32.totalorder %s1239_s18, 3 }
   0x4   : > { %p198_p2 = pnand %p889_p0, %p197_p1 }
   0x5   : > { %v255_v0 = vld [vmem:[%s1472_s2] sm:$0xff] (!%p198_p2)  ;;  %v256_v1 = vld [vmem:[%s1472_s2 + $0x8] sm:$0xff] (!%p198_p2)  ;;  %p230_p3 = scmp.lt.s32.totalorder (!%p198_p2), %s885_s19, 1  ;;  %v257_v5 = vld [vmem:[%s1472_s2 + $0x10] sm:$0xff] (!%p198_p2)  ;;  %vm263_vm0 = vcmask (!%p198_p2), 523264  }
   0x6   : > { %201 = sbr.rel (%p198_p2) target bundleno = 274 (0x112), region = 40  ;;  %v537_v2 = vld [vmem:[%s1473_s3] sm:$0xff] (!%p198_p2)  ;;  %v1116_v3 = vpack.c.bf16 (!%p198_p2), %v256_v1, %v255_v0  ;;  %v538_v4 = vld [vmem:[%s1473_s3 + $0x8] sm:$0xff] (!%p198_p2)  ;;  %v258_v6 = vld [vmem:[%s1472_s2 + $0x18] sm:$0xff] (!%p198_p2) }
   0x7   : > { %v1164_v7 = vpack.c.bf16 (!%p198_p2), %v538_v4, %v537_v2  ;;  %v1120_v8 = vpack.c.bf16 (!%p198_p2), %v258_v6, %v257_v5  ;;  %v539_v9 = vld [vmem:[%s1473_s3 + $0x10] sm:$0xff] (!%p198_p2)  ;;  %v540_v10 = vld [vmem:[%s1473_s3 + $0x18] sm:$0xff] (!%p198_p2)  ;;  %v259_v11 = vld [vmem:[%s1472_s2 + $0x20] sm:$0xff] (!%p198_p2) }
   0x8   : > { %1117 = vmatprep.subr.bf16.mxu1 (!%p198_p2), %v1116_v3  ;;  %v1168_v12 = vpack.c.bf16 (!%p198_p2), %v540_v10, %v539_v9  ;;  %v260_v13 = vld [vmem:[%s1472_s2 + $0x28] sm:$0xff] (!%p198_p2)  ;;  %v541_v14 = vld [vmem:[%s1473_s3 + $0x20] sm:$0xff] (!%p198_p2)  ;;  %v261_v18 = vld [vmem:[%s1472_s2 + $0x30] sm:$0xff] (!%p198_p2) }
   0x9   : > { %v542_v15 = vld [vmem:[%s1473_s3 + $0x28] sm:$0xff] (!%p198_p2)  ;;  %1165 = vmatprep.subr.bf16.mxu0 (!%p198_p2), %v1164_v7  ;;  %1119 = vmatpush3.bf16.msra.mxu1 (!%p198_p2), %v1116_v3  ;;  %v1124_v16 = vpack.c.bf16 (!%p198_p2), %v260_v13, %v259_v11  ;;  %v262_v19 = vld [vmem:[%s1472_s2 + $0x38] sm:$0xff] (!%p198_p2)  ;;  %v543_v20 = vld [vmem:[%s1473_s3 + $0x30] sm:$0xff] (!%p198_p2) }
   0xa   : > { %1167 = vmatpush3.bf16.msra.mxu0 (!%p198_p2), %v1164_v7  ;;  %1121 = vmatprep.subr.bf16.mxu1 (!%p198_p2), %v1120_v8  ;;  %v1172_v17 = vpack.c.bf16 (!%p198_p2), %v542_v15, %v541_v14  ;;  %v544_v21 = vld [vmem:[%s1473_s3 + $0x38] sm:$0xff] (!%p198_p2)  ;;  %v1128_v24 = vpack.c.bf16 (!%p198_p2), %v262_v19, %v261_v18  ;;  %v897_v26 = vld [vmem:[%s1472_s2 + $0x40] sm:$0xff] (!%p198_p2)  ;;  %v898_v27 = vld [vmem:[%s1472_s2 + $0x48] sm:$0xff] (!%p198_p2) }
   0xb   : > { %1169 = vmatprep.subr.bf16.mxu0 (!%p198_p2), %v1168_v12  ;;  %v1176_v25 = vpack.c.bf16 (!%p198_p2), %v544_v21, %v543_v20  ;;  %v919_v28 = vld [vmem:[%s1473_s3 + $0x40] sm:$0xff] (!%p198_p2)  ;;  %v920_v29 = vld [vmem:[%s1473_s3 + $0x48] sm:$0xff] (!%p198_p2)  ;;  %v1132_v30 = vpack.c.bf16 (!%p198_p2), %v898_v27, %v897_v26  ;;  %v899_v32 = vld [vmem:[%s1472_s2 + $0x50] sm:$0xff] (!%p198_p2) }
   0xc   : > { %v1180_v31 = vpack.c.bf16 (!%p198_p2), %v920_v29, %v919_v28  ;;  %v900_v33 = vld [vmem:[%s1472_s2 + $0x58] sm:$0xff] (!%p198_p2)  ;;  %v921_v34 = vld [vmem:[%s1473_s3 + $0x50] sm:$0xff] (!%p198_p2)  ;;  %v901_v40 = vld [vmem:[%s1472_s2 + $0x60] sm:$0xff] (!%p198_p2) }
   0xd   : > { %s1477_s19 = smov (!%p230_p3, %s885_s19), 1  ;;  %1123 = vmatpush3.bf16.msra.mxu1 %v1120_v8  ;;  %v922_v35 = vld [vmem:[%s1473_s3 + $0x58] sm:$0xff]  ;;  %v1136_v38 = vpack.c.bf16 %v900_v33, %v899_v32  ;;  %v902_v41 = vld [vmem:[%s1472_s2 + $0x68] sm:$0xff]  ;;  %v923_v42 = vld [vmem:[%s1473_s3 + $0x60] sm:$0xff] }
   0xe   : > { %s1224_s21 = smul.u32 24, %s1477_s19  ;;  %1171 = vmatpush3.bf16.msra.mxu0 %v1168_v12  ;;  %1125 = vmatprep.subr.bf16.mxu1 %v1124_v16  ;;  %v1184_v39 = vpack.c.bf16 %v922_v35, %v921_v34  ;;  %v924_v43 = vld [vmem:[%s1473_s3 + $0x68] sm:$0xff]  ;;  %v1140_v46 = vpack.c.bf16 %v902_v41, %v901_v40  ;;  %v903_v48 = vld [vmem:[%s1472_s2 + $0x70] sm:$0xff]  ;;  %v904_v49 = vld [vmem:[%s1472_s2 + $0x78] sm:$0xff]  ;;  %s941_s14 = sshll.u32 %s1477_s19, 4 }
   0xf   : > { %1173 = vmatprep.subr.bf16.mxu0 %v1172_v17  ;;  %v1188_v47 = vpack.c.bf16 %v924_v43, %v923_v42  ;;  %v925_v50 = vld [vmem:[%s1473_s3 + $0x70] sm:$0xff]  ;;  %v926_v51 = vld [vmem:[%s1473_s3 + $0x78] sm:$0xff]  ;;  %v1144_v52 = vpack.c.bf16 %v904_v49, %v903_v48  ;;  %v907_v54 = vld [vmem:[%s1472_s2 + $0x80] sm:$0xff]  ;;  %s244_s17 = scalar_lea.vmem %s1475_s5, %s941_s14 }
  0x10   : > { %s1330_s30 = scalar_lea.vmem %s1470_s0, %s1224_s21  ;;  %s1335_s8 = scalar_lea.vmem %s1471_s1, %s1224_s21  ;;  %v1192_v53 = vpack.c.bf16 %v926_v51, %v925_v50  ;;  %v908_v55 = vld [vmem:[%s1472_s2 + $0x88] sm:$0xff]  ;;  %v929_v56 = vld [vmem:[%s1473_s3 + $0x80] sm:$0xff]  ;;  %v909_v60 = vld [vmem:[%s1472_s2 + $0x90] sm:$0xff] }
  0x11   : > { %v253_v22 = vld [vmem:[%s1330_s30] sm:$0xff]  ;;  %1127 = vmatpush3.bf16.msra.mxu1 %v1124_v16  ;;  %v254_v36 = vld [vmem:[%s1330_s30 + $0x8] sm:$0xff]  ;;  %v1148_v58 = vpack.c.bf16 %v908_v55, %v907_v54  ;;  %v910_v61 = vld [vmem:[%s1472_s2 + $0x98] sm:$0xff] }
  0x12   : > { %v535_v23 = vld [vmem:[%s1335_s8] sm:$0xff]  ;;  %1018 = vmatprep.mubr.msk.f32.mxu1 %vm263_vm0, %v253_v22  ;;  %1175 = vmatpush3.bf16.msra.mxu0 %v1172_v17  ;;  %v536_v37 = vld [vmem:[%s1335_s8 + $0x8] sm:$0xff]  ;;  %v931_v62 = vld [vmem:[%s1473_s3 + $0x90] sm:$0xff]  ;;  %v1152_v2 = vpack.c.bf16 %v910_v61, %v909_v60 }
  0x13   : > { %1075 = vmatprep.mubr.msk.f32.mxu0 %vm263_vm0, %v535_v23  ;;  %1129 = vmatprep.subr.bf16.mxu1 %v1128_v24  ;;  %v347_v44 = vld [vmem:[%s1330_s30 + $0x1] sm:$0xff]  ;;  %v932_v63 = vld [vmem:[%s1473_s3 + $0x98] sm:$0xff]  ;;  %v348_v0 = vld [vmem:[%s1330_s30 + $0x9] sm:$0xff] }
  0x14   : > { %1177 = vmatprep.subr.bf16.mxu0 %v1176_v25  ;;  %v628_v45 = vld [vmem:[%s1335_s8 + $0x1] sm:$0xff]  ;;  %v629_v1 = vld [vmem:[%s1335_s8 + $0x9] sm:$0xff]  ;;  %v1200_v3 = vpack.c.bf16 %v932_v63, %v931_v62  ;;  %v914_v13 = vld [vmem:[%s1472_s2 + $0xb8] sm:$0xff] }
  0x15   : > { %1131 = vmatpush3.bf16.msra.mxu1 %v1128_v24  ;;  %v930_v57 = vld [vmem:[%s1473_s3 + $0x88] sm:$0xff]  ;;  %v911_v4 = vld [vmem:[%s1472_s2 + $0xa0] sm:$0xff]  ;;  %v913_v12 = vld [vmem:[%s1472_s2 + $0xb0] sm:$0xff] }
  0x16   : > { %1179 = vmatpush3.bf16.msra.mxu0 %v1176_v25  ;;  %1133 = vmatprep.subr.bf16.mxu1 %v1132_v30  ;;  %v1196_v59 = vpack.c.bf16 %v930_v57, %v929_v56  ;;  %v912_v5 = vld [vmem:[%s1472_s2 + $0xa8] sm:$0xff]  ;;  %v933_v6 = vld [vmem:[%s1473_s3 + $0xa0] sm:$0xff]  ;;  %v935_v14 = vld [vmem:[%s1473_s3 + $0xb0] sm:$0xff]  ;;  %v1160_v16 = vpack.c.bf16 %v914_v13, %v913_v12 }
  0x17   : > { %1181 = vmatprep.subr.bf16.mxu0 %v1180_v31  ;;  %v934_v7 = vld [vmem:[%s1473_s3 + $0xa8] sm:$0xff]  ;;  %v1156_v10 = vpack.c.bf16 %v912_v5, %v911_v4  ;;  %v936_v15 = vld [vmem:[%s1473_s3 + $0xb8] sm:$0xff]  ;;  %v894_v20 = vld [vmem:[%s1474_s4] ss:$0 sm:$0xff] }
  0x18   : > { %1019 = vmatmul.mubr.msk.f32.vlgmr.msra.gmra.mrb[0].mxu1 %vm263_vm0, %v254_v36  ;;  %v441_v8 = vld [vmem:[%s1330_s30 + $0x2] sm:$0xff]  ;;  %v1204_v11 = vpack.c.bf16 %v934_v7, %v933_v6  ;;  %v1208_v17 = vpack.c.bf16 %v936_v15, %v935_v14  ;;  %v442_v18 = vld [vmem:[%s1330_s30 + $0xa] sm:$0xff] }
  0x19   : > { %1135 = vmatpush3.bf16.msra.mxu1 %v1132_v30  ;;  %1076 = vmatmul.mubr.msk.f32.vlgmr.msra.gmra.mrb[0].mxu0 %vm263_vm0, %v536_v37  ;;  %v722_v9 = vld [vmem:[%s1335_s8 + $0x2] sm:$0xff]  ;;  %v723_v19 = vld [vmem:[%s1335_s8 + $0xa] sm:$0xff] }
  0x1a   : > { %1183 = vmatpush3.bf16.msra.mxu0 %v1180_v31  ;;  %1137 = vmatprep.subr.bf16.mxu1 %v1136_v38 }
  0x1b   : > { %1185 = vmatprep.subr.bf16.mxu0 %v1184_v39  ;;  %1037 = vmatprep.mubr.msk.f32.mxu1 %vm263_vm0, %v347_v44 }
  0x1c   : > { %1094 = vmatprep.mubr.msk.f32.mxu0 %vm263_vm0, %v628_v45 }
  0x1d   : > { %1139 = vmatpush3.bf16.msra.mxu1 %v1136_v38 }
  0x1e   : > { %1187 = vmatpush3.bf16.msra.mxu0 %v1184_v39  ;;  %1141 = vmatprep.subr.bf16.mxu1 %v1140_v46 }
  0x1f   : > { %1189 = vmatprep.subr.bf16.mxu0 %v1188_v47 }
  0x21   : > { %1143 = vmatpush3.bf16.msra.mxu1 %v1140_v46 }
  0x22   : > { %1191 = vmatpush3.bf16.msra.mxu0 %v1188_v47  ;;  %1145 = vmatprep.subr.bf16.mxu1 %v1144_v52 }
  0x23   : > { %1193 = vmatprep.subr.bf16.mxu0 %v1192_v53 }
  0x25   : > { %1147 = vmatpush3.bf16.msra.mxu1 %v1144_v52 }
  0x26   : > { %1195 = vmatpush3.bf16.msra.mxu0 %v1192_v53  ;;  %1149 = vmatprep.subr.bf16.mxu1 %v1148_v58 }
  0x27   : > { %1197 = vmatprep.subr.bf16.mxu0 %v1196_v59 }
  0x28   : > { %1038 = vmatmul.mubr.msk.f32.vlgmr.msra.gmra.mrb[0].mxu1 %vm263_vm0, %v348_v0 }
  0x29   : > { %1151 = vmatpush3.bf16.msra.mxu1 %v1148_v58  ;;  %1095 = vmatmul.mubr.msk.f32.vlgmr.msra.gmra.mrb[0].mxu0 %vm263_vm0, %v629_v1 }
  0x2a   : > { %1199 = vmatpush3.bf16.msra.mxu0 %v1196_v59  ;;  %1153 = vmatprep.subr.bf16.mxu1 %v1152_v2 }
  0x2b   : > { %1201 = vmatprep.subr.bf16.mxu0 %v1200_v3  ;;  %1056 = vmatprep.mubr.msk.f32.mxu1 %vm263_vm0, %v441_v8 }
  0x2c   : > { %1113 = vmatprep.mubr.msk.f32.mxu0 %vm263_vm0, %v722_v9 }
  0x2d   : > { %1155 = vmatpush3.bf16.msra.mxu1 %v1152_v2 }
  0x2e   : > { %1203 = vmatpush3.bf16.msra.mxu0 %v1200_v3  ;;  %1157 = vmatprep.subr.bf16.mxu1 %v1156_v10 }
  0x2f   : > { %1205 = vmatprep.subr.bf16.mxu0 %v1204_v11 }
  0x31   : > { %1159 = vmatpush3.bf16.msra.mxu1 %v1156_v10 }
  0x32   : > { %1207 = vmatpush3.bf16.msra.mxu0 %v1204_v11  ;;  %1161 = vmatprep.subr.bf16.mxu1 %v1160_v16 }
  0x33   : > { %1209 = vmatprep.subr.bf16.mxu0 %v1208_v17 }
  0x35   : > { %1163 = vmatpush3.bf16.msra.mxu1 %v1160_v16 }
  0x36   : > { %1211 = vmatpush3.bf16.msra.mxu0 %v1208_v17 }
  0x38   : > { %1057 = vmatmul.mubr.msk.f32.vlgmr.msra.gmra.mrb[0].mxu1 %vm263_vm0, %v442_v18 }
  0x39   : > { %1114 = vmatmul.mubr.msk.f32.vlgmr.msra.gmra.mrb[0].mxu0 %vm263_vm0, %v723_v19 }
 0x10b   : > { %v1058_v21 = vpop.f32.mrb[0].mxu1 }
 0x10c   : > { %v1212_v22 = vadd.f32 %v1058_v21, %v894_v20  ;;  %v1115_v23 = vpop.f32.mrb[0].mxu0  ;;  %v524_v24 = vpop.f32.mrb[1].mxu1 }
 0x10d   : > { %v1214_v25 = vadd.f32 %v894_v20, %v524_v24  ;;  %v805_v26 = vpop.f32.mrb[1].mxu0 }
 0x10e   : > { %v1213_v27 = vadd.f32 %v1212_v22, %v1115_v23 }
 0x10f   : > { %v1215_v28 = vadd.f32 %v1214_v25, %v805_v26 }
 0x110   : > { %817 = vst [vmem:[%s244_s17 + $0x8] sm:$0xff] %v1213_v27 }
 0x111   : > { %816 = vst [vmem:[%s244_s17] sm:$0xff] %v1215_v28 }
 0x112 PF: > { %s15_s18 = sadd.s32 1, %s1239_s18  }
 0x113   : > { %p12_p4 = scmp.ge.s32.totalorder %s15_s18, 4  }
 0x115   :  { %14 = sbr.rel (!%p12_p4) target bundleno = 1 (0x1), region = 77 }

// kernel: aggregation_forward.11
= control target key start
LH: loop header
LB: loop body
LE: loop exit
PB: predicated region body
PF: predicated region fallthrough
CT: control target
= control target key end

     0   :  { %s1247_s12 = smov 0   ;;  %s1944_s0 = inlined_call_operand.vmem [shape: f32[2,34,256], index: 0, kind: input, shape index: {}]   ;;  %s1945_s1 = inlined_call_operand.vmem [shape: f32[3,256,256], index: 1, kind: input, shape index: {}]   ;;  %s1946_s2 = inlined_call_operand.vmem [shape: f32[1,256], index: 2, kind: input, shape index: {}]   ;;  %s1947_s3 = inlined_call_operand.vmem [shape: f32[2,32,256], index: 3, kind: output, shape index: {}]  }
   0x1 LB: > { %s823_s13 = sadd.s32 4294967295, %s1225_s12   ;;  %p827_p0 = scmp.ge.s32.totalorder %s1225_s12, 1  ;;  %s1225_s12 = sphi %s1247_s12, %s13_s12  }
   0x2   : > { %p137_p1 = scmp.lt.s32.totalorder %s1225_s12, 3 }
   0x4   : > { %p138_p2 = pnand %p827_p0, %p137_p1 }
   0x5   : > { %v194_v0 = vld [vmem:[%s1945_s1 + $0x8] sm:$0xff] (!%p138_p2)  ;;  %v196_v1 = vld [vmem:[%s1945_s1 + $0x18] sm:$0xff] (!%p138_p2)  ;;  %v193_v5 = vld [vmem:[%s1945_s1] sm:$0xff] (!%p138_p2)  ;;  %p1461_p3 = scmp.lt.s32.totalorder (!%p138_p2), %s823_s13, 1  ;;  %vm439_vm0 = vcmask (!%p138_p2), 1046528   ;;  %vm636_vm1 = vcmask (!%p138_p2), 1045504  }
   0x6   : > { %141 = sbr.rel (%p138_p2) target bundleno = 357 (0x165), region = 32  ;;  %v832_v2 = vld [vmem:[%s1945_s1 + $0x208] sm:$0xff] (!%p138_p2)  ;;  %v962_v3 = vpack.c.bf16 (!%p138_p2), %v196_v1, %v194_v0  ;;  %v834_v4 = vld [vmem:[%s1945_s1 + $0x218] sm:$0xff] (!%p138_p2)  ;;  %v195_v6 = vld [vmem:[%s1945_s1 + $0x10] sm:$0xff] (!%p138_p2) }
   0x7   : > { %v1026_v7 = vpack.c.bf16 (!%p138_p2), %v834_v4, %v832_v2  ;;  %v964_v8 = vpack.c.bf16 (!%p138_p2), %v195_v6, %v193_v5  ;;  %v831_v9 = vld [vmem:[%s1945_s1 + $0x200] sm:$0xff] (!%p138_p2)  ;;  %v833_v10 = vld [vmem:[%s1945_s1 + $0x210] sm:$0xff] (!%p138_p2)  ;;  %v198_v11 = vld [vmem:[%s1945_s1 + $0x28] sm:$0xff] (!%p138_p2) }
   0x8   : > { %963 = vmatprep.subr.bf16.mxu1 (!%p138_p2), %v962_v3  ;;  %v1028_v12 = vpack.c.bf16 (!%p138_p2), %v833_v10, %v831_v9  ;;  %v200_v13 = vld [vmem:[%s1945_s1 + $0x38] sm:$0xff] (!%p138_p2)  ;;  %v836_v14 = vld [vmem:[%s1945_s1 + $0x228] sm:$0xff] (!%p138_p2)  ;;  %v197_v18 = vld [vmem:[%s1945_s1 + $0x20] sm:$0xff] (!%p138_p2) }
   0x9   : > { %v838_v15 = vld [vmem:[%s1945_s1 + $0x238] sm:$0xff] (!%p138_p2)  ;;  %1027 = vmatprep.subr.bf16.mxu0 (!%p138_p2), %v1026_v7  ;;  %965 = vmatpush1.bf16.msra.mxu1 (!%p138_p2), %v964_v8  ;;  %v966_v16 = vpack.c.bf16 (!%p138_p2), %v200_v13, %v198_v11  ;;  %v199_v19 = vld [vmem:[%s1945_s1 + $0x30] sm:$0xff] (!%p138_p2)  ;;  %v835_v20 = vld [vmem:[%s1945_s1 + $0x220] sm:$0xff] (!%p138_p2) }
   0xa   : > { %v1030_v17 = vpack.c.bf16 (!%p138_p2), %v838_v15, %v836_v14  ;;  %1029 = vmatpush1.bf16.msra.mxu0 (!%p138_p2), %v1028_v12  ;;  %v968_v21 = vpack.c.bf16 (!%p138_p2), %v199_v19, %v197_v18  ;;  %v837_v22 = vld [vmem:[%s1945_s1 + $0x230] sm:$0xff] (!%p138_p2)  ;;  %v202_v23 = vld [vmem:[%s1945_s1 + $0x48] sm:$0xff] (!%p138_p2)  ;;  %v204_v24 = vld [vmem:[%s1945_s1 + $0x58] sm:$0xff] (!%p138_p2) }
   0xb   : > { %967 = vmatprep.subr.bf16.mxu1 (!%p138_p2), %v966_v16  ;;  %v1032_v25 = vpack.c.bf16 (!%p138_p2), %v837_v22, %v835_v20  ;;  %v970_v26 = vpack.c.bf16 (!%p138_p2), %v204_v24, %v202_v23  ;;  %v840_v27 = vld [vmem:[%s1945_s1 + $0x248] sm:$0xff] (!%p138_p2)  ;;  %v842_v28 = vld [vmem:[%s1945_s1 + $0x258] sm:$0xff] (!%p138_p2)  ;;  %v201_v29 = vld [vmem:[%s1945_s1 + $0x40] sm:$0xff] (!%p138_p2) }
   0xc   : > { %1031 = vmatprep.subr.bf16.mxu0 (!%p138_p2), %v1030_v17  ;;  %v1034_v30 = vpack.c.bf16 (!%p138_p2), %v842_v28, %v840_v27  ;;  %v203_v31 = vld [vmem:[%s1945_s1 + $0x50] sm:$0xff] (!%p138_p2)  ;;  %v839_v32 = vld [vmem:[%s1945_s1 + $0x240] sm:$0xff] (!%p138_p2)  ;;  %v206_v35 = vld [vmem:[%s1945_s1 + $0x68] sm:$0xff] (!%p138_p2) }
   0xd   : > { %v841_v33 = vld [vmem:[%s1945_s1 + $0x250] sm:$0xff]  ;;  %969 = vmatpush1.bf16.msra.mxu1 %v968_v21  ;;  %v972_v34 = vpack.c.bf16 %v203_v31, %v201_v29  ;;  %v208_v36 = vld [vmem:[%s1945_s1 + $0x78] sm:$0xff]  ;;  %v844_v37 = vld [vmem:[%s1945_s1 + $0x268] sm:$0xff]  ;;  %s1950_s13 = smov (!%p1461_p3, %s823_s13), 1 }
   0xe   : > { %1033 = vmatpush1.bf16.msra.mxu0 %v1032_v25  ;;  %971 = vmatprep.subr.bf16.mxu1 %v970_v26  ;;  %v1036_v38 = vpack.c.bf16 %v841_v33, %v839_v32  ;;  %v974_v39 = vpack.c.bf16 %v208_v36, %v206_v35  ;;  %v846_v40 = vld [vmem:[%s1945_s1 + $0x278] sm:$0xff]  ;;  %v205_v41 = vld [vmem:[%s1945_s1 + $0x60] sm:$0xff]  ;;  %v207_v42 = vld [vmem:[%s1945_s1 + $0x70] sm:$0xff]  ;;  %s1210_s6 = smul.u32 80, %s1950_s13  ;;  %s961_s11 = sshll.u32 %s1950_s13, 6 }
   0xf   : > { %1035 = vmatprep.subr.bf16.mxu0 %v1034_v30  ;;  %v1038_v43 = vpack.c.bf16 %v846_v40, %v844_v37  ;;  %v843_v44 = vld [vmem:[%s1945_s1 + $0x260] sm:$0xff]  ;;  %v845_v45 = vld [vmem:[%s1945_s1 + $0x270] sm:$0xff]  ;;  %v210_v46 = vld [vmem:[%s1945_s1 + $0x88] sm:$0xff]  ;;  %v976_v50 = vpack.c.bf16 %v207_v42, %v205_v41  ;;  %s170_s15 = scalar_lea.vmem %s1947_s3, %s961_s11 }
  0x10   : > { %v212_v47 = vld [vmem:[%s1945_s1 + $0x98] sm:$0xff]  ;;  %v848_v48 = vld [vmem:[%s1945_s1 + $0x288] sm:$0xff]  ;;  %v1040_v51 = vpack.c.bf16 %v845_v45, %v843_v44  ;;  %v209_v53 = vld [vmem:[%s1945_s1 + $0x80] sm:$0xff]  ;;  %s1553_s4 = scalar_lea.vmem %s1944_s0, %s1210_s6 }
  0x11   : > { %v850_v49 = vld [vmem:[%s1945_s1 + $0x298] sm:$0xff]  ;;  %973 = vmatpush1.bf16.msra.mxu1 %v972_v34  ;;  %v978_v52 = vpack.c.bf16 %v212_v47, %v210_v46  ;;  %v211_v54 = vld [vmem:[%s1945_s1 + $0x90] sm:$0xff]  ;;  %v847_v55 = vld [vmem:[%s1945_s1 + $0x280] sm:$0xff] }
  0x12   : > { %1037 = vmatpush1.bf16.msra.mxu0 %v1036_v38  ;;  %975 = vmatprep.subr.bf16.mxu1 %v974_v39  ;;  %v1042_v56 = vpack.c.bf16 %v850_v49, %v848_v48  ;;  %v849_v57 = vld [vmem:[%s1945_s1 + $0x290] sm:$0xff]  ;;  %v214_v58 = vld [vmem:[%s1945_s1 + $0xa8] sm:$0xff]  ;;  %v216_v59 = vld [vmem:[%s1945_s1 + $0xb8] sm:$0xff]  ;;  %v980_v62 = vpack.c.bf16 %v211_v54, %v209_v53 }
  0x13   : > { %1039 = vmatprep.subr.bf16.mxu0 %v1038_v43  ;;  %v852_v60 = vld [vmem:[%s1945_s1 + $0x2a8] sm:$0xff]  ;;  %v854_v61 = vld [vmem:[%s1945_s1 + $0x2b8] sm:$0xff]  ;;  %v1044_v63 = vpack.c.bf16 %v849_v57, %v847_v55  ;;  %v982_v0 = vpack.c.bf16 %v216_v59, %v214_v58  ;;  %v213_v1 = vld [vmem:[%s1945_s1 + $0xa0] sm:$0xff] }
  0x14   : > { %v215_v2 = vld [vmem:[%s1945_s1 + $0xb0] sm:$0xff]  ;;  %v851_v3 = vld [vmem:[%s1945_s1 + $0x2a0] sm:$0xff]  ;;  %v1046_v4 = vpack.c.bf16 %v854_v61, %v852_v60  ;;  %v218_v6 = vld [vmem:[%s1945_s1 + $0xc8] sm:$0xff] }
  0x15   : > { %977 = vmatpush1.bf16.msra.mxu1 %v976_v50  ;;  %v853_v5 = vld [vmem:[%s1945_s1 + $0x2b0] sm:$0xff]  ;;  %v220_v7 = vld [vmem:[%s1945_s1 + $0xd8] sm:$0xff]  ;;  %v856_v8 = vld [vmem:[%s1945_s1 + $0x2c8] sm:$0xff]  ;;  %v984_v10 = vpack.c.bf16 %v215_v2, %v213_v1 }
  0x16   : > { %1041 = vmatpush1.bf16.msra.mxu0 %v1040_v51  ;;  %979 = vmatprep.subr.bf16.mxu1 %v978_v52  ;;  %v858_v9 = vld [vmem:[%s1945_s1 + $0x2d8] sm:$0xff]  ;;  %v1048_v11 = vpack.c.bf16 %v853_v5, %v851_v3  ;;  %v986_v12 = vpack.c.bf16 %v220_v7, %v218_v6  ;;  %v217_v13 = vld [vmem:[%s1945_s1 + $0xc0] sm:$0xff]  ;;  %v219_v14 = vld [vmem:[%s1945_s1 + $0xd0] sm:$0xff] }
  0x17   : > { %1043 = vmatprep.subr.bf16.mxu0 %v1042_v56  ;;  %v855_v15 = vld [vmem:[%s1945_s1 + $0x2c0] sm:$0xff]  ;;  %v1050_v16 = vpack.c.bf16 %v858_v9, %v856_v8  ;;  %v857_v17 = vld [vmem:[%s1945_s1 + $0x2d0] sm:$0xff]  ;;  %v222_v18 = vld [vmem:[%s1945_s1 + $0xe8] sm:$0xff]  ;;  %v988_v22 = vpack.c.bf16 %v219_v14, %v217_v13 }
  0x18   : > { %v224_v19 = vld [vmem:[%s1945_s1 + $0xf8] sm:$0xff]  ;;  %v860_v20 = vld [vmem:[%s1945_s1 + $0x2e8] sm:$0xff]  ;;  %v1052_v23 = vpack.c.bf16 %v857_v17, %v855_v15  ;;  %v221_v25 = vld [vmem:[%s1945_s1 + $0xe0] sm:$0xff] }
  0x19   : > { %981 = vmatpush1.bf16.msra.mxu1 %v980_v62  ;;  %v862_v21 = vld [vmem:[%s1945_s1 + $0x2f8] sm:$0xff]  ;;  %v990_v24 = vpack.c.bf16 %v224_v19, %v222_v18  ;;  %v223_v26 = vld [vmem:[%s1945_s1 + $0xf0] sm:$0xff]  ;;  %v859_v27 = vld [vmem:[%s1945_s1 + $0x2e0] sm:$0xff] }
  0x1a   : > { %1045 = vmatpush1.bf16.msra.mxu0 %v1044_v63  ;;  %983 = vmatprep.subr.bf16.mxu1 %v982_v0  ;;  %v1054_v28 = vpack.c.bf16 %v862_v21, %v860_v20  ;;  %v861_v29 = vld [vmem:[%s1945_s1 + $0x2f0] sm:$0xff]  ;;  %v226_v30 = vld [vmem:[%s1945_s1 + $0x108] sm:$0xff]  ;;  %v228_v31 = vld [vmem:[%s1945_s1 + $0x118] sm:$0xff]  ;;  %v992_v34 = vpack.c.bf16 %v223_v26, %v221_v25 }
  0x1b   : > { %1047 = vmatprep.subr.bf16.mxu0 %v1046_v4  ;;  %v864_v32 = vld [vmem:[%s1945_s1 + $0x308] sm:$0xff]  ;;  %v866_v33 = vld [vmem:[%s1945_s1 + $0x318] sm:$0xff]  ;;  %v1056_v35 = vpack.c.bf16 %v861_v29, %v859_v27  ;;  %v994_v36 = vpack.c.bf16 %v228_v31, %v226_v30  ;;  %v225_v37 = vld [vmem:[%s1945_s1 + $0x100] sm:$0xff] }
  0x1c   : > { %v227_v38 = vld [vmem:[%s1945_s1 + $0x110] sm:$0xff]  ;;  %v863_v39 = vld [vmem:[%s1945_s1 + $0x300] sm:$0xff]  ;;  %v1058_v40 = vpack.c.bf16 %v866_v33, %v864_v32  ;;  %v230_v42 = vld [vmem:[%s1945_s1 + $0x128] sm:$0xff] }
  0x1d   : > { %985 = vmatpush1.bf16.msra.mxu1 %v984_v10  ;;  %v865_v41 = vld [vmem:[%s1945_s1 + $0x310] sm:$0xff]  ;;  %v232_v43 = vld [vmem:[%s1945_s1 + $0x138] sm:$0xff]  ;;  %v868_v44 = vld [vmem:[%s1945_s1 + $0x328] sm:$0xff]  ;;  %v996_v46 = vpack.c.bf16 %v227_v38, %v225_v37 }
  0x1e   : > { %1049 = vmatpush1.bf16.msra.mxu0 %v1048_v11  ;;  %987 = vmatprep.subr.bf16.mxu1 %v986_v12  ;;  %v870_v45 = vld [vmem:[%s1945_s1 + $0x338] sm:$0xff]  ;;  %v1060_v47 = vpack.c.bf16 %v865_v41, %v863_v39  ;;  %v998_v48 = vpack.c.bf16 %v232_v43, %v230_v42  ;;  %v229_v49 = vld [vmem:[%s1945_s1 + $0x120] sm:$0xff]  ;;  %v231_v50 = vld [vmem:[%s1945_s1 + $0x130] sm:$0xff] }
  0x1f   : > { %1051 = vmatprep.subr.bf16.mxu0 %v1050_v16  ;;  %v867_v51 = vld [vmem:[%s1945_s1 + $0x320] sm:$0xff]  ;;  %v1062_v52 = vpack.c.bf16 %v870_v45, %v868_v44  ;;  %v869_v53 = vld [vmem:[%s1945_s1 + $0x330] sm:$0xff]  ;;  %v234_v54 = vld [vmem:[%s1945_s1 + $0x148] sm:$0xff]  ;;  %v1000_v58 = vpack.c.bf16 %v231_v50, %v229_v49 }
  0x20   : > { %v236_v55 = vld [vmem:[%s1945_s1 + $0x158] sm:$0xff]  ;;  %v872_v56 = vld [vmem:[%s1945_s1 + $0x348] sm:$0xff]  ;;  %v1064_v59 = vpack.c.bf16 %v869_v53, %v867_v51  ;;  %v233_v61 = vld [vmem:[%s1945_s1 + $0x140] sm:$0xff] }
  0x21   : > { %989 = vmatpush1.bf16.msra.mxu1 %v988_v22  ;;  %v874_v57 = vld [vmem:[%s1945_s1 + $0x358] sm:$0xff]  ;;  %v1002_v60 = vpack.c.bf16 %v236_v55, %v234_v54  ;;  %v235_v62 = vld [vmem:[%s1945_s1 + $0x150] sm:$0xff]  ;;  %v871_v63 = vld [vmem:[%s1945_s1 + $0x340] sm:$0xff] }
  0x22   : > { %1053 = vmatpush1.bf16.msra.mxu0 %v1052_v23  ;;  %991 = vmatprep.subr.bf16.mxu1 %v990_v24  ;;  %v1066_v0 = vpack.c.bf16 %v874_v57, %v872_v56  ;;  %v873_v1 = vld [vmem:[%s1945_s1 + $0x350] sm:$0xff]  ;;  %v238_v2 = vld [vmem:[%s1945_s1 + $0x168] sm:$0xff]  ;;  %v240_v3 = vld [vmem:[%s1945_s1 + $0x178] sm:$0xff]  ;;  %v1004_v6 = vpack.c.bf16 %v235_v62, %v233_v61 }
  0x23   : > { %1055 = vmatprep.subr.bf16.mxu0 %v1054_v28  ;;  %v876_v4 = vld [vmem:[%s1945_s1 + $0x368] sm:$0xff]  ;;  %v878_v5 = vld [vmem:[%s1945_s1 + $0x378] sm:$0xff]  ;;  %v237_v7 = vld [vmem:[%s1945_s1 + $0x160] sm:$0xff]  ;;  %v1068_v9 = vpack.c.bf16 %v873_v1, %v871_v63  ;;  %v1006_v10 = vpack.c.bf16 %v240_v3, %v238_v2 }
  0x24   : > { %v239_v8 = vld [vmem:[%s1945_s1 + $0x170] sm:$0xff]  ;;  %v875_v11 = vld [vmem:[%s1945_s1 + $0x360] sm:$0xff]  ;;  %v242_v13 = vld [vmem:[%s1945_s1 + $0x188] sm:$0xff]  ;;  %v1070_v14 = vpack.c.bf16 %v878_v5, %v876_v4 }
  0x25   : > { %993 = vmatpush1.bf16.msra.mxu1 %v992_v34  ;;  %v877_v12 = vld [vmem:[%s1945_s1 + $0x370] sm:$0xff]  ;;  %v244_v15 = vld [vmem:[%s1945_s1 + $0x198] sm:$0xff]  ;;  %v880_v16 = vld [vmem:[%s1945_s1 + $0x388] sm:$0xff]  ;;  %v1008_v21 = vpack.c.bf16 %v239_v8, %v237_v7 }
  0x26   : > { %1057 = vmatpush1.bf16.msra.mxu0 %v1056_v35  ;;  %995 = vmatprep.subr.bf16.mxu1 %v994_v36  ;;  %v186_v17 = vld [vmem:[%s1553_s4 + $0x8] sm:$0xff]  ;;  %v882_v18 = vld [vmem:[%s1945_s1 + $0x398] sm:$0xff]  ;;  %v1072_v24 = vpack.c.bf16 %v877_v12, %v875_v11  ;;  %v1010_v25 = vpack.c.bf16 %v244_v15, %v242_v13  ;;  %v241_v26 = vld [vmem:[%s1945_s1 + $0x180] sm:$0xff] }
  0x27   : > { %1059 = vmatprep.subr.bf16.mxu0 %v1058_v40  ;;  %321 = vmatprep.mubr.f32.mxu1 %v186_v17  ;;  %v355_v19 = vld [vmem:[%s1553_s4 + $0x8] sm:$0xfe]  ;;  %v1576_v20 = vld [vmem:[%s1553_s4 + $0x18] sm:$0xff]  ;;  %v243_v27 = vld [vmem:[%s1945_s1 + $0x190] sm:$0xff]  ;;  %v1074_v29 = vpack.c.bf16 %v882_v18, %v880_v16 }
  0x28   : > { %v443_v22 = vrot.slane %v355_v19, 1  ;;  %v444_v23 = vrot.slane %v1576_v20, 1  ;;  %v879_v28 = vld [vmem:[%s1945_s1 + $0x380] sm:$0xff]  ;;  %v881_v30 = vld [vmem:[%s1945_s1 + $0x390] sm:$0xff]  ;;  %v246_v31 = vld [vmem:[%s1945_s1 + $0x1a8] sm:$0xff]  ;;  %v1012_v36 = vpack.c.bf16 %v243_v27, %v241_v26 }
  0x29   : > { %997 = vmatpush1.bf16.msra.mxu1 %v996_v46  ;;  %v248_v32 = vld [vmem:[%s1945_s1 + $0x1b8] sm:$0xff]  ;;  %v884_v34 = vld [vmem:[%s1945_s1 + $0x3a8] sm:$0xff]  ;;  %v1076_v37 = vpack.c.bf16 %v881_v30, %v879_v28  ;;  %v245_v39 = vld [vmem:[%s1945_s1 + $0x1a0] sm:$0xff] }
  0x2a   : > { %1061 = vmatpush1.bf16.msra.mxu0 %v1060_v47  ;;  %999 = vmatprep.subr.bf16.mxu1 %v998_v48  ;;  %v445_v33 = vsel %vm439_vm0, %v443_v22, %v444_v23  ;;  %v886_v35 = vld [vmem:[%s1945_s1 + $0x3b8] sm:$0xff]  ;;  %v1014_v38 = vpack.c.bf16 %v248_v32, %v246_v31  ;;  %v247_v40 = vld [vmem:[%s1945_s1 + $0x1b0] sm:$0xff]  ;;  %v883_v41 = vld [vmem:[%s1945_s1 + $0x3a0] sm:$0xff] }
  0x2b   : > { %1063 = vmatprep.subr.bf16.mxu0 %v1062_v52  ;;  %530 = vmatprep.mubr.f32.mxu0 %v445_v33  ;;  %v1078_v42 = vpack.c.bf16 %v886_v35, %v884_v34  ;;  %v885_v43 = vld [vmem:[%s1945_s1 + $0x3b0] sm:$0xff]  ;;  %v250_v44 = vld [vmem:[%s1945_s1 + $0x1c8] sm:$0xff]  ;;  %v252_v45 = vld [vmem:[%s1945_s1 + $0x1d8] sm:$0xff]  ;;  %v1016_v48 = vpack.c.bf16 %v247_v40, %v245_v39 }
  0x2c   : > { %v888_v46 = vld [vmem:[%s1945_s1 + $0x3c8] sm:$0xff]  ;;  %v890_v47 = vld [vmem:[%s1945_s1 + $0x3d8] sm:$0xff]  ;;  %v1080_v49 = vpack.c.bf16 %v885_v43, %v883_v41  ;;  %v1018_v50 = vpack.c.bf16 %v252_v45, %v250_v44  ;;  %v249_v51 = vld [vmem:[%s1945_s1 + $0x1c0] sm:$0xff] }
  0x2d   : > { %1001 = vmatpush1.bf16.msra.mxu1 %v1000_v58  ;;  %v251_v52 = vld [vmem:[%s1945_s1 + $0x1d0] sm:$0xff]  ;;  %v887_v53 = vld [vmem:[%s1945_s1 + $0x3c0] sm:$0xff]  ;;  %v1082_v54 = vpack.c.bf16 %v890_v47, %v888_v46  ;;  %v254_v56 = vld [vmem:[%s1945_s1 + $0x1e8] sm:$0xff] }
  0x2e   : > { %1065 = vmatpush1.bf16.msra.mxu0 %v1064_v59  ;;  %1003 = vmatprep.subr.bf16.mxu1 %v1002_v60  ;;  %v889_v55 = vld [vmem:[%s1945_s1 + $0x3d0] sm:$0xff]  ;;  %v256_v57 = vld [vmem:[%s1945_s1 + $0x1f8] sm:$0xff]  ;;  %v892_v58 = vld [vmem:[%s1945_s1 + $0x3e8] sm:$0xff]  ;;  %v1020_v60 = vpack.c.bf16 %v251_v52, %v249_v51 }
  0x2f   : > { %1067 = vmatprep.subr.bf16.mxu0 %v1066_v0  ;;  %v894_v59 = vld [vmem:[%s1945_s1 + $0x3f8] sm:$0xff]  ;;  %v253_v61 = vld [vmem:[%s1945_s1 + $0x1e0] sm:$0xff]  ;;  %v255_v62 = vld [vmem:[%s1945_s1 + $0x1f0] sm:$0xff]  ;;  %v1084_v63 = vpack.c.bf16 %v889_v55, %v887_v53  ;;  %v1022_v0 = vpack.c.bf16 %v256_v57, %v254_v56 }
  0x30   : > { %v891_v1 = vld [vmem:[%s1945_s1 + $0x3e0] sm:$0xff]  ;;  %v893_v2 = vld [vmem:[%s1945_s1 + $0x3f0] sm:$0xff]  ;;  %v896_v3 = vld [vmem:[%s1945_s1 + $0x408] sm:$0xff]  ;;  %v1086_v4 = vpack.c.bf16 %v894_v59, %v892_v58  ;;  %v1024_v8 = vpack.c.bf16 %v255_v62, %v253_v61 }
  0x31   : > { %1005 = vmatpush1.bf16.msra.mxu1 %v1004_v6  ;;  %v898_v5 = vld [vmem:[%s1945_s1 + $0x418] sm:$0xff]  ;;  %v354_v6 = vld [vmem:[%s1553_s4] sm:$0xfe]  ;;  %v1674_v7 = vld [vmem:[%s1553_s4 + $0x10] sm:$0xff] }
  0x32   : > { %1069 = vmatpush1.bf16.msra.mxu0 %v1068_v9  ;;  %1007 = vmatprep.subr.bf16.mxu1 %v1006_v10  ;;  %v1088_v9 = vpack.c.bf16 %v893_v2, %v891_v1  ;;  %v1090_v10 = vpack.c.bf16 %v898_v5, %v896_v3  ;;  %v440_v11 = vrot.slane %v354_v6, 1  ;;  %v441_v12 = vrot.slane %v1674_v7, 1  ;;  %v895_v13 = vld [vmem:[%s1945_s1 + $0x400] sm:$0xff]  ;;  %v900_v15 = vld [vmem:[%s1945_s1 + $0x428] sm:$0xff]  ;;  %v902_v16 = vld [vmem:[%s1945_s1 + $0x438] sm:$0xff] }
  0x33   : > { %1071 = vmatprep.subr.bf16.mxu0 %v1070_v14  ;;  %v897_v14 = vld [vmem:[%s1945_s1 + $0x410] sm:$0xff]  ;;  %v1690_v17 = vld [vmem:[%s1553_s4 + $0x28] sm:$0xff]  ;;  %v1693_v18 = vld [vmem:[%s1553_s4 + $0x20] sm:$0xff]  ;;  %v638_v33 = vrot.slane %v1674_v7, 2 }
  0x34   : > { %v185_v19 = vld [vmem:[%s1553_s4] sm:$0xff]  ;;  %v448_v22 = vrot.slane %v1690_v17, 1  ;;  %v901_v27 = vld [vmem:[%s1945_s1 + $0x430] sm:$0xff]  ;;  %v446_v28 = vrot.slane %v1693_v18, 1  ;;  %v904_v30 = vld [vmem:[%s1945_s1 + $0x448] sm:$0xff] }
  0x35   : > { %1009 = vmatpush1.bf16.msra.mxu1 %v1008_v21  ;;  %v1092_v21 = vpack.c.bf16 %v897_v14, %v895_v13  ;;  %v899_v26 = vld [vmem:[%s1945_s1 + $0x420] sm:$0xff]  ;;  %v906_v31 = vld [vmem:[%s1945_s1 + $0x458] sm:$0xff]  ;;  %v1715_v32 = vld [vmem:[%s1553_s4 + $0x30] sm:$0xff] }
  0x36   : > { %1073 = vmatpush1.bf16.msra.mxu0 %v1072_v24  ;;  %1011 = vmatprep.subr.bf16.mxu1 %v1010_v25  ;;  %v442_v24 = vsel %vm439_vm0, %v440_v11, %v441_v12  ;;  %v1094_v25 = vpack.c.bf16 %v902_v16, %v900_v15  ;;  %v1096_v34 = vpack.c.bf16 %v901_v27, %v899_v26  ;;  %v903_v39 = vld [vmem:[%s1945_s1 + $0x440] sm:$0xff]  ;;  %v905_v40 = vld [vmem:[%s1945_s1 + $0x450] sm:$0xff]  ;;  %v908_v44 = vld [vmem:[%s1945_s1 + $0x468] sm:$0xff] }
  0x37   : > { %1075 = vmatprep.subr.bf16.mxu0 %v1074_v29  ;;  %v1706_v29 = vld [vmem:[%s1553_s4 + $0x38] sm:$0xff]  ;;  %v449_v35 = vsel %vm439_vm0, %v444_v23, %v448_v22  ;;  %v447_v41 = vsel %vm439_vm0, %v441_v12, %v446_v28  ;;  %v450_v23 = vrot.slane %v1715_v32, 1  ;;  %v362_v46 = vld [vmem:[%s1553_s4 + $0x40] sm:$0x1]  ;;  %v564_v51 = vld [vmem:[%s1553_s4 + $0x8] sm:$0xfc] }
  0x38   : > { %v910_v45 = vld [vmem:[%s1945_s1 + $0x478] sm:$0xff]  ;;  %v907_v53 = vld [vmem:[%s1945_s1 + $0x460] sm:$0xff]  ;;  %v454_v56 = vrot.slane %v362_v46, 1  ;;  %v912_v57 = vld [vmem:[%s1945_s1 + $0x488] sm:$0xff]  ;;  %v640_v59 = vrot.slane %v564_v51, 2 }
  0x39   : > { %1013 = vmatpush1.bf16.msra.mxu1 %v1012_v36  ;;  %v452_v36 = vrot.slane %v1706_v29, 1  ;;  %v1102_v52 = vpack.c.bf16 %v910_v45, %v908_v44  ;;  %v451_v55 = vsel %vm439_vm0, %v446_v28, %v450_v23  ;;  %v914_v58 = vld [vmem:[%s1945_s1 + $0x498] sm:$0xff]  ;;  %v911_v2 = vld [vmem:[%s1945_s1 + $0x480] sm:$0xff]  ;;  %v913_v3 = vld [vmem:[%s1945_s1 + $0x490] sm:$0xff] }
  0x3a   : > { %1077 = vmatpush1.bf16.msra.mxu0 %v1076_v37  ;;  %1015 = vmatprep.subr.bf16.mxu1 %v1014_v38  ;;  %v563_v37 = vld [vmem:[%s1553_s4] sm:$0xfc]  ;;  %v1098_v38 = vpack.c.bf16 %v906_v31, %v904_v30  ;;  %v1106_v1 = vpack.c.bf16 %v914_v58, %v912_v57  ;;  %v916_v5 = vld [vmem:[%s1945_s1 + $0x4a8] sm:$0xff]  ;;  %v918_v6 = vld [vmem:[%s1945_s1 + $0x4b8] sm:$0xff] }
  0x3b   : > { %1079 = vmatprep.subr.bf16.mxu0 %v1078_v42  ;;  %v363_v42 = vld [vmem:[%s1553_s4 + $0x48] sm:$0x1]  ;;  %v637_v43 = vrot.slane %v563_v37, 2  ;;  %v1110_v11 = vpack.c.bf16 %v918_v6, %v916_v5  ;;  %v915_v12 = vld [vmem:[%s1945_s1 + $0x4a0] sm:$0xff]  ;;  %v917_v13 = vld [vmem:[%s1945_s1 + $0x4b0] sm:$0xff] }
  0x3c   : > { %v920_v14 = vld [vmem:[%s1945_s1 + $0x4c8] sm:$0xff]  ;;  %v922_v15 = vld [vmem:[%s1945_s1 + $0x4d8] sm:$0xff]  ;;  %v1112_v16 = vpack.c.bf16 %v917_v13, %v915_v12  ;;  %v923_v28 = vld [vmem:[%s1945_s1 + $0x4e0] sm:$0xff] }
  0x3d   : > { %1017 = vmatpush1.bf16.msra.mxu1 %v1016_v48  ;;  %v1744_v47 = vsel %vm636_vm1, %v637_v43, %v638_v33  ;;  %v1100_v48 = vpack.c.bf16 %v905_v40, %v903_v39  ;;  %v925_v30 = vld [vmem:[%s1945_s1 + $0x4f0] sm:$0xff]  ;;  %v928_v31 = vld [vmem:[%s1945_s1 + $0x508] sm:$0xff]  ;;  %v927_v37 = vld [vmem:[%s1945_s1 + $0x500] sm:$0xff] }
  0x3e   : > { %1081 = vmatpush1.bf16.msra.mxu0 %v1080_v49  ;;  %1019 = vmatprep.subr.bf16.mxu1 %v1018_v50  ;;  %v453_v49 = vsel %vm439_vm0, %v448_v22, %v452_v36  ;;  %v456_v50 = vrot.slane %v363_v42, 1  ;;  %v921_v22 = vld [vmem:[%s1945_s1 + $0x4d0] sm:$0xff]  ;;  %v932_v39 = vld [vmem:[%s1945_s1 + $0x528] sm:$0xff]  ;;  %v934_v40 = vld [vmem:[%s1945_s1 + $0x538] sm:$0xff] }
  0x3f   : > { %1083 = vmatprep.subr.bf16.mxu0 %v1082_v54  ;;  %v909_v54 = vld [vmem:[%s1945_s1 + $0x470] sm:$0xff]  ;;  %v931_v42 = vld [vmem:[%s1945_s1 + $0x520] sm:$0xff]  ;;  %v936_v44 = vld [vmem:[%s1945_s1 + $0x548] sm:$0xff] }
  0x40   : > { %v1104_v61 = vpack.c.bf16 %v909_v54, %v907_v53  ;;  %v457_v62 = vsel %vm439_vm0, %v452_v36, %v456_v50  ;;  %v933_v43 = vld [vmem:[%s1945_s1 + $0x530] sm:$0xff]  ;;  %v938_v45 = vld [vmem:[%s1945_s1 + $0x558] sm:$0xff]  ;;  %v940_v51 = vld [vmem:[%s1945_s1 + $0x568] sm:$0xff] }
  0x41   : > { %1021 = vmatpush1.bf16.msra.mxu1 %v1020_v60  ;;  %v641_v60 = vrot.slane %v1576_v20, 2  ;;  %v1128_v46 = vpack.c.bf16 %v933_v43, %v931_v42  ;;  %v937_v50 = vld [vmem:[%s1945_s1 + $0x550] sm:$0xff]  ;;  %v944_v57 = vld [vmem:[%s1945_s1 + $0x588] sm:$0xff]  ;;  %v946_v58 = vld [vmem:[%s1945_s1 + $0x598] sm:$0xff] }
  0x42   : > { %1085 = vmatpush1.bf16.msra.mxu0 %v1084_v63  ;;  %1023 = vmatprep.subr.bf16.mxu1 %v1022_v0  ;;  %v645_v63 = vrot.slane %v1690_v17, 2  ;;  %v649_v0 = vrot.slane %v1706_v29, 2  ;;  %v947_v6 = vld [vmem:[%s1945_s1 + $0x5a0] sm:$0xff] }
  0x43   : > { %1087 = vmatprep.subr.bf16.mxu0 %v1086_v4  ;;  %v455_v4 = vsel %vm439_vm0, %v450_v23, %v454_v56  ;;  %v1126_v23 = vpack.c.bf16 %v934_v40, %v932_v39  ;;  %v941_v56 = vld [vmem:[%s1945_s1 + $0x570] sm:$0xff]  ;;  %v951_v13 = vld [vmem:[%s1945_s1 + $0x5c0] sm:$0xff] }
  0x45   : > { %1025 = vmatpush1.bf16.msra.mxu1 %v1024_v8  ;;  %v642_v8 = vsel %vm636_vm1, %v640_v59, %v641_v60 }
  0x46   : > { %1089 = vmatpush1.bf16.msra.mxu0 %v1088_v9  ;;  %1154 = vmatprep.subr.bf16.mxu1 %v1090_v10  ;;  %v1108_v9 = vpack.c.bf16 %v913_v3, %v911_v2  ;;  %v948_v2 = vld [vmem:[%s1945_s1 + $0x5a8] sm:$0xff]  ;;  %v950_v3 = vld [vmem:[%s1945_s1 + $0x5b8] sm:$0xff] }
  0x47   : > { %1091 = vmatprep.subr.bf16.mxu0 %v1090_v10  ;;  %v650_v10 = vsel %vm636_vm1, %v645_v63, %v649_v0  ;;  %v1142_v5 = vpack.c.bf16 %v950_v3, %v948_v2 }
  0x48   : > { %322 = vmatmul.mubr.f32.vlgmr.msra.gmra.mrb[0].mxu1 %v185_v19  ;;  %v1114_v19 = vpack.c.bf16 %v922_v15, %v920_v14  ;;  %v953_v14 = vld [vmem:[%s1945_s1 + $0x5d0] sm:$0xff]  ;;  %v956_v15 = vld [vmem:[%s1945_s1 + $0x5e8] sm:$0xff] }
  0x49   : > { %531 = vmatmul.mubr.f32.vlgmr.msra.gmra.mrb[0].mxu0 %v442_v24  ;;  %1170 = vmatpush1.bf16.msra.mxu1 %v1092_v21  ;;  %v924_v24 = vld [vmem:[%s1945_s1 + $0x4e8] sm:$0xff] }
  0x4a   : > { %1093 = vmatpush1.bf16.msra.mxu0 %v1092_v21  ;;  %1155 = vmatprep.subr.bf16.mxu1 %v1094_v25  ;;  %v919_v21 = vld [vmem:[%s1945_s1 + $0x4c0] sm:$0xff] }
  0x4b   : > { %1095 = vmatprep.subr.bf16.mxu0 %v1094_v25  ;;  %327 = vmatprep.mubr.f32.mxu1 %v1576_v20  ;;  %v926_v25 = vld [vmem:[%s1945_s1 + $0x4f8] sm:$0xff]  ;;  %v1116_v26 = vpack.c.bf16 %v921_v22, %v919_v21  ;;  %v955_v22 = vld [vmem:[%s1945_s1 + $0x5e0] sm:$0xff] }
  0x4c   : > { %328 = vmatmul.mubr.f32.gmra.mrb[2].mxu1 %v1674_v7  ;;  %536 = vmatprep.mubr.f32.mxu0 %v449_v35  ;;  %v1118_v27 = vpack.c.bf16 %v926_v25, %v924_v24  ;;  %v1120_v35 = vpack.c.bf16 %v925_v30, %v923_v28  ;;  %v957_v24 = vld [vmem:[%s1945_s1 + $0x5f0] sm:$0xff]  ;;  %v566_v25 = vld [vmem:[%s1553_s4 + $0x48] sm:$0x3] }
  0x4d   : > { %1171 = vmatpush1.bf16.msra.mxu1 %v1096_v34  ;;  %537 = vmatmul.mubr.f32.gmra.mrb[2].mxu0 %v447_v41  ;;  %v1152_v28 = vpack.c.bf16 %v957_v24, %v955_v22  ;;  %v653_v30 = vrot.slane %v566_v25, 2 }
  0x4e   : > { %1097 = vmatpush1.bf16.msra.mxu0 %v1096_v34  ;;  %1156 = vmatprep.subr.bf16.mxu1 %v1098_v38  ;;  %v930_v34 = vld [vmem:[%s1945_s1 + $0x518] sm:$0xff] }
  0x4f   : > { %1099 = vmatprep.subr.bf16.mxu0 %v1098_v38  ;;  %333 = vmatprep.mubr.f32.mxu1 %v1690_v17  ;;  %v1122_v36 = vpack.c.bf16 %v930_v34, %v928_v31  ;;  %v929_v38 = vld [vmem:[%s1945_s1 + $0x510] sm:$0xff]  ;;  %v565_v31 = vld [vmem:[%s1553_s4 + $0x40] sm:$0x3] }
  0x50   : > { %334 = vmatmul.mubr.f32.gmra.mrb[4].mxu1 %v1693_v18  ;;  %542 = vmatprep.mubr.f32.mxu0 %v453_v49  ;;  %v1124_v41 = vpack.c.bf16 %v929_v38, %v927_v37  ;;  %v935_v49 = vld [vmem:[%s1945_s1 + $0x540] sm:$0xff] }
  0x51   : > { %1172 = vmatpush1.bf16.msra.mxu1 %v1100_v48  ;;  %543 = vmatmul.mubr.f32.gmra.mrb[4].mxu0 %v451_v55  ;;  %v1132_v53 = vpack.c.bf16 %v937_v50, %v935_v49  ;;  %v939_v55 = vld [vmem:[%s1945_s1 + $0x560] sm:$0xff] }
  0x52   : > { %1101 = vmatpush1.bf16.msra.mxu0 %v1100_v48  ;;  %1157 = vmatprep.subr.bf16.mxu1 %v1102_v52  ;;  %v1130_v48 = vpack.c.bf16 %v938_v45, %v936_v44  ;;  %v1136_v59 = vpack.c.bf16 %v941_v56, %v939_v55 }
  0x53   : > { %1103 = vmatprep.subr.bf16.mxu0 %v1102_v52  ;;  %339 = vmatprep.mubr.f32.mxu1 %v1706_v29  ;;  %v942_v52 = vld [vmem:[%s1945_s1 + $0x578] sm:$0xff]  ;;  %v173_v29 = vlaneseq }
  0x54   : > { %340 = vmatmul.mubr.f32.gmra.mrb[6].mxu1 %v1715_v32  ;;  %548 = vmatprep.mubr.f32.mxu0 %v457_v62  ;;  %v1134_v54 = vpack.c.bf16 %v942_v52, %v940_v51  ;;  %v943_v62 = vld [vmem:[%s1945_s1 + $0x580] sm:$0xff] }
  0x55   : > { %1173 = vmatpush1.bf16.msra.mxu1 %v1104_v61  ;;  %549 = vmatmul.mubr.f32.gmra.mrb[6].mxu0 %v455_v4 }
  0x56   : > { %1105 = vmatpush1.bf16.msra.mxu0 %v1104_v61  ;;  %1158 = vmatprep.subr.bf16.mxu1 %v1106_v1  ;;  %v1138_v61 = vpack.c.bf16 %v946_v58, %v944_v57 }
  0x57   : > { %1107 = vmatprep.subr.bf16.mxu0 %v1106_v1  ;;  %727 = vmatprep.mubr.f32.mxu0 %v642_v8  ;;  %v945_v1 = vld [vmem:[%s1945_s1 + $0x590] sm:$0xff] }
  0x58   : > { %739 = vmatprep.mubr.f32.mxu1 %v650_v10  ;;  %v1140_v4 = vpack.c.bf16 %v945_v1, %v943_v62  ;;  %v949_v8 = vld [vmem:[%s1945_s1 + $0x5b0] sm:$0xff]  ;;  %v954_v10 = vld [vmem:[%s1945_s1 + $0x5d8] sm:$0xff] }
  0x59   : > { %1174 = vmatpush1.bf16.msra.mxu1 %v1108_v9 }
  0x5a   : > { %1109 = vmatpush1.bf16.msra.mxu0 %v1108_v9  ;;  %1159 = vmatprep.subr.bf16.mxu1 %v1110_v11  ;;  %v952_v9 = vld [vmem:[%s1945_s1 + $0x5c8] sm:$0xff] }
  0x5b   : > { %1111 = vmatprep.subr.bf16.mxu0 %v1110_v11  ;;  %v1144_v11 = vpack.c.bf16 %v949_v8, %v947_v6  ;;  %v1146_v12 = vpack.c.bf16 %v954_v10, %v952_v9 }
  0x5d   : > { %1175 = vmatpush1.bf16.msra.mxu1 %v1112_v16 }
  0x5e   : > { %1113 = vmatpush1.bf16.msra.mxu0 %v1112_v16  ;;  %1160 = vmatprep.subr.bf16.mxu1 %v1114_v19  ;;  %v958_v16 = vld [vmem:[%s1945_s1 + $0x5f8] sm:$0xff] }
  0x5f   : > { %1115 = vmatprep.subr.bf16.mxu0 %v1114_v19  ;;  %v1148_v19 = vpack.c.bf16 %v953_v14, %v951_v13  ;;  %v1150_v21 = vpack.c.bf16 %v958_v16, %v956_v15 }
  0x61   : > { %1176 = vmatpush1.bf16.msra.mxu1 %v1116_v26 }
  0x62   : > { %1117 = vmatpush1.bf16.msra.mxu0 %v1116_v26  ;;  %1161 = vmatprep.subr.bf16.mxu1 %v1118_v27  ;;  %v643_v26 = vrot.slane %v1693_v18, 2  ;;  %v646_v18 = vsel %vm636_vm1, %v641_v60, %v645_v63  ;;  %v171_v60 = vld [vmem:[%s1946_s2] sm:$0x3] }
  0x63   : > { %1119 = vmatprep.subr.bf16.mxu0 %v1118_v27  ;;  %v647_v27 = vrot.slane %v1715_v32, 2 }
  0x64   : > { %v644_v37 = vsel %vm636_vm1, %v638_v33, %v643_v26 }
  0x65   : > { %1177 = vmatpush1.bf16.msra.mxu1 %v1120_v35  ;;  %v648_v34 = vsel %vm636_vm1, %v643_v26, %v647_v27 }
  0x66   : > { %1121 = vmatpush1.bf16.msra.mxu0 %v1120_v35  ;;  %1162 = vmatprep.subr.bf16.mxu1 %v1122_v36  ;;  %v651_v35 = vrot.slane %v565_v31, 2 }
  0x67   : > { %1123 = vmatprep.subr.bf16.mxu0 %v1122_v36  ;;  %v654_v36 = vsel %vm636_vm1, %v649_v0, %v653_v30  ;;  %v174_v0 = vshrl.u32 %v173_v29, 7 }
  0x68   : > { %v652_v32 = vsel %vm636_vm1, %v647_v27, %v651_v35 }
  0x69   : > { %1178 = vmatpush1.bf16.msra.mxu1 %v1124_v41  ;;  %v175_v20 = vsub.s32 0, %v174_v0 }
  0x6a   : > { %1125 = vmatpush1.bf16.msra.mxu0 %v1124_v41  ;;  %1163 = vmatprep.subr.bf16.mxu1 %v1126_v23 }
  0x6b   : > { %1127 = vmatprep.subr.bf16.mxu0 %v1126_v23  ;;  %v176_v40 = vrot.slane %v171_v60, %v175_v20 }
  0x6d   : > { %1179 = vmatpush1.bf16.msra.mxu1 %v1128_v46 }
  0x6e   : > { %1129 = vmatpush1.bf16.msra.mxu0 %v1128_v46  ;;  %1164 = vmatprep.subr.bf16.mxu1 %v1130_v48 }
  0x6f   : > { %1131 = vmatprep.subr.bf16.mxu0 %v1130_v48 }
  0x71   : > { %1180 = vmatpush1.bf16.msra.mxu1 %v1132_v53 }
  0x72   : > { %1133 = vmatpush1.bf16.msra.mxu0 %v1132_v53  ;;  %1165 = vmatprep.subr.bf16.mxu1 %v1134_v54 }
  0x73   : > { %1135 = vmatprep.subr.bf16.mxu0 %v1134_v54 }
  0x75   : > { %1181 = vmatpush1.bf16.msra.mxu1 %v1136_v59 }
  0x76   : > { %1137 = vmatpush1.bf16.msra.mxu0 %v1136_v59  ;;  %1166 = vmatprep.subr.bf16.mxu1 %v1138_v61 }
  0x77   : > { %1139 = vmatprep.subr.bf16.mxu0 %v1138_v61 }
  0x79   : > { %1182 = vmatpush1.bf16.msra.mxu1 %v1140_v4 }
  0x7a   : > { %1141 = vmatpush1.bf16.msra.mxu0 %v1140_v4  ;;  %1167 = vmatprep.subr.bf16.mxu1 %v1142_v5 }
  0x7b   : > { %1143 = vmatprep.subr.bf16.mxu0 %v1142_v5 }
  0x7d   : > { %1183 = vmatpush1.bf16.msra.mxu1 %v1144_v11 }
  0x7e   : > { %1145 = vmatpush1.bf16.msra.mxu0 %v1144_v11  ;;  %1168 = vmatprep.subr.bf16.mxu1 %v1146_v12 }
  0x7f   : > { %1147 = vmatprep.subr.bf16.mxu0 %v1146_v12 }
  0x81   : > { %1184 = vmatpush1.bf16.msra.mxu1 %v1148_v19 }
  0x82   : > { %1149 = vmatpush1.bf16.msra.mxu0 %v1148_v19  ;;  %1169 = vmatprep.subr.bf16.mxu1 %v1150_v21 }
  0x83   : > { %1151 = vmatprep.subr.bf16.mxu0 %v1150_v21 }
  0x85   : > { %1185 = vmatpush1.bf16.msra.mxu1 %v1152_v28 }
  0x86   : > { %1153 = vmatpush1.bf16.msra.mxu0 %v1152_v28 }
  0x88   : > { %740 = vmatmul.mubr.f32.vlgmr.msra.gmra.mrb[8].mxu1 %v648_v34 }
  0x89   : > { %728 = vmatmul.mubr.f32.vlgmr.msra.gmra.mrb[0].mxu0 %v1744_v47  ;;  %745 = vmatprep.mubr.f32.mxu1 %v654_v36  ;;  %v179_v47 = vsub.s32 1, %v174_v0 }
  0x8a   : > { %733 = vmatprep.mubr.f32.mxu0 %v646_v18 }
  0x8b   : > { %v180_v41 = vrot.slane %v171_v60, %v179_v47 }
  0x8c   : > { %746 = vmatmul.mubr.f32.gmra.mrb[10].mxu1 %v652_v32 }
  0x8d   : > { %734 = vmatmul.mubr.f32.gmra.mrb[2].mxu0 %v644_v37 }
 0x11b   : > { %v323_v17 = vpop.f32.mrb[0].mxu1 }
 0x11c   : > { %v325_v38 = vpop.f32.mrb[1].mxu1  ;;  %v346_v56 = vadd.f32 %v323_v17, %v176_v40 }
 0x11d   : > { %v347_v58 = vadd.f32 %v325_v38, %v180_v41 }
 0x11f   : > { %v329_v63 = vpop.f32.mrb[2].mxu1 }
 0x120   : > { %v331_v39 = vpop.f32.mrb[3].mxu1  ;;  %v348_v5 = vadd.f32 %v329_v63, %v176_v40 }
 0x121   : > { %v349_v8 = vadd.f32 %v331_v39, %v180_v41 }
 0x123   : > { %v335_v23 = vpop.f32.mrb[4].mxu1 }
 0x124   : > { %v350_v7 = vadd.f32 %v335_v23, %v176_v40  ;;  %v337_v33 = vpop.f32.mrb[5].mxu1  ;;  %v544_v42 = vpop.f32.mrb[4].mxu0 }
 0x125   : > { %v351_v43 = vadd.f32 %v337_v33, %v180_v41  ;;  %v546_v44 = vpop.f32.mrb[5].mxu0 }
 0x126   : > { %v559_v45 = vadd.f32 %v544_v42, %v350_v7 }
 0x127   : > { %v560_v46 = vadd.f32 %v546_v44, %v351_v43  ;;  %v341_v48 = vpop.f32.mrb[6].mxu1 }
 0x128   : > { %v352_v49 = vadd.f32 %v341_v48, %v176_v40  ;;  %v343_v50 = vpop.f32.mrb[7].mxu1  ;;  %v550_v51 = vpop.f32.mrb[6].mxu0 }
 0x129   : > { %v353_v52 = vadd.f32 %v343_v50, %v180_v41  ;;  %v552_v53 = vpop.f32.mrb[7].mxu0 }
 0x12a   : > { %v561_v54 = vadd.f32 %v550_v51, %v352_v49 }
 0x12b   : > { %v562_v55 = vadd.f32 %v552_v53, %v353_v52 }
 0x15b   : > { %v741_v57 = vpop.f32.mrb[8].mxu1 }
 0x15c   : > { %v729_v59 = vpop.f32.mrb[0].mxu0  ;;  %v756_v61 = vadd.f32 %v741_v57, %v559_v45  ;;  %v743_v62 = vpop.f32.mrb[9].mxu1 }
 0x15d   : > { %v1187_v1 = vadd.f32 %v729_v59, %v346_v56  ;;  %v731_v2 = vpop.f32.mrb[1].mxu0  ;;  %v757_v3 = vadd.f32 %v743_v62, %v560_v46 }
 0x15e   : > { %764 = vst [vmem:[%s170_s15 + $0x20] sm:$0xff] %v756_v61  ;;  %v1189_v4 = vadd.f32 %v731_v2, %v347_v58 }
 0x15f   : > { %760 = vst [vmem:[%s170_s15] sm:$0xff] %v1187_v1  ;;  %765 = vst [vmem:[%s170_s15 + $0x28] sm:$0xff] %v757_v3  ;;  %v747_v6 = vpop.f32.mrb[10].mxu1 }
 0x160   : > { %761 = vst [vmem:[%s170_s15 + $0x8] sm:$0xff] %v1189_v4  ;;  %v735_v9 = vpop.f32.mrb[2].mxu0  ;;  %v758_v10 = vadd.f32 %v747_v6, %v561_v54  ;;  %v749_v11 = vpop.f32.mrb[11].mxu1 }
 0x161   : > { %v1191_v12 = vadd.f32 %v735_v9, %v348_v5  ;;  %v737_v13 = vpop.f32.mrb[3].mxu0  ;;  %v759_v14 = vadd.f32 %v749_v11, %v562_v55 }
 0x162   : > { %766 = vst [vmem:[%s170_s15 + $0x30] sm:$0xff] %v758_v10  ;;  %v1193_v15 = vadd.f32 %v737_v13, %v349_v8 }
 0x163   : > { %762 = vst [vmem:[%s170_s15 + $0x10] sm:$0xff] %v1191_v12  ;;  %767 = vst [vmem:[%s170_s15 + $0x38] sm:$0xff] %v759_v14 }
 0x164   : > { %763 = vst [vmem:[%s170_s15 + $0x18] sm:$0xff] %v1193_v15 }
 0x165 PF: > { %s13_s12 = sadd.s32 1, %s1225_s12  }
 0x166   : > { %p10_p4 = scmp.ge.s32.totalorder %s13_s12, 4  }
 0x168   :  { %12 = sbr.rel (!%p10_p4) target bundleno = 1 (0x1), region = 64 }

// kernel: aggregation_forward.8
= control target key start
LH: loop header
LB: loop body
LE: loop exit
PB: predicated region body
PF: predicated region fallthrough
CT: control target
= control target key end

     0   :  { %s1790_s24 = smov 0   ;;  %s2139_s0 = inlined_call_operand.vmem [shape: f32[2,34,128], index: 0, kind: input, shape index: {}]   ;;  %s2140_s1 = inlined_call_operand.vmem [shape: f32[2,34,128], index: 1, kind: input, shape index: {}]   ;;  %s2141_s2 = inlined_call_operand.vmem [shape: f32[2,32,128], index: 2, kind: input, shape index: {}]   ;;  %s2142_s3 = inlined_call_operand.vmem [shape: f32[3,128,128], index: 3, kind: input, shape index: {}]   ;;  %s2143_s4 = inlined_call_operand.vmem [shape: f32[3,128,128], index: 4, kind: input, shape index: {}]   ;;  %s2144_s5 = inlined_call_operand.vmem [shape: f32[1,128], index: 5, kind: input, shape index: {}]   ;;  %s2145_s6 = inlined_call_operand.vmem [shape: f32[1,128], index: 6, kind: input, shape index: {}]   ;;  %s2146_s7 = inlined_call_operand.vmem [shape: f32[2,32,128], index: 7, kind: output, shape index: {}]  }
   0x1 LB: > { %s1088_s25 = sadd.s32 4294967295, %s1748_s24   ;;  %p1092_p0 = scmp.ge.s32.totalorder %s1748_s24, 1  ;;  %s1748_s24 = sphi %s1790_s24, %s17_s24  }
   0x2   : > { %p257_p1 = scmp.lt.s32.totalorder %s1748_s24, 3 }
   0x4   : > { %p258_p2 = pnand %p1092_p0, %p257_p1 }
   0x5   : > { %v331_v0 = vld [vmem:[%s2142_s3] sm:$0xff] (!%p258_p2)  ;;  %v332_v1 = vld [vmem:[%s2142_s3 + $0x8] sm:$0xff] (!%p258_p2)  ;;  %p299_p3 = scmp.lt.s32.totalorder (!%p258_p2), %s1088_s25, 1  ;;  %v333_v5 = vld [vmem:[%s2142_s3 + $0x10] sm:$0xff] (!%p258_p2) }
   0x6   : > { %261 = sbr.rel (%p258_p2) target bundleno = 329 (0x149), region = 48  ;;  %v668_v2 = vld [vmem:[%s2143_s4] sm:$0xff] (!%p258_p2)  ;;  %v1517_v3 = vpack.c.bf16 (!%p258_p2), %v332_v1, %v331_v0  ;;  %v669_v4 = vld [vmem:[%s2143_s4 + $0x8] sm:$0xff] (!%p258_p2)  ;;  %v334_v6 = vld [vmem:[%s2142_s3 + $0x18] sm:$0xff] (!%p258_p2) }
   0x7   : > { %v1613_v7 = vpack.c.bf16 (!%p258_p2), %v669_v4, %v668_v2  ;;  %v1521_v8 = vpack.c.bf16 (!%p258_p2), %v334_v6, %v333_v5  ;;  %v670_v9 = vld [vmem:[%s2143_s4 + $0x10] sm:$0xff] (!%p258_p2)  ;;  %v671_v10 = vld [vmem:[%s2143_s4 + $0x18] sm:$0xff] (!%p258_p2)  ;;  %v335_v11 = vld [vmem:[%s2142_s3 + $0x20] sm:$0xff] (!%p258_p2) }
   0x8   : > { %1518 = vmatprep.subr.bf16.mxu0 (!%p258_p2), %v1517_v3  ;;  %v1617_v12 = vpack.c.bf16 (!%p258_p2), %v671_v10, %v670_v9  ;;  %v336_v13 = vld [vmem:[%s2142_s3 + $0x28] sm:$0xff] (!%p258_p2)  ;;  %v672_v14 = vld [vmem:[%s2143_s4 + $0x20] sm:$0xff] (!%p258_p2)  ;;  %v337_v18 = vld [vmem:[%s2142_s3 + $0x30] sm:$0xff] (!%p258_p2) }
   0x9   : > { %v673_v15 = vld [vmem:[%s2143_s4 + $0x28] sm:$0xff] (!%p258_p2)  ;;  %1614 = vmatprep.subr.bf16.mxu1 (!%p258_p2), %v1613_v7  ;;  %1520 = vmatpush3.bf16.msra.mxu0 (!%p258_p2), %v1517_v3  ;;  %v1525_v16 = vpack.c.bf16 (!%p258_p2), %v336_v13, %v335_v11  ;;  %v338_v19 = vld [vmem:[%s2142_s3 + $0x38] sm:$0xff] (!%p258_p2)  ;;  %v674_v20 = vld [vmem:[%s2143_s4 + $0x30] sm:$0xff] (!%p258_p2) }
   0xa   : > { %1616 = vmatpush3.bf16.msra.mxu1 (!%p258_p2), %v1613_v7  ;;  %1522 = vmatprep.subr.bf16.mxu0 (!%p258_p2), %v1521_v8  ;;  %v1621_v17 = vpack.c.bf16 (!%p258_p2), %v673_v15, %v672_v14  ;;  %v675_v21 = vld [vmem:[%s2143_s4 + $0x38] sm:$0xff] (!%p258_p2)  ;;  %v1529_v22 = vpack.c.bf16 (!%p258_p2), %v338_v19, %v337_v18  ;;  %v339_v24 = vld [vmem:[%s2142_s3 + $0x40] sm:$0xff] (!%p258_p2)  ;;  %v340_v25 = vld [vmem:[%s2142_s3 + $0x48] sm:$0xff] (!%p258_p2) }
   0xb   : > { %1618 = vmatprep.subr.bf16.mxu1 (!%p258_p2), %v1617_v12  ;;  %v1625_v23 = vpack.c.bf16 (!%p258_p2), %v675_v21, %v674_v20  ;;  %v676_v27 = vld [vmem:[%s2143_s4 + $0x40] sm:$0xff] (!%p258_p2)  ;;  %v677_v28 = vld [vmem:[%s2143_s4 + $0x48] sm:$0xff] (!%p258_p2)  ;;  %v1533_v30 = vpack.c.bf16 (!%p258_p2), %v340_v25, %v339_v24  ;;  %v341_v32 = vld [vmem:[%s2142_s3 + $0x50] sm:$0xff] (!%p258_p2) }
   0xc   : > { %v1629_v31 = vpack.c.bf16 (!%p258_p2), %v677_v28, %v676_v27  ;;  %v342_v33 = vld [vmem:[%s2142_s3 + $0x58] sm:$0xff] (!%p258_p2)  ;;  %v678_v34 = vld [vmem:[%s2143_s4 + $0x50] sm:$0xff] (!%p258_p2)  ;;  %v343_v38 = vld [vmem:[%s2142_s3 + $0x60] sm:$0xff] (!%p258_p2) }
   0xd   : > { %s2148_s25 = smov (!%p299_p3, %s1088_s25), 1  ;;  %1524 = vmatpush3.bf16.msra.mxu0 %v1521_v8  ;;  %v679_v35 = vld [vmem:[%s2143_s4 + $0x58] sm:$0xff]  ;;  %v1537_v36 = vpack.c.bf16 %v342_v33, %v341_v32  ;;  %v344_v39 = vld [vmem:[%s2142_s3 + $0x68] sm:$0xff]  ;;  %v680_v40 = vld [vmem:[%s2143_s4 + $0x60] sm:$0xff] }
   0xe   : > { %s1733_s29 = smul.u32 40, %s2148_s25  ;;  %1620 = vmatpush3.bf16.msra.mxu1 %v1617_v12  ;;  %1526 = vmatprep.subr.bf16.mxu0 %v1525_v16  ;;  %v1633_v37 = vpack.c.bf16 %v679_v35, %v678_v34  ;;  %v681_v41 = vld [vmem:[%s2143_s4 + $0x68] sm:$0xff]  ;;  %v1541_v42 = vpack.c.bf16 %v344_v39, %v343_v38  ;;  %v345_v44 = vld [vmem:[%s2142_s3 + $0x70] sm:$0xff]  ;;  %v346_v45 = vld [vmem:[%s2142_s3 + $0x78] sm:$0xff]  ;;  %s1167_s8 = sshll.u32 %s2148_s25, 5 }
   0xf   : > { %1622 = vmatprep.subr.bf16.mxu1 %v1621_v17  ;;  %v1637_v43 = vpack.c.bf16 %v681_v41, %v680_v40  ;;  %v682_v46 = vld [vmem:[%s2143_s4 + $0x70] sm:$0xff]  ;;  %v683_v47 = vld [vmem:[%s2143_s4 + $0x78] sm:$0xff]  ;;  %v1545_v48 = vpack.c.bf16 %v346_v45, %v345_v44  ;;  %v1100_v50 = vld [vmem:[%s2142_s3 + $0x80] sm:$0xff]  ;;  %s313_s15 = scalar_lea.vmem %s2141_s2, %s1167_s8 }
  0x10   : > { %s1852_s17 = scalar_lea.vmem %s2139_s0, %s1733_s29  ;;  %s1857_s20 = scalar_lea.vmem %s2140_s1, %s1733_s29  ;;  %v1641_v49 = vpack.c.bf16 %v683_v47, %v682_v46  ;;  %v1101_v51 = vld [vmem:[%s2142_s3 + $0x88] sm:$0xff]  ;;  %v1133_v52 = vld [vmem:[%s2143_s4 + $0x80] sm:$0xff]  ;;  %v1102_v56 = vld [vmem:[%s2142_s3 + $0x90] sm:$0xff] }
  0x11   : > { %v327_v26 = vld [vmem:[%s1852_s17] sm:$0xff]  ;;  %1528 = vmatpush3.bf16.msra.mxu0 %v1525_v16  ;;  %v1134_v53 = vld [vmem:[%s2143_s4 + $0x88] sm:$0xff]  ;;  %v1549_v54 = vpack.c.bf16 %v1101_v51, %v1100_v50  ;;  %v1103_v57 = vld [vmem:[%s2142_s3 + $0x98] sm:$0xff] }
  0x12   : > { %1321 = vmatprep.mubr.f32.mxu0 %v327_v26  ;;  %v664_v29 = vld [vmem:[%s1857_s20] sm:$0xff]  ;;  %1624 = vmatpush3.bf16.msra.mxu1 %v1621_v17  ;;  %v1645_v55 = vpack.c.bf16 %v1134_v53, %v1133_v52  ;;  %v1135_v58 = vld [vmem:[%s2143_s4 + $0x90] sm:$0xff]  ;;  %v1136_v59 = vld [vmem:[%s2143_s4 + $0x98] sm:$0xff]  ;;  %v1553_v62 = vpack.c.bf16 %v1103_v57, %v1102_v56 }
  0x13   : > { %1435 = vmatprep.mubr.f32.mxu1 %v664_v29  ;;  %1530 = vmatprep.subr.bf16.mxu0 %v1529_v22  ;;  %v328_v60 = vld [vmem:[%s1852_s17 + $0x8] sm:$0xff]  ;;  %v1649_v63 = vpack.c.bf16 %v1136_v59, %v1135_v58  ;;  %v1104_v0 = vld [vmem:[%s2142_s3 + $0xa0] sm:$0xff]  ;;  %v329_v4 = vld [vmem:[%s1852_s17 + $0x10] sm:$0xff] }
  0x14   : > { %1626 = vmatprep.subr.bf16.mxu1 %v1625_v23  ;;  %v665_v61 = vld [vmem:[%s1857_s20 + $0x8] sm:$0xff]  ;;  %v1137_v2 = vld [vmem:[%s2143_s4 + $0xa0] sm:$0xff]  ;;  %v666_v5 = vld [vmem:[%s1857_s20 + $0x10] sm:$0xff] }
  0x15   : > { %1532 = vmatpush3.bf16.msra.mxu0 %v1529_v22  ;;  %v1105_v1 = vld [vmem:[%s2142_s3 + $0xa8] sm:$0xff]  ;;  %v330_v6 = vld [vmem:[%s1852_s17 + $0x18] sm:$0xff]  ;;  %v1106_v10 = vld [vmem:[%s2142_s3 + $0xb0] sm:$0xff] }
  0x16   : > { %1628 = vmatpush3.bf16.msra.mxu1 %v1625_v23  ;;  %1534 = vmatprep.subr.bf16.mxu0 %v1533_v30  ;;  %v1138_v3 = vld [vmem:[%s2143_s4 + $0xa8] sm:$0xff]  ;;  %v1557_v7 = vpack.c.bf16 %v1105_v1, %v1104_v0  ;;  %v667_v8 = vld [vmem:[%s1857_s20 + $0x18] sm:$0xff]  ;;  %v1139_v12 = vld [vmem:[%s2143_s4 + $0xb0] sm:$0xff] }
  0x17   : > { %1630 = vmatprep.subr.bf16.mxu1 %v1629_v31  ;;  %v1653_v9 = vpack.c.bf16 %v1138_v3, %v1137_v2  ;;  %v1107_v11 = vld [vmem:[%s2142_s3 + $0xb8] sm:$0xff]  ;;  %v436_v14 = vld [vmem:[%s1852_s17 + $0x1] sm:$0xff]  ;;  %v1110_v24 = vld [vmem:[%s2142_s3 + $0xd0] sm:$0xff] }
  0x18   : > { %v1140_v13 = vld [vmem:[%s2143_s4 + $0xb8] sm:$0xff]  ;;  %v773_v15 = vld [vmem:[%s1857_s20 + $0x1] sm:$0xff]  ;;  %v1561_v16 = vpack.c.bf16 %v1107_v11, %v1106_v10  ;;  %v1143_v26 = vld [vmem:[%s2143_s4 + $0xd0] sm:$0xff] }
  0x19   : > { %1536 = vmatpush3.bf16.msra.mxu0 %v1533_v30  ;;  %v1657_v17 = vpack.c.bf16 %v1140_v13, %v1139_v12  ;;  %v1108_v18 = vld [vmem:[%s2142_s3 + $0xc0] sm:$0xff]  ;;  %v1109_v19 = vld [vmem:[%s2142_s3 + $0xc8] sm:$0xff]  ;;  %v1111_v25 = vld [vmem:[%s2142_s3 + $0xd8] sm:$0xff] }
  0x1a   : > { %1632 = vmatpush3.bf16.msra.mxu1 %v1629_v31  ;;  %1538 = vmatprep.subr.bf16.mxu0 %v1537_v36  ;;  %v1141_v20 = vld [vmem:[%s2143_s4 + $0xc0] sm:$0xff]  ;;  %v1142_v21 = vld [vmem:[%s2143_s4 + $0xc8] sm:$0xff]  ;;  %v1565_v22 = vpack.c.bf16 %v1109_v19, %v1108_v18  ;;  %v1144_v27 = vld [vmem:[%s2143_s4 + $0xd8] sm:$0xff]  ;;  %v1569_v28 = vpack.c.bf16 %v1111_v25, %v1110_v24 }
  0x1b   : > { %1634 = vmatprep.subr.bf16.mxu1 %v1633_v37  ;;  %v1661_v23 = vpack.c.bf16 %v1142_v21, %v1141_v20  ;;  %v1665_v29 = vpack.c.bf16 %v1144_v27, %v1143_v26  ;;  %v1112_v30 = vld [vmem:[%s2142_s3 + $0xe0] sm:$0xff]  ;;  %v1113_v31 = vld [vmem:[%s2142_s3 + $0xe8] sm:$0xff]  ;;  %v1147_v38 = vld [vmem:[%s2143_s4 + $0xf0] sm:$0xff] }
  0x1c   : > { %v1145_v32 = vld [vmem:[%s2143_s4 + $0xe0] sm:$0xff]  ;;  %v1146_v33 = vld [vmem:[%s2143_s4 + $0xe8] sm:$0xff]  ;;  %v1573_v34 = vpack.c.bf16 %v1113_v31, %v1112_v30  ;;  %v1148_v39 = vld [vmem:[%s2143_s4 + $0xf8] sm:$0xff] }
  0x1d   : > { %1540 = vmatpush3.bf16.msra.mxu0 %v1537_v36  ;;  %v1669_v35 = vpack.c.bf16 %v1146_v33, %v1145_v32  ;;  %v1114_v36 = vld [vmem:[%s2142_s3 + $0xf0] sm:$0xff]  ;;  %v1673_v41 = vpack.c.bf16 %v1148_v39, %v1147_v38  ;;  %v1149_v44 = vld [vmem:[%s2143_s4 + $0x100] sm:$0xff]  ;;  %v1150_v45 = vld [vmem:[%s2143_s4 + $0x108] sm:$0xff] }
  0x1e   : > { %1636 = vmatpush3.bf16.msra.mxu1 %v1633_v37  ;;  %1542 = vmatprep.subr.bf16.mxu0 %v1541_v42  ;;  %v1115_v37 = vld [vmem:[%s2142_s3 + $0xf8] sm:$0xff]  ;;  %v1677_v47 = vpack.c.bf16 %v1150_v45, %v1149_v44  ;;  %v1151_v50 = vld [vmem:[%s2143_s4 + $0x110] sm:$0xff]  ;;  %v1120_v56 = vld [vmem:[%s2142_s3 + $0x120] sm:$0xff] }
  0x1f   : > { %1638 = vmatprep.subr.bf16.mxu1 %v1637_v43  ;;  %v1577_v40 = vpack.c.bf16 %v1115_v37, %v1114_v36  ;;  %v1152_v51 = vld [vmem:[%s2143_s4 + $0x118] sm:$0xff]  ;;  %v437_v52 = vld [vmem:[%s1852_s17 + $0x9] sm:$0xff]  ;;  %v1153_v58 = vld [vmem:[%s2143_s4 + $0x120] sm:$0xff] }
  0x20   : > { %v774_v53 = vld [vmem:[%s1857_s20 + $0x9] sm:$0xff]  ;;  %v776_v0 = vld [vmem:[%s1857_s20 + $0x19] sm:$0xff] }
  0x21   : > { %1544 = vmatpush3.bf16.msra.mxu0 %v1541_v42  ;;  %v1116_v42 = vld [vmem:[%s2142_s3 + $0x100] sm:$0xff]  ;;  %v1121_v57 = vld [vmem:[%s2142_s3 + $0x128] sm:$0xff]  ;;  %v1122_v2 = vld [vmem:[%s2142_s3 + $0x130] sm:$0xff] }
  0x22   : > { %1640 = vmatpush3.bf16.msra.mxu1 %v1637_v43  ;;  %1546 = vmatprep.subr.bf16.mxu0 %v1545_v48  ;;  %v1117_v43 = vld [vmem:[%s2142_s3 + $0x108] sm:$0xff]  ;;  %v1123_v3 = vld [vmem:[%s2142_s3 + $0x138] sm:$0xff]  ;;  %v1124_v10 = vld [vmem:[%s2142_s3 + $0x140] sm:$0xff] }
  0x23   : > { %1642 = vmatprep.subr.bf16.mxu1 %v1641_v49  ;;  %v1581_v46 = vpack.c.bf16 %v1117_v43, %v1116_v42  ;;  %v1154_v59 = vld [vmem:[%s2143_s4 + $0x128] sm:$0xff]  ;;  %v1157_v12 = vld [vmem:[%s2143_s4 + $0x140] sm:$0xff]  ;;  %v1159_v18 = vld [vmem:[%s2143_s4 + $0x150] sm:$0xff] }
  0x24   : > { %v1685_v1 = vpack.c.bf16 %v1154_v59, %v1153_v58  ;;  %v1125_v11 = vld [vmem:[%s2142_s3 + $0x148] sm:$0xff]  ;;  %v1160_v19 = vld [vmem:[%s2143_s4 + $0x158] sm:$0xff]  ;;  %v1161_v24 = vld [vmem:[%s2143_s4 + $0x160] sm:$0xff] }
  0x25   : > { %1548 = vmatpush3.bf16.msra.mxu0 %v1545_v48  ;;  %v1118_v48 = vld [vmem:[%s2142_s3 + $0x110] sm:$0xff]  ;;  %v1158_v13 = vld [vmem:[%s2143_s4 + $0x148] sm:$0xff]  ;;  %v1697_v21 = vpack.c.bf16 %v1160_v19, %v1159_v18  ;;  %v1164_v31 = vld [vmem:[%s2143_s4 + $0x178] sm:$0xff] }
  0x26   : > { %1644 = vmatpush3.bf16.msra.mxu1 %v1641_v49  ;;  %1550 = vmatprep.subr.bf16.mxu0 %v1549_v54  ;;  %v1119_v49 = vld [vmem:[%s2142_s3 + $0x118] sm:$0xff]  ;;  %v1162_v25 = vld [vmem:[%s2143_s4 + $0x168] sm:$0xff]  ;;  %v1163_v30 = vld [vmem:[%s2143_s4 + $0x170] sm:$0xff] }
  0x27   : > { %1646 = vmatprep.subr.bf16.mxu1 %v1645_v55  ;;  %v1701_v27 = vpack.c.bf16 %v1162_v25, %v1161_v24  ;;  %v1705_v33 = vpack.c.bf16 %v1164_v31, %v1163_v30  ;;  %v548_v36 = vld [vmem:[%s1852_s17 + $0x12] sm:$0xff]  ;;  %v549_v38 = vld [vmem:[%s1852_s17 + $0x1a] sm:$0xff] }
  0x28   : > { %1322 = vmatmul.mubr.f32.vlgmr.msra.gmra.mrb[0].mxu0 %v328_v60  ;;  %v438_v60 = vld [vmem:[%s1852_s17 + $0x11] sm:$0xff]  ;;  %v886_v39 = vld [vmem:[%s1857_s20 + $0x1a] sm:$0xff] }
  0x29   : > { %1552 = vmatpush3.bf16.msra.mxu0 %v1549_v54  ;;  %1436 = vmatmul.mubr.f32.vlgmr.msra.gmra.mrb[0].mxu1 %v665_v61  ;;  %v1585_v54 = vpack.c.bf16 %v1119_v49, %v1118_v48  ;;  %v775_v61 = vld [vmem:[%s1857_s20 + $0x11] sm:$0xff]  ;;  %v998_v49 = vld [vmem:[%s313_s15 + $0x8] sm:$0xff] }
  0x2a   : > { %1648 = vmatpush3.bf16.msra.mxu1 %v1645_v55  ;;  %1554 = vmatprep.subr.bf16.mxu0 %v1553_v62  ;;  %v1681_v55 = vpack.c.bf16 %v1152_v51, %v1151_v50  ;;  %v885_v37 = vld [vmem:[%s1857_s20 + $0x12] sm:$0xff] }
  0x2b   : > { %1650 = vmatprep.subr.bf16.mxu1 %v1649_v63  ;;  %1324 = vmatprep.mubr.f32.mxu0 %v329_v4  ;;  %v1155_v4 = vld [vmem:[%s2143_s4 + $0x130] sm:$0xff] }
  0x2c   : > { %1438 = vmatprep.mubr.f32.mxu1 %v666_v5  ;;  %1325 = vmatmul.mubr.f32.gmra.mrb[2].mxu0 %v330_v6  ;;  %v1156_v5 = vld [vmem:[%s2143_s4 + $0x138] sm:$0xff]  ;;  %v546_v6 = vld [vmem:[%s1852_s17 + $0x2] sm:$0xff] }
  0x2d   : > { %1556 = vmatpush3.bf16.msra.mxu0 %v1553_v62  ;;  %1439 = vmatmul.mubr.f32.gmra.mrb[2].mxu1 %v667_v8  ;;  %v439_v62 = vld [vmem:[%s1852_s17 + $0x19] sm:$0xff]  ;;  %v1593_v8 = vpack.c.bf16 %v1123_v3, %v1122_v2  ;;  %v999_v2 = vld [vmem:[%s313_s15 + $0x10] sm:$0xff] }
  0x2e   : > { %1652 = vmatpush3.bf16.msra.mxu1 %v1649_v63  ;;  %1558 = vmatprep.subr.bf16.mxu0 %v1557_v7  ;;  %v1589_v63 = vpack.c.bf16 %v1121_v57, %v1120_v56 }
  0x2f   : > { %1654 = vmatprep.subr.bf16.mxu1 %v1653_v9  ;;  %1359 = vmatprep.mubr.f32.mxu0 %v436_v14  ;;  %v1597_v14 = vpack.c.bf16 %v1125_v11, %v1124_v10 }
  0x30   : > { %1473 = vmatprep.mubr.f32.mxu1 %v773_v15  ;;  %v1693_v15 = vpack.c.bf16 %v1158_v13, %v1157_v12 }
  0x31   : > { %1560 = vmatpush3.bf16.msra.mxu0 %v1557_v7  ;;  %v883_v7 = vld [vmem:[%s1857_s20 + $0x2] sm:$0xff] }
  0x32   : > { %1656 = vmatpush3.bf16.msra.mxu1 %v1653_v9  ;;  %1562 = vmatprep.subr.bf16.mxu0 %v1561_v16  ;;  %v1689_v9 = vpack.c.bf16 %v1156_v5, %v1155_v4 }
  0x33   : > { %1658 = vmatprep.subr.bf16.mxu1 %v1657_v17 }
  0x35   : > { %1564 = vmatpush3.bf16.msra.mxu0 %v1561_v16  ;;  %v1126_v16 = vld [vmem:[%s2142_s3 + $0x150] sm:$0xff] }
  0x36   : > { %1660 = vmatpush3.bf16.msra.mxu1 %v1657_v17  ;;  %1566 = vmatprep.subr.bf16.mxu0 %v1565_v22  ;;  %v1127_v17 = vld [vmem:[%s2142_s3 + $0x158] sm:$0xff] }
  0x37   : > { %1662 = vmatprep.subr.bf16.mxu1 %v1661_v23  ;;  %v1601_v20 = vpack.c.bf16 %v1127_v17, %v1126_v16 }
  0x39   : > { %1568 = vmatpush3.bf16.msra.mxu0 %v1565_v22  ;;  %v1128_v22 = vld [vmem:[%s2142_s3 + $0x160] sm:$0xff] }
  0x3a   : > { %1664 = vmatpush3.bf16.msra.mxu1 %v1661_v23  ;;  %1570 = vmatprep.subr.bf16.mxu0 %v1569_v28  ;;  %v1129_v23 = vld [vmem:[%s2142_s3 + $0x168] sm:$0xff] }
  0x3b   : > { %1666 = vmatprep.subr.bf16.mxu1 %v1665_v29  ;;  %v1605_v26 = vpack.c.bf16 %v1129_v23, %v1128_v22 }
  0x3d   : > { %1572 = vmatpush3.bf16.msra.mxu0 %v1569_v28  ;;  %v1130_v28 = vld [vmem:[%s2142_s3 + $0x170] sm:$0xff] }
  0x3e   : > { %1668 = vmatpush3.bf16.msra.mxu1 %v1665_v29  ;;  %1574 = vmatprep.subr.bf16.mxu0 %v1573_v34  ;;  %v1131_v29 = vld [vmem:[%s2142_s3 + $0x178] sm:$0xff] }
  0x3f   : > { %1670 = vmatprep.subr.bf16.mxu1 %v1669_v35  ;;  %v1609_v32 = vpack.c.bf16 %v1131_v29, %v1130_v28 }
  0x41   : > { %1576 = vmatpush3.bf16.msra.mxu0 %v1573_v34  ;;  %v547_v34 = vld [vmem:[%s1852_s17 + $0xa] sm:$0xff] }
  0x42   : > { %1672 = vmatpush3.bf16.msra.mxu1 %v1669_v35  ;;  %1578 = vmatprep.subr.bf16.mxu0 %v1577_v40  ;;  %v884_v35 = vld [vmem:[%s1857_s20 + $0xa] sm:$0xff]  ;;  %s318_s20 = scalar_lea.vmem %s2146_s7, %s1167_s8 }
  0x43   : > { %1674 = vmatprep.subr.bf16.mxu1 %v1673_v41 }
  0x45   : > { %1580 = vmatpush3.bf16.msra.mxu0 %v1577_v40  ;;  %v1099_v40 = vld [vmem:[%s2144_s5] ss:$0 sm:$0xff] }
  0x46   : > { %1676 = vmatpush3.bf16.msra.mxu1 %v1673_v41  ;;  %1582 = vmatprep.subr.bf16.mxu0 %v1581_v46  ;;  %v1132_v41 = vld [vmem:[%s2145_s6] ss:$0 sm:$0xff] }
  0x47   : > { %1678 = vmatprep.subr.bf16.mxu1 %v1677_v47 }
  0x48   : > { %1360 = vmatmul.mubr.f32.vlgmr.msra.gmra.mrb[0].mxu0 %v437_v52  ;;  %v997_v52 = vld [vmem:[%s313_s15] sm:$0xff] }
  0x49   : > { %1584 = vmatpush3.bf16.msra.mxu0 %v1581_v46  ;;  %1474 = vmatmul.mubr.f32.vlgmr.msra.gmra.mrb[0].mxu1 %v774_v53 }
  0x4a   : > { %1680 = vmatpush3.bf16.msra.mxu1 %v1677_v47  ;;  %1586 = vmatprep.subr.bf16.mxu0 %v1585_v54 }
  0x4b   : > { %1682 = vmatprep.subr.bf16.mxu1 %v1681_v55  ;;  %1362 = vmatprep.mubr.f32.mxu0 %v438_v60 }
  0x4c   : > { %1476 = vmatprep.mubr.f32.mxu1 %v775_v61  ;;  %1363 = vmatmul.mubr.f32.gmra.mrb[2].mxu0 %v439_v62 }
  0x4d   : > { %1588 = vmatpush3.bf16.msra.mxu0 %v1585_v54  ;;  %1477 = vmatmul.mubr.f32.gmra.mrb[2].mxu1 %v776_v0 }
  0x4e   : > { %1684 = vmatpush3.bf16.msra.mxu1 %v1681_v55  ;;  %1590 = vmatprep.subr.bf16.mxu0 %v1589_v63 }
  0x4f   : > { %1686 = vmatprep.subr.bf16.mxu1 %v1685_v1  ;;  %1397 = vmatprep.mubr.f32.mxu0 %v546_v6 }
  0x50   : > { %1511 = vmatprep.mubr.f32.mxu1 %v883_v7 }
  0x51   : > { %1592 = vmatpush3.bf16.msra.mxu0 %v1589_v63  ;;  %v1000_v63 = vld [vmem:[%s313_s15 + $0x18] sm:$0xff] }
  0x52   : > { %1688 = vmatpush3.bf16.msra.mxu1 %v1685_v1  ;;  %1594 = vmatprep.subr.bf16.mxu0 %v1593_v8 }
  0x53   : > { %1690 = vmatprep.subr.bf16.mxu1 %v1689_v9 }
  0x55   : > { %1596 = vmatpush3.bf16.msra.mxu0 %v1593_v8 }
  0x56   : > { %1692 = vmatpush3.bf16.msra.mxu1 %v1689_v9  ;;  %1598 = vmatprep.subr.bf16.mxu0 %v1597_v14 }
  0x57   : > { %1694 = vmatprep.subr.bf16.mxu1 %v1693_v15 }
  0x59   : > { %1600 = vmatpush3.bf16.msra.mxu0 %v1597_v14 }
  0x5a   : > { %1696 = vmatpush3.bf16.msra.mxu1 %v1693_v15  ;;  %1602 = vmatprep.subr.bf16.mxu0 %v1601_v20 }
  0x5b   : > { %1698 = vmatprep.subr.bf16.mxu1 %v1697_v21 }
  0x5d   : > { %1604 = vmatpush3.bf16.msra.mxu0 %v1601_v20 }
  0x5e   : > { %1700 = vmatpush3.bf16.msra.mxu1 %v1697_v21  ;;  %1606 = vmatprep.subr.bf16.mxu0 %v1605_v26 }
  0x5f   : > { %1702 = vmatprep.subr.bf16.mxu1 %v1701_v27 }
  0x61   : > { %1608 = vmatpush3.bf16.msra.mxu0 %v1605_v26 }
  0x62   : > { %1704 = vmatpush3.bf16.msra.mxu1 %v1701_v27  ;;  %1610 = vmatprep.subr.bf16.mxu0 %v1609_v32 }
  0x63   : > { %1706 = vmatprep.subr.bf16.mxu1 %v1705_v33 }
  0x65   : > { %1612 = vmatpush3.bf16.msra.mxu0 %v1609_v32 }
  0x66   : > { %1708 = vmatpush3.bf16.msra.mxu1 %v1705_v33 }
  0x68   : > { %1398 = vmatmul.mubr.f32.vlgmr.msra.gmra.mrb[0].mxu0 %v547_v34 }
  0x69   : > { %1512 = vmatmul.mubr.f32.vlgmr.msra.gmra.mrb[0].mxu1 %v884_v35  ;;  %1400 = vmatprep.mubr.f32.mxu0 %v548_v36 }
  0x6a   : > { %1514 = vmatprep.mubr.f32.mxu1 %v885_v37 }
  0x6c   : > { %1401 = vmatmul.mubr.f32.gmra.mrb[2].mxu0 %v549_v38 }
  0x6d   : > { %1515 = vmatmul.mubr.f32.gmra.mrb[2].mxu1 %v886_v39 }
 0x13b   : > { %v1399_v42 = vpop.f32.mrb[0].mxu0 }
 0x13c   : > { %v1709_v43 = vadd.f32 %v1399_v42, %v1099_v40  ;;  %v1513_v44 = vpop.f32.mrb[0].mxu1  ;;  %v633_v45 = vpop.f32.mrb[1].mxu0 }
 0x13d   : > { %v1713_v46 = vadd.f32 %v1513_v44, %v1132_v41  ;;  %v1710_v47 = vadd.f32 %v1099_v40, %v633_v45  ;;  %v970_v48 = vpop.f32.mrb[1].mxu1 }
 0x13e   : > { %v1714_v50 = vadd.f32 %v1132_v41, %v970_v48 }
 0x13f   : > { %v994_v51 = vmul.f32 %v1713_v46, %v1709_v43  ;;  %v1402_v53 = vpop.f32.mrb[2].mxu0 }
 0x140   : > { %v993_v54 = vmul.f32 %v1714_v50, %v1710_v47  ;;  %v1711_v55 = vadd.f32 %v1402_v53, %v1099_v40  ;;  %v1516_v56 = vpop.f32.mrb[2].mxu1  ;;  %v643_v57 = vpop.f32.mrb[3].mxu0 }
 0x141   : > { %v1002_v58 = vmul.f32 %v998_v49, %v994_v51  ;;  %v1715_v59 = vadd.f32 %v1516_v56, %v1132_v41  ;;  %v1712_v60 = vadd.f32 %v1099_v40, %v643_v57  ;;  %v980_v61 = vpop.f32.mrb[3].mxu1 }
 0x142   : > { %v1001_v62 = vmul.f32 %v997_v52, %v993_v54  ;;  %v1716_v0 = vadd.f32 %v1132_v41, %v980_v61 }
 0x143   : > { %1006 = vst [vmem:[%s318_s20 + $0x8] sm:$0xff] %v1002_v58  ;;  %v996_v1 = vmul.f32 %v1715_v59, %v1711_v55 }
 0x144   : > { %1005 = vst [vmem:[%s318_s20] sm:$0xff] %v1001_v62  ;;  %v995_v3 = vmul.f32 %v1716_v0, %v1712_v60 }
 0x145   : > { %v1004_v4 = vmul.f32 %v1000_v63, %v996_v1 }
 0x146   : > { %v1003_v5 = vmul.f32 %v999_v2, %v995_v3 }
 0x147   : > { %1008 = vst [vmem:[%s318_s20 + $0x18] sm:$0xff] %v1004_v4 }
 0x148   : > { %1007 = vst [vmem:[%s318_s20 + $0x10] sm:$0xff] %v1003_v5 }
 0x149 PF: > { %s17_s24 = sadd.s32 1, %s1748_s24  }
 0x14a   : > { %p14_p4 = scmp.ge.s32.totalorder %s17_s24, 4  }
 0x14c   :  { %16 = sbr.rel (!%p14_p4) target bundleno = 1 (0x1), region = 88 }

// kernel: aggregation_forward.12
= control target key start
LH: loop header
LB: loop body
LE: loop exit
PB: predicated region body
PF: predicated region fallthrough
CT: control target
= control target key end

     0   :  { %s3193_s18 = smov 0   ;;  %s4755_s0 = inlined_call_operand.vmem [shape: f32[2,34,128], index: 0, kind: input, shape index: {}]   ;;  %s4756_s1 = inlined_call_operand.vmem [shape: f32[2,34,256], index: 1, kind: input, shape index: {}]   ;;  %s4757_s2 = inlined_call_operand.vmem [shape: f32[3,128,384], index: 2, kind: input, shape index: {}]   ;;  %s4758_s3 = inlined_call_operand.vmem [shape: f32[3,256,384], index: 3, kind: input, shape index: {}]   ;;  %s4759_s4 = inlined_call_operand.vmem [shape: f32[1,384], index: 4, kind: input, shape index: {}]   ;;  %s4760_s5 = inlined_call_operand.vmem [shape: f32[2,32,384], index: 5, kind: output, shape index: {}]  }
   0x1 LB: > { %s1998_s19 = sadd.s32 4294967295, %s3160_s18   ;;  %p2002_p0 = scmp.ge.s32.totalorder %s3160_s18, 1  ;;  %s3160_s18 = sphi %s3193_s18, %s15_s18  }
   0x2   : > { %p197_p1 = scmp.lt.s32.totalorder %s3160_s18, 3 }
   0x4   : > { %p198_p2 = pnand %p2002_p0, %p197_p1 }
   0x5   : > { %v270_v0 = vld [vmem:[%s4757_s2 + $0x8] sm:$0xff] (!%p198_p2)  ;;  %v273_v1 = vld [vmem:[%s4757_s2 + $0x20] sm:$0xff] (!%p198_p2)  ;;  %v272_v6 = vld [vmem:[%s4757_s2 + $0x18] sm:$0xff] (!%p198_p2)  ;;  %v3162_v7 = vmov (!%p198_p2), 0.0   ;;  %p3346_p3 = scmp.lt.s32.totalorder (!%p198_p2), %s1998_s19, 1  ;;  %vm1388_vm0 = vcmask (!%p198_p2), 1046528  }
   0x6   : > { %201 = sbr.rel (%p198_p2) target bundleno = 494 (0x1ee), region = 40  ;;  %v2007_v2 = vld [vmem:[%s4757_s2 + $0x188] sm:$0xff] (!%p198_p2)  ;;  %v2602_v3 = vpack.c.bf16 (!%p198_p2), %v273_v1, %v270_v0  ;;  %v2010_v4 = vld [vmem:[%s4757_s2 + $0x1a0] sm:$0xff] (!%p198_p2)  ;;  %381 = vmatprep.mubr.f32.mxu1 (!%p198_p2), %v3162_v7  ;;  %620 = vmatprep.mubr.f32.mxu0 (!%p198_p2), %v3162_v7  ;;  %v2009_v11 = vld [vmem:[%s4757_s2 + $0x198] sm:$0xff] (!%p198_p2)  ;;  %vm1706_vm1 = vcmask (!%p198_p2), 1045504  }
   0x7   : > { %v269_v5 = vld [vmem:[%s4757_s2] sm:$0xff] (!%p198_p2)  ;;  %v2666_v8 = vpack.c.bf16 (!%p198_p2), %v2010_v4, %v2007_v2  ;;  %v276_v12 = vld [vmem:[%s4757_s2 + $0x38] sm:$0xff] (!%p198_p2)  ;;  %v279_v14 = vld [vmem:[%s4757_s2 + $0x50] sm:$0xff] (!%p198_p2) }
   0x8   : > { %v2604_v9 = vpack.c.bf16 (!%p198_p2), %v272_v6, %v269_v5  ;;  %v2006_v10 = vld [vmem:[%s4757_s2 + $0x180] sm:$0xff] (!%p198_p2)  ;;  %2603 = vmatprep.subr.bf16.mxu1 (!%p198_p2), %v2602_v3  ;;  %v2013_v15 = vld [vmem:[%s4757_s2 + $0x1b8] sm:$0xff] (!%p198_p2)  ;;  %v2016_v16 = vld [vmem:[%s4757_s2 + $0x1d0] sm:$0xff] (!%p198_p2)  ;;  %v2606_v17 = vpack.c.bf16 (!%p198_p2), %v279_v14, %v276_v12 }
   0x9   : > { %v2668_v13 = vpack.c.bf16 (!%p198_p2), %v2009_v11, %v2006_v10  ;;  %2667 = vmatprep.subr.bf16.mxu0 (!%p198_p2), %v2666_v8  ;;  %v2670_v18 = vpack.c.bf16 (!%p198_p2), %v2016_v16, %v2013_v15  ;;  %v275_v19 = vld [vmem:[%s4757_s2 + $0x30] sm:$0xff] (!%p198_p2)  ;;  %v278_v20 = vld [vmem:[%s4757_s2 + $0x48] sm:$0xff] (!%p198_p2)  ;;  %v285_v25 = vld [vmem:[%s4757_s2 + $0x80] sm:$0xff] (!%p198_p2) }
   0xa   : > { %2605 = vmatpush1.bf16.msra.mxu1 (!%p198_p2), %v2604_v9  ;;  %v2012_v21 = vld [vmem:[%s4757_s2 + $0x1b0] sm:$0xff] (!%p198_p2)  ;;  %v2608_v22 = vpack.c.bf16 (!%p198_p2), %v278_v20, %v275_v19  ;;  %v2015_v23 = vld [vmem:[%s4757_s2 + $0x1c8] sm:$0xff] (!%p198_p2)  ;;  %v2022_v29 = vld [vmem:[%s4757_s2 + $0x200] sm:$0xff] (!%p198_p2) }
   0xb   : > { %2669 = vmatpush1.bf16.msra.mxu0 (!%p198_p2), %v2668_v13  ;;  %v282_v24 = vld [vmem:[%s4757_s2 + $0x68] sm:$0xff] (!%p198_p2)  ;;  %2607 = vmatprep.subr.bf16.mxu1 (!%p198_p2), %v2606_v17  ;;  %v2672_v26 = vpack.c.bf16 (!%p198_p2), %v2015_v23, %v2012_v21  ;;  %v281_v30 = vld [vmem:[%s4757_s2 + $0x60] sm:$0xff] (!%p198_p2)  ;;  %v284_v32 = vld [vmem:[%s4757_s2 + $0x78] sm:$0xff] (!%p198_p2) }
   0xc   : > { %2671 = vmatprep.subr.bf16.mxu0 (!%p198_p2), %v2670_v18  ;;  %v2610_v27 = vpack.c.bf16 (!%p198_p2), %v285_v25, %v282_v24  ;;  %v2019_v28 = vld [vmem:[%s4757_s2 + $0x1e8] sm:$0xff] (!%p198_p2)  ;;  %v2018_v33 = vld [vmem:[%s4757_s2 + $0x1e0] sm:$0xff] (!%p198_p2)  ;;  %v2021_v34 = vld [vmem:[%s4757_s2 + $0x1f8] sm:$0xff] (!%p198_p2)  ;;  %v2612_v35 = vpack.c.bf16 (!%p198_p2), %v284_v32, %v281_v30 }
   0xd   : > { %v2674_v31 = vpack.c.bf16 %v2022_v29, %v2019_v28  ;;  %v288_v36 = vld [vmem:[%s4757_s2 + $0x98] sm:$0xff]  ;;  %v291_v37 = vld [vmem:[%s4757_s2 + $0xb0] sm:$0xff]  ;;  %v2676_v39 = vpack.c.bf16 %v2021_v34, %v2018_v33  ;;  %v290_v43 = vld [vmem:[%s4757_s2 + $0xa8] sm:$0xff]  ;;  %s4763_s19 = smov (!%p3346_p3, %s1998_s19), 1 }
   0xe   : > { %2609 = vmatpush1.bf16.msra.mxu1 %v2608_v22  ;;  %v2025_v38 = vld [vmem:[%s4757_s2 + $0x218] sm:$0xff]  ;;  %v2614_v40 = vpack.c.bf16 %v291_v37, %v288_v36  ;;  %v2028_v41 = vld [vmem:[%s4757_s2 + $0x230] sm:$0xff]  ;;  %v2027_v46 = vld [vmem:[%s4757_s2 + $0x228] sm:$0xff]  ;;  %s3142_s7 = smul.u32 40, %s4763_s19 }
   0xf   : > { %2673 = vmatpush1.bf16.msra.mxu0 %v2672_v26  ;;  %2611 = vmatprep.subr.bf16.mxu1 %v2610_v27  ;;  %v287_v42 = vld [vmem:[%s4757_s2 + $0x90] sm:$0xff]  ;;  %v2678_v44 = vpack.c.bf16 %v2028_v41, %v2025_v38  ;;  %v294_v47 = vld [vmem:[%s4757_s2 + $0xc8] sm:$0xff]  ;;  %v297_v48 = vld [vmem:[%s4757_s2 + $0xe0] sm:$0xff]  ;;  %s3143_s24 = smul.u32 80, %s4763_s19 }
  0x10   : > { %2675 = vmatprep.subr.bf16.mxu0 %v2674_v31  ;;  %v2024_v45 = vld [vmem:[%s4757_s2 + $0x210] sm:$0xff]  ;;  %v2031_v49 = vld [vmem:[%s4757_s2 + $0x248] sm:$0xff]  ;;  %v2034_v50 = vld [vmem:[%s4757_s2 + $0x260] sm:$0xff]  ;;  %v2616_v51 = vpack.c.bf16 %v290_v43, %v287_v42  ;;  %v2618_v53 = vpack.c.bf16 %v297_v48, %v294_v47  ;;  %s3423_s23 = scalar_lea.vmem %s4755_s0, %s3142_s7  ;;  %s3144_s29 = smul.u32 96, %s4763_s19 }
  0x11   : > { %v2680_v52 = vpack.c.bf16 %v2027_v46, %v2024_v45  ;;  %v293_v54 = vld [vmem:[%s4757_s2 + $0xc0] sm:$0xff]  ;;  %v296_v55 = vld [vmem:[%s4757_s2 + $0xd8] sm:$0xff]  ;;  %v2682_v57 = vpack.c.bf16 %v2034_v50, %v2031_v49  ;;  %v303_v60 = vld [vmem:[%s4757_s2 + $0x110] sm:$0xff]  ;;  %s3702_s13 = scalar_lea.vmem %s4756_s1, %s3143_s24 }
  0x12   : > { %2613 = vmatpush1.bf16.msra.mxu1 %v2612_v35  ;;  %v2030_v56 = vld [vmem:[%s4757_s2 + $0x240] sm:$0xff]  ;;  %v2033_v58 = vld [vmem:[%s4757_s2 + $0x258] sm:$0xff]  ;;  %v2040_v62 = vld [vmem:[%s4757_s2 + $0x290] sm:$0xff]  ;;  %v2620_v63 = vpack.c.bf16 %v296_v55, %v293_v54  ;;  %s4726_s7 = scalar_lea.vmem %s4760_s5, %s3144_s29 }
  0x13   : > { %2677 = vmatpush1.bf16.msra.mxu0 %v2676_v39  ;;  %2615 = vmatprep.subr.bf16.mxu1 %v2614_v40  ;;  %v300_v59 = vld [vmem:[%s4757_s2 + $0xf8] sm:$0xff]  ;;  %v2684_v0 = vpack.c.bf16 %v2033_v58, %v2030_v56  ;;  %v299_v2 = vld [vmem:[%s4757_s2 + $0xf0] sm:$0xff]  ;;  %v302_v3 = vld [vmem:[%s4757_s2 + $0x108] sm:$0xff] }
  0x14   : > { %2679 = vmatprep.subr.bf16.mxu0 %v2678_v44  ;;  %v2037_v61 = vld [vmem:[%s4757_s2 + $0x278] sm:$0xff]  ;;  %v2622_v1 = vpack.c.bf16 %v303_v60, %v300_v59  ;;  %v2036_v4 = vld [vmem:[%s4757_s2 + $0x270] sm:$0xff]  ;;  %v2039_v6 = vld [vmem:[%s4757_s2 + $0x288] sm:$0xff]  ;;  %v2624_v12 = vpack.c.bf16 %v302_v3, %v299_v2 }
  0x15   : > { %v2686_v5 = vpack.c.bf16 %v2040_v62, %v2037_v61  ;;  %v306_v8 = vld [vmem:[%s4757_s2 + $0x128] sm:$0xff]  ;;  %v309_v9 = vld [vmem:[%s4757_s2 + $0x140] sm:$0xff]  ;;  %v2688_v13 = vpack.c.bf16 %v2039_v6, %v2036_v4  ;;  %v308_v16 = vld [vmem:[%s4757_s2 + $0x138] sm:$0xff] }
  0x16   : > { %2617 = vmatpush1.bf16.msra.mxu1 %v2616_v51  ;;  %v2043_v10 = vld [vmem:[%s4757_s2 + $0x2a8] sm:$0xff]  ;;  %v2046_v11 = vld [vmem:[%s4757_s2 + $0x2c0] sm:$0xff]  ;;  %v2626_v14 = vpack.c.bf16 %v309_v9, %v306_v8  ;;  %v2045_v19 = vld [vmem:[%s4757_s2 + $0x2b8] sm:$0xff] }
  0x17   : > { %2681 = vmatpush1.bf16.msra.mxu0 %v2680_v52  ;;  %2619 = vmatprep.subr.bf16.mxu1 %v2618_v53  ;;  %v305_v15 = vld [vmem:[%s4757_s2 + $0x120] sm:$0xff]  ;;  %v2690_v18 = vpack.c.bf16 %v2046_v11, %v2043_v10  ;;  %v312_v20 = vld [vmem:[%s4757_s2 + $0x158] sm:$0xff]  ;;  %v315_v21 = vld [vmem:[%s4757_s2 + $0x170] sm:$0xff] }
  0x18   : > { %2683 = vmatprep.subr.bf16.mxu0 %v2682_v57  ;;  %v2042_v17 = vld [vmem:[%s4757_s2 + $0x2a0] sm:$0xff]  ;;  %v2049_v22 = vld [vmem:[%s4757_s2 + $0x2d8] sm:$0xff]  ;;  %v2052_v23 = vld [vmem:[%s4757_s2 + $0x2f0] sm:$0xff]  ;;  %v2628_v24 = vpack.c.bf16 %v308_v16, %v305_v15  ;;  %v2630_v26 = vpack.c.bf16 %v315_v21, %v312_v20 }
  0x19   : > { %v2692_v25 = vpack.c.bf16 %v2045_v19, %v2042_v17  ;;  %v311_v27 = vld [vmem:[%s4757_s2 + $0x150] sm:$0xff]  ;;  %v314_v28 = vld [vmem:[%s4757_s2 + $0x168] sm:$0xff]  ;;  %v2694_v30 = vpack.c.bf16 %v2052_v23, %v2049_v22  ;;  %v2058_v35 = vld [vmem:[%s4757_s2 + $0x320] sm:$0xff] }
  0x1a   : > { %2621 = vmatpush1.bf16.msra.mxu1 %v2620_v63  ;;  %v2048_v29 = vld [vmem:[%s4757_s2 + $0x2d0] sm:$0xff]  ;;  %v2051_v31 = vld [vmem:[%s4757_s2 + $0x2e8] sm:$0xff]  ;;  %v2632_v36 = vpack.c.bf16 %v314_v28, %v311_v27  ;;  %v2054_v39 = vld [vmem:[%s4757_s2 + $0x300] sm:$0xff] }
  0x1b   : > { %2685 = vmatpush1.bf16.msra.mxu0 %v2684_v0  ;;  %2623 = vmatprep.subr.bf16.mxu1 %v2622_v1  ;;  %v271_v32 = vld [vmem:[%s4757_s2 + $0x10] sm:$0xff]  ;;  %v274_v33 = vld [vmem:[%s4757_s2 + $0x28] sm:$0xff]  ;;  %v2696_v37 = vpack.c.bf16 %v2051_v31, %v2048_v29  ;;  %v2057_v41 = vld [vmem:[%s4757_s2 + $0x318] sm:$0xff] }
  0x1c   : > { %2687 = vmatprep.subr.bf16.mxu0 %v2686_v5  ;;  %v2055_v34 = vld [vmem:[%s4757_s2 + $0x308] sm:$0xff]  ;;  %v2634_v38 = vpack.c.bf16 %v274_v33, %v271_v32  ;;  %v277_v42 = vld [vmem:[%s4757_s2 + $0x40] sm:$0xff]  ;;  %v280_v43 = vld [vmem:[%s4757_s2 + $0x58] sm:$0xff]  ;;  %v2732_v48 = vpack.c.bf16 %v2057_v41, %v2054_v39 }
  0x1d   : > { %v2730_v40 = vpack.c.bf16 %v2058_v35, %v2055_v34  ;;  %v2061_v44 = vld [vmem:[%s4757_s2 + $0x338] sm:$0xff]  ;;  %v2064_v45 = vld [vmem:[%s4757_s2 + $0x350] sm:$0xff]  ;;  %v3444_v46 = vld [vmem:[%s3423_s23] sm:$0xff]  ;;  %v2638_v49 = vpack.c.bf16 %v280_v43, %v277_v42 }
  0x1e   : > { %2625 = vmatpush1.bf16.msra.mxu1 %v2624_v12  ;;  %v3447_v47 = vld [vmem:[%s3423_s23 + $0x1] sm:$0xff]  ;;  %v2060_v50 = vld [vmem:[%s4757_s2 + $0x330] sm:$0xff]  ;;  %v2734_v51 = vpack.c.bf16 %v2064_v45, %v2061_v44  ;;  %v2069_v63 = vld [vmem:[%s4757_s2 + $0x378] sm:$0xff] }
  0x1f   : > { %2689 = vmatpush1.bf16.msra.mxu0 %v2688_v13  ;;  %2627 = vmatprep.subr.bf16.mxu1 %v2626_v14  ;;  %v2063_v52 = vld [vmem:[%s4757_s2 + $0x348] sm:$0xff]  ;;  %v283_v53 = vld [vmem:[%s4757_s2 + $0x70] sm:$0xff]  ;;  %v2070_v56 = vld [vmem:[%s4757_s2 + $0x380] sm:$0xff] }
  0x20   : > { %2691 = vmatprep.subr.bf16.mxu0 %v2690_v18  ;;  %v286_v54 = vld [vmem:[%s4757_s2 + $0x88] sm:$0xff]  ;;  %v2736_v58 = vpack.c.bf16 %v2063_v52, %v2060_v50  ;;  %v2066_v60 = vld [vmem:[%s4757_s2 + $0x360] sm:$0xff]  ;;  %v292_v1 = vld [vmem:[%s4757_s2 + $0xb8] sm:$0xff] }
  0x21   : > { %v2067_v55 = vld [vmem:[%s4757_s2 + $0x368] sm:$0xff]  ;;  %v2642_v59 = vpack.c.bf16 %v286_v54, %v283_v53  ;;  %v289_v0 = vld [vmem:[%s4757_s2 + $0xa0] sm:$0xff]  ;;  %v2073_v2 = vld [vmem:[%s4757_s2 + $0x398] sm:$0xff]  ;;  %v2740_v5 = vpack.c.bf16 %v2069_v63, %v2066_v60 }
  0x22   : > { %2629 = vmatpush1.bf16.msra.mxu1 %v2628_v24  ;;  %v3470_v57 = vld [vmem:[%s3423_s23 + $0x8] sm:$0xff]  ;;  %v2738_v62 = vpack.c.bf16 %v2070_v56, %v2067_v55  ;;  %v2076_v3 = vld [vmem:[%s4757_s2 + $0x3b0] sm:$0xff]  ;;  %v2646_v6 = vpack.c.bf16 %v292_v1, %v289_v0  ;;  %v2082_v15 = vld [vmem:[%s4757_s2 + $0x3e0] sm:$0xff] }
  0x23   : > { %2693 = vmatpush1.bf16.msra.mxu0 %v2692_v25  ;;  %2631 = vmatprep.subr.bf16.mxu1 %v2630_v26  ;;  %v3476_v61 = vld [vmem:[%s3423_s23 + $0x9] sm:$0xff]  ;;  %v3504_v9 = vld [vmem:[%s3423_s23 + $0x11] sm:$0xff]  ;;  %v2742_v10 = vpack.c.bf16 %v2076_v3, %v2073_v2  ;;  %v2078_v19 = vld [vmem:[%s4757_s2 + $0x3c0] sm:$0xff] }
  0x24   : > { %2695 = vmatprep.subr.bf16.mxu0 %v2694_v30  ;;  %v3498_v4 = vld [vmem:[%s3423_s23 + $0x10] sm:$0xff]  ;;  %v2075_v11 = vld [vmem:[%s4757_s2 + $0x3a8] sm:$0xff]  ;;  %v3526_v16 = vld [vmem:[%s3423_s23 + $0x18] sm:$0xff] }
  0x25   : > { %v2072_v8 = vld [vmem:[%s4757_s2 + $0x390] sm:$0xff]  ;;  %v298_v13 = vld [vmem:[%s4757_s2 + $0xe8] sm:$0xff]  ;;  %v3532_v20 = vld [vmem:[%s3423_s23 + $0x19] sm:$0xff] }
  0x26   : > { %2633 = vmatpush1.bf16.msra.mxu1 %v2632_v36  ;;  %v295_v12 = vld [vmem:[%s4757_s2 + $0xd0] sm:$0xff]  ;;  %v2079_v14 = vld [vmem:[%s4757_s2 + $0x3c8] sm:$0xff]  ;;  %v2744_v17 = vpack.c.bf16 %v2075_v11, %v2072_v8  ;;  %v2081_v22 = vld [vmem:[%s4757_s2 + $0x3d8] sm:$0xff] }
  0x27   : > { %2697 = vmatpush1.bf16.msra.mxu0 %v2696_v37  ;;  %2635 = vmatprep.subr.bf16.mxu1 %v2634_v38  ;;  %v2650_v18 = vpack.c.bf16 %v298_v13, %v295_v12  ;;  %v2746_v21 = vpack.c.bf16 %v2082_v15, %v2079_v14  ;;  %v301_v23 = vld [vmem:[%s4757_s2 + $0x100] sm:$0xff]  ;;  %v304_v24 = vld [vmem:[%s4757_s2 + $0x118] sm:$0xff]  ;;  %v2088_v26 = vld [vmem:[%s4757_s2 + $0x410] sm:$0xff]  ;;  %v2748_v27 = vpack.c.bf16 %v2081_v22, %v2078_v19 }
  0x28   : > { %2731 = vmatprep.subr.bf16.mxu0 %v2730_v40  ;;  %v2085_v25 = vld [vmem:[%s4757_s2 + $0x3f8] sm:$0xff]  ;;  %v2654_v28 = vpack.c.bf16 %v304_v24, %v301_v23  ;;  %v2084_v29 = vld [vmem:[%s4757_s2 + $0x3f0] sm:$0xff]  ;;  %v2087_v31 = vld [vmem:[%s4757_s2 + $0x408] sm:$0xff] }
  0x29   : > { %382 = vmatmul.mubr.f32.vlgmr.msra.gmra.mrb[0].mxu1 %v3444_v46  ;;  %v2750_v30 = vpack.c.bf16 %v2088_v26, %v2085_v25  ;;  %v307_v32 = vld [vmem:[%s4757_s2 + $0x130] sm:$0xff]  ;;  %v310_v33 = vld [vmem:[%s4757_s2 + $0x148] sm:$0xff]  ;;  %v2094_v35 = vld [vmem:[%s4757_s2 + $0x440] sm:$0xff]  ;;  %v2752_v36 = vpack.c.bf16 %v2087_v31, %v2084_v29 }
  0x2a   : > { %2637 = vmatpush3.bf16.msra.mxu1 %v2634_v38  ;;  %621 = vmatmul.mubr.f32.vlgmr.msra.gmra.mrb[0].mxu0 %v3447_v47  ;;  %v2091_v34 = vld [vmem:[%s4757_s2 + $0x428] sm:$0xff]  ;;  %v2658_v37 = vpack.c.bf16 %v310_v33, %v307_v32  ;;  %v2090_v38 = vld [vmem:[%s4757_s2 + $0x420] sm:$0xff]  ;;  %v2093_v40 = vld [vmem:[%s4757_s2 + $0x438] sm:$0xff] }
  0x2b   : > { %2733 = vmatpush1.bf16.msra.mxu0 %v2732_v48  ;;  %2639 = vmatprep.subr.bf16.mxu1 %v2638_v49  ;;  %v2754_v39 = vpack.c.bf16 %v2094_v35, %v2091_v34  ;;  %v313_v41 = vld [vmem:[%s4757_s2 + $0x160] sm:$0xff]  ;;  %v316_v42 = vld [vmem:[%s4757_s2 + $0x178] sm:$0xff]  ;;  %v2100_v44 = vld [vmem:[%s4757_s2 + $0x470] sm:$0xff]  ;;  %v2756_v45 = vpack.c.bf16 %v2093_v40, %v2090_v38 }
  0x2c   : > { %2735 = vmatprep.subr.bf16.mxu0 %v2734_v51  ;;  %387 = vmatprep.mubr.f32.mxu1 %v3162_v7  ;;  %v2097_v43 = vld [vmem:[%s4757_s2 + $0x458] sm:$0xff]  ;;  %v2096_v48 = vld [vmem:[%s4757_s2 + $0x450] sm:$0xff]  ;;  %v2099_v50 = vld [vmem:[%s4757_s2 + $0x468] sm:$0xff] }
  0x2d   : > { %626 = vmatprep.mubr.f32.mxu0 %v3162_v7  ;;  %388 = vmatmul.mubr.f32.gmra.mrb[2].mxu1 %v3470_v57  ;;  %v2008_v51 = vld [vmem:[%s4757_s2 + $0x190] sm:$0xff]  ;;  %v2011_v52 = vld [vmem:[%s4757_s2 + $0x1a8] sm:$0xff]  ;;  %v993_v54 = vld [vmem:[%s4758_s3 + $0x20] sm:$0xff]  ;;  %v2760_v55 = vpack.c.bf16 %v2099_v50, %v2096_v48 }
  0x2e   : > { %2641 = vmatpush3.bf16.msra.mxu1 %v2638_v49  ;;  %627 = vmatmul.mubr.f32.gmra.mrb[2].mxu0 %v3476_v61  ;;  %v2758_v49 = vpack.c.bf16 %v2100_v44, %v2097_v43  ;;  %v990_v53 = vld [vmem:[%s4758_s3 + $0x8] sm:$0xff]  ;;  %v2698_v56 = vpack.c.bf16 %v2011_v52, %v2008_v51  ;;  %v992_v60 = vld [vmem:[%s4758_s3 + $0x18] sm:$0xff]  ;;  %v999_v1 = vld [vmem:[%s4758_s3 + $0x50] sm:$0xff] }
  0x2f   : > { %2737 = vmatpush1.bf16.msra.mxu0 %v2736_v58  ;;  %2643 = vmatprep.subr.bf16.mxu1 %v2642_v59  ;;  %v989_v58 = vld [vmem:[%s4758_s3] sm:$0xff]  ;;  %v2017_v63 = vld [vmem:[%s4757_s2 + $0x1d8] sm:$0xff]  ;;  %v2020_v11 = vld [vmem:[%s4757_s2 + $0x1f0] sm:$0xff] }
  0x30   : > { %2739 = vmatprep.subr.bf16.mxu0 %v2738_v62  ;;  %393 = vmatprep.mubr.f32.mxu1 %v3162_v7  ;;  %v2014_v62 = vld [vmem:[%s4757_s2 + $0x1c0] sm:$0xff]  ;;  %v996_v0 = vld [vmem:[%s4758_s3 + $0x38] sm:$0xff]  ;;  %v2796_v3 = vpack.c.bf16 %v992_v60, %v989_v58  ;;  %v2023_v12 = vld [vmem:[%s4757_s2 + $0x208] sm:$0xff] }
  0x31   : > { %632 = vmatprep.mubr.f32.mxu0 %v3162_v7  ;;  %394 = vmatmul.mubr.f32.gmra.mrb[4].mxu1 %v3498_v4  ;;  %v3628_v2 = vld [vmem:[%s3423_s23 + $0x2] sm:$0xff]  ;;  %v2798_v8 = vpack.c.bf16 %v999_v1, %v996_v0  ;;  %v1004_v19 = vld [vmem:[%s4758_s3 + $0x78] sm:$0xff]  ;;  %v1011_v24 = vld [vmem:[%s4758_s3 + $0xb0] sm:$0xff] }
  0x32   : > { %2645 = vmatpush3.bf16.msra.mxu1 %v2642_v59  ;;  %633 = vmatmul.mubr.f32.gmra.mrb[4].mxu0 %v3504_v9  ;;  %v2794_v59 = vpack.c.bf16 %v993_v54, %v990_v53  ;;  %v1002_v13 = vld [vmem:[%s4758_s3 + $0x68] sm:$0xff]  ;;  %v1005_v14 = vld [vmem:[%s4758_s3 + $0x80] sm:$0xff]  ;;  %v2029_v22 = vld [vmem:[%s4757_s2 + $0x238] sm:$0xff] }
  0x33   : > { %2741 = vmatpush1.bf16.msra.mxu0 %v2740_v5  ;;  %2647 = vmatprep.subr.bf16.mxu1 %v2646_v6  ;;  %v2702_v5 = vpack.c.bf16 %v2017_v63, %v2014_v62  ;;  %v1008_v23 = vld [vmem:[%s4758_s3 + $0x98] sm:$0xff]  ;;  %v3672_v25 = vld [vmem:[%s3423_s23 + $0xa] sm:$0xff]  ;;  %v1017_v31 = vld [vmem:[%s4758_s3 + $0xe0] sm:$0xff] }
  0x34   : > { %2743 = vmatprep.subr.bf16.mxu0 %v2742_v10  ;;  %399 = vmatprep.mubr.f32.mxu1 %v3162_v7  ;;  %v998_v10 = vld [vmem:[%s4758_s3 + $0x48] sm:$0xff]  ;;  %v3697_v32 = vld [vmem:[%s3423_s23 + $0x12] sm:$0xff]  ;;  %v1013_v35 = vld [vmem:[%s4758_s3 + $0xc0] sm:$0xff] }
  0x35   : > { %638 = vmatprep.mubr.f32.mxu0 %v3162_v7  ;;  %400 = vmatmul.mubr.f32.gmra.mrb[6].mxu1 %v3526_v16  ;;  %v2035_v29 = vld [vmem:[%s4757_s2 + $0x268] sm:$0xff]  ;;  %v2038_v38 = vld [vmem:[%s4757_s2 + $0x280] sm:$0xff]  ;;  %v1020_v40 = vld [vmem:[%s4758_s3 + $0xf8] sm:$0xff] }
  0x36   : > { %2649 = vmatpush3.bf16.msra.mxu1 %v2646_v6  ;;  %639 = vmatmul.mubr.f32.gmra.mrb[6].mxu0 %v3532_v20  ;;  %v995_v6 = vld [vmem:[%s4758_s3 + $0x30] sm:$0xff]  ;;  %v3728_v43 = vld [vmem:[%s3702_s13 + $0x8] sm:$0xff]  ;;  %v1029_v52 = vld [vmem:[%s4758_s3 + $0x140] sm:$0xff] }
  0x37   : > { %2745 = vmatpush1.bf16.msra.mxu0 %v2744_v17  ;;  %2651 = vmatprep.subr.bf16.mxu1 %v2650_v18  ;;  %v2800_v15 = vpack.c.bf16 %v998_v10, %v995_v6  ;;  %v2706_v17 = vpack.c.bf16 %v2023_v12, %v2020_v11  ;;  %v2047_v50 = vld [vmem:[%s4757_s2 + $0x2c8] sm:$0xff]  ;;  %v1028_v58 = vld [vmem:[%s4758_s3 + $0x138] sm:$0xff]  ;;  %v1035_v63 = vld [vmem:[%s4758_s3 + $0x170] sm:$0xff] }
  0x38   : > { %2747 = vmatprep.subr.bf16.mxu0 %v2746_v21  ;;  %2520 = vmatprep.mubr.f32.mxu1 %v3444_v46  ;;  %v2662_v46 = vpack.c.bf16 %v316_v42, %v313_v41  ;;  %v2026_v21 = vld [vmem:[%s4757_s2 + $0x220] sm:$0xff]  ;;  %v1023_v41 = vld [vmem:[%s4758_s3 + $0x110] sm:$0xff]  ;;  %v1026_v51 = vld [vmem:[%s4758_s3 + $0x128] sm:$0xff] }
  0x39   : > { %859 = vmatprep.mubr.f32.mxu0 %v3162_v7  ;;  %v2710_v26 = vpack.c.bf16 %v2029_v22, %v2026_v21  ;;  %v3725_v42 = vld [vmem:[%s3423_s23 + $0x1a] sm:$0xff]  ;;  %v2814_v48 = vpack.c.bf16 %v1023_v41, %v1020_v40  ;;  %v1034_v6 = vld [vmem:[%s4758_s3 + $0x168] sm:$0xff]  ;;  %v1047_v22 = vld [vmem:[%s4758_s3 + $0x1d0] sm:$0xff] }
  0x3a   : > { %2653 = vmatpush3.bf16.msra.mxu1 %v2650_v18  ;;  %v2802_v18 = vpack.c.bf16 %v1005_v14, %v1002_v13  ;;  %v2053_v60 = vld [vmem:[%s4757_s2 + $0x2f8] sm:$0xff]  ;;  %v2059_v10 = vld [vmem:[%s4757_s2 + $0x328] sm:$0xff]  ;;  %v1041_v12 = vld [vmem:[%s4758_s3 + $0x1a0] sm:$0xff] }
  0x3b   : > { %2749 = vmatpush1.bf16.msra.mxu0 %v2748_v27  ;;  %2655 = vmatprep.subr.bf16.mxu1 %v2654_v28  ;;  %v1007_v27 = vld [vmem:[%s4758_s3 + $0x90] sm:$0xff]  ;;  %v1032_v62 = vld [vmem:[%s4758_s3 + $0x158] sm:$0xff]  ;;  %v1038_v11 = vld [vmem:[%s4758_s3 + $0x188] sm:$0xff] }
  0x3c   : > { %2751 = vmatprep.subr.bf16.mxu0 %v2750_v30  ;;  %v1014_v30 = vld [vmem:[%s4758_s3 + $0xc8] sm:$0xff]  ;;  %v1044_v21 = vld [vmem:[%s4758_s3 + $0x1b8] sm:$0xff]  ;;  %v1055_v40 = vld [vmem:[%s4758_s3 + $0x210] sm:$0xff] }
  0x3e   : > { %2657 = vmatpush3.bf16.msra.mxu1 %v2654_v28  ;;  %v2806_v28 = vpack.c.bf16 %v1011_v24, %v1008_v23 }
  0x3f   : > { %2753 = vmatpush1.bf16.msra.mxu0 %v2752_v36  ;;  %2659 = vmatprep.subr.bf16.mxu1 %v2658_v37  ;;  %v2810_v36 = vpack.c.bf16 %v1017_v31, %v1014_v30 }
  0x40   : > { %2755 = vmatprep.subr.bf16.mxu0 %v2754_v39  ;;  %v2041_v39 = vld [vmem:[%s4757_s2 + $0x298] sm:$0xff] }
  0x42   : > { %2661 = vmatpush3.bf16.msra.mxu1 %v2658_v37  ;;  %v1016_v37 = vld [vmem:[%s4758_s3 + $0xd8] sm:$0xff] }
  0x43   : > { %2757 = vmatpush1.bf16.msra.mxu0 %v2756_v45  ;;  %2663 = vmatprep.subr.bf16.mxu1 %v2662_v46  ;;  %v2812_v44 = vpack.c.bf16 %v1016_v37, %v1013_v35  ;;  %v2718_v45 = vpack.c.bf16 %v2041_v39, %v2038_v38  ;;  %v2074_v35 = vld [vmem:[%s4757_s2 + $0x3a0] sm:$0xff]  ;;  %v1059_v37 = vld [vmem:[%s4758_s3 + $0x230] sm:$0xff] }
  0x44   : > { %2759 = vmatprep.subr.bf16.mxu0 %v2758_v49  ;;  %v1022_v49 = vld [vmem:[%s4758_s3 + $0x108] sm:$0xff] }
  0x46   : > { %2665 = vmatpush3.bf16.msra.mxu1 %v2662_v46  ;;  %v1019_v46 = vld [vmem:[%s4758_s3 + $0xf0] sm:$0xff] }
  0x47   : > { %2761 = vmatpush1.bf16.msra.mxu0 %v2760_v55  ;;  %2699 = vmatprep.subr.bf16.mxu1 %v2698_v56  ;;  %v2816_v53 = vpack.c.bf16 %v1022_v49, %v1019_v46  ;;  %v1025_v55 = vld [vmem:[%s4758_s3 + $0x120] sm:$0xff] }
  0x48   : > { %2795 = vmatprep.subr.bf16.mxu0 %v2794_v59  ;;  %v2050_v59 = vld [vmem:[%s4757_s2 + $0x2e0] sm:$0xff]  ;;  %v2820_v0 = vpack.c.bf16 %v1028_v58, %v1025_v55  ;;  %v1071_v55 = vld [vmem:[%s4758_s3 + $0x290] sm:$0xff] }
  0x49   : > { %2521 = vmatmul.mubr.f32.vlgmr.msra.gmra.mrb[8].mxu1 %v3470_v57  ;;  %v1001_v57 = vld [vmem:[%s4758_s3 + $0x60] sm:$0xff]  ;;  %v2726_v1 = vpack.c.bf16 %v2053_v60, %v2050_v59  ;;  %v1067_v59 = vld [vmem:[%s4758_s3 + $0x270] sm:$0xff] }
  0x4a   : > { %2701 = vmatpush3.bf16.msra.mxu1 %v2698_v56  ;;  %860 = vmatmul.mubr.f32.vlgmr.msra.gmra.mrb[0].mxu0 %v3628_v2  ;;  %v2818_v56 = vpack.c.bf16 %v1029_v52, %v1026_v51  ;;  %v1065_v46 = vld [vmem:[%s4758_s3 + $0x260] sm:$0xff]  ;;  %v1064_v51 = vld [vmem:[%s4758_s3 + $0x258] sm:$0xff] }
  0x4b   : > { %2797 = vmatpush1.bf16.msra.mxu0 %v2796_v3  ;;  %2703 = vmatprep.subr.bf16.mxu1 %v2702_v5  ;;  %v1031_v3 = vld [vmem:[%s4758_s3 + $0x150] sm:$0xff]  ;;  %v2086_v52 = vld [vmem:[%s4757_s2 + $0x400] sm:$0xff] }
  0x4c   : > { %2799 = vmatprep.subr.bf16.mxu0 %v2798_v8  ;;  %2523 = vmatprep.mubr.f32.mxu1 %v3498_v4  ;;  %v2804_v4 = vpack.c.bf16 %v1004_v19, %v1001_v57  ;;  %v2056_v8 = vld [vmem:[%s4757_s2 + $0x310] sm:$0xff]  ;;  %v2824_v13 = vpack.c.bf16 %v1034_v6, %v1031_v3  ;;  %v1040_v57 = vld [vmem:[%s4758_s3 + $0x198] sm:$0xff]  ;;  %v1077_v3 = vld [vmem:[%s4758_s3 + $0x2c0] sm:$0xff] }
  0x4d   : > { %2524 = vmatmul.mubr.f32.gmra.mrb[10].mxu1 %v3526_v16  ;;  %865 = vmatprep.mubr.f32.mxu0 %v3162_v7  ;;  %v1010_v16 = vld [vmem:[%s4758_s3 + $0xa8] sm:$0xff]  ;;  %v2762_v14 = vpack.c.bf16 %v2059_v10, %v2056_v8  ;;  %v2065_v19 = vld [vmem:[%s4757_s2 + $0x358] sm:$0xff]  ;;  %v1073_v8 = vld [vmem:[%s4758_s3 + $0x2a0] sm:$0xff] }
  0x4e   : > { %2705 = vmatpush3.bf16.msra.mxu1 %v2702_v5  ;;  %2558 = vmatprep.mubr.f32.mxu1 %v3447_v47  ;;  %v2032_v47 = vld [vmem:[%s4757_s2 + $0x250] sm:$0xff]  ;;  %v2808_v33 = vpack.c.bf16 %v1010_v16, %v1007_v27  ;;  %v2822_v5 = vpack.c.bf16 %v1035_v63, %v1032_v62  ;;  %v1046_v27 = vld [vmem:[%s4758_s3 + $0x1c8] sm:$0xff] }
  0x4f   : > { %2801 = vmatpush1.bf16.msra.mxu0 %v2800_v15  ;;  %2707 = vmatprep.subr.bf16.mxu1 %v2706_v17  ;;  %v2714_v34 = vpack.c.bf16 %v2035_v29, %v2032_v47  ;;  %v1037_v15 = vld [vmem:[%s4758_s3 + $0x180] sm:$0xff]  ;;  %v2071_v16 = vld [vmem:[%s4757_s2 + $0x388] sm:$0xff]  ;;  %v2092_v63 = vld [vmem:[%s4757_s2 + $0x430] sm:$0xff] }
  0x50   : > { %2803 = vmatprep.subr.bf16.mxu0 %v2802_v18  ;;  %866 = vmatmul.mubr.f32.gmra.mrb[2].mxu0 %v3672_v25  ;;  %v2062_v18 = vld [vmem:[%s4757_s2 + $0x340] sm:$0xff]  ;;  %v2828_v23 = vpack.c.bf16 %v1040_v57, %v1037_v15  ;;  %v1050_v47 = vld [vmem:[%s4758_s3 + $0x1e8] sm:$0xff]  ;;  %v1083_v15 = vld [vmem:[%s4758_s3 + $0x2f0] sm:$0xff] }
  0x51   : > { %871 = vmatprep.mubr.f32.mxu0 %v3162_v7  ;;  %v2766_v24 = vpack.c.bf16 %v2065_v19, %v2062_v18  ;;  %v1053_v29 = vld [vmem:[%s4758_s3 + $0x200] sm:$0xff]  ;;  %v1070_v62 = vld [vmem:[%s4758_s3 + $0x288] sm:$0xff]  ;;  %v1079_v18 = vld [vmem:[%s4758_s3 + $0x2d0] sm:$0xff] }
  0x52   : > { %2709 = vmatpush3.bf16.msra.mxu1 %v2706_v17  ;;  %v2826_v17 = vpack.c.bf16 %v1041_v12, %v1038_v11  ;;  %v1076_v11 = vld [vmem:[%s4758_s3 + $0x2b8] sm:$0xff]  ;;  %v2098_v12 = vld [vmem:[%s4757_s2 + $0x460] sm:$0xff] }
  0x53   : > { %2805 = vmatpush1.bf16.msra.mxu0 %v2804_v4  ;;  %2711 = vmatprep.subr.bf16.mxu1 %v2710_v26  ;;  %v1043_v4 = vld [vmem:[%s4758_s3 + $0x1b0] sm:$0xff] }
  0x54   : > { %2807 = vmatprep.subr.bf16.mxu0 %v2806_v28  ;;  %872 = vmatmul.mubr.f32.gmra.mrb[4].mxu0 %v3697_v32  ;;  %v2068_v28 = vld [vmem:[%s4757_s2 + $0x370] sm:$0xff]  ;;  %v2832_v30 = vpack.c.bf16 %v1046_v27, %v1043_v4  ;;  %v2106_v4 = vld [vmem:[%s4758_s3 + $0x320] sm:$0xff] }
  0x55   : > { %877 = vmatprep.mubr.f32.mxu0 %v3162_v7  ;;  %v2044_v7 = vld [vmem:[%s4757_s2 + $0x2b0] sm:$0xff]  ;;  %v2770_v31 = vpack.c.bf16 %v2071_v16, %v2068_v28  ;;  %v994_v16 = vld [vmem:[%s4758_s3 + $0x28] sm:$0xff] }
  0x56   : > { %2713 = vmatpush3.bf16.msra.mxu1 %v2710_v26  ;;  %v2722_v54 = vpack.c.bf16 %v2047_v50, %v2044_v7  ;;  %v2830_v26 = vpack.c.bf16 %v1047_v22, %v1044_v21  ;;  %v1061_v7 = vld [vmem:[%s4758_s3 + $0x240] sm:$0xff]  ;;  %v1082_v21 = vld [vmem:[%s4758_s3 + $0x2e8] sm:$0xff]  ;;  %v1039_v22 = vld [vmem:[%s4758_s3 + $0x190] sm:$0xff] }
  0x57   : > { %2809 = vmatpush1.bf16.msra.mxu0 %v2808_v33  ;;  %2715 = vmatprep.subr.bf16.mxu1 %v2714_v34  ;;  %v1049_v33 = vld [vmem:[%s4758_s3 + $0x1e0] sm:$0xff]  ;;  %v991_v28 = vld [vmem:[%s4758_s3 + $0x10] sm:$0xff] }
  0x58   : > { %2811 = vmatprep.subr.bf16.mxu0 %v2810_v36  ;;  %878 = vmatmul.mubr.f32.gmra.mrb[6].mxu0 %v3725_v42  ;;  %v1056_v36 = vld [vmem:[%s4758_s3 + $0x218] sm:$0xff] }
  0x59   : > { %1149 = vmatprep.mubr.f32.mxu0 %v3728_v43  ;;  %v2838_v41 = vpack.c.bf16 %v1059_v37, %v1056_v36  ;;  %v997_v37 = vld [vmem:[%s4758_s3 + $0x40] sm:$0xff] }
  0x5a   : > { %2717 = vmatpush3.bf16.msra.mxu1 %v2714_v34  ;;  %v1052_v34 = vld [vmem:[%s4758_s3 + $0x1f8] sm:$0xff] }
  0x5b   : > { %2813 = vmatpush1.bf16.msra.mxu0 %v2812_v44  ;;  %2719 = vmatprep.subr.bf16.mxu1 %v2718_v45  ;;  %v2836_v38 = vpack.c.bf16 %v1052_v34, %v1049_v33  ;;  %v1058_v44 = vld [vmem:[%s4758_s3 + $0x228] sm:$0xff]  ;;  %v1048_v33 = vld [vmem:[%s4758_s3 + $0x1d8] sm:$0xff]  ;;  %v2112_v34 = vld [vmem:[%s4758_s3 + $0x350] sm:$0xff] }
  0x5c   : > { %2815 = vmatprep.subr.bf16.mxu0 %v2814_v48  ;;  %v2840_v48 = vpack.c.bf16 %v1058_v44, %v1055_v40  ;;  %v2111_v44 = vld [vmem:[%s4758_s3 + $0x348] sm:$0xff] }
  0x5e   : > { %2721 = vmatpush3.bf16.msra.mxu1 %v2718_v45  ;;  %v1062_v45 = vld [vmem:[%s4758_s3 + $0x248] sm:$0xff] }
  0x5f   : > { %2817 = vmatpush1.bf16.msra.mxu0 %v2816_v53  ;;  %2723 = vmatprep.subr.bf16.mxu1 %v2722_v54  ;;  %v2842_v50 = vpack.c.bf16 %v1065_v46, %v1062_v45  ;;  %v2089_v53 = vld [vmem:[%s4757_s2 + $0x418] sm:$0xff]  ;;  %v2115_v45 = vld [vmem:[%s4758_s3 + $0x368] sm:$0xff]  ;;  %v2118_v46 = vld [vmem:[%s4758_s3 + $0x380] sm:$0xff] }
  0x60   : > { %2819 = vmatprep.subr.bf16.mxu0 %v2818_v56  ;;  %v2844_v56 = vpack.c.bf16 %v1064_v51, %v1061_v7  ;;  %v2782_v58 = vpack.c.bf16 %v2089_v53, %v2086_v52  ;;  %v2114_v51 = vld [vmem:[%s4758_s3 + $0x360] sm:$0xff]  ;;  %v2117_v52 = vld [vmem:[%s4758_s3 + $0x378] sm:$0xff]  ;;  %v2898_v53 = vpack.c.bf16 %v2118_v46, %v2115_v45  ;;  %v1027_v45 = vld [vmem:[%s4758_s3 + $0x130] sm:$0xff] }
  0x61   : > { %v1030_v46 = vld [vmem:[%s4758_s3 + $0x148] sm:$0xff] }
  0x62   : > { %2725 = vmatpush3.bf16.msra.mxu1 %v2722_v54  ;;  %v1068_v54 = vld [vmem:[%s4758_s3 + $0x278] sm:$0xff] }
  0x63   : > { %2821 = vmatpush1.bf16.msra.mxu0 %v2820_v0  ;;  %2727 = vmatprep.subr.bf16.mxu1 %v2726_v1  ;;  %v2846_v60 = vpack.c.bf16 %v1071_v55, %v1068_v54  ;;  %v2095_v0 = vld [vmem:[%s4757_s2 + $0x448] sm:$0xff]  ;;  %v1060_v54 = vld [vmem:[%s4758_s3 + $0x238] sm:$0xff] }
  0x64   : > { %2823 = vmatprep.subr.bf16.mxu0 %v2822_v5  ;;  %v2848_v5 = vpack.c.bf16 %v1070_v62, %v1067_v59  ;;  %v2786_v6 = vpack.c.bf16 %v2095_v0, %v2092_v63  ;;  %v4007_v55 = vld [vmem:[%s3702_s13 + $0x18] sm:$0xff]  ;;  %v2120_v62 = vld [vmem:[%s4758_s3 + $0x390] sm:$0xff]  ;;  %v2900_v63 = vpack.c.bf16 %v2117_v52, %v2114_v51 }
  0x65   : > { %v2145_v51 = vld [vmem:[%s4758_s3 + $0x458] sm:$0xff]  ;;  %v2148_v52 = vld [vmem:[%s4758_s3 + $0x470] sm:$0xff] }
  0x66   : > { %2729 = vmatpush3.bf16.msra.mxu1 %v2726_v1  ;;  %v1074_v1 = vld [vmem:[%s4758_s3 + $0x2a8] sm:$0xff] }
  0x67   : > { %2825 = vmatpush1.bf16.msra.mxu0 %v2824_v13  ;;  %2763 = vmatprep.subr.bf16.mxu1 %v2762_v14  ;;  %v2850_v10 = vpack.c.bf16 %v1077_v3, %v1074_v1  ;;  %v2101_v13 = vld [vmem:[%s4757_s2 + $0x478] sm:$0xff]  ;;  %v2123_v1 = vld [vmem:[%s4758_s3 + $0x3a8] sm:$0xff]  ;;  %v4031_v3 = vld [vmem:[%s3702_s13 + $0x10] sm:$0xff] }
  0x68   : > { %2827 = vmatprep.subr.bf16.mxu0 %v2826_v17  ;;  %v2852_v17 = vpack.c.bf16 %v1076_v11, %v1073_v8  ;;  %v2790_v57 = vpack.c.bf16 %v2101_v13, %v2098_v12  ;;  %v1063_v8 = vld [vmem:[%s4758_s3 + $0x250] sm:$0xff]  ;;  %v2127_v11 = vld [vmem:[%s4758_s3 + $0x3c8] sm:$0xff]  ;;  %v2130_v12 = vld [vmem:[%s4758_s3 + $0x3e0] sm:$0xff] }
  0x69   : > { %2559 = vmatmul.mubr.f32.vlgmr.msra.gmra.mrb[8].mxu1 %v3476_v61  ;;  %v2834_v61 = vpack.c.bf16 %v1053_v29, %v1050_v47  ;;  %v2102_v29 = vld [vmem:[%s4758_s3 + $0x300] sm:$0xff] }
  0x6a   : > { %2765 = vmatpush3.bf16.msra.mxu1 %v2762_v14  ;;  %2561 = vmatprep.mubr.f32.mxu1 %v3504_v9  ;;  %v2077_v9 = vld [vmem:[%s4757_s2 + $0x3b8] sm:$0xff] }
  0x6b   : > { %2829 = vmatpush1.bf16.msra.mxu0 %v2828_v23  ;;  %2767 = vmatprep.subr.bf16.mxu1 %v2766_v24  ;;  %v2774_v39 = vpack.c.bf16 %v2077_v9, %v2074_v35  ;;  %v1080_v14 = vld [vmem:[%s4758_s3 + $0x2d8] sm:$0xff]  ;;  %v1042_v23 = vld [vmem:[%s4758_s3 + $0x1a8] sm:$0xff]  ;;  %v3959_v35 = vld [vmem:[%s3702_s13] sm:$0xff]  ;;  %v2860_v9 = vpack.c.bf16 %v994_v16, %v991_v28 }
  0x6c   : > { %2831 = vmatprep.subr.bf16.mxu0 %v2830_v26  ;;  %v2854_v19 = vpack.c.bf16 %v1083_v15, %v1080_v14  ;;  %v2856_v26 = vpack.c.bf16 %v1082_v21, %v1079_v18  ;;  %v2858_v27 = vpack.c.bf16 %v1042_v23, %v1039_v22  ;;  %v1015_v14 = vld [vmem:[%s4758_s3 + $0xd0] sm:$0xff]  ;;  %v1018_v15 = vld [vmem:[%s4758_s3 + $0xe8] sm:$0xff]  ;;  %v2904_v18 = vpack.c.bf16 %v2123_v1, %v2120_v62  ;;  %v2126_v21 = vld [vmem:[%s4758_s3 + $0x3c0] sm:$0xff] }
  0x6d   : > { %2562 = vmatmul.mubr.f32.gmra.mrb[10].mxu1 %v3532_v20  ;;  %v2080_v20 = vld [vmem:[%s4757_s2 + $0x3d0] sm:$0xff]  ;;  %v2129_v22 = vld [vmem:[%s4758_s3 + $0x3d8] sm:$0xff]  ;;  %v4065_v23 = vld [vmem:[%s3702_s13 + $0x20] sm:$0xff] }
  0x6e   : > { %2769 = vmatpush3.bf16.msra.mxu1 %v2766_v24  ;;  %2596 = vmatprep.mubr.f32.mxu1 %v3628_v2  ;;  %v2083_v2 = vld [vmem:[%s4757_s2 + $0x3e8] sm:$0xff]  ;;  %v2133_v28 = vld [vmem:[%s4758_s3 + $0x3f8] sm:$0xff]  ;;  %v2136_v16 = vld [vmem:[%s4758_s3 + $0x410] sm:$0xff] }
  0x6f   : > { %2833 = vmatpush1.bf16.msra.mxu0 %v2832_v30  ;;  %2771 = vmatprep.subr.bf16.mxu1 %v2770_v31  ;;  %v2778_v49 = vpack.c.bf16 %v2083_v2, %v2080_v20  ;;  %v2103_v24 = vld [vmem:[%s4758_s3 + $0x308] sm:$0xff]  ;;  %v2105_v30 = vld [vmem:[%s4758_s3 + $0x318] sm:$0xff]  ;;  %v1051_v20 = vld [vmem:[%s4758_s3 + $0x1f0] sm:$0xff] }
  0x70   : > { %2835 = vmatprep.subr.bf16.mxu0 %v2834_v61  ;;  %v2890_v47 = vpack.c.bf16 %v2106_v4, %v2103_v24  ;;  %v2109_v61 = vld [vmem:[%s4758_s3 + $0x338] sm:$0xff]  ;;  %v2892_v36 = vpack.c.bf16 %v2105_v30, %v2102_v29  ;;  %v1054_v2 = vld [vmem:[%s4758_s3 + $0x208] sm:$0xff]  ;;  %v2906_v24 = vpack.c.bf16 %v2130_v12, %v2127_v11  ;;  %v1069_v4 = vld [vmem:[%s4758_s3 + $0x280] sm:$0xff] }
  0x71   : > { %v2866_v7 = vpack.c.bf16 %v1054_v2, %v1051_v20  ;;  %v1021_v29 = vld [vmem:[%s4758_s3 + $0x100] sm:$0xff]  ;;  %v2152_v62 = vld [vmem:[%s4758_s3 + $0x490] sm:$0xff]  ;;  %v2107_v12 = vld [vmem:[%s4758_s3 + $0x328] sm:$0xff] }
  0x72   : > { %2773 = vmatpush3.bf16.msra.mxu1 %v2770_v31  ;;  %v1045_v31 = vld [vmem:[%s4758_s3 + $0x1c0] sm:$0xff]  ;;  %v2104_v11 = vld [vmem:[%s4758_s3 + $0x310] sm:$0xff] }
  0x73   : > { %2837 = vmatpush1.bf16.msra.mxu0 %v2836_v38  ;;  %2775 = vmatprep.subr.bf16.mxu1 %v2774_v39  ;;  %v1000_v38 = vld [vmem:[%s4758_s3 + $0x58] sm:$0xff]  ;;  %v2862_v40 = vpack.c.bf16 %v1048_v33, %v1045_v31  ;;  %v2908_v31 = vpack.c.bf16 %v2129_v22, %v2126_v21  ;;  %v2154_v1 = vld [vmem:[%s4758_s3 + $0x4a0] sm:$0xff]  ;;  %v2956_v21 = vpack.c.bf16 %v2107_v12, %v2104_v11 }
  0x74   : > { %2839 = vmatprep.subr.bf16.mxu0 %v2838_v41  ;;  %v2894_v41 = vpack.c.bf16 %v2112_v34, %v2109_v61  ;;  %v1024_v61 = vld [vmem:[%s4758_s3 + $0x118] sm:$0xff]  ;;  %v2132_v34 = vld [vmem:[%s4758_s3 + $0x3f0] sm:$0xff] }
  0x76   : > { %2777 = vmatpush3.bf16.msra.mxu1 %v2774_v39  ;;  %v2108_v39 = vld [vmem:[%s4758_s3 + $0x330] sm:$0xff] }
  0x77   : > { %2841 = vmatpush1.bf16.msra.mxu0 %v2840_v48  ;;  %2779 = vmatprep.subr.bf16.mxu1 %v2778_v49  ;;  %v2864_v48 = vpack.c.bf16 %v1000_v38, %v997_v37  ;;  %v2135_v37 = vld [vmem:[%s4758_s3 + $0x408] sm:$0xff]  ;;  %v1075_v38 = vld [vmem:[%s4758_s3 + $0x2b0] sm:$0xff] }
  0x78   : > { %2843 = vmatprep.subr.bf16.mxu0 %v2842_v50  ;;  %v1006_v50 = vld [vmem:[%s4758_s3 + $0x88] sm:$0xff]  ;;  %v2912_v20 = vpack.c.bf16 %v2135_v37, %v2132_v34 }
  0x7a   : > { %2781 = vmatpush3.bf16.msra.mxu1 %v2778_v49  ;;  %v1003_v49 = vld [vmem:[%s4758_s3 + $0x70] sm:$0xff] }
  0x7b   : > { %2845 = vmatpush1.bf16.msra.mxu0 %v2844_v56  ;;  %2783 = vmatprep.subr.bf16.mxu1 %v2782_v58  ;;  %v2121_v56 = vld [vmem:[%s4758_s3 + $0x398] sm:$0xff]  ;;  %v2868_v59 = vpack.c.bf16 %v1006_v50, %v1003_v49 }
  0x7c   : > { %2847 = vmatprep.subr.bf16.mxu0 %v2846_v60  ;;  %v1009_v60 = vld [vmem:[%s4758_s3 + $0xa0] sm:$0xff]  ;;  %v1084_v50 = vld [vmem:[%s4758_s3 + $0x2f8] sm:$0xff] }
  0x7e   : > { %2785 = vmatpush3.bf16.msra.mxu1 %v2782_v58  ;;  %v2124_v58 = vld [vmem:[%s4758_s3 + $0x3b0] sm:$0xff] }
  0x7f   : > { %2849 = vmatpush1.bf16.msra.mxu0 %v2848_v5  ;;  %2787 = vmatprep.subr.bf16.mxu1 %v2786_v6  ;;  %v1272_v5 = vld [vmem:[%s3702_s13 + $0x8] sm:$0xfe] }
  0x80   : > { %2851 = vmatprep.subr.bf16.mxu0 %v2850_v10  ;;  %v4041_v10 = vld [vmem:[%s3702_s13 + $0x28] sm:$0xff] }
  0x82   : > { %2789 = vmatpush3.bf16.msra.mxu1 %v2786_v6  ;;  %v2902_v6 = vpack.c.bf16 %v2124_v58, %v2121_v56  ;;  %v1033_v56 = vld [vmem:[%s4758_s3 + $0x160] sm:$0xff]  ;;  %v1036_v58 = vld [vmem:[%s4758_s3 + $0x178] sm:$0xff] }
  0x83   : > { %2853 = vmatpush1.bf16.msra.mxu0 %v2852_v17  ;;  %2791 = vmatprep.subr.bf16.mxu1 %v2790_v57  ;;  %v1392_v17 = vrot.slane %v1272_v5, 1  ;;  %v2888_v5 = vpack.c.bf16 %v1036_v58, %v1033_v56  ;;  %v2178_v56 = vld [vmem:[%s4758_s3 + $0x560] sm:$0xff] }
  0x84   : > { %2855 = vmatprep.subr.bf16.mxu0 %v2854_v19 }
  0x86   : > { %2793 = vmatpush3.bf16.msra.mxu1 %v2790_v57  ;;  %v1393_v57 = vrot.slane %v4007_v55, 1 }
  0x87   : > { %2857 = vmatpush1.bf16.msra.mxu0 %v2856_v26  ;;  %2859 = vmatprep.subr.bf16.mxu1 %v2858_v27  ;;  %v1072_v26 = vld [vmem:[%s4758_s3 + $0x298] sm:$0xff] }
  0x88   : > { %2891 = vmatprep.subr.bf16.mxu0 %v2890_v47  ;;  %v4074_v27 = vld [vmem:[%s3702_s13 + $0x38] sm:$0xff]  ;;  %v2876_v47 = vpack.c.bf16 %v1018_v15, %v1015_v14  ;;  %v4090_v30 = vsel %vm1388_vm0, %v1392_v17, %v1393_v57  ;;  %v2878_v33 = vpack.c.bf16 %v1072_v26, %v1069_v4  ;;  %v2158_v15 = vld [vmem:[%s4758_s3 + $0x4c0] sm:$0xff]  ;;  %v2156_v4 = vld [vmem:[%s4758_s3 + $0x4b0] sm:$0xff] }
  0x89   : > { %2597 = vmatmul.mubr.f32.vlgmr.msra.gmra.mrb[8].mxu1 %v3672_v25  ;;  %v2896_v25 = vpack.c.bf16 %v2111_v44, %v2108_v39  ;;  %v1078_v39 = vld [vmem:[%s4758_s3 + $0x2c8] sm:$0xff]  ;;  %v2880_v44 = vpack.c.bf16 %v1024_v61, %v1021_v29  ;;  %v2153_v14 = vld [vmem:[%s4758_s3 + $0x498] sm:$0xff]  ;;  %v2110_v26 = vld [vmem:[%s4758_s3 + $0x340] sm:$0xff] }
  0x8a   : > { %1150 = vmatmul.mubr.f32.vlgmr.msra.gmra.mrb[0].mxu0 %v3959_v35  ;;  %2861 = vmatpush3.bf16.msra.mxu1 %v2860_v9  ;;  %v4099_v9 = vld [vmem:[%s3702_s13 + $0x30] sm:$0xff]  ;;  %v2882_v2 = vpack.c.bf16 %v1078_v39, %v1075_v38  ;;  %v2161_v17 = vld [vmem:[%s4758_s3 + $0x4d8] sm:$0xff]  ;;  %v2166_v61 = vld [vmem:[%s4758_s3 + $0x500] sm:$0xff] }
  0x8b   : > { %2893 = vmatpush1.bf16.msra.mxu0 %v2892_v36  ;;  %2599 = vmatprep.mubr.f32.mxu1 %v3697_v32  ;;  %v1057_v32 = vld [vmem:[%s4758_s3 + $0x220] sm:$0xff]  ;;  %v2910_v36 = vpack.c.bf16 %v2136_v16, %v2133_v28  ;;  %v2113_v28 = vld [vmem:[%s4758_s3 + $0x358] sm:$0xff]  ;;  %v2164_v29 = vld [vmem:[%s4758_s3 + $0x4f0] sm:$0xff] }
  0x8c   : > { %2863 = vmatprep.subr.bf16.mxu1 %v2862_v40  ;;  %2895 = vmatprep.subr.bf16.mxu0 %v2894_v41  ;;  %v2870_v0 = vpack.c.bf16 %v1060_v54, %v1057_v32  ;;  %v2139_v40 = vld [vmem:[%s4758_s3 + $0x428] sm:$0xff]  ;;  %v2142_v41 = vld [vmem:[%s4758_s3 + $0x440] sm:$0xff]  ;;  %v2960_v34 = vpack.c.bf16 %v2113_v28, %v2110_v26  ;;  %v2116_v38 = vld [vmem:[%s4758_s3 + $0x370] sm:$0xff] }
  0x8d   : > { %2600 = vmatmul.mubr.f32.gmra.mrb[10].mxu1 %v3725_v42  ;;  %1155 = vmatprep.mubr.f32.mxu0 %v4007_v55  ;;  %v1012_v42 = vld [vmem:[%s4758_s3 + $0xb8] sm:$0xff]  ;;  %v2914_v49 = vpack.c.bf16 %v2142_v41, %v2139_v40  ;;  %v2119_v39 = vld [vmem:[%s4758_s3 + $0x388] sm:$0xff] }
  0x8e   : > { %2865 = vmatpush3.bf16.msra.mxu1 %v2864_v48  ;;  %1238 = vmatprep.mubr.f32.mxu1 %v3728_v43  ;;  %v1066_v43 = vld [vmem:[%s4758_s3 + $0x268] sm:$0xff]  ;;  %v2872_v13 = vpack.c.bf16 %v1012_v42, %v1009_v60  ;;  %v2138_v48 = vld [vmem:[%s4758_s3 + $0x420] sm:$0xff]  ;;  %v2918_v60 = vpack.c.bf16 %v2148_v52, %v2145_v51  ;;  %v2165_v41 = vld [vmem:[%s4758_s3 + $0x4f8] sm:$0xff] }
  0x8f   : > { %2897 = vmatpush1.bf16.msra.mxu0 %v2896_v25  ;;  %2867 = vmatprep.subr.bf16.mxu1 %v2866_v7  ;;  %v2874_v19 = vpack.c.bf16 %v1066_v43, %v1063_v8  ;;  %v2141_v25 = vld [vmem:[%s4758_s3 + $0x438] sm:$0xff]  ;;  %v1081_v7 = vld [vmem:[%s4758_s3 + $0x2e0] sm:$0xff]  ;;  %v2147_v42 = vld [vmem:[%s4758_s3 + $0x468] sm:$0xff] }
  0x90   : > { %2899 = vmatprep.subr.bf16.mxu0 %v2898_v53  ;;  %1156 = vmatmul.mubr.f32.gmra.mrb[2].mxu0 %v4031_v3  ;;  %v2884_v53 = vpack.c.bf16 %v1030_v46, %v1027_v45  ;;  %v2916_v32 = vpack.c.bf16 %v2141_v25, %v2138_v48  ;;  %v2886_v54 = vpack.c.bf16 %v1084_v50, %v1081_v7  ;;  %v2150_v43 = vld [vmem:[%s4758_s3 + $0x480] sm:$0xff]  ;;  %v2172_v45 = vld [vmem:[%s4758_s3 + $0x530] sm:$0xff]  ;;  %v2125_v50 = vld [vmem:[%s4758_s3 + $0x3b8] sm:$0xff] }
  0x91   : > { %1161 = vmatprep.mubr.f32.mxu0 %v4041_v10  ;;  %v2924_v22 = vpack.c.bf16 %v2153_v14, %v2150_v43  ;;  %v2964_v46 = vpack.c.bf16 %v2119_v39, %v2116_v38  ;;  %v2168_v25 = vld [vmem:[%s4758_s3 + $0x510] sm:$0xff]  ;;  %v2122_v7 = vld [vmem:[%s4758_s3 + $0x3a0] sm:$0xff]  ;;  %v2171_v52 = vld [vmem:[%s4758_s3 + $0x528] sm:$0xff] }
  0x92   : > { %2869 = vmatpush3.bf16.msra.mxu1 %v2868_v59  ;;  %v2144_v59 = vld [vmem:[%s4758_s3 + $0x450] sm:$0xff]  ;;  %v2968_v58 = vpack.c.bf16 %v2125_v50, %v2122_v7 }
  0x93   : > { %2901 = vmatpush1.bf16.msra.mxu0 %v2900_v63  ;;  %2871 = vmatprep.subr.bf16.mxu1 %v2870_v0  ;;  %v2155_v63 = vld [vmem:[%s4758_s3 + $0x4a8] sm:$0xff]  ;;  %v2184_v43 = vld [vmem:[%s4758_s3 + $0x590] sm:$0xff] }
  0x94   : > { %2903 = vmatprep.subr.bf16.mxu0 %v2902_v6  ;;  %1162 = vmatmul.mubr.f32.gmra.mrb[4].mxu0 %v4065_v23  ;;  %v2151_v0 = vld [vmem:[%s4758_s3 + $0x488] sm:$0xff]  ;;  %v2920_v6 = vpack.c.bf16 %v2147_v42, %v2144_v59  ;;  %v2954_v8 = vpack.c.bf16 %v2155_v63, %v2152_v62  ;;  %v2936_v59 = vpack.c.bf16 %v2171_v52, %v2168_v25  ;;  %v2174_v42 = vld [vmem:[%s4758_s3 + $0x540] sm:$0xff]  ;;  %v2128_v62 = vld [vmem:[%s4758_s3 + $0x3d0] sm:$0xff] }
  0x95   : > { %1167 = vmatprep.mubr.f32.mxu0 %v4074_v27  ;;  %v2131_v63 = vld [vmem:[%s4758_s3 + $0x3e8] sm:$0xff]  ;;  %v2180_v14 = vld [vmem:[%s4758_s3 + $0x570] sm:$0xff]  ;;  %v2202_v25 = vld [vmem:[%s4758_s3 + $0x620] sm:$0xff] }
  0x96   : > { %2873 = vmatpush3.bf16.msra.mxu1 %v2872_v13  ;;  %v2922_v13 = vpack.c.bf16 %v2154_v1, %v2151_v0  ;;  %v2177_v1 = vld [vmem:[%s4758_s3 + $0x558] sm:$0xff]  ;;  %v2972_v11 = vpack.c.bf16 %v2131_v63, %v2128_v62  ;;  %v2192_v38 = vld [vmem:[%s4758_s3 + $0x5d0] sm:$0xff]  ;;  %v2254_v63 = vld [vmem:[%s4758_s3 + $0x7c0] sm:$0xff] }
  0x97   : > { %2905 = vmatpush1.bf16.msra.mxu0 %v2904_v18  ;;  %2875 = vmatprep.subr.bf16.mxu1 %v2874_v19  ;;  %v2157_v18 = vld [vmem:[%s4758_s3 + $0x4b8] sm:$0xff]  ;;  %v2160_v19 = vld [vmem:[%s4758_s3 + $0x4d0] sm:$0xff]  ;;  %v2940_v12 = vpack.c.bf16 %v2177_v1, %v2174_v42 }
  0x98   : > { %2907 = vmatprep.subr.bf16.mxu0 %v2906_v24  ;;  %1168 = vmatmul.mubr.f32.gmra.mrb[6].mxu0 %v4099_v9  ;;  %v2958_v24 = vpack.c.bf16 %v2161_v17, %v2158_v15  ;;  %v2926_v16 = vpack.c.bf16 %v2160_v19, %v2157_v18  ;;  %v2134_v15 = vld [vmem:[%s4758_s3 + $0x400] sm:$0xff]  ;;  %v2137_v17 = vld [vmem:[%s4758_s3 + $0x418] sm:$0xff]  ;;  %v2188_v19 = vld [vmem:[%s4758_s3 + $0x5b0] sm:$0xff] }
  0x99   : > { %1479 = vmatprep.mubr.f32.mxu0 %v4090_v30  ;;  %v2205_v42 = vld [vmem:[%s4758_s3 + $0x638] sm:$0xff]  ;;  %v2208_v62 = vld [vmem:[%s4758_s3 + $0x650] sm:$0xff] }
  0x9a   : > { %2877 = vmatpush3.bf16.msra.mxu1 %v2876_v47  ;;  %v2159_v47 = vld [vmem:[%s4758_s3 + $0x4c8] sm:$0xff] }
  0x9b   : > { %2909 = vmatpush1.bf16.msra.mxu0 %v2908_v31  ;;  %2879 = vmatprep.subr.bf16.mxu1 %v2878_v33  ;;  %v2167_v31 = vld [vmem:[%s4758_s3 + $0x508] sm:$0xff] }
  0x9c   : > { %2911 = vmatprep.subr.bf16.mxu0 %v2910_v36  ;;  %v2163_v33 = vld [vmem:[%s4758_s3 + $0x4e8] sm:$0xff]  ;;  %v2928_v36 = vpack.c.bf16 %v2159_v47, %v2156_v4  ;;  %v2962_v37 = vpack.c.bf16 %v2167_v31, %v2164_v29  ;;  %v2976_v4 = vpack.c.bf16 %v2137_v17, %v2134_v15  ;;  %v2140_v47 = vld [vmem:[%s4758_s3 + $0x430] sm:$0xff]  ;;  %v2990_v17 = vpack.c.bf16 %v2208_v62, %v2205_v42 }
  0x9d   : > { %v2930_v40 = vpack.c.bf16 %v2166_v61, %v2163_v33  ;;  %v2143_v29 = vld [vmem:[%s4758_s3 + $0x448] sm:$0xff]  ;;  %v2189_v33 = vld [vmem:[%s4758_s3 + $0x5b8] sm:$0xff]  ;;  %v2194_v61 = vld [vmem:[%s4758_s3 + $0x5e0] sm:$0xff] }
  0x9e   : > { %2881 = vmatpush3.bf16.msra.mxu1 %v2880_v44  ;;  %v2170_v44 = vld [vmem:[%s4758_s3 + $0x520] sm:$0xff] }
  0x9f   : > { %2913 = vmatpush1.bf16.msra.mxu0 %v2912_v20  ;;  %2883 = vmatprep.subr.bf16.mxu1 %v2882_v2  ;;  %v2173_v20 = vld [vmem:[%s4758_s3 + $0x538] sm:$0xff] }
  0xa0   : > { %2915 = vmatprep.subr.bf16.mxu0 %v2914_v49  ;;  %v2169_v2 = vld [vmem:[%s4758_s3 + $0x518] sm:$0xff]  ;;  %v2966_v49 = vpack.c.bf16 %v2173_v20, %v2170_v44  ;;  %v1271_v20 = vld [vmem:[%s3702_s13] sm:$0xfe] }
  0xa1   : > { %v2934_v51 = vpack.c.bf16 %v2172_v45, %v2169_v2  ;;  %v2149_v44 = vld [vmem:[%s4758_s3 + $0x478] sm:$0xff]  ;;  %v2195_v45 = vld [vmem:[%s4758_s3 + $0x5e8] sm:$0xff]  ;;  %v1389_v50 = vrot.slane %v1271_v20, 1 }
  0xa2   : > { %2885 = vmatpush3.bf16.msra.mxu1 %v2884_v53  ;;  %v2176_v53 = vld [vmem:[%s4758_s3 + $0x550] sm:$0xff]  ;;  %v2952_v52 = vpack.c.bf16 %v2195_v45, %v2192_v38  ;;  %v2269_v38 = vld [vmem:[%s4758_s3 + $0x838] sm:$0xff]  ;;  %v1711_v45 = vrot.slane %v4007_v55, 2 }
  0xa3   : > { %2917 = vmatpush1.bf16.msra.mxu0 %v2916_v32  ;;  %2887 = vmatprep.subr.bf16.mxu1 %v2886_v54  ;;  %v2179_v32 = vld [vmem:[%s4758_s3 + $0x568] sm:$0xff] }
  0xa4   : > { %2919 = vmatprep.subr.bf16.mxu0 %v2918_v60  ;;  %v2175_v54 = vld [vmem:[%s4758_s3 + $0x548] sm:$0xff]  ;;  %v2970_v60 = vpack.c.bf16 %v2179_v32, %v2176_v53  ;;  %v2200_v32 = vld [vmem:[%s4758_s3 + $0x610] sm:$0xff] }
  0xa5   : > { %v2938_v0 = vpack.c.bf16 %v2178_v56, %v2175_v54  ;;  %v2203_v54 = vld [vmem:[%s4758_s3 + $0x628] sm:$0xff] }
  0xa6   : > { %2889 = vmatpush3.bf16.msra.mxu1 %v2888_v5  ;;  %v2182_v5 = vld [vmem:[%s4758_s3 + $0x580] sm:$0xff] }
  0xa7   : > { %2921 = vmatpush1.bf16.msra.mxu0 %v2920_v6  ;;  %2955 = vmatprep.subr.bf16.mxu1 %v2954_v8  ;;  %v2185_v6 = vld [vmem:[%s4758_s3 + $0x598] sm:$0xff] }
  0xa8   : > { %2923 = vmatprep.subr.bf16.mxu0 %v2922_v13  ;;  %v2181_v8 = vld [vmem:[%s4758_s3 + $0x578] sm:$0xff]  ;;  %v2974_v13 = vpack.c.bf16 %v2185_v6, %v2182_v5  ;;  %v3052_v5 = vpack.c.bf16 %v2203_v54, %v2200_v32  ;;  %v1395_v6 = vrot.slane %v4065_v23, 1  ;;  %v2272_v32 = vld [vmem:[%s4758_s3 + $0x850] sm:$0xff]  ;;  %v2275_v54 = vld [vmem:[%s4758_s3 + $0x868] sm:$0xff] }
  0xa9   : > { %1239 = vmatmul.mubr.f32.vlgmr.msra.gmra.mrb[12].mxu1 %v3959_v35  ;;  %v2162_v35 = vld [vmem:[%s4758_s3 + $0x4e0] sm:$0xff]  ;;  %v2942_v18 = vpack.c.bf16 %v2184_v43, %v2181_v8  ;;  %v2204_v8 = vld [vmem:[%s4758_s3 + $0x630] sm:$0xff]  ;;  %v3066_v62 = vpack.c.bf16 %v2275_v54, %v2272_v32  ;;  %v1715_v32 = vrot.slane %v4041_v10, 2 }
  0xaa   : > { %2957 = vmatpush3.bf16.msra.mxu1 %v2956_v21  ;;  %1243 = vmatprep.mubr.f32.mxu1 %v4007_v55  ;;  %v2932_v48 = vpack.c.bf16 %v2165_v41, %v2162_v35  ;;  %v2191_v21 = vld [vmem:[%s4758_s3 + $0x5c8] sm:$0xff]  ;;  %v2980_v35 = vpack.c.bf16 %v2143_v29, %v2140_v47  ;;  %v2146_v41 = vld [vmem:[%s4758_s3 + $0x460] sm:$0xff] }
  0xab   : > { %2925 = vmatpush1.bf16.msra.mxu0 %v2924_v22  ;;  %2959 = vmatprep.subr.bf16.mxu1 %v2958_v24  ;;  %v2187_v22 = vld [vmem:[%s4758_s3 + $0x5a8] sm:$0xff]  ;;  %v2190_v24 = vld [vmem:[%s4758_s3 + $0x5c0] sm:$0xff]  ;;  %v2978_v28 = vpack.c.bf16 %v2191_v21, %v2188_v19  ;;  %v2984_v7 = vpack.c.bf16 %v2149_v44, %v2146_v41  ;;  %v2220_v41 = vld [vmem:[%s4758_s3 + $0x6b0] sm:$0xff] }
  0xac   : > { %2927 = vmatprep.subr.bf16.mxu0 %v2926_v16  ;;  %v2186_v16 = vld [vmem:[%s4758_s3 + $0x5a0] sm:$0xff]  ;;  %v2946_v31 = vpack.c.bf16 %v2190_v24, %v2187_v22  ;;  %v2263_v19 = vld [vmem:[%s4758_s3 + $0x808] sm:$0xff] }
  0xad   : > { %1244 = vmatmul.mubr.f32.gmra.mrb[14].mxu1 %v4031_v3  ;;  %v2948_v39 = vpack.c.bf16 %v2189_v33, %v2186_v16  ;;  %v1280_v21 = vld [vmem:[%s3702_s13 + $0x48] sm:$0x1]  ;;  %v2213_v16 = vld [vmem:[%s4758_s3 + $0x678] sm:$0xff]  ;;  %v2212_v33 = vld [vmem:[%s4758_s3 + $0x670] sm:$0xff] }
  0xae   : > { %2961 = vmatpush3.bf16.msra.mxu1 %v2960_v34  ;;  %1248 = vmatprep.mubr.f32.mxu1 %v4041_v10  ;;  %v2197_v34 = vld [vmem:[%s4758_s3 + $0x5f8] sm:$0xff]  ;;  %v2211_v22 = vld [vmem:[%s4758_s3 + $0x668] sm:$0xff] }
  0xaf   : > { %2929 = vmatpush1.bf16.msra.mxu0 %v2928_v36  ;;  %2963 = vmatprep.subr.bf16.mxu1 %v2962_v37  ;;  %v2193_v36 = vld [vmem:[%s4758_s3 + $0x5d8] sm:$0xff]  ;;  %v2196_v37 = vld [vmem:[%s4758_s3 + $0x5f0] sm:$0xff]  ;;  %v2259_v55 = vld [vmem:[%s4758_s3 + $0x7e8] sm:$0xff] }
  0xb0   : > { %2931 = vmatprep.subr.bf16.mxu0 %v2930_v40  ;;  %v2982_v40 = vpack.c.bf16 %v2197_v34, %v2194_v61  ;;  %v2950_v2 = vpack.c.bf16 %v2196_v37, %v2193_v36  ;;  %v2215_v61 = vld [vmem:[%s4758_s3 + $0x688] sm:$0xff]  ;;  %v1405_v34 = vrot.slane %v1280_v21, 1  ;;  %v1279_v36 = vld [vmem:[%s3702_s13 + $0x40] sm:$0x1] }
  0xb1   : > { %1249 = vmatmul.mubr.f32.gmra.mrb[16].mxu1 %v4065_v23  ;;  %v3060_v20 = vpack.c.bf16 %v2215_v61, %v2212_v33  ;;  %v2239_v33 = vld [vmem:[%s4758_s3 + $0x748] sm:$0xff] }
  0xb2   : > { %2965 = vmatpush3.bf16.msra.mxu1 %v2964_v46  ;;  %1253 = vmatprep.mubr.f32.mxu1 %v4074_v27  ;;  %v2248_v46 = vld [vmem:[%s4758_s3 + $0x790] sm:$0xff] }
  0xb3   : > { %2933 = vmatpush1.bf16.msra.mxu0 %v2932_v48  ;;  %2967 = vmatprep.subr.bf16.mxu1 %v2966_v49  ;;  %v2251_v48 = vld [vmem:[%s4758_s3 + $0x7a8] sm:$0xff] }
  0xb4   : > { %2935 = vmatprep.subr.bf16.mxu0 %v2934_v51  ;;  %v2199_v49 = vld [vmem:[%s4758_s3 + $0x608] sm:$0xff]  ;;  %v1390_v51 = vrot.slane %v4031_v3, 1  ;;  %v3050_v53 = vpack.c.bf16 %v2251_v48, %v2248_v46 }
  0xb5   : > { %1254 = vmatmul.mubr.f32.gmra.mrb[18].mxu1 %v4099_v9  ;;  %v2986_v56 = vpack.c.bf16 %v2202_v25, %v2199_v49  ;;  %v2216_v25 = vld [vmem:[%s4758_s3 + $0x690] sm:$0xff] }
  0xb6   : > { %2969 = vmatpush3.bf16.msra.mxu1 %v2968_v58  ;;  %1568 = vmatprep.mubr.f32.mxu1 %v4090_v30  ;;  %v2183_v30 = vld [vmem:[%s4758_s3 + $0x588] sm:$0xff]  ;;  %v2198_v58 = vld [vmem:[%s4758_s3 + $0x600] sm:$0xff]  ;;  %v1391_v1 = vsel %vm1388_vm0, %v1389_v50, %v1390_v51  ;;  %v1396_v24 = vsel %vm1388_vm0, %v1390_v51, %v1395_v6  ;;  %v2221_v50 = vld [vmem:[%s4758_s3 + $0x6b8] sm:$0xff] }
  0xb7   : > { %2937 = vmatpush1.bf16.msra.mxu0 %v2936_v59  ;;  %2971 = vmatprep.subr.bf16.mxu1 %v2970_v60  ;;  %v2944_v26 = vpack.c.bf16 %v2183_v30, %v2180_v14  ;;  %v2201_v59 = vld [vmem:[%s4758_s3 + $0x618] sm:$0xff]  ;;  %v1397_v60 = vrot.slane %v4041_v10, 1  ;;  %v1401_v14 = vrot.slane %v4074_v27, 1  ;;  %v2260_v30 = vld [vmem:[%s4758_s3 + $0x7f0] sm:$0xff] }
  0xb8   : > { %2939 = vmatprep.subr.bf16.mxu0 %v2938_v0  ;;  %v2257_v0 = vld [vmem:[%s4758_s3 + $0x7d8] sm:$0xff]  ;;  %v2988_v43 = vpack.c.bf16 %v2201_v59, %v2198_v58  ;;  %v2226_v58 = vld [vmem:[%s4758_s3 + $0x6e0] sm:$0xff] }
  0xb9   : > { %v1398_v15 = vsel %vm1388_vm0, %v1393_v57, %v1397_v60  ;;  %v2214_v57 = vld [vmem:[%s4758_s3 + $0x680] sm:$0xff]  ;;  %v1402_v29 = vsel %vm1388_vm0, %v1397_v60, %v1401_v14  ;;  %v1406_v48 = vsel %vm1388_vm0, %v1401_v14, %v1405_v34  ;;  %v2237_v34 = vld [vmem:[%s4758_s3 + $0x738] sm:$0xff] }
  0xba   : > { %2973 = vmatpush3.bf16.msra.mxu1 %v2972_v11  ;;  %v2207_v11 = vld [vmem:[%s4758_s3 + $0x648] sm:$0xff]  ;;  %v2994_v37 = vpack.c.bf16 %v2214_v57, %v2211_v22  ;;  %v2284_v57 = vld [vmem:[%s4758_s3 + $0x8b0] sm:$0xff] }
  0xbb   : > { %2941 = vmatpush1.bf16.msra.mxu0 %v2940_v12  ;;  %2975 = vmatprep.subr.bf16.mxu1 %v2974_v13  ;;  %v2206_v12 = vld [vmem:[%s4758_s3 + $0x640] sm:$0xff]  ;;  %v2209_v13 = vld [vmem:[%s4758_s3 + $0x658] sm:$0xff]  ;;  %v2992_v47 = vpack.c.bf16 %v2207_v11, %v2204_v8  ;;  %v2231_v22 = vld [vmem:[%s4758_s3 + $0x708] sm:$0xff] }
  0xbc   : > { %2943 = vmatprep.subr.bf16.mxu0 %v2942_v18  ;;  %v3054_v18 = vpack.c.bf16 %v2257_v0, %v2254_v63  ;;  %v2222_v63 = vld [vmem:[%s4758_s3 + $0x6c0] sm:$0xff]  ;;  %v2224_v0 = vld [vmem:[%s4758_s3 + $0x6d0] sm:$0xff]  ;;  %v2225_v8 = vld [vmem:[%s4758_s3 + $0x6d8] sm:$0xff] }
  0xbd   : > { %v2281_v11 = vld [vmem:[%s4758_s3 + $0x898] sm:$0xff] }
  0xbe   : > { %2977 = vmatpush3.bf16.msra.mxu1 %v2976_v4  ;;  %v3056_v4 = vpack.c.bf16 %v2209_v13, %v2206_v12  ;;  %v2229_v12 = vld [vmem:[%s4758_s3 + $0x6f8] sm:$0xff]  ;;  %v2232_v13 = vld [vmem:[%s4758_s3 + $0x710] sm:$0xff] }
  0xbf   : > { %2945 = vmatpush1.bf16.msra.mxu0 %v2944_v26  ;;  %2979 = vmatprep.subr.bf16.mxu1 %v2978_v28  ;;  %v1399_v26 = vrot.slane %v4099_v9, 1  ;;  %v2210_v28 = vld [vmem:[%s4758_s3 + $0x660] sm:$0xff]  ;;  %v3006_v21 = vpack.c.bf16 %v2232_v13, %v2229_v12 }
  0xc0   : > { %2947 = vmatprep.subr.bf16.mxu0 %v2946_v31  ;;  %v3058_v31 = vpack.c.bf16 %v2263_v19, %v2260_v30  ;;  %v2996_v46 = vpack.c.bf16 %v2213_v16, %v2210_v28  ;;  %v2230_v30 = vld [vmem:[%s4758_s3 + $0x700] sm:$0xff]  ;;  %v2233_v19 = vld [vmem:[%s4758_s3 + $0x718] sm:$0xff] }
  0xc1   : > { %v1400_v44 = vsel %vm1388_vm0, %v1395_v6, %v1399_v26  ;;  %v3072_v28 = vpack.c.bf16 %v2233_v19, %v2230_v30  ;;  %v1603_v12 = vld [vmem:[%s3702_s13 + $0x40] sm:$0x3] }
  0xc2   : > { %2981 = vmatpush3.bf16.msra.mxu1 %v2980_v35  ;;  %v2266_v35 = vld [vmem:[%s4758_s3 + $0x820] sm:$0xff]  ;;  %v1721_v30 = vrot.slane %v1603_v12, 2 }
  0xc3   : > { %2949 = vmatpush1.bf16.msra.mxu0 %v2948_v39  ;;  %2983 = vmatprep.subr.bf16.mxu1 %v2982_v40  ;;  %v1602_v39 = vld [vmem:[%s3702_s13 + $0x8] sm:$0xfc]  ;;  %v2217_v40 = vld [vmem:[%s4758_s3 + $0x698] sm:$0xff]  ;;  %v3062_v49 = vpack.c.bf16 %v2269_v38, %v2266_v35  ;;  %v2244_v38 = vld [vmem:[%s4758_s3 + $0x770] sm:$0xff] }
  0xc4   : > { %2951 = vmatprep.subr.bf16.mxu0 %v2950_v2  ;;  %v1403_v2 = vrot.slane %v1279_v36, 1  ;;  %v1710_v51 = vrot.slane %v1602_v39, 2  ;;  %v2290_v36 = vld [vmem:[%s4758_s3 + $0x8e0] sm:$0xff]  ;;  %v2241_v35 = vld [vmem:[%s4758_s3 + $0x758] sm:$0xff] }
  0xc6   : > { %2985 = vmatpush3.bf16.msra.mxu1 %v2984_v7  ;;  %v2218_v7 = vld [vmem:[%s4758_s3 + $0x6a0] sm:$0xff]  ;;  %v1404_v59 = vsel %vm1388_vm0, %v1399_v26, %v1403_v2 }
  0xc7   : > { %2953 = vmatpush1.bf16.msra.mxu0 %v2952_v52  ;;  %3051 = vmatprep.subr.bf16.mxu1 %v3050_v53  ;;  %v2998_v52 = vpack.c.bf16 %v2220_v41, %v2217_v40  ;;  %v2219_v53 = vld [vmem:[%s4758_s3 + $0x6a8] sm:$0xff]  ;;  %v3064_v60 = vpack.c.bf16 %v2221_v50, %v2218_v7  ;;  %v2238_v26 = vld [vmem:[%s4758_s3 + $0x740] sm:$0xff] }
  0xc8   : > { %2987 = vmatprep.subr.bf16.mxu0 %v2986_v56  ;;  %v2223_v56 = vld [vmem:[%s4758_s3 + $0x6c8] sm:$0xff]  ;;  %v3000_v42 = vpack.c.bf16 %v2219_v53, %v2216_v25  ;;  %v1601_v2 = vld [vmem:[%s3702_s13] sm:$0xfc] }
  0xc9   : > { %1569 = vmatmul.mubr.f32.vlgmr.msra.gmra.mrb[20].mxu1 %v1391_v1  ;;  %v3002_v6 = vpack.c.bf16 %v2226_v58, %v2223_v56  ;;  %v2247_v25 = vld [vmem:[%s4758_s3 + $0x788] sm:$0xff]  ;;  %v2250_v7 = vld [vmem:[%s4758_s3 + $0x7a0] sm:$0xff]  ;;  %v2249_v58 = vld [vmem:[%s4758_s3 + $0x798] sm:$0xff] }
  0xca   : > { %1480 = vmatmul.mubr.f32.vlgmr.msra.gmra.mrb[0].mxu0 %v1391_v1  ;;  %3053 = vmatpush3.bf16.msra.mxu1 %v3052_v5  ;;  %v2227_v1 = vld [vmem:[%s4758_s3 + $0x6e8] sm:$0xff]  ;;  %v1712_v5 = vsel %vm1706_vm1, %v1710_v51, %v1711_v45  ;;  %v1707_v51 = vrot.slane %v1601_v2, 2  ;;  %v3018_v54 = vpack.c.bf16 %v2250_v7, %v2247_v25  ;;  %v2246_v56 = vld [vmem:[%s4758_s3 + $0x780] sm:$0xff] }
  0xcb   : > { %2989 = vmatpush1.bf16.msra.mxu0 %v2988_v43  ;;  %1573 = vmatprep.mubr.f32.mxu1 %v1398_v15  ;;  %v2278_v43 = vld [vmem:[%s4758_s3 + $0x880] sm:$0xff]  ;;  %v3068_v14 = vpack.c.bf16 %v2227_v1, %v2224_v0  ;;  %v2252_v1 = vld [vmem:[%s4758_s3 + $0x7b0] sm:$0xff] }
  0xcc   : > { %2991 = vmatprep.subr.bf16.mxu0 %v2990_v17  ;;  %3055 = vmatprep.subr.bf16.mxu1 %v3054_v18  ;;  %v3070_v17 = vpack.c.bf16 %v2281_v11, %v2278_v43  ;;  %v2228_v18 = vld [vmem:[%s4758_s3 + $0x6f0] sm:$0xff] }
  0xcd   : > { %1574 = vmatmul.mubr.f32.gmra.mrb[22].mxu1 %v1396_v24  ;;  %1485 = vmatprep.mubr.f32.mxu0 %v1398_v15  ;;  %v3004_v15 = vpack.c.bf16 %v2225_v8, %v2222_v63  ;;  %v3008_v16 = vpack.c.bf16 %v2231_v22, %v2228_v18  ;;  %v1719_v63 = vrot.slane %v4074_v27, 2  ;;  %v2262_v27 = vld [vmem:[%s4758_s3 + $0x800] sm:$0xff] }
  0xce   : > { %3057 = vmatpush3.bf16.msra.mxu1 %v3056_v4  ;;  %1578 = vmatprep.mubr.f32.mxu1 %v1402_v29  ;;  %v2235_v4 = vld [vmem:[%s4758_s3 + $0x728] sm:$0xff]  ;;  %v3026_v13 = vpack.c.bf16 %v2262_v27, %v2259_v55 }
  0xcf   : > { %2993 = vmatpush1.bf16.msra.mxu0 %v2992_v47  ;;  %3059 = vmatprep.subr.bf16.mxu1 %v3058_v31  ;;  %v2236_v31 = vld [vmem:[%s4758_s3 + $0x730] sm:$0xff]  ;;  %v3010_v61 = vpack.c.bf16 %v2238_v26, %v2235_v4  ;;  %v4619_v43 = vsel %vm1706_vm1, %v1715_v32, %v1719_v63  ;;  %v2271_v4 = vld [vmem:[%s4758_s3 + $0x848] sm:$0xff]  ;;  %v2274_v26 = vld [vmem:[%s4758_s3 + $0x860] sm:$0xff] }
  0xd0   : > { %2995 = vmatprep.subr.bf16.mxu0 %v2994_v37  ;;  %1486 = vmatmul.mubr.f32.gmra.mrb[2].mxu0 %v1396_v24  ;;  %v2287_v24 = vld [vmem:[%s4758_s3 + $0x8c8] sm:$0xff]  ;;  %v2293_v37 = vld [vmem:[%s4758_s3 + $0x8f8] sm:$0xff]  ;;  %v3076_v39 = vpack.c.bf16 %v2239_v33, %v2236_v31 }
  0xd1   : > { %1579 = vmatmul.mubr.f32.gmra.mrb[24].mxu1 %v1400_v44  ;;  %1491 = vmatprep.mubr.f32.mxu0 %v1402_v29  ;;  %v3074_v47 = vpack.c.bf16 %v2287_v24, %v2284_v57  ;;  %v2234_v29 = vld [vmem:[%s4758_s3 + $0x720] sm:$0xff]  ;;  %v3078_v41 = vpack.c.bf16 %v2293_v37, %v2290_v36  ;;  %v2264_v57 = vld [vmem:[%s4758_s3 + $0x810] sm:$0xff]  ;;  %v2267_v24 = vld [vmem:[%s4758_s3 + $0x828] sm:$0xff] }
  0xd2   : > { %3061 = vmatpush3.bf16.msra.mxu1 %v3060_v20  ;;  %1583 = vmatprep.mubr.f32.mxu1 %v1406_v48  ;;  %v3012_v40 = vpack.c.bf16 %v2237_v34, %v2234_v29  ;;  %v2245_v20 = vld [vmem:[%s4758_s3 + $0x778] sm:$0xff]  ;;  %v2270_v29 = vld [vmem:[%s4758_s3 + $0x840] sm:$0xff]  ;;  %v2276_v37 = vld [vmem:[%s4758_s3 + $0x870] sm:$0xff] }
  0xd3   : > { %2997 = vmatpush1.bf16.msra.mxu0 %v2996_v46  ;;  %3063 = vmatprep.subr.bf16.mxu1 %v3062_v49  ;;  %v3014_v46 = vpack.c.bf16 %v2244_v38, %v2241_v35  ;;  %v2243_v49 = vld [vmem:[%s4758_s3 + $0x768] sm:$0xff]  ;;  %v2273_v31 = vld [vmem:[%s4758_s3 + $0x858] sm:$0xff] }
  0xd4   : > { %2999 = vmatprep.subr.bf16.mxu0 %v2998_v52  ;;  %1492 = vmatmul.mubr.f32.gmra.mrb[4].mxu0 %v1400_v44  ;;  %v2242_v44 = vld [vmem:[%s4758_s3 + $0x760] sm:$0xff]  ;;  %v1708_v52 = vrot.slane %v4031_v3, 2  ;;  %v2253_v3 = vld [vmem:[%s4758_s3 + $0x7b8] sm:$0xff]  ;;  %v3036_v34 = vpack.c.bf16 %v2273_v31, %v2270_v29  ;;  %v2279_v35 = vld [vmem:[%s4758_s3 + $0x888] sm:$0xff] }
  0xd5   : > { %1584 = vmatmul.mubr.f32.gmra.mrb[26].mxu1 %v1404_v59  ;;  %1497 = vmatprep.mubr.f32.mxu0 %v1406_v48  ;;  %v2240_v48 = vld [vmem:[%s4758_s3 + $0x750] sm:$0xff]  ;;  %v3080_v50 = vpack.c.bf16 %v2245_v20, %v2242_v44  ;;  %v2277_v33 = vld [vmem:[%s4758_s3 + $0x878] sm:$0xff]  ;;  %v2283_v38 = vld [vmem:[%s4758_s3 + $0x8a8] sm:$0xff] }
  0xd6   : > { %3065 = vmatpush3.bf16.msra.mxu1 %v3064_v60  ;;  %1886 = vmatprep.mubr.f32.mxu1 %v1712_v5  ;;  %v3016_v53 = vpack.c.bf16 %v2243_v49, %v2240_v48  ;;  %v4590_v10 = vsel %vm1706_vm1, %v1707_v51, %v1708_v52  ;;  %v1713_v60 = vrot.slane %v4065_v23, 2  ;;  %v2255_v23 = vld [vmem:[%s4758_s3 + $0x7c8] sm:$0xff]  ;;  %v2282_v44 = vld [vmem:[%s4758_s3 + $0x8a0] sm:$0xff]  ;;  %v2285_v20 = vld [vmem:[%s4758_s3 + $0x8b8] sm:$0xff] }
  0xd7   : > { %3001 = vmatpush1.bf16.msra.mxu0 %v3000_v42  ;;  %3067 = vmatprep.subr.bf16.mxu1 %v3066_v62  ;;  %v3020_v42 = vpack.c.bf16 %v2249_v58, %v2246_v56  ;;  %v4596_v62 = vsel %vm1706_vm1, %v1711_v45, %v1715_v32  ;;  %v3024_v8 = vpack.c.bf16 %v2255_v23, %v2252_v1  ;;  %v2292_v48 = vld [vmem:[%s4758_s3 + $0x8f0] sm:$0xff]  ;;  %v2291_v51 = vld [vmem:[%s4758_s3 + $0x8e8] sm:$0xff] }
  0xd8   : > { %3003 = vmatprep.subr.bf16.mxu0 %v3002_v6  ;;  %1498 = vmatmul.mubr.f32.gmra.mrb[6].mxu0 %v1404_v59  ;;  %v2256_v59 = vld [vmem:[%s4758_s3 + $0x7d0] sm:$0xff]  ;;  %v4615_v45 = vsel %vm1706_vm1, %v1708_v52, %v1713_v60  ;;  %v1717_v6 = vrot.slane %v4099_v9, 2  ;;  %v2265_v9 = vld [vmem:[%s4758_s3 + $0x818] sm:$0xff]  ;;  %v3044_v25 = vpack.c.bf16 %v2285_v20, %v2282_v44 }
  0xd9   : > { %1797 = vmatprep.mubr.f32.mxu0 %v1712_v5  ;;  %v3022_v0 = vpack.c.bf16 %v2256_v59, %v2253_v3  ;;  %v1604_v5 = vld [vmem:[%s3702_s13 + $0x48] sm:$0x3] }
  0xda   : > { %3069 = vmatpush3.bf16.msra.mxu1 %v3068_v14  ;;  %v1723_v11 = vrot.slane %v1604_v5, 2  ;;  %v2258_v14 = vld [vmem:[%s4758_s3 + $0x7e0] sm:$0xff]  ;;  %v1718_v18 = vsel %vm1706_vm1, %v1713_v60, %v1717_v6 }
  0xdb   : > { %3005 = vmatpush1.bf16.msra.mxu0 %v3004_v15  ;;  %3071 = vmatprep.subr.bf16.mxu1 %v3070_v17  ;;  %v2261_v15 = vld [vmem:[%s4758_s3 + $0x7f8] sm:$0xff]  ;;  %v2268_v17 = vld [vmem:[%s4758_s3 + $0x830] sm:$0xff] }
  0xdc   : > { %3007 = vmatprep.subr.bf16.mxu0 %v3006_v21  ;;  %v3028_v19 = vpack.c.bf16 %v2261_v15, %v2258_v14  ;;  %v1724_v21 = vsel %vm1706_vm1, %v1719_v63, %v1723_v11  ;;  %v3030_v22 = vpack.c.bf16 %v2268_v17, %v2265_v9 }
  0xde   : > { %3073 = vmatpush3.bf16.msra.mxu1 %v3072_v28  ;;  %v1722_v28 = vsel %vm1706_vm1, %v1717_v6, %v1721_v30 }
  0xdf   : > { %3009 = vmatpush1.bf16.msra.mxu0 %v3008_v16  ;;  %3075 = vmatprep.subr.bf16.mxu1 %v3074_v47  ;;  %v3032_v16 = vpack.c.bf16 %v2267_v24, %v2264_v57  ;;  %v3034_v47 = vpack.c.bf16 %v2274_v26, %v2271_v4 }
  0xe0   : > { %3011 = vmatprep.subr.bf16.mxu0 %v3010_v61  ;;  %v2280_v61 = vld [vmem:[%s4758_s3 + $0x890] sm:$0xff] }
  0xe1   : > { %v3038_v36 = vpack.c.bf16 %v2280_v61, %v2277_v33 }
  0xe2   : > { %3077 = vmatpush3.bf16.msra.mxu1 %v3076_v39  ;;  %v2286_v39 = vld [vmem:[%s4758_s3 + $0x8c0] sm:$0xff] }
  0xe3   : > { %3013 = vmatpush1.bf16.msra.mxu0 %v3012_v40  ;;  %3079 = vmatprep.subr.bf16.mxu1 %v3078_v41  ;;  %v3040_v40 = vpack.c.bf16 %v2279_v35, %v2276_v37  ;;  %v3042_v41 = vpack.c.bf16 %v2286_v39, %v2283_v38 }
  0xe4   : > { %3015 = vmatprep.subr.bf16.mxu0 %v3014_v46  ;;  %v2289_v46 = vld [vmem:[%s4758_s3 + $0x8d8] sm:$0xff] }
  0xe5   : > { %v3046_v7 = vpack.c.bf16 %v2292_v48, %v2289_v46 }
  0xe6   : > { %3081 = vmatpush3.bf16.msra.mxu1 %v3080_v50  ;;  %v2288_v50 = vld [vmem:[%s4758_s3 + $0x8d0] sm:$0xff] }
  0xe7   : > { %3017 = vmatpush1.bf16.msra.mxu0 %v3016_v53  ;;  %v3048_v32 = vpack.c.bf16 %v2291_v51, %v2288_v50 }
  0xe8   : > { %3019 = vmatprep.subr.bf16.mxu0 %v3018_v54 }
  0xe9   : > { %1887 = vmatmul.mubr.f32.vlgmr.msra.gmra.mrb[28].mxu1 %v4590_v10 }
  0xea   : > { %1891 = vmatprep.mubr.f32.mxu1 %v4596_v62 }
  0xeb   : > { %3021 = vmatpush1.bf16.msra.mxu0 %v3020_v42 }
  0xec   : > { %3023 = vmatprep.subr.bf16.mxu0 %v3022_v0  ;;  %v247_v0 = vlaneseq }
  0xed   : > { %1892 = vmatmul.mubr.f32.gmra.mrb[30].mxu1 %v4615_v45 }
  0xee   : > { %1896 = vmatprep.mubr.f32.mxu1 %v4619_v43  ;;  %v4713_v1 = vshrl.u32 %v247_v0, 7 }
  0xef   : > { %3025 = vmatpush1.bf16.msra.mxu0 %v3024_v8 }
  0xf0   : > { %3027 = vmatprep.subr.bf16.mxu0 %v3026_v13  ;;  %v257_v23 = vsub.s32 2, %v4713_v1 }
  0xf1   : > { %1897 = vmatmul.mubr.f32.gmra.mrb[32].mxu1 %v1718_v18 }
  0xf2   : > { %1901 = vmatprep.mubr.f32.mxu1 %v1724_v21 }
  0xf3   : > { %3029 = vmatpush1.bf16.msra.mxu0 %v3028_v19 }
  0xf4   : > { %3031 = vmatprep.subr.bf16.mxu0 %v3030_v22 }
  0xf5   : > { %1902 = vmatmul.mubr.f32.gmra.mrb[34].mxu1 %v1722_v28 }
  0xf7   : > { %3033 = vmatpush1.bf16.msra.mxu0 %v3032_v16 }
  0xf8   : > { %3035 = vmatprep.subr.bf16.mxu0 %v3034_v47 }
  0xfb   : > { %3037 = vmatpush1.bf16.msra.mxu0 %v3036_v34 }
  0xfc   : > { %3039 = vmatprep.subr.bf16.mxu0 %v3038_v36  ;;  %v4681_v2 = vpop.f32.mrb[0].mxu1 }
  0xfd   : > { %v4689_v49 = vpop.f32.mrb[1].mxu1 }
  0xff   : > { %3041 = vmatpush1.bf16.msra.mxu0 %v3040_v40 }
 0x100   : > { %3043 = vmatprep.subr.bf16.mxu0 %v3042_v41  ;;  %v4697_v52 = vpop.f32.mrb[2].mxu1 }
 0x101   : > { %v4699_v53 = vpop.f32.mrb[3].mxu1 }
 0x103   : > { %3045 = vmatpush1.bf16.msra.mxu0 %v3044_v25 }
 0x104   : > { %3047 = vmatprep.subr.bf16.mxu0 %v3046_v7  ;;  %v4701_v54 = vpop.f32.mrb[4].mxu1 }
 0x105   : > { %v4703_v56 = vpop.f32.mrb[5].mxu1 }
 0x107   : > { %3049 = vmatpush1.bf16.msra.mxu0 %v3048_v32 }
 0x108   : > { %v4705_v58 = vpop.f32.mrb[6].mxu1 }
 0x109   : > { %v4707_v3 = vpop.f32.mrb[7].mxu1 }
 0x10a   : > { %1798 = vmatmul.mubr.f32.vlgmr.msra.gmra.mrb[0].mxu0 %v4590_v10  ;;  %v4719_v10 = vld [vmem:[%s4759_s4] sm:$0x7] }
 0x10b   : > { %1803 = vmatprep.mubr.f32.mxu0 %v4596_v62  ;;  %v258_v62 = vrot.slane %v4719_v10, %v257_v23  ;;  %v249_v23 = vsub.s32 0, %v4713_v1 }
 0x10e   : > { %1804 = vmatmul.mubr.f32.gmra.mrb[2].mxu0 %v4615_v45 }
 0x10f   : > { %1809 = vmatprep.mubr.f32.mxu0 %v4619_v43 }
 0x112   : > { %1810 = vmatmul.mubr.f32.gmra.mrb[4].mxu0 %v1718_v18 }
 0x113   : > { %1815 = vmatprep.mubr.f32.mxu0 %v1724_v21 }
 0x116   : > { %1816 = vmatmul.mubr.f32.gmra.mrb[6].mxu0 %v1722_v28 }
 0x15c   : > { %v2598_v59 = vpop.f32.mrb[8].mxu1 }
 0x15d   : > { %v950_v60 = vpop.f32.mrb[9].mxu1  ;;  %v3098_v11 = vadd.f32 %v2598_v59, %v258_v62 }
 0x15e   : > { %v3099_v27 = vadd.f32 %v950_v60, %v258_v62 }
 0x160   : > { %v2601_v42 = vpop.f32.mrb[10].mxu1 }
 0x161   : > { %v960_v63 = vpop.f32.mrb[11].mxu1  ;;  %v3100_v21 = vadd.f32 %v2601_v42, %v258_v62 }
 0x162   : > { %v3101_v9 = vadd.f32 %v960_v63, %v258_v62  ;;  %v253_v62 = vsub.s32 1, %v4713_v1 }
 0x17c   : > { %v2388_v5 = vpop.f32.mrb[12].mxu1 }
 0x17d   : > { %v2389_v55 = vpop.f32.mrb[13].mxu1 }
 0x17e   : > { %v2390_v45 = vadd.f32 %v2389_v55, %v2388_v5  ;;  %v250_v5 = vrot.slane %v4719_v10, %v249_v23  ;;  %v254_v55 = vrot.slane %v4719_v10, %v253_v62 }
 0x180   : > { %v1261_v6 = vadd.f32 %v3099_v27, %v2390_v45  ;;  %v2391_v8 = vpop.f32.mrb[14].mxu1  ;;  %v491_v27 = vadd.f32 %v4681_v2, %v250_v5  ;;  %v492_v45 = vadd.f32 %v4689_v49, %v254_v55  ;;  %v495_v1 = vadd.f32 %v4699_v53, %v254_v55 }
 0x181   : > { %v2392_v43 = vpop.f32.mrb[15].mxu1  ;;  %v497_v2 = vadd.f32 %v4701_v54, %v250_v5  ;;  %v498_v49 = vadd.f32 %v4703_v56, %v254_v55  ;;  %v500_v53 = vadd.f32 %v4705_v58, %v250_v5 }
 0x182   : > { %v2393_v12 = vadd.f32 %v2392_v43, %v2391_v8 }
 0x184   : > { %v1264_v13 = vadd.f32 %v3098_v11, %v2393_v12  ;;  %v2394_v14 = vpop.f32.mrb[16].mxu1  ;;  %v494_v12 = vadd.f32 %v4697_v52, %v250_v5 }
 0x185   : > { %v2395_v15 = vpop.f32.mrb[17].mxu1 }
 0x186   : > { %v2396_v17 = vadd.f32 %v2395_v15, %v2394_v14 }
 0x188   : > { %v1267_v18 = vadd.f32 %v3101_v9, %v2396_v17  ;;  %v2397_v30 = vpop.f32.mrb[18].mxu1 }
 0x189   : > { %v2398_v19 = vpop.f32.mrb[19].mxu1 }
 0x18a   : > { %v2399_v22 = vadd.f32 %v2398_v19, %v2397_v30  ;;  %v501_v30 = vadd.f32 %v4707_v3, %v254_v55 }
 0x18c   : > { %v1270_v57 = vadd.f32 %v3100_v21, %v2399_v22 }
 0x19c   : > { %v2432_v24 = vpop.f32.mrb[20].mxu1 }
 0x19d   : > { %v2433_v4 = vpop.f32.mrb[21].mxu1 }
 0x19e   : > { %v2434_v26 = vadd.f32 %v2433_v4, %v2432_v24 }
 0x1a0   : > { %v1591_v28 = vadd.f32 %v2434_v26, %v1261_v6  ;;  %v2435_v16 = vpop.f32.mrb[22].mxu1 }
 0x1a1   : > { %v2436_v47 = vpop.f32.mrb[23].mxu1 }
 0x1a2   : > { %v2437_v29 = vadd.f32 %v2436_v47, %v2435_v16 }
 0x1a4   : > { %v1594_v31 = vadd.f32 %v2437_v29, %v1264_v13  ;;  %v2438_v33 = vpop.f32.mrb[24].mxu1 }
 0x1a5   : > { %v2439_v61 = vpop.f32.mrb[25].mxu1 }
 0x1a6   : > { %v2440_v34 = vadd.f32 %v2439_v61, %v2438_v33 }
 0x1a8   : > { %v1597_v36 = vadd.f32 %v2440_v34, %v1267_v18  ;;  %v2441_v37 = vpop.f32.mrb[26].mxu1 }
 0x1a9   : > { %v2442_v35 = vpop.f32.mrb[27].mxu1 }
 0x1aa   : > { %v2443_v38 = vadd.f32 %v2442_v35, %v2441_v37 }
 0x1ac   : > { %v1600_v39 = vadd.f32 %v2443_v38, %v1270_v57 }
 0x1bc   : > { %v2476_v40 = vpop.f32.mrb[28].mxu1 }
 0x1bd   : > { %v2477_v41 = vpop.f32.mrb[29].mxu1 }
 0x1be   : > { %v2478_v44 = vadd.f32 %v2477_v41, %v2476_v40 }
 0x1c0   : > { %v1909_v20 = vadd.f32 %v2478_v44, %v1591_v28  ;;  %v2479_v46 = vpop.f32.mrb[30].mxu1 }
 0x1c1   : > { %v2480_v48 = vpop.f32.mrb[31].mxu1 }
 0x1c2   : > { %1921 = vst [vmem:[%s4726_s7 + $0x10] sm:$0xff] %v1909_v20  ;;  %v2481_v25 = vadd.f32 %v2480_v48, %v2479_v46 }
 0x1c4   : > { %v1912_v7 = vadd.f32 %v2481_v25, %v1594_v31  ;;  %v2482_v50 = vpop.f32.mrb[32].mxu1 }
 0x1c5   : > { %v2483_v51 = vpop.f32.mrb[33].mxu1 }
 0x1c6   : > { %1924 = vst [vmem:[%s4726_s7 + $0x28] sm:$0xff] %v1912_v7  ;;  %v2484_v32 = vadd.f32 %v2483_v51, %v2482_v50 }
 0x1c8   : > { %v1915_v59 = vadd.f32 %v2484_v32, %v1597_v36  ;;  %v2485_v60 = vpop.f32.mrb[34].mxu1 }
 0x1c9   : > { %v2486_v42 = vpop.f32.mrb[35].mxu1 }
 0x1ca   : > { %1927 = vst [vmem:[%s4726_s7 + $0x40] sm:$0xff] %v1915_v59  ;;  %v2487_v63 = vadd.f32 %v2486_v42, %v2485_v60 }
 0x1cc   : > { %v1918_v0 = vadd.f32 %v2487_v63, %v1600_v39 }
 0x1ce   : > { %1930 = vst [vmem:[%s4726_s7 + $0x58] sm:$0xff] %v1918_v0 }
 0x1dd   : > { %v1799_v6 = vpop.f32.mrb[0].mxu0 }
 0x1de   : > { %v3083_v8 = vadd.f32 %v1799_v6, %v491_v27  ;;  %v1801_v43 = vpop.f32.mrb[1].mxu0 }
 0x1df   : > { %v3085_v11 = vadd.f32 %v1801_v43, %v492_v45 }
 0x1e0   : > { %1919 = vst [vmem:[%s4726_s7] sm:$0xff] %v3083_v8 }
 0x1e1   : > { %1920 = vst [vmem:[%s4726_s7 + $0x8] sm:$0xff] %v3085_v11  ;;  %v1805_v13 = vpop.f32.mrb[2].mxu0 }
 0x1e2   : > { %v3087_v10 = vadd.f32 %v1805_v13, %v494_v12  ;;  %v1807_v14 = vpop.f32.mrb[3].mxu0 }
 0x1e3   : > { %v3089_v15 = vadd.f32 %v1807_v14, %v495_v1 }
 0x1e4   : > { %1922 = vst [vmem:[%s4726_s7 + $0x18] sm:$0xff] %v3087_v10 }
 0x1e5   : > { %1923 = vst [vmem:[%s4726_s7 + $0x20] sm:$0xff] %v3089_v15  ;;  %v1811_v9 = vpop.f32.mrb[4].mxu0 }
 0x1e6   : > { %v3091_v52 = vadd.f32 %v1811_v9, %v497_v2  ;;  %v1813_v17 = vpop.f32.mrb[5].mxu0 }
 0x1e7   : > { %v3093_v18 = vadd.f32 %v1813_v17, %v498_v49 }
 0x1e8   : > { %1925 = vst [vmem:[%s4726_s7 + $0x30] sm:$0xff] %v3091_v52 }
 0x1e9   : > { %1926 = vst [vmem:[%s4726_s7 + $0x38] sm:$0xff] %v3093_v18  ;;  %v1817_v19 = vpop.f32.mrb[6].mxu0 }
 0x1ea   : > { %v3095_v21 = vadd.f32 %v1817_v19, %v500_v53  ;;  %v1819_v22 = vpop.f32.mrb[7].mxu0 }
 0x1eb   : > { %v3097_v54 = vadd.f32 %v1819_v22, %v501_v30 }
 0x1ec   : > { %1928 = vst [vmem:[%s4726_s7 + $0x48] sm:$0xff] %v3095_v21 }
 0x1ed   : > { %1929 = vst [vmem:[%s4726_s7 + $0x50] sm:$0xff] %v3097_v54 }
 0x1ee PF: > { %s15_s18 = sadd.s32 1, %s3160_s18  }
 0x1ef   : > { %p12_p4 = scmp.ge.s32.totalorder %s15_s18, 4  }
 0x1f1   :  { %14 = sbr.rel (!%p12_p4) target bundleno = 1 (0x1), region = 77 }

// kernel: aggregation_forward.13
= control target key start
LH: loop header
LB: loop body
LE: loop exit
PB: predicated region body
PF: predicated region fallthrough
CT: control target
= control target key end

     0   :  { %s5582_s0 = inlined_call_operand.vmem [shape: f32[2,34,384], index: 0, kind: input, shape index: {}]   ;;  %s5583_s1 = inlined_call_operand.vmem [shape: f32[3,384,384], index: 1, kind: input, shape index: {}]   ;;  %s5584_s2 = inlined_call_operand.vmem [shape: f32[1,384], index: 2, kind: input, shape index: {}]   ;;  %s5585_s3 = inlined_call_operand.vmem [shape: f32[384,32], index: 3, kind: input, shape index: {}]   ;;  %s5586_s4 = inlined_call_operand.<no memory space> [shape: f32[1,1], index: 4, kind: input, shape index: {}]   ;;  %s5587_s5 = inlined_call_operand.hbm [shape: f32[2,32,32], index: 5, kind: output, shape index: {}]  }
   0x1   :  { %v10_v0 = vstv %s5586_s4 }
   0x2   :  { %11 = vst [vmem:[#allocation2] sm:$0x1] %v10_v0 }
   0x3   :  { %12 = vsyncpa [#allocation4], 0 }
   0x4   :  { %14 = vsyncpa [#allocation4 + $0x1], 0  ;;  %s3690_s20 = smov 0   ;;  %s3692_s21 = smov 0  }
   0x5   :  { %s3694_s22 = smov 0   ;;  %s3696_s23 = smov 0  }
   0x6 LB: > { %s3711_s4 = sadd.s32 4294967295, %s3650_s23   ;;  %s2202_s24 = sadd.s32 4294967294, %s3650_s23   ;;  %s3650_s23 = sphi %s3696_s23, %s5593_s23   ;;  %s3646_s22 = sphi %s3694_s22, %s5592_s22   ;;  %s3642_s21 = sphi %s3692_s21, %s5591_s21   ;;  %s3638_s20 = sphi %s3690_s20, %s5590_s20  }
   0x7   : > { %s3715_s25 = sadd.s32 1, %s3650_s23   ;;  %s137_s26 = sadd.s32 1, %s3646_s22 }
   0x8   : > { %s134_s27 = ssub.s32 %s3650_s23, %s3715_s25  ;;  %p147_p0 = scmp.ne.s32.totalorder %s3646_s22, %s3642_s21 }
   0x9   : > { %p135_p1 = scmp.eq.s32.totalorder %s134_s27, 0  ;;  %p148_p2 = scmp.eq.s32.totalorder %s3711_s4, 1 }
   0xa   : > { %p153_p3 = scmp.ne.s32.totalorder %s3642_s21, %s3638_s20  ;;  %p154_p4 = scmp.eq.s32.totalorder %s2202_s24, 1 }
   0xb   : > { %s3726_s28 = scalar_select %p135_p1, %s3646_s22, %s137_s26  }
   0xc   : > { %p3728_p5 = por %p148_p2, %p147_p0  ;;  %p3732_p6 = por %p154_p4, %p153_p3 }
   0xd   : > { %p2205_p7 = scmp.ge.s32.totalorder %s3650_s23, 1  ;;  %p192_p8 = scmp.lt.s32.totalorder %s3650_s23, 3 }
   0xf   : > { %p193_p9 = pnand %p2205_p7, %p192_p8 }
  0x10   : > { %v258_v1 = vld [vmem:[%s5583_s1 + $0x8] sm:$0xff] (!%p193_p9)  ;;  %v261_v2 = vld [vmem:[%s5583_s1 + $0x20] sm:$0xff] (!%p193_p9)  ;;  %v260_v7 = vld [vmem:[%s5583_s1 + $0x18] sm:$0xff] (!%p193_p9)  ;;  %v3652_v8 = vmov (!%p193_p9), 0.0   ;;  %p220_p10 = scmp.lt.s32.totalorder (!%p193_p9), %s3711_s4, 1  ;;  %vm936_vm0 = vcmask (!%p193_p9), 1046528  }
  0x11   : > { %196 = sbr.rel (%p193_p9) target bundleno = 754 (0x2f2), region = 40  ;;  %v354_v3 = vld [vmem:[%s5583_s1 + $0x308] sm:$0xff] (!%p193_p9)  ;;  %v2911_v4 = vpack.c.bf16 (!%p193_p9), %v261_v2, %v258_v1  ;;  %v357_v5 = vld [vmem:[%s5583_s1 + $0x320] sm:$0xff] (!%p193_p9)  ;;  %554 = vmatprep.mubr.f32.mxu1 (!%p193_p9), %v3652_v8  ;;  %v356_v12 = vld [vmem:[%s5583_s1 + $0x318] sm:$0xff] (!%p193_p9)  ;;  %vm1493_vm1 = vcmask (!%p193_p9), 1045504   ;;  %s217_s11 = sand.u32 (!%p193_p9), 1, %s3642_s21  }
  0x12   : > { %v257_v6 = vld [vmem:[%s5583_s1] sm:$0xff] (!%p193_p9)  ;;  %v2975_v9 = vpack.c.bf16 (!%p193_p9), %v357_v5, %v354_v3  ;;  %v264_v13 = vld [vmem:[%s5583_s1 + $0x38] sm:$0xff] (!%p193_p9)  ;;  %v267_v15 = vld [vmem:[%s5583_s1 + $0x50] sm:$0xff] (!%p193_p9)  ;;  %s2206_s12 = sshll.u32 (!%p193_p9), %s217_s11, 5  ;;  %vm2121_vm2 = vcmask (!%p193_p9), 261120   ;;  %s2502_s17 = sshll.u32 (!%p193_p9), %s3711_s4, 9 }
  0x13   : > { %v2913_v10 = vpack.c.bf16 (!%p193_p9), %v260_v7, %v257_v6  ;;  %v353_v11 = vld [vmem:[%s5583_s1 + $0x300] sm:$0xff] (!%p193_p9)  ;;  %2912 = vmatprep.subr.bf16.mxu0 (!%p193_p9), %v2911_v4  ;;  %v360_v16 = vld [vmem:[%s5583_s1 + $0x338] sm:$0xff] (!%p193_p9)  ;;  %v363_v17 = vld [vmem:[%s5583_s1 + $0x350] sm:$0xff] (!%p193_p9)  ;;  %v2915_v18 = vpack.c.bf16 (!%p193_p9), %v267_v15, %v264_v13  ;;  %s219_s13 = scalar_lea.vmem (!%p193_p9), [#allocation3], %s2206_s12  ;;  %s3654_s27 = smov (!%p193_p9), [#allocation3]  }
  0x14   : > { %v2977_v14 = vpack.c.bf16 (!%p193_p9), %v356_v12, %v353_v11  ;;  %2976 = vmatprep.subr.bf16.mxu1 (!%p193_p9), %v2975_v9  ;;  %v2979_v19 = vpack.c.bf16 (!%p193_p9), %v363_v17, %v360_v16  ;;  %v263_v20 = vld [vmem:[%s5583_s1 + $0x30] sm:$0xff] (!%p193_p9)  ;;  %v266_v21 = vld [vmem:[%s5583_s1 + $0x48] sm:$0xff] (!%p193_p9)  ;;  %v273_v26 = vld [vmem:[%s5583_s1 + $0x80] sm:$0xff] (!%p193_p9)  ;;  %s2140_s18 = sshll.u32 (!%p193_p9), %s219_s13, 4  ;;  %s3592_s6 = sshll.u32 (!%p193_p9), %s3654_s27, 4  ;;  %s5535_s18 = int_to_ptr.vmem [resolvable:$true] %s2140_s18  ;;  %s3593_s6 = int_to_ptr.vmem [resolvable:$false] %s3592_s6 }
  0x15   : > { %2914 = vmatpush1.bf16.msra.mxu0 (!%p193_p9), %v2913_v10  ;;  %v359_v22 = vld [vmem:[%s5583_s1 + $0x330] sm:$0xff] (!%p193_p9)  ;;  %v2917_v23 = vpack.c.bf16 (!%p193_p9), %v266_v21, %v263_v20  ;;  %v362_v24 = vld [vmem:[%s5583_s1 + $0x348] sm:$0xff] (!%p193_p9)  ;;  %v369_v30 = vld [vmem:[%s5583_s1 + $0x380] sm:$0xff] (!%p193_p9)  ;;  %s3588_s26 = scalar_lea.vmem (!%p193_p9), %s5535_s18, 512  ;;  %s3594_s7 = scalar_lea.vmem (!%p193_p9), %s3593_s6, 1024 }
  0x16   : > { %2978 = vmatpush1.bf16.msra.mxu1 (!%p193_p9), %v2977_v14  ;;  %v270_v25 = vld [vmem:[%s5583_s1 + $0x68] sm:$0xff] (!%p193_p9)  ;;  %2916 = vmatprep.subr.bf16.mxu0 (!%p193_p9), %v2915_v18  ;;  %v2981_v27 = vpack.c.bf16 (!%p193_p9), %v362_v24, %v359_v22  ;;  %v269_v31 = vld [vmem:[%s5583_s1 + $0x60] sm:$0xff] (!%p193_p9)  ;;  %v272_v33 = vld [vmem:[%s5583_s1 + $0x78] sm:$0xff] (!%p193_p9)  ;;  %p3589_p11 = scmp.ne.s32.totalorder (!%p193_p9), %s5535_s18, %s3588_s26  ;;  %p3595_p0 = scmp.lt.s32.totalorder (!%p193_p9), %s5535_s18, %s3593_s6 }
  0x17   : > { %2980 = vmatprep.subr.bf16.mxu1 (!%p193_p9), %v2979_v19  ;;  %v2919_v28 = vpack.c.bf16 (!%p193_p9), %v273_v26, %v270_v25  ;;  %v366_v29 = vld [vmem:[%s5583_s1 + $0x368] sm:$0xff] (!%p193_p9)  ;;  %v365_v34 = vld [vmem:[%s5583_s1 + $0x360] sm:$0xff] (!%p193_p9)  ;;  %v368_v35 = vld [vmem:[%s5583_s1 + $0x378] sm:$0xff] (!%p193_p9)  ;;  %v2921_v36 = vpack.c.bf16 (!%p193_p9), %v272_v33, %v269_v31  ;;  %p3596_p1 = scmp.lt.s32.totalorder (!%p193_p9), %s3594_s7, %s3588_s26 }
  0x18   : > { %v2983_v32 = vpack.c.bf16 %v369_v30, %v366_v29  ;;  %v276_v37 = vld [vmem:[%s5583_s1 + $0x98] sm:$0xff]  ;;  %v279_v38 = vld [vmem:[%s5583_s1 + $0xb0] sm:$0xff]  ;;  %v2985_v40 = vpack.c.bf16 %v368_v35, %v365_v34  ;;  %v278_v44 = vld [vmem:[%s5583_s1 + $0xa8] sm:$0xff]  ;;  %s3908_s14 = scalar_select %p220_p10, %s3711_s4, 1 }
  0x19   : > { %2918 = vmatpush1.bf16.msra.mxu0 %v2917_v23  ;;  %v372_v39 = vld [vmem:[%s5583_s1 + $0x398] sm:$0xff]  ;;  %v2923_v41 = vpack.c.bf16 %v279_v38, %v276_v37  ;;  %v375_v42 = vld [vmem:[%s5583_s1 + $0x3b0] sm:$0xff]  ;;  %v374_v47 = vld [vmem:[%s5583_s1 + $0x3a8] sm:$0xff]  ;;  %s5541_s4 = scalar_lea.sflag [#allocation4], %s217_s11  ;;  %p3590_p12 = pnand %p3589_p11, %p3728_p5 }
  0x1a   : > { %2982 = vmatpush1.bf16.msra.mxu1 %v2981_v27  ;;  %2920 = vmatprep.subr.bf16.mxu0 %v2919_v28  ;;  %v275_v43 = vld [vmem:[%s5583_s1 + $0x90] sm:$0xff]  ;;  %v2987_v45 = vpack.c.bf16 %v375_v42, %v372_v39  ;;  %v282_v48 = vld [vmem:[%s5583_s1 + $0xc8] sm:$0xff]  ;;  %v285_v49 = vld [vmem:[%s5583_s1 + $0xe0] sm:$0xff]  ;;  %s3543_s15 = smul.u32 120, %s3908_s14  ;;  %p3597_p2 = por %p3596_p1, %p3595_p0 }
  0x1b   : > { %2984 = vmatprep.subr.bf16.mxu1 %v2983_v32  ;;  %v371_v46 = vld [vmem:[%s5583_s1 + $0x390] sm:$0xff]  ;;  %v378_v50 = vld [vmem:[%s5583_s1 + $0x3c8] sm:$0xff]  ;;  %v381_v51 = vld [vmem:[%s5583_s1 + $0x3e0] sm:$0xff]  ;;  %v2925_v52 = vpack.c.bf16 %v278_v44, %v275_v43  ;;  %v2927_v54 = vpack.c.bf16 %v285_v49, %v282_v48  ;;  %p3591_p13 = pneg %p3590_p12 }
  0x1c   : > { %v2989_v53 = vpack.c.bf16 %v374_v47, %v371_v46  ;;  %v281_v55 = vld [vmem:[%s5583_s1 + $0xc0] sm:$0xff]  ;;  %v284_v56 = vld [vmem:[%s5583_s1 + $0xd8] sm:$0xff]  ;;  %v2991_v58 = vpack.c.bf16 %v381_v51, %v378_v50  ;;  %v291_v61 = vld [vmem:[%s5583_s1 + $0x110] sm:$0xff]  ;;  %s3959_s16 = scalar_lea.vmem %s5582_s0, %s3543_s15 }
  0x1d   : > { %2922 = vmatpush1.bf16.msra.mxu0 %v2921_v36  ;;  %v377_v57 = vld [vmem:[%s5583_s1 + $0x3c0] sm:$0xff]  ;;  %v380_v59 = vld [vmem:[%s5583_s1 + $0x3d8] sm:$0xff]  ;;  %v387_v63 = vld [vmem:[%s5583_s1 + $0x410] sm:$0xff]  ;;  %v2929_v0 = vpack.c.bf16 %v284_v56, %v281_v55  ;;  %p3598_p3 = pnand %p3597_p2, %p3591_p13 }
  0x1e   : > { %2986 = vmatpush1.bf16.msra.mxu1 %v2985_v40  ;;  %2924 = vmatprep.subr.bf16.mxu0 %v2923_v41  ;;  %v288_v60 = vld [vmem:[%s5583_s1 + $0xf8] sm:$0xff]  ;;  %v2993_v1 = vpack.c.bf16 %v380_v59, %v377_v57  ;;  %v287_v3 = vld [vmem:[%s5583_s1 + $0xf0] sm:$0xff]  ;;  %v290_v4 = vld [vmem:[%s5583_s1 + $0x108] sm:$0xff] }
  0x1f   : > { %2988 = vmatprep.subr.bf16.mxu1 %v2987_v45  ;;  %v384_v62 = vld [vmem:[%s5583_s1 + $0x3f8] sm:$0xff]  ;;  %v2931_v2 = vpack.c.bf16 %v291_v61, %v288_v60  ;;  %v383_v5 = vld [vmem:[%s5583_s1 + $0x3f0] sm:$0xff]  ;;  %v386_v7 = vld [vmem:[%s5583_s1 + $0x408] sm:$0xff]  ;;  %v2933_v13 = vpack.c.bf16 %v290_v4, %v287_v3 }
  0x20   : > { %v2995_v6 = vpack.c.bf16 %v387_v63, %v384_v62  ;;  %v294_v9 = vld [vmem:[%s5583_s1 + $0x128] sm:$0xff]  ;;  %v297_v10 = vld [vmem:[%s5583_s1 + $0x140] sm:$0xff]  ;;  %v2997_v14 = vpack.c.bf16 %v386_v7, %v383_v5  ;;  %v296_v17 = vld [vmem:[%s5583_s1 + $0x138] sm:$0xff] }
  0x21   : > { %2926 = vmatpush1.bf16.msra.mxu0 %v2925_v52  ;;  %v390_v11 = vld [vmem:[%s5583_s1 + $0x428] sm:$0xff]  ;;  %v393_v12 = vld [vmem:[%s5583_s1 + $0x440] sm:$0xff]  ;;  %v2935_v15 = vpack.c.bf16 %v297_v10, %v294_v9  ;;  %v392_v20 = vld [vmem:[%s5583_s1 + $0x438] sm:$0xff] }
  0x22   : > { %2990 = vmatpush1.bf16.msra.mxu1 %v2989_v53  ;;  %2928 = vmatprep.subr.bf16.mxu0 %v2927_v54  ;;  %v293_v16 = vld [vmem:[%s5583_s1 + $0x120] sm:$0xff]  ;;  %v2999_v19 = vpack.c.bf16 %v393_v12, %v390_v11  ;;  %v300_v21 = vld [vmem:[%s5583_s1 + $0x158] sm:$0xff]  ;;  %v303_v22 = vld [vmem:[%s5583_s1 + $0x170] sm:$0xff] }
  0x23   : > { %2992 = vmatprep.subr.bf16.mxu1 %v2991_v58  ;;  %v389_v18 = vld [vmem:[%s5583_s1 + $0x420] sm:$0xff]  ;;  %v396_v23 = vld [vmem:[%s5583_s1 + $0x458] sm:$0xff]  ;;  %v399_v24 = vld [vmem:[%s5583_s1 + $0x470] sm:$0xff]  ;;  %v2937_v25 = vpack.c.bf16 %v296_v17, %v293_v16  ;;  %v2939_v27 = vpack.c.bf16 %v303_v22, %v300_v21 }
  0x24   : > { %v3001_v26 = vpack.c.bf16 %v392_v20, %v389_v18  ;;  %v299_v28 = vld [vmem:[%s5583_s1 + $0x150] sm:$0xff]  ;;  %v302_v29 = vld [vmem:[%s5583_s1 + $0x168] sm:$0xff]  ;;  %v3003_v31 = vpack.c.bf16 %v399_v24, %v396_v23  ;;  %v309_v34 = vld [vmem:[%s5583_s1 + $0x1a0] sm:$0xff] }
  0x25   : > { %2930 = vmatpush1.bf16.msra.mxu0 %v2929_v0  ;;  %v395_v30 = vld [vmem:[%s5583_s1 + $0x450] sm:$0xff]  ;;  %v398_v32 = vld [vmem:[%s5583_s1 + $0x468] sm:$0xff]  ;;  %v2941_v37 = vpack.c.bf16 %v302_v29, %v299_v28  ;;  %v305_v40 = vld [vmem:[%s5583_s1 + $0x180] sm:$0xff] }
  0x26   : > { %2994 = vmatpush1.bf16.msra.mxu1 %v2993_v1  ;;  %2932 = vmatprep.subr.bf16.mxu0 %v2931_v2  ;;  %v306_v33 = vld [vmem:[%s5583_s1 + $0x188] sm:$0xff]  ;;  %v307_v35 = vld [vmem:[%s5583_s1 + $0x190] sm:$0xff]  ;;  %v3005_v38 = vpack.c.bf16 %v398_v32, %v395_v30  ;;  %v308_v41 = vld [vmem:[%s5583_s1 + $0x198] sm:$0xff] }
  0x27   : > { %2996 = vmatprep.subr.bf16.mxu1 %v2995_v6  ;;  %v310_v36 = vld [vmem:[%s5583_s1 + $0x1a8] sm:$0xff]  ;;  %v2943_v39 = vpack.c.bf16 %v309_v34, %v306_v33  ;;  %v259_v42 = vld [vmem:[%s5583_s1 + $0x10] sm:$0xff]  ;;  %v312_v45 = vld [vmem:[%s5583_s1 + $0x1b8] sm:$0xff]  ;;  %v2945_v49 = vpack.c.bf16 %v308_v41, %v305_v40 }
  0x28   : > { %v3007_v43 = vpack.c.bf16 %v310_v36, %v307_v35  ;;  %v262_v44 = vld [vmem:[%s5583_s1 + $0x28] sm:$0xff]  ;;  %v315_v46 = vld [vmem:[%s5583_s1 + $0x1d0] sm:$0xff]  ;;  %v313_v47 = vld [vmem:[%s5583_s1 + $0x1c0] sm:$0xff] }
  0x29   : > { %2934 = vmatpush1.bf16.msra.mxu0 %v2933_v13  ;;  %v316_v48 = vld [vmem:[%s5583_s1 + $0x1d8] sm:$0xff]  ;;  %v3980_v50 = vld [vmem:[%s3959_s16 + $0x10] sm:$0xff]  ;;  %v3009_v51 = vpack.c.bf16 %v262_v44, %v259_v42  ;;  %v2947_v52 = vpack.c.bf16 %v315_v46, %v312_v45  ;;  %v314_v54 = vld [vmem:[%s5583_s1 + $0x1c8] sm:$0xff] }
  0x2a   : > { %2998 = vmatpush1.bf16.msra.mxu1 %v2997_v14  ;;  %2936 = vmatprep.subr.bf16.mxu0 %v2935_v15  ;;  %v311_v53 = vld [vmem:[%s5583_s1 + $0x1b0] sm:$0xff]  ;;  %v265_v55 = vld [vmem:[%s5583_s1 + $0x40] sm:$0xff]  ;;  %v3011_v56 = vpack.c.bf16 %v316_v48, %v313_v47  ;;  %v268_v57 = vld [vmem:[%s5583_s1 + $0x58] sm:$0xff] }
  0x2b   : > { %3000 = vmatprep.subr.bf16.mxu1 %v2999_v19  ;;  %v318_v58 = vld [vmem:[%s5583_s1 + $0x1e8] sm:$0xff]  ;;  %v321_v59 = vld [vmem:[%s5583_s1 + $0x200] sm:$0xff]  ;;  %v319_v60 = vld [vmem:[%s5583_s1 + $0x1f0] sm:$0xff]  ;;  %v2949_v62 = vpack.c.bf16 %v314_v54, %v311_v53  ;;  %v3013_v0 = vpack.c.bf16 %v268_v57, %v265_v55 }
  0x2c   : > { %v322_v61 = vld [vmem:[%s5583_s1 + $0x208] sm:$0xff]  ;;  %v317_v63 = vld [vmem:[%s5583_s1 + $0x1e0] sm:$0xff]  ;;  %v2951_v1 = vpack.c.bf16 %v321_v59, %v318_v58  ;;  %v320_v2 = vld [vmem:[%s5583_s1 + $0x1f8] sm:$0xff] }
  0x2d   : > { %2938 = vmatpush1.bf16.msra.mxu0 %v2937_v25  ;;  %v271_v3 = vld [vmem:[%s5583_s1 + $0x70] sm:$0xff]  ;;  %v4017_v4 = vld [vmem:[%s3959_s16 + $0x28] sm:$0xff]  ;;  %v3015_v5 = vpack.c.bf16 %v322_v61, %v319_v60  ;;  %v324_v7 = vld [vmem:[%s5583_s1 + $0x218] sm:$0xff]  ;;  %v2953_v13 = vpack.c.bf16 %v320_v2, %v317_v63 }
  0x2e   : > { %3002 = vmatpush1.bf16.msra.mxu1 %v3001_v26  ;;  %2940 = vmatprep.subr.bf16.mxu0 %v2939_v27  ;;  %v274_v6 = vld [vmem:[%s5583_s1 + $0x88] sm:$0xff]  ;;  %v327_v9 = vld [vmem:[%s5583_s1 + $0x230] sm:$0xff]  ;;  %v325_v10 = vld [vmem:[%s5583_s1 + $0x220] sm:$0xff]  ;;  %v944_v12 = vrot.slane %v4017_v4, 1 }
  0x2f   : > { %3004 = vmatprep.subr.bf16.mxu1 %v3003_v31  ;;  %v328_v11 = vld [vmem:[%s5583_s1 + $0x238] sm:$0xff]  ;;  %v4038_v14 = vld [vmem:[%s3959_s16 + $0x40] sm:$0xff]  ;;  %v3017_v15 = vpack.c.bf16 %v274_v6, %v271_v3  ;;  %v2955_v16 = vpack.c.bf16 %v327_v9, %v324_v7  ;;  %v323_v17 = vld [vmem:[%s5583_s1 + $0x210] sm:$0xff] }
  0x30   : > { %v326_v18 = vld [vmem:[%s5583_s1 + $0x228] sm:$0xff]  ;;  %v277_v19 = vld [vmem:[%s5583_s1 + $0xa0] sm:$0xff]  ;;  %v950_v20 = vrot.slane %v4038_v14, 1  ;;  %v3019_v21 = vpack.c.bf16 %v328_v11, %v325_v10  ;;  %v280_v22 = vld [vmem:[%s5583_s1 + $0xb8] sm:$0xff] }
  0x31   : > { %2942 = vmatpush1.bf16.msra.mxu0 %v2941_v37  ;;  %v330_v23 = vld [vmem:[%s5583_s1 + $0x248] sm:$0xff]  ;;  %v333_v24 = vld [vmem:[%s5583_s1 + $0x260] sm:$0xff]  ;;  %v331_v25 = vld [vmem:[%s5583_s1 + $0x250] sm:$0xff]  ;;  %v2957_v28 = vpack.c.bf16 %v326_v18, %v323_v17  ;;  %v3021_v31 = vpack.c.bf16 %v280_v22, %v277_v19 }
  0x32   : > { %3006 = vmatpush1.bf16.msra.mxu1 %v3005_v38  ;;  %2944 = vmatprep.subr.bf16.mxu0 %v2943_v39  ;;  %v334_v26 = vld [vmem:[%s5583_s1 + $0x268] sm:$0xff]  ;;  %v4071_v27 = vsel %vm936_vm0, %v944_v12, %v950_v20  ;;  %v329_v29 = vld [vmem:[%s5583_s1 + $0x240] sm:$0xff]  ;;  %v2959_v32 = vpack.c.bf16 %v333_v24, %v330_v23  ;;  %v332_v33 = vld [vmem:[%s5583_s1 + $0x258] sm:$0xff] }
  0x33   : > { %3008 = vmatprep.subr.bf16.mxu1 %v3007_v43  ;;  %v246_v30 = vld [vmem:[%s3959_s16 + $0x8] sm:$0xff]  ;;  %v283_v34 = vld [vmem:[%s5583_s1 + $0xd0] sm:$0xff]  ;;  %v4085_v35 = vld [vmem:[%s3959_s16 + $0x58] sm:$0xff]  ;;  %v3023_v36 = vpack.c.bf16 %v334_v26, %v331_v25  ;;  %v2961_v42 = vpack.c.bf16 %v332_v33, %v329_v29 }
  0x34   : > { %v286_v37 = vld [vmem:[%s5583_s1 + $0xe8] sm:$0xff]  ;;  %v336_v38 = vld [vmem:[%s5583_s1 + $0x278] sm:$0xff]  ;;  %v339_v39 = vld [vmem:[%s5583_s1 + $0x290] sm:$0xff]  ;;  %465 = vmatprep.mubr.f32.mxu0 %v246_v30 }
  0x35   : > { %2946 = vmatpush1.bf16.msra.mxu0 %v2945_v49  ;;  %555 = vmatmul.mubr.f32.vlgmr.msra.gmra.mrb[0].mxu1 %v3980_v50  ;;  %v337_v40 = vld [vmem:[%s5583_s1 + $0x280] sm:$0xff]  ;;  %v340_v41 = vld [vmem:[%s5583_s1 + $0x298] sm:$0xff]  ;;  %v3025_v43 = vpack.c.bf16 %v286_v37, %v283_v34  ;;  %v2963_v44 = vpack.c.bf16 %v339_v39, %v336_v38  ;;  %v335_v45 = vld [vmem:[%s5583_s1 + $0x270] sm:$0xff] }
  0x36   : > { %3010 = vmatpush3.bf16.msra.mxu1 %v3009_v51  ;;  %2948 = vmatprep.subr.bf16.mxu0 %v2947_v52  ;;  %v338_v46 = vld [vmem:[%s5583_s1 + $0x288] sm:$0xff]  ;;  %v289_v47 = vld [vmem:[%s5583_s1 + $0x100] sm:$0xff]  ;;  %v3027_v48 = vpack.c.bf16 %v340_v41, %v337_v40  ;;  %v292_v49 = vld [vmem:[%s5583_s1 + $0x118] sm:$0xff] }
  0x37   : > { %3012 = vmatprep.subr.bf16.mxu1 %v3011_v56  ;;  %560 = vmatprep.mubr.f32.mxu1 %v3652_v8  ;;  %v342_v51 = vld [vmem:[%s5583_s1 + $0x2a8] sm:$0xff]  ;;  %v345_v52 = vld [vmem:[%s5583_s1 + $0x2c0] sm:$0xff]  ;;  %v343_v53 = vld [vmem:[%s5583_s1 + $0x2b0] sm:$0xff]  ;;  %v2965_v55 = vpack.c.bf16 %v338_v46, %v335_v45  ;;  %v3029_v56 = vpack.c.bf16 %v292_v49, %v289_v47 }
  0x38   : > { %v346_v54 = vld [vmem:[%s5583_s1 + $0x2c8] sm:$0xff]  ;;  %v2967_v57 = vpack.c.bf16 %v345_v52, %v342_v51  ;;  %v341_v58 = vld [vmem:[%s5583_s1 + $0x2a0] sm:$0xff]  ;;  %v344_v59 = vld [vmem:[%s5583_s1 + $0x2b8] sm:$0xff] }
  0x39   : > { %2950 = vmatpush1.bf16.msra.mxu0 %v2949_v62  ;;  %561 = vmatmul.mubr.f32.gmra.mrb[2].mxu1 %v4017_v4  ;;  %v295_v60 = vld [vmem:[%s5583_s1 + $0x130] sm:$0xff]  ;;  %v3031_v61 = vpack.c.bf16 %v346_v54, %v343_v53  ;;  %v298_v62 = vld [vmem:[%s5583_s1 + $0x148] sm:$0xff]  ;;  %v348_v63 = vld [vmem:[%s5583_s1 + $0x2d8] sm:$0xff]  ;;  %v2969_v3 = vpack.c.bf16 %v344_v59, %v341_v58 }
  0x3a   : > { %3014 = vmatpush3.bf16.msra.mxu1 %v3013_v0  ;;  %2952 = vmatprep.subr.bf16.mxu0 %v2951_v1  ;;  %v351_v0 = vld [vmem:[%s5583_s1 + $0x2f0] sm:$0xff]  ;;  %v349_v1 = vld [vmem:[%s5583_s1 + $0x2e0] sm:$0xff]  ;;  %v352_v2 = vld [vmem:[%s5583_s1 + $0x2f8] sm:$0xff] }
  0x3b   : > { %3016 = vmatprep.subr.bf16.mxu1 %v3015_v5  ;;  %566 = vmatprep.mubr.f32.mxu1 %v3652_v8  ;;  %v3033_v5 = vpack.c.bf16 %v298_v62, %v295_v60  ;;  %v2971_v6 = vpack.c.bf16 %v351_v0, %v348_v63  ;;  %v347_v7 = vld [vmem:[%s5583_s1 + $0x2d0] sm:$0xff]  ;;  %v350_v9 = vld [vmem:[%s5583_s1 + $0x2e8] sm:$0xff]  ;;  %v301_v10 = vld [vmem:[%s5583_s1 + $0x160] sm:$0xff]  ;;  %v3035_v11 = vpack.c.bf16 %v352_v2, %v349_v1 }
  0x3c   : > { %v355_v17 = vld [vmem:[%s5583_s1 + $0x310] sm:$0xff]  ;;  %v358_v18 = vld [vmem:[%s5583_s1 + $0x328] sm:$0xff]  ;;  %v2973_v19 = vpack.c.bf16 %v350_v9, %v347_v7  ;;  %v2208_v23 = vld [vmem:[%s5583_s1 + $0x480] sm:$0xff] }
  0x3d   : > { %2954 = vmatpush1.bf16.msra.mxu0 %v2953_v13  ;;  %567 = vmatmul.mubr.f32.gmra.mrb[4].mxu1 %v4038_v14  ;;  %v304_v13 = vld [vmem:[%s5583_s1 + $0x178] sm:$0xff]  ;;  %v3039_v25 = vpack.c.bf16 %v358_v18, %v355_v17  ;;  %v361_v29 = vld [vmem:[%s5583_s1 + $0x340] sm:$0xff]  ;;  %v2214_v34 = vld [vmem:[%s5583_s1 + $0x4b0] sm:$0xff] }
  0x3e   : > { %3018 = vmatpush3.bf16.msra.mxu1 %v3017_v15  ;;  %2956 = vmatprep.subr.bf16.mxu0 %v2955_v16  ;;  %v2209_v15 = vld [vmem:[%s5583_s1 + $0x488] sm:$0xff]  ;;  %v2212_v16 = vld [vmem:[%s5583_s1 + $0x4a0] sm:$0xff]  ;;  %v2211_v24 = vld [vmem:[%s5583_s1 + $0x498] sm:$0xff] }
  0x3f   : > { %3020 = vmatprep.subr.bf16.mxu1 %v3019_v21  ;;  %572 = vmatprep.mubr.f32.mxu1 %v3652_v8  ;;  %v3037_v21 = vpack.c.bf16 %v304_v13, %v301_v10  ;;  %v3071_v22 = vpack.c.bf16 %v2212_v16, %v2209_v15  ;;  %v2215_v26 = vld [vmem:[%s5583_s1 + $0x4b8] sm:$0xff]  ;;  %v367_v38 = vld [vmem:[%s5583_s1 + $0x370] sm:$0xff]  ;;  %v2221_v39 = vld [vmem:[%s5583_s1 + $0x4e8] sm:$0xff] }
  0x40   : > { %v2224_v40 = vld [vmem:[%s5583_s1 + $0x500] sm:$0xff]  ;;  %v370_v41 = vld [vmem:[%s5583_s1 + $0x388] sm:$0xff]  ;;  %v4220_v45 = vld [vmem:[%s3959_s16 + $0x18] sm:$0xff] }
  0x41   : > { %2958 = vmatpush1.bf16.msra.mxu0 %v2957_v28  ;;  %573 = vmatmul.mubr.f32.gmra.mrb[6].mxu1 %v4085_v35  ;;  %v2218_v28 = vld [vmem:[%s5583_s1 + $0x4d0] sm:$0xff]  ;;  %v3079_v49 = vpack.c.bf16 %v2224_v40, %v2221_v39  ;;  %v2220_v51 = vld [vmem:[%s5583_s1 + $0x4e0] sm:$0xff]  ;;  %v2223_v52 = vld [vmem:[%s5583_s1 + $0x4f8] sm:$0xff]  ;;  %v1495_v53 = vrot.slane %v4220_v45, 2 }
  0x42   : > { %3022 = vmatpush3.bf16.msra.mxu1 %v3021_v31  ;;  %2960 = vmatprep.subr.bf16.mxu0 %v2959_v32  ;;  %v245_v31 = vld [vmem:[%s3959_s16] sm:$0xff]  ;;  %v3073_v32 = vpack.c.bf16 %v2211_v24, %v2208_v23  ;;  %v3075_v33 = vpack.c.bf16 %v2218_v28, %v2215_v26  ;;  %v4223_v46 = vld [vmem:[%s3959_s16 + $0x30] sm:$0xff]  ;;  %v376_v60 = vld [vmem:[%s5583_s1 + $0x3b8] sm:$0xff]  ;;  %v3081_v63 = vpack.c.bf16 %v2223_v52, %v2220_v51 }
  0x43   : > { %3024 = vmatprep.subr.bf16.mxu1 %v3023_v36  ;;  %643 = vmatprep.mubr.f32.mxu1 %v246_v30  ;;  %v364_v30 = vld [vmem:[%s5583_s1 + $0x358] sm:$0xff]  ;;  %v2217_v36 = vld [vmem:[%s5583_s1 + $0x4c8] sm:$0xff]  ;;  %v1503_v54 = vrot.slane %v4223_v46, 2  ;;  %v373_v59 = vld [vmem:[%s5583_s1 + $0x3a0] sm:$0xff] }
  0x44   : > { %v3043_v37 = vpack.c.bf16 %v364_v30, %v361_v29  ;;  %v4264_v0 = vld [vmem:[%s3959_s16 + $0x48] sm:$0xff]  ;;  %v3051_v7 = vpack.c.bf16 %v376_v60, %v373_v59  ;;  %v2236_v10 = vld [vmem:[%s5583_s1 + $0x560] sm:$0xff]  ;;  %v379_v13 = vld [vmem:[%s5583_s1 + $0x3d0] sm:$0xff] }
  0x45   : > { %2962 = vmatpush1.bf16.msra.mxu0 %v2961_v42  ;;  %v4214_v42 = vld [vmem:[%s3959_s16 + $0x20] sm:$0xff]  ;;  %v4260_v62 = vsel %vm1493_vm1, %v1495_v53, %v1503_v54  ;;  %v2233_v9 = vld [vmem:[%s5583_s1 + $0x548] sm:$0xff]  ;;  %v2239_v23 = vld [vmem:[%s5583_s1 + $0x578] sm:$0xff] }
  0x46   : > { %3026 = vmatpush3.bf16.msra.mxu1 %v3025_v43  ;;  %2964 = vmatprep.subr.bf16.mxu0 %v2963_v44  ;;  %v4217_v43 = vld [vmem:[%s3959_s16 + $0x38] sm:$0xff]  ;;  %v3077_v44 = vpack.c.bf16 %v2217_v36, %v2214_v34  ;;  %v1498_v47 = vrot.slane %v4214_v42, 2  ;;  %v382_v15 = vld [vmem:[%s5583_s1 + $0x3e8] sm:$0xff]  ;;  %v3087_v18 = vpack.c.bf16 %v2236_v10, %v2233_v9  ;;  %v2242_v24 = vld [vmem:[%s5583_s1 + $0x590] sm:$0xff] }
  0x47   : > { %3028 = vmatprep.subr.bf16.mxu1 %v3027_v48  ;;  %v1505_v48 = vrot.slane %v4217_v43, 2  ;;  %v388_v26 = vld [vmem:[%s5583_s1 + $0x418] sm:$0xff]  ;;  %v3091_v29 = vpack.c.bf16 %v2242_v24, %v2239_v23  ;;  %v2238_v30 = vld [vmem:[%s5583_s1 + $0x570] sm:$0xff]  ;;  %v2248_v34 = vld [vmem:[%s5583_s1 + $0x5c0] sm:$0xff] }
  0x48   : > { %v391_v36 = vld [vmem:[%s5583_s1 + $0x430] sm:$0xff]  ;;  %v762_v40 = vld [vmem:[%s3959_s16 + $0x8] sm:$0xfe]  ;;  %v2251_v51 = vld [vmem:[%s5583_s1 + $0x5d8] sm:$0xff] }
  0x49   : > { %2966 = vmatpush1.bf16.msra.mxu0 %v2965_v55  ;;  %v3047_v55 = vpack.c.bf16 %v370_v41, %v367_v38  ;;  %v4245_v58 = vsel %vm1493_vm1, %v1498_v47, %v1505_v48  ;;  %v941_v38 = vrot.slane %v4214_v42, 1  ;;  %v2244_v41 = vld [vmem:[%s5583_s1 + $0x5a0] sm:$0xff]  ;;  %v2254_v52 = vld [vmem:[%s5583_s1 + $0x5f0] sm:$0xff]  ;;  %v2261_v9 = vld [vmem:[%s5583_s1 + $0x628] sm:$0xff] }
  0x4a   : > { %3030 = vmatpush3.bf16.msra.mxu1 %v3029_v56  ;;  %2968 = vmatprep.subr.bf16.mxu0 %v2967_v57  ;;  %v2227_v56 = vld [vmem:[%s5583_s1 + $0x518] sm:$0xff]  ;;  %v2230_v57 = vld [vmem:[%s5583_s1 + $0x530] sm:$0xff]  ;;  %v3099_v59 = vpack.c.bf16 %v2254_v52, %v2251_v51  ;;  %v2264_v24 = vld [vmem:[%s5583_s1 + $0x640] sm:$0xff] }
  0x4b   : > { %3032 = vmatprep.subr.bf16.mxu1 %v3031_v61  ;;  %v4254_v61 = vld [vmem:[%s3959_s16 + $0x50] sm:$0xff]  ;;  %v3083_v2 = vpack.c.bf16 %v2230_v57, %v2227_v56  ;;  %v2268_v52 = vld [vmem:[%s5583_s1 + $0x660] sm:$0xff] }
  0x4c   : > { %v1511_v1 = vrot.slane %v4254_v61, 2  ;;  %v2250_v60 = vld [vmem:[%s5583_s1 + $0x5d0] sm:$0xff] }
  0x4d   : > { %2970 = vmatpush1.bf16.msra.mxu0 %v2969_v3  ;;  %v2226_v3 = vld [vmem:[%s5583_s1 + $0x510] sm:$0xff] }
  0x4e   : > { %3034 = vmatpush3.bf16.msra.mxu1 %v3033_v5  ;;  %2972 = vmatprep.subr.bf16.mxu0 %v2971_v6  ;;  %v2229_v5 = vld [vmem:[%s5583_s1 + $0x528] sm:$0xff]  ;;  %v1509_v6 = vrot.slane %v4264_v0, 2  ;;  %v2266_v23 = vld [vmem:[%s5583_s1 + $0x650] sm:$0xff] }
  0x4f   : > { %3036 = vmatprep.subr.bf16.mxu1 %v3035_v11  ;;  %v4284_v11 = vsel %vm1493_vm1, %v1505_v48, %v1511_v1  ;;  %v3085_v17 = vpack.c.bf16 %v2229_v5, %v2226_v3  ;;  %v940_v48 = vrot.slane %v762_v40, 1  ;;  %v2257_v3 = vld [vmem:[%s5583_s1 + $0x608] sm:$0xff]  ;;  %v2260_v5 = vld [vmem:[%s5583_s1 + $0x620] sm:$0xff] }
  0x50   : > { %v4296_v16 = vsel %vm1493_vm1, %v1503_v54, %v1509_v6  ;;  %v397_v54 = vld [vmem:[%s5583_s1 + $0x460] sm:$0xff] }
  0x51   : > { %2974 = vmatpush1.bf16.msra.mxu0 %v2973_v19  ;;  %v2232_v19 = vld [vmem:[%s5583_s1 + $0x540] sm:$0xff]  ;;  %v4365_v56 = vsel %vm936_vm0, %v940_v48, %v941_v38 }
  0x52   : > { %3038 = vmatpush3.bf16.msra.mxu1 %v3037_v21  ;;  %3072 = vmatprep.subr.bf16.mxu0 %v3071_v22  ;;  %v2235_v21 = vld [vmem:[%s5583_s1 + $0x558] sm:$0xff]  ;;  %v3055_v22 = vpack.c.bf16 %v382_v15, %v379_v13  ;;  %v3103_v13 = vpack.c.bf16 %v2260_v5, %v2257_v3  ;;  %v2256_v15 = vld [vmem:[%s5583_s1 + $0x600] sm:$0xff] }
  0x53   : > { %3040 = vmatprep.subr.bf16.mxu1 %v3039_v25  ;;  %v3089_v28 = vpack.c.bf16 %v2235_v21, %v2232_v19  ;;  %v2213_v21 = vld [vmem:[%s5583_s1 + $0x4a8] sm:$0xff]  ;;  %v2272_v40 = vld [vmem:[%s5583_s1 + $0x680] sm:$0xff]  ;;  %v2279_v3 = vld [vmem:[%s5583_s1 + $0x6b8] sm:$0xff] }
  0x54   : > { %466 = vmatmul.mubr.f32.vlgmr.msra.gmra.mrb[0].mxu0 %v245_v31 }
  0x55   : > { %644 = vmatmul.mubr.f32.vlgmr.msra.gmra.mrb[8].mxu1 %v245_v31  ;;  %3074 = vmatpush1.bf16.msra.mxu0 %v3073_v32  ;;  %v2241_v31 = vld [vmem:[%s5583_s1 + $0x588] sm:$0xff] }
  0x56   : > { %3042 = vmatpush3.bf16.msra.mxu1 %v3039_v25  ;;  %3076 = vmatprep.subr.bf16.mxu0 %v3075_v33  ;;  %v385_v25 = vld [vmem:[%s5583_s1 + $0x400] sm:$0xff]  ;;  %v2245_v33 = vld [vmem:[%s5583_s1 + $0x5a8] sm:$0xff]  ;;  %v3093_v39 = vpack.c.bf16 %v2241_v31, %v2238_v30  ;;  %v2262_v31 = vld [vmem:[%s5583_s1 + $0x630] sm:$0xff] }
  0x57   : > { %3044 = vmatprep.subr.bf16.mxu1 %v3043_v37  ;;  %648 = vmatprep.mubr.f32.mxu1 %v4214_v42  ;;  %v3059_v32 = vpack.c.bf16 %v388_v26, %v385_v25  ;;  %v2267_v25 = vld [vmem:[%s5583_s1 + $0x658] sm:$0xff] }
  0x58   : > { %471 = vmatprep.mubr.f32.mxu0 %v4214_v42  ;;  %v2373_v42 = vld [vmem:[%s5583_s1 + $0x9a8] sm:$0xff] }
  0x59   : > { %3078 = vmatpush1.bf16.msra.mxu0 %v3077_v44  ;;  %649 = vmatmul.mubr.f32.gmra.mrb[10].mxu1 %v4220_v45  ;;  %v2247_v44 = vld [vmem:[%s5583_s1 + $0x5b8] sm:$0xff] }
  0x5a   : > { %3046 = vmatpush3.bf16.msra.mxu1 %v3043_v37  ;;  %3080 = vmatprep.subr.bf16.mxu0 %v3079_v49  ;;  %v394_v37 = vld [vmem:[%s5583_s1 + $0x448] sm:$0xff]  ;;  %v3097_v57 = vpack.c.bf16 %v2247_v44, %v2244_v41 }
  0x5b   : > { %3048 = vmatprep.subr.bf16.mxu1 %v3047_v55  ;;  %653 = vmatprep.mubr.f32.mxu1 %v4217_v43  ;;  %v3063_v49 = vpack.c.bf16 %v394_v37, %v391_v36  ;;  %v3171_v36 = vpack.c.bf16 %v2267_v25, %v2264_v24  ;;  %v2219_v37 = vld [vmem:[%s5583_s1 + $0x4d8] sm:$0xff]  ;;  %v2273_v41 = vld [vmem:[%s5583_s1 + $0x688] sm:$0xff] }
  0x5c   : > { %472 = vmatmul.mubr.f32.gmra.mrb[2].mxu0 %v4220_v45 }
  0x5d   : > { %3082 = vmatpush1.bf16.msra.mxu0 %v3081_v63  ;;  %654 = vmatmul.mubr.f32.gmra.mrb[12].mxu1 %v4223_v46  ;;  %v2253_v63 = vld [vmem:[%s5583_s1 + $0x5e8] sm:$0xff] }
  0x5e   : > { %3050 = vmatpush3.bf16.msra.mxu1 %v3047_v55  ;;  %3084 = vmatprep.subr.bf16.mxu0 %v3083_v2  ;;  %v400_v55 = vld [vmem:[%s5583_s1 + $0x478] sm:$0xff]  ;;  %v3101_v10 = vpack.c.bf16 %v2253_v63, %v2250_v60  ;;  %v2278_v63 = vld [vmem:[%s5583_s1 + $0x6b0] sm:$0xff] }
  0x5f   : > { %3052 = vmatprep.subr.bf16.mxu1 %v3051_v7  ;;  %658 = vmatprep.mubr.f32.mxu1 %v4254_v61  ;;  %v3067_v2 = vpack.c.bf16 %v400_v55, %v397_v54  ;;  %v2271_v54 = vld [vmem:[%s5583_s1 + $0x678] sm:$0xff]  ;;  %v2222_v55 = vld [vmem:[%s5583_s1 + $0x4f0] sm:$0xff] }
  0x60   : > { %477 = vmatprep.mubr.f32.mxu0 %v4217_v43  ;;  %v2275_v60 = vld [vmem:[%s5583_s1 + $0x698] sm:$0xff]  ;;  %v3113_v5 = vpack.c.bf16 %v2271_v54, %v2268_v52  ;;  %v2293_v54 = vld [vmem:[%s5583_s1 + $0x728] sm:$0xff] }
  0x61   : > { %3086 = vmatpush1.bf16.msra.mxu0 %v3085_v17  ;;  %659 = vmatmul.mubr.f32.gmra.mrb[14].mxu1 %v4264_v0  ;;  %v2259_v17 = vld [vmem:[%s5583_s1 + $0x618] sm:$0xff] }
  0x62   : > { %3054 = vmatpush3.bf16.msra.mxu1 %v3051_v7  ;;  %3088 = vmatprep.subr.bf16.mxu0 %v3087_v18  ;;  %v2258_v7 = vld [vmem:[%s5583_s1 + $0x610] sm:$0xff]  ;;  %v3105_v26 = vpack.c.bf16 %v2259_v17, %v2256_v15  ;;  %v2228_v15 = vld [vmem:[%s5583_s1 + $0x520] sm:$0xff]  ;;  %v2243_v52 = vld [vmem:[%s5583_s1 + $0x598] sm:$0xff] }
  0x63   : > { %3056 = vmatprep.subr.bf16.mxu1 %v3055_v22  ;;  %2791 = vmatprep.mubr.f32.mxu1 %v3980_v50  ;;  %v3095_v50 = vpack.c.bf16 %v2248_v34, %v2245_v33  ;;  %v2210_v18 = vld [vmem:[%s5583_s1 + $0x490] sm:$0xff]  ;;  %v3167_v19 = vpack.c.bf16 %v2261_v9, %v2258_v7  ;;  %v2216_v33 = vld [vmem:[%s5583_s1 + $0x4c0] sm:$0xff]  ;;  %v1507_v34 = vrot.slane %v4038_v14, 2  ;;  %v3115_v9 = vpack.c.bf16 %v2278_v63, %v2275_v60 }
  0x64   : > { %478 = vmatmul.mubr.f32.gmra.mrb[4].mxu0 %v4223_v46 }
  0x65   : > { %3090 = vmatpush1.bf16.msra.mxu0 %v3089_v28  ;;  %483 = vmatprep.mubr.f32.mxu0 %v4254_v61  ;;  %v1501_v28 = vrot.slane %v4017_v4, 2 }
  0x66   : > { %3058 = vmatpush3.bf16.msra.mxu1 %v3055_v22  ;;  %3092 = vmatprep.subr.bf16.mxu0 %v3091_v29  ;;  %v2263_v22 = vld [vmem:[%s5583_s1 + $0x638] sm:$0xff]  ;;  %v3169_v29 = vpack.c.bf16 %v2213_v21, %v2210_v18  ;;  %v2281_v18 = vld [vmem:[%s5583_s1 + $0x6c8] sm:$0xff]  ;;  %v2282_v21 = vld [vmem:[%s5583_s1 + $0x6d0] sm:$0xff] }
  0x67   : > { %3060 = vmatprep.subr.bf16.mxu1 %v3059_v32  ;;  %v3107_v30 = vpack.c.bf16 %v2266_v23, %v2263_v22  ;;  %v4441_v44 = vsel %vm1493_vm1, %v1501_v28, %v1507_v34  ;;  %v2285_v22 = vld [vmem:[%s5583_s1 + $0x6e8] sm:$0xff] }
  0x68   : > { %484 = vmatmul.mubr.f32.gmra.mrb[6].mxu0 %v4264_v0 }
  0x69   : > { %3094 = vmatpush1.bf16.msra.mxu0 %v3093_v39  ;;  %1040 = vmatprep.mubr.f32.mxu0 %v4365_v56  ;;  %v2269_v39 = vld [vmem:[%s5583_s1 + $0x668] sm:$0xff] }
  0x6a   : > { %3062 = vmatpush3.bf16.msra.mxu1 %v3059_v32  ;;  %3096 = vmatprep.subr.bf16.mxu0 %v3095_v50  ;;  %v2265_v32 = vld [vmem:[%s5583_s1 + $0x648] sm:$0xff]  ;;  %v2270_v50 = vld [vmem:[%s5583_s1 + $0x670] sm:$0xff]  ;;  %v3111_v51 = vpack.c.bf16 %v2272_v40, %v2269_v39 }
  0x6b   : > { %3064 = vmatprep.subr.bf16.mxu1 %v3063_v49  ;;  %v3109_v48 = vpack.c.bf16 %v2265_v32, %v2262_v31  ;;  %v2237_v31 = vld [vmem:[%s5583_s1 + $0x568] sm:$0xff]  ;;  %v2287_v32 = vld [vmem:[%s5583_s1 + $0x6f8] sm:$0xff] }
  0x6d   : > { %3098 = vmatpush1.bf16.msra.mxu0 %v3097_v57  ;;  %v3175_v57 = vpack.c.bf16 %v2273_v41, %v2270_v50  ;;  %v2286_v41 = vld [vmem:[%s5583_s1 + $0x6f0] sm:$0xff] }
  0x6e   : > { %3066 = vmatpush3.bf16.msra.mxu1 %v3063_v49  ;;  %3100 = vmatprep.subr.bf16.mxu0 %v3099_v59  ;;  %v3173_v49 = vpack.c.bf16 %v2219_v37, %v2216_v33  ;;  %v2225_v59 = vld [vmem:[%s5583_s1 + $0x508] sm:$0xff]  ;;  %v2290_v33 = vld [vmem:[%s5583_s1 + $0x710] sm:$0xff]  ;;  %v2291_v37 = vld [vmem:[%s5583_s1 + $0x718] sm:$0xff] }
  0x6f   : > { %3068 = vmatprep.subr.bf16.mxu1 %v3067_v2  ;;  %v3177_v7 = vpack.c.bf16 %v2225_v59, %v2222_v55  ;;  %v3123_v50 = vpack.c.bf16 %v2290_v33, %v2287_v32  ;;  %v2296_v55 = vld [vmem:[%s5583_s1 + $0x740] sm:$0xff]  ;;  %v2297_v59 = vld [vmem:[%s5583_s1 + $0x748] sm:$0xff] }
  0x70   : > { %v2309_v32 = vld [vmem:[%s5583_s1 + $0x7a8] sm:$0xff] }
  0x71   : > { %3102 = vmatpush1.bf16.msra.mxu0 %v3101_v10  ;;  %v2274_v10 = vld [vmem:[%s5583_s1 + $0x690] sm:$0xff] }
  0x72   : > { %3070 = vmatpush3.bf16.msra.mxu1 %v3067_v2  ;;  %3104 = vmatprep.subr.bf16.mxu0 %v3103_v13  ;;  %v2276_v2 = vld [vmem:[%s5583_s1 + $0x6a0] sm:$0xff]  ;;  %v2277_v13 = vld [vmem:[%s5583_s1 + $0x6a8] sm:$0xff] }
  0x73   : > { %3168 = vmatprep.subr.bf16.mxu1 %v3167_v19  ;;  %v3179_v17 = vpack.c.bf16 %v2279_v3, %v2276_v2  ;;  %v2284_v19 = vld [vmem:[%s5583_s1 + $0x6e0] sm:$0xff]  ;;  %v3117_v23 = vpack.c.bf16 %v2277_v13, %v2274_v10  ;;  %v3127_v2 = vpack.c.bf16 %v2296_v55, %v2293_v54  ;;  %v2249_v10 = vld [vmem:[%s5583_s1 + $0x5c8] sm:$0xff]  ;;  %v2299_v13 = vld [vmem:[%s5583_s1 + $0x758] sm:$0xff]  ;;  %v948_v55 = vrot.slane %v4217_v43, 1 }
  0x74   : > { %v3119_v25 = vpack.c.bf16 %v2284_v19, %v2281_v18  ;;  %v2292_v3 = vld [vmem:[%s5583_s1 + $0x720] sm:$0xff]  ;;  %v2298_v19 = vld [vmem:[%s5583_s1 + $0x750] sm:$0xff]  ;;  %v2315_v54 = vld [vmem:[%s5583_s1 + $0x7d8] sm:$0xff] }
  0x75   : > { %2792 = vmatmul.mubr.f32.vlgmr.msra.gmra.mrb[16].mxu1 %v4017_v4  ;;  %3106 = vmatpush1.bf16.msra.mxu0 %v3105_v26  ;;  %v2280_v26 = vld [vmem:[%s5583_s1 + $0x6c0] sm:$0xff]  ;;  %v2317_v43 = vld [vmem:[%s5583_s1 + $0x7e8] sm:$0xff] }
  0x76   : > { %3170 = vmatpush3.bf16.msra.mxu1 %v3169_v29  ;;  %3108 = vmatprep.subr.bf16.mxu0 %v3107_v30  ;;  %v2234_v29 = vld [vmem:[%s5583_s1 + $0x550] sm:$0xff]  ;;  %v3183_v30 = vpack.c.bf16 %v2285_v22, %v2282_v21 }
  0x77   : > { %3172 = vmatprep.subr.bf16.mxu1 %v3171_v36  ;;  %2794 = vmatprep.mubr.f32.mxu1 %v4038_v14  ;;  %v2288_v36 = vld [vmem:[%s5583_s1 + $0x700] sm:$0xff]  ;;  %v3185_v40 = vpack.c.bf16 %v2237_v31, %v2234_v29  ;;  %v2305_v29 = vld [vmem:[%s5583_s1 + $0x788] sm:$0xff]  ;;  %v2306_v31 = vld [vmem:[%s5583_s1 + $0x790] sm:$0xff] }
  0x79   : > { %3110 = vmatpush1.bf16.msra.mxu0 %v3109_v48  ;;  %2795 = vmatmul.mubr.f32.gmra.mrb[18].mxu1 %v4085_v35  ;;  %v2231_v35 = vld [vmem:[%s5583_s1 + $0x538] sm:$0xff]  ;;  %v2289_v48 = vld [vmem:[%s5583_s1 + $0x708] sm:$0xff] }
  0x7a   : > { %3174 = vmatpush3.bf16.msra.mxu1 %v3173_v49  ;;  %3112 = vmatprep.subr.bf16.mxu0 %v3111_v51  ;;  %v3181_v24 = vpack.c.bf16 %v2231_v35, %v2228_v15  ;;  %v2240_v49 = vld [vmem:[%s5583_s1 + $0x580] sm:$0xff]  ;;  %v3187_v51 = vpack.c.bf16 %v2291_v37, %v2288_v36  ;;  %v3125_v60 = vpack.c.bf16 %v2289_v48, %v2286_v41  ;;  %v2302_v15 = vld [vmem:[%s5583_s1 + $0x770] sm:$0xff]  ;;  %v2303_v35 = vld [vmem:[%s5583_s1 + $0x778] sm:$0xff]  ;;  %v938_v37 = vrot.slane %v4220_v45, 1 }
  0x7b   : > { %3176 = vmatprep.subr.bf16.mxu1 %v3175_v57  ;;  %1218 = vmatprep.mubr.f32.mxu1 %v4365_v56  ;;  %v2283_v56 = vld [vmem:[%s5583_s1 + $0x6d8] sm:$0xff]  ;;  %v2294_v57 = vld [vmem:[%s5583_s1 + $0x730] sm:$0xff]  ;;  %v3189_v63 = vpack.c.bf16 %v2243_v52, %v2240_v49  ;;  %v3131_v22 = vpack.c.bf16 %v2302_v15, %v2299_v13  ;;  %v3199_v48 = vpack.c.bf16 %v2309_v32, %v2306_v31  ;;  %v2312_v52 = vld [vmem:[%s5583_s1 + $0x7c0] sm:$0xff]  ;;  %v954_v13 = vrot.slane %v4254_v61, 1 }
  0x7c   : > { %v3121_v39 = vpack.c.bf16 %v2283_v56, %v2280_v26  ;;  %v2255_v56 = vld [vmem:[%s5583_s1 + $0x5f8] sm:$0xff]  ;;  %v2416_v45 = vld [vmem:[%s5583_s1 + $0xb00] sm:$0xff]  ;;  %v2477_v61 = vld [vmem:[%s5583_s1 + $0xce8] sm:$0xff] }
  0x7d   : > { %3114 = vmatpush1.bf16.msra.mxu0 %v3113_v5  ;;  %v2295_v5 = vld [vmem:[%s5583_s1 + $0x738] sm:$0xff] }
  0x7e   : > { %3178 = vmatpush3.bf16.msra.mxu1 %v3177_v7  ;;  %3116 = vmatprep.subr.bf16.mxu0 %v3115_v9  ;;  %v2246_v7 = vld [vmem:[%s5583_s1 + $0x5b0] sm:$0xff]  ;;  %v3191_v9 = vpack.c.bf16 %v2297_v59, %v2294_v57  ;;  %v3129_v18 = vpack.c.bf16 %v2295_v5, %v2292_v3  ;;  %v2307_v41 = vld [vmem:[%s5583_s1 + $0x798] sm:$0xff]  ;;  %v946_v3 = vrot.slane %v4223_v46, 1  ;;  %v3203_v5 = vpack.c.bf16 %v2315_v54, %v2312_v52  ;;  %v2321_v46 = vld [vmem:[%s5583_s1 + $0x808] sm:$0xff] }
  0x7f   : > { %3180 = vmatprep.subr.bf16.mxu1 %v3179_v17  ;;  %v2300_v17 = vld [vmem:[%s5583_s1 + $0x760] sm:$0xff]  ;;  %v3193_v21 = vpack.c.bf16 %v2249_v10, %v2246_v7  ;;  %v2311_v49 = vld [vmem:[%s5583_s1 + $0x7b8] sm:$0xff]  ;;  %v949_v10 = vsel %vm936_vm0, %v941_v38, %v948_v55  ;;  %v952_v38 = vrot.slane %v4264_v0, 1  ;;  %v2434_v0 = vld [vmem:[%s5583_s1 + $0xb90] sm:$0xff] }
  0x80   : > { %v3195_v26 = vpack.c.bf16 %v2303_v35, %v2300_v17  ;;  %v2320_v7 = vld [vmem:[%s5583_s1 + $0x800] sm:$0xff] }
  0x81   : > { %3118 = vmatpush1.bf16.msra.mxu0 %v3117_v23  ;;  %v2301_v23 = vld [vmem:[%s5583_s1 + $0x768] sm:$0xff]  ;;  %v3143_v17 = vpack.c.bf16 %v2320_v7, %v2317_v43  ;;  %v2316_v35 = vld [vmem:[%s5583_s1 + $0x7e0] sm:$0xff]  ;;  %v2339_v7 = vld [vmem:[%s5583_s1 + $0x898] sm:$0xff] }
  0x82   : > { %3182 = vmatpush3.bf16.msra.mxu1 %v3181_v24  ;;  %3120 = vmatprep.subr.bf16.mxu0 %v3119_v25  ;;  %v2252_v24 = vld [vmem:[%s5583_s1 + $0x5e0] sm:$0xff]  ;;  %v3133_v33 = vpack.c.bf16 %v2301_v23, %v2298_v19  ;;  %v947_v19 = vsel %vm936_vm0, %v938_v37, %v946_v3  ;;  %v2323_v23 = vld [vmem:[%s5583_s1 + $0x818] sm:$0xff] }
  0x83   : > { %3184 = vmatprep.subr.bf16.mxu1 %v3183_v30  ;;  %v761_v25 = vld [vmem:[%s3959_s16] sm:$0xfe] }
  0x84   : > { %v2308_v30 = vld [vmem:[%s5583_s1 + $0x7a0] sm:$0xff]  ;;  %v937_v36 = vrot.slane %v761_v25, 1 }
  0x85   : > { %3122 = vmatpush1.bf16.msra.mxu0 %v3121_v39  ;;  %v3197_v39 = vpack.c.bf16 %v2255_v56, %v2252_v24  ;;  %v2326_v24 = vld [vmem:[%s5583_s1 + $0x830] sm:$0xff]  ;;  %v773_v25 = vld [vmem:[%s3959_s16 + $0x60] sm:$0x1]  ;;  %v2327_v56 = vld [vmem:[%s5583_s1 + $0x838] sm:$0xff] }
  0x86   : > { %3186 = vmatpush3.bf16.msra.mxu1 %v3185_v40  ;;  %3124 = vmatprep.subr.bf16.mxu0 %v3123_v50  ;;  %v3135_v40 = vpack.c.bf16 %v2308_v30, %v2305_v29  ;;  %v2304_v50 = vld [vmem:[%s5583_s1 + $0x780] sm:$0xff]  ;;  %v939_v57 = vsel %vm936_vm0, %v937_v36, %v938_v37  ;;  %v955_v29 = vsel %vm936_vm0, %v948_v55, %v954_v13  ;;  %v2325_v36 = vld [vmem:[%s5583_s1 + $0x828] sm:$0xff] }
  0x87   : > { %3188 = vmatprep.subr.bf16.mxu1 %v3187_v51  ;;  %v2314_v51 = vld [vmem:[%s5583_s1 + $0x7d0] sm:$0xff]  ;;  %v3137_v59 = vpack.c.bf16 %v2307_v41, %v2304_v50  ;;  %v3147_v32 = vpack.c.bf16 %v2326_v24, %v2323_v23  ;;  %v953_v37 = vsel %vm936_vm0, %v946_v3, %v952_v38  ;;  %v2329_v41 = vld [vmem:[%s5583_s1 + $0x848] sm:$0xff]  ;;  %v2335_v3 = vld [vmem:[%s5583_s1 + $0x878] sm:$0xff] }
  0x88   : > { %v2336_v43 = vld [vmem:[%s5583_s1 + $0x880] sm:$0xff]  ;;  %v2343_v23 = vld [vmem:[%s5583_s1 + $0x8b8] sm:$0xff] }
  0x89   : > { %3126 = vmatpush1.bf16.msra.mxu0 %v3125_v60  ;;  %v3139_v60 = vpack.c.bf16 %v2314_v51, %v2311_v49  ;;  %v2330_v49 = vld [vmem:[%s5583_s1 + $0x850] sm:$0xff]  ;;  %v2333_v51 = vld [vmem:[%s5583_s1 + $0x868] sm:$0xff] }
  0x8a   : > { %3190 = vmatpush3.bf16.msra.mxu1 %v3189_v63  ;;  %3128 = vmatprep.subr.bf16.mxu0 %v3127_v2  ;;  %v2310_v63 = vld [vmem:[%s5583_s1 + $0x7b0] sm:$0xff]  ;;  %v2313_v2 = vld [vmem:[%s5583_s1 + $0x7c8] sm:$0xff] }
  0x8b   : > { %3192 = vmatprep.subr.bf16.mxu1 %v3191_v9  ;;  %v2318_v9 = vld [vmem:[%s5583_s1 + $0x7f0] sm:$0xff]  ;;  %v3141_v15 = vpack.c.bf16 %v2313_v2, %v2310_v63  ;;  %v3215_v2 = vpack.c.bf16 %v2333_v51, %v2330_v49  ;;  %v4764_v49 = vld [vmem:[%s3959_s16 + $0x58] sm:$0xff] }
  0x8d   : > { %3130 = vmatpush1.bf16.msra.mxu0 %v3129_v18  ;;  %v2319_v18 = vld [vmem:[%s5583_s1 + $0x7f8] sm:$0xff] }
  0x8e   : > { %3194 = vmatpush3.bf16.msra.mxu1 %v3193_v21  ;;  %3132 = vmatprep.subr.bf16.mxu0 %v3131_v22  ;;  %v774_v21 = vld [vmem:[%s3959_s16 + $0x68] sm:$0x1]  ;;  %v3207_v22 = vpack.c.bf16 %v2321_v46, %v2318_v9  ;;  %v3145_v30 = vpack.c.bf16 %v2319_v18, %v2316_v35  ;;  %v2342_v18 = vld [vmem:[%s5583_s1 + $0x8b0] sm:$0xff] }
  0x8f   : > { %3196 = vmatprep.subr.bf16.mxu1 %v3195_v26  ;;  %v2324_v26 = vld [vmem:[%s5583_s1 + $0x820] sm:$0xff]  ;;  %v960_v31 = vrot.slane %v774_v21, 1  ;;  %v2341_v35 = vld [vmem:[%s5583_s1 + $0x8a8] sm:$0xff] }
  0x90   : > { %v3211_v50 = vpack.c.bf16 %v2327_v56, %v2324_v26  ;;  %v2350_v26 = vld [vmem:[%s5583_s1 + $0x8f0] sm:$0xff]  ;;  %v2348_v56 = vld [vmem:[%s5583_s1 + $0x8e0] sm:$0xff] }
  0x91   : > { %3134 = vmatpush1.bf16.msra.mxu0 %v3133_v33  ;;  %v2322_v33 = vld [vmem:[%s5583_s1 + $0x810] sm:$0xff]  ;;  %v961_v54 = vsel %vm936_vm0, %v954_v13, %v960_v31 }
  0x92   : > { %3198 = vmatpush3.bf16.msra.mxu1 %v3197_v39  ;;  %3136 = vmatprep.subr.bf16.mxu0 %v3135_v40  ;;  %v958_v39 = vrot.slane %v773_v25, 1  ;;  %v763_v40 = vld [vmem:[%s3959_s16 + $0x10] sm:$0xfe]  ;;  %v3149_v52 = vpack.c.bf16 %v2325_v36, %v2322_v33  ;;  %v2347_v25 = vld [vmem:[%s5583_s1 + $0x8d8] sm:$0xff]  ;;  %v2349_v33 = vld [vmem:[%s5583_s1 + $0x8e8] sm:$0xff] }
  0x93   : > { %3200 = vmatprep.subr.bf16.mxu1 %v3199_v48  ;;  %v943_v55 = vrot.slane %v763_v40, 1  ;;  %v2334_v13 = vld [vmem:[%s5583_s1 + $0x870] sm:$0xff]  ;;  %v3163_v31 = vpack.c.bf16 %v2350_v26, %v2347_v25 }
  0x94   : > { %1041 = vmatmul.mubr.f32.vlgmr.msra.gmra.mrb[8].mxu0 %v939_v57  ;;  %v959_v63 = vsel %vm936_vm0, %v952_v38, %v958_v39  ;;  %v2356_v39 = vld [vmem:[%s5583_s1 + $0x920] sm:$0xff]  ;;  %v2402_v40 = vld [vmem:[%s5583_s1 + $0xa90] sm:$0xff] }
  0x95   : > { %1219 = vmatmul.mubr.f32.vlgmr.msra.gmra.mrb[20].mxu1 %v939_v57  ;;  %3138 = vmatpush1.bf16.msra.mxu0 %v3137_v59  ;;  %v2328_v59 = vld [vmem:[%s5583_s1 + $0x840] sm:$0xff]  ;;  %v4702_v46 = vsel %vm936_vm0, %v943_v55, %v944_v12  ;;  %v2357_v55 = vld [vmem:[%s5583_s1 + $0x928] sm:$0xff] }
  0x96   : > { %3202 = vmatpush3.bf16.msra.mxu1 %v3199_v48  ;;  %3140 = vmatprep.subr.bf16.mxu0 %v3139_v60  ;;  %v2332_v48 = vld [vmem:[%s5583_s1 + $0x860] sm:$0xff]  ;;  %v2331_v60 = vld [vmem:[%s5583_s1 + $0x858] sm:$0xff] }
  0x97   : > { %3204 = vmatprep.subr.bf16.mxu1 %v3203_v5  ;;  %1223 = vmatprep.mubr.f32.mxu1 %v949_v10  ;;  %v3151_v57 = vpack.c.bf16 %v2332_v48, %v2329_v41  ;;  %v3153_v9 = vpack.c.bf16 %v2331_v60, %v2328_v59  ;;  %v2344_v12 = vld [vmem:[%s5583_s1 + $0x8c0] sm:$0xff]  ;;  %v2359_v59 = vld [vmem:[%s5583_s1 + $0x938] sm:$0xff]  ;;  %v2362_v60 = vld [vmem:[%s5583_s1 + $0x950] sm:$0xff] }
  0x98   : > { %1046 = vmatprep.mubr.f32.mxu0 %v949_v10  ;;  %v3159_v21 = vpack.c.bf16 %v2344_v12, %v2341_v35  ;;  %v2352_v48 = vld [vmem:[%s5583_s1 + $0x900] sm:$0xff] }
  0x99   : > { %3142 = vmatpush1.bf16.msra.mxu0 %v3141_v15  ;;  %1224 = vmatmul.mubr.f32.gmra.mrb[22].mxu1 %v947_v19  ;;  %v2337_v15 = vld [vmem:[%s5583_s1 + $0x888] sm:$0xff] }
  0x9a   : > { %3206 = vmatpush3.bf16.msra.mxu1 %v3203_v5  ;;  %3144 = vmatprep.subr.bf16.mxu0 %v3143_v17  ;;  %v2338_v5 = vld [vmem:[%s5583_s1 + $0x890] sm:$0xff]  ;;  %v3219_v17 = vpack.c.bf16 %v2339_v7, %v2336_v43  ;;  %v3157_v38 = vpack.c.bf16 %v2337_v15, %v2334_v13  ;;  %v1337_v7 = vld [vmem:[%s3959_s16 + $0x8] sm:$0xfc] }
  0x9b   : > { %3208 = vmatprep.subr.bf16.mxu1 %v3207_v22  ;;  %1228 = vmatprep.mubr.f32.mxu1 %v955_v29  ;;  %v3155_v10 = vpack.c.bf16 %v2338_v5, %v2335_v3  ;;  %v2411_v3 = vld [vmem:[%s5583_s1 + $0xad8] sm:$0xff]  ;;  %v956_v5 = vrot.slane %v4764_v49, 1  ;;  %v2358_v13 = vld [vmem:[%s5583_s1 + $0x930] sm:$0xff]  ;;  %v2361_v15 = vld [vmem:[%s5583_s1 + $0x948] sm:$0xff] }
  0x9c   : > { %1047 = vmatmul.mubr.f32.gmra.mrb[10].mxu0 %v947_v19  ;;  %v2345_v19 = vld [vmem:[%s5583_s1 + $0x8c8] sm:$0xff]  ;;  %v3237_v25 = vpack.c.bf16 %v2361_v15, %v2358_v13  ;;  %v2386_v13 = vld [vmem:[%s5583_s1 + $0xa10] sm:$0xff]  ;;  %v2432_v15 = vld [vmem:[%s5583_s1 + $0xb80] sm:$0xff] }
  0x9d   : > { %3146 = vmatpush1.bf16.msra.mxu0 %v3145_v30  ;;  %1229 = vmatmul.mubr.f32.gmra.mrb[24].mxu1 %v953_v37  ;;  %v3223_v24 = vpack.c.bf16 %v2345_v19, %v2342_v18  ;;  %v2363_v18 = vld [vmem:[%s5583_s1 + $0x958] sm:$0xff]  ;;  %v2365_v19 = vld [vmem:[%s5583_s1 + $0x968] sm:$0xff] }
  0x9e   : > { %3210 = vmatpush3.bf16.msra.mxu1 %v3207_v22  ;;  %3148 = vmatprep.subr.bf16.mxu0 %v3147_v32  ;;  %v2340_v22 = vld [vmem:[%s5583_s1 + $0x8a0] sm:$0xff]  ;;  %v2346_v32 = vld [vmem:[%s5583_s1 + $0x8d0] sm:$0xff] }
  0x9f   : > { %3212 = vmatprep.subr.bf16.mxu1 %v3211_v50  ;;  %1052 = vmatprep.mubr.f32.mxu0 %v955_v29  ;;  %v2351_v29 = vld [vmem:[%s5583_s1 + $0x8f8] sm:$0xff]  ;;  %v3161_v30 = vpack.c.bf16 %v2343_v23, %v2340_v22  ;;  %v3165_v41 = vpack.c.bf16 %v2349_v33, %v2346_v32  ;;  %v2417_v22 = vld [vmem:[%s5583_s1 + $0xb08] sm:$0xff]  ;;  %v957_v23 = vsel %vm936_vm0, %v950_v20, %v956_v5  ;;  %v2366_v20 = vld [vmem:[%s5583_s1 + $0x970] sm:$0xff] }
  0xa0   : > { %1233 = vmatprep.mubr.f32.mxu1 %v961_v54  ;;  %1053 = vmatmul.mubr.f32.gmra.mrb[12].mxu0 %v953_v37  ;;  %v3227_v36 = vpack.c.bf16 %v2351_v29, %v2348_v56  ;;  %v2353_v37 = vld [vmem:[%s5583_s1 + $0x908] sm:$0xff]  ;;  %v2364_v56 = vld [vmem:[%s5583_s1 + $0x960] sm:$0xff]  ;;  %v2367_v29 = vld [vmem:[%s5583_s1 + $0x978] sm:$0xff] }
  0xa1   : > { %3150 = vmatpush1.bf16.msra.mxu0 %v3149_v52  ;;  %1234 = vmatmul.mubr.f32.gmra.mrb[26].mxu1 %v959_v63  ;;  %v3231_v51 = vpack.c.bf16 %v2356_v39, %v2353_v37  ;;  %v2355_v52 = vld [vmem:[%s5583_s1 + $0x918] sm:$0xff]  ;;  %v2369_v32 = vld [vmem:[%s5583_s1 + $0x988] sm:$0xff]  ;;  %v2420_v37 = vld [vmem:[%s5583_s1 + $0xb20] sm:$0xff] }
  0xa2   : > { %3214 = vmatpush3.bf16.msra.mxu1 %v3211_v50  ;;  %3152 = vmatprep.subr.bf16.mxu0 %v3151_v57  ;;  %v2405_v50 = vld [vmem:[%s5583_s1 + $0xaa8] sm:$0xff]  ;;  %v3233_v43 = vpack.c.bf16 %v2355_v52, %v2352_v48  ;;  %v2371_v33 = vld [vmem:[%s5583_s1 + $0x998] sm:$0xff] }
  0xa3   : > { %3216 = vmatprep.subr.bf16.mxu1 %v3215_v2  ;;  %1058 = vmatprep.mubr.f32.mxu0 %v961_v54  ;;  %v2354_v54 = vld [vmem:[%s5583_s1 + $0x910] sm:$0xff]  ;;  %v3327_v57 = vpack.c.bf16 %v2405_v50, %v2402_v40  ;;  %v2423_v39 = vld [vmem:[%s5583_s1 + $0xb38] sm:$0xff]  ;;  %v3241_v50 = vpack.c.bf16 %v2367_v29, %v2364_v56 }
  0xa4   : > { %1059 = vmatmul.mubr.f32.gmra.mrb[14].mxu0 %v959_v63  ;;  %2829 = vmatprep.mubr.f32.mxu1 %v4702_v46  ;;  %v775_v63 = vld [vmem:[%s3959_s16 + $0x70] sm:$0x1]  ;;  %v3339_v52 = vpack.c.bf16 %v2423_v39, %v2420_v37  ;;  %v2395_v37 = vld [vmem:[%s5583_s1 + $0xa58] sm:$0xff] }
  0xa5   : > { %3154 = vmatpush1.bf16.msra.mxu0 %v3153_v9  ;;  %1129 = vmatprep.mubr.f32.mxu0 %v3652_v8  ;;  %v3329_v9 = vpack.c.bf16 %v2357_v55, %v2354_v54  ;;  %v962_v35 = vrot.slane %v775_v63, 1  ;;  %v2375_v54 = vld [vmem:[%s5583_s1 + $0x9b8] sm:$0xff]  ;;  %v2377_v55 = vld [vmem:[%s5583_s1 + $0x9c8] sm:$0xff]  ;;  %v2398_v39 = vld [vmem:[%s5583_s1 + $0xa70] sm:$0xff] }
  0xa6   : > { %3218 = vmatpush3.bf16.msra.mxu1 %v3215_v2  ;;  %3156 = vmatprep.subr.bf16.mxu0 %v3155_v10  ;;  %v2408_v2 = vld [vmem:[%s5583_s1 + $0xac0] sm:$0xff]  ;;  %v3235_v10 = vpack.c.bf16 %v2362_v60, %v2359_v59  ;;  %v2426_v59 = vld [vmem:[%s5583_s1 + $0xb50] sm:$0xff]  ;;  %v2429_v60 = vld [vmem:[%s5583_s1 + $0xb68] sm:$0xff] }
  0xa7   : > { %3220 = vmatprep.subr.bf16.mxu1 %v3219_v17  ;;  %v3331_v12 = vpack.c.bf16 %v2411_v3, %v2408_v2 }
  0xa9   : > { %3158 = vmatpush1.bf16.msra.mxu0 %v3157_v38  ;;  %v2368_v38 = vld [vmem:[%s5583_s1 + $0x980] sm:$0xff] }
  0xaa   : > { %3222 = vmatpush3.bf16.msra.mxu1 %v3219_v17  ;;  %3160 = vmatprep.subr.bf16.mxu0 %v3159_v21  ;;  %v2360_v17 = vld [vmem:[%s5583_s1 + $0x940] sm:$0xff]  ;;  %v2414_v21 = vld [vmem:[%s5583_s1 + $0xaf0] sm:$0xff]  ;;  %v3239_v26 = vpack.c.bf16 %v2368_v38, %v2365_v19  ;;  %v2385_v38 = vld [vmem:[%s5583_s1 + $0xa08] sm:$0xff] }
  0xab   : > { %3224 = vmatprep.subr.bf16.mxu1 %v3223_v24  ;;  %v2382_v19 = vld [vmem:[%s5583_s1 + $0x9f0] sm:$0xff] }
  0xac   : > { %v3253_v56 = vpack.c.bf16 %v2385_v38, %v2382_v19  ;;  %v2406_v19 = vld [vmem:[%s5583_s1 + $0xab0] sm:$0xff]  ;;  %v2409_v38 = vld [vmem:[%s5583_s1 + $0xac8] sm:$0xff] }
  0xad   : > { %3162 = vmatpush1.bf16.msra.mxu0 %v3161_v30  ;;  %v4829_v30 = vsel %vm936_vm0, %v956_v5, %v962_v35  ;;  %v2376_v5 = vld [vmem:[%s5583_s1 + $0x9c0] sm:$0xff] }
  0xae   : > { %3226 = vmatpush3.bf16.msra.mxu1 %v3223_v24  ;;  %3164 = vmatprep.subr.bf16.mxu0 %v3163_v31  ;;  %v1497_v24 = vrot.slane %v1337_v7, 2  ;;  %v3335_v31 = vpack.c.bf16 %v2417_v22, %v2414_v21  ;;  %v3343_v7 = vpack.c.bf16 %v2429_v60, %v2426_v59  ;;  %v2384_v21 = vld [vmem:[%s5583_s1 + $0xa00] sm:$0xff] }
  0xaf   : > { %3228 = vmatprep.subr.bf16.mxu1 %v3227_v36  ;;  %v2404_v59 = vld [vmem:[%s5583_s1 + $0xaa0] sm:$0xff] }
  0xb0   : > { %v1499_v40 = vsel %vm1493_vm1, %v1497_v24, %v1498_v47  ;;  %v2372_v47 = vld [vmem:[%s5583_s1 + $0x9a0] sm:$0xff]  ;;  %v2389_v24 = vld [vmem:[%s5583_s1 + $0xa28] sm:$0xff] }
  0xb1   : > { %3166 = vmatpush1.bf16.msra.mxu0 %v3165_v41  ;;  %v3337_v41 = vpack.c.bf16 %v2369_v32, %v2366_v20  ;;  %v3341_v2 = vpack.c.bf16 %v2375_v54, %v2372_v47  ;;  %v2391_v32 = vld [vmem:[%s5583_s1 + $0xa38] sm:$0xff]  ;;  %v2397_v47 = vld [vmem:[%s5583_s1 + $0xa68] sm:$0xff]  ;;  %v1336_v60 = vld [vmem:[%s3959_s16] sm:$0xfc] }
  0xb2   : > { %3230 = vmatpush3.bf16.msra.mxu1 %v3227_v36  ;;  %3232 = vmatprep.subr.bf16.mxu0 %v3231_v51  ;;  %v2374_v36 = vld [vmem:[%s5583_s1 + $0x9b0] sm:$0xff]  ;;  %v2399_v54 = vld [vmem:[%s5583_s1 + $0xa78] sm:$0xff] }
  0xb3   : > { %3328 = vmatprep.subr.bf16.mxu1 %v3327_v57  ;;  %v3243_v48 = vpack.c.bf16 %v2374_v36, %v2371_v33  ;;  %v2370_v51 = vld [vmem:[%s5583_s1 + $0x990] sm:$0xff]  ;;  %v2380_v57 = vld [vmem:[%s5583_s1 + $0x9e0] sm:$0xff]  ;;  %v2393_v36 = vld [vmem:[%s5583_s1 + $0xa48] sm:$0xff] }
  0xb4   : > { %1130 = vmatmul.mubr.f32.vlgmr.msra.gmra.mrb[8].mxu0 %v4702_v46  ;;  %v3333_v46 = vpack.c.bf16 %v2363_v18, %v2360_v17  ;;  %v3245_v63 = vpack.c.bf16 %v2373_v42, %v2370_v51  ;;  %v3247_v3 = vpack.c.bf16 %v2380_v57, %v2377_v55  ;;  %v2435_v17 = vld [vmem:[%s5583_s1 + $0xb98] sm:$0xff]  ;;  %v2390_v33 = vld [vmem:[%s5583_s1 + $0xa30] sm:$0xff]  ;;  %v3259_v42 = vpack.c.bf16 %v2398_v39, %v2395_v37  ;;  %v2401_v57 = vld [vmem:[%s5583_s1 + $0xa88] sm:$0xff] }
  0xb5   : > { %2830 = vmatmul.mubr.f32.vlgmr.msra.gmra.mrb[16].mxu1 %v4071_v27  ;;  %3234 = vmatpush1.bf16.msra.mxu0 %v3233_v43  ;;  %v2379_v43 = vld [vmem:[%s5583_s1 + $0x9d8] sm:$0xff]  ;;  %v3347_v22 = vpack.c.bf16 %v2435_v17, %v2432_v15  ;;  %v3353_v51 = vpack.c.bf16 %v2393_v36, %v2390_v33  ;;  %v2410_v15 = vld [vmem:[%s5583_s1 + $0xad0] sm:$0xff]  ;;  %v2456_v17 = vld [vmem:[%s5583_s1 + $0xc40] sm:$0xff] }
  0xb6   : > { %3330 = vmatpush3.bf16.msra.mxu1 %v3329_v9  ;;  %3236 = vmatprep.subr.bf16.mxu0 %v3235_v10  ;;  %v2381_v9 = vld [vmem:[%s5583_s1 + $0x9e8] sm:$0xff]  ;;  %v2383_v10 = vld [vmem:[%s5583_s1 + $0x9f8] sm:$0xff]  ;;  %v3249_v35 = vpack.c.bf16 %v2379_v43, %v2376_v5  ;;  %v3263_v43 = vpack.c.bf16 %v2404_v59, %v2401_v57  ;;  %v1339_v33 = vld [vmem:[%s3959_s16 + $0x60] sm:$0x3] }
  0xb7   : > { %3332 = vmatprep.subr.bf16.mxu1 %v3331_v12  ;;  %2832 = vmatprep.mubr.f32.mxu1 %v957_v23  ;;  %v3251_v18 = vpack.c.bf16 %v2386_v13, %v2383_v10  ;;  %v2407_v13 = vld [vmem:[%s5583_s1 + $0xab8] sm:$0xff]  ;;  %v2468_v36 = vld [vmem:[%s5583_s1 + $0xca0] sm:$0xff] }
  0xb8   : > { %1135 = vmatprep.mubr.f32.mxu0 %v3652_v8  ;;  %v2471_v37 = vld [vmem:[%s5583_s1 + $0xcb8] sm:$0xff] }
  0xb9   : > { %3238 = vmatpush1.bf16.msra.mxu0 %v3237_v25  ;;  %2833 = vmatmul.mubr.f32.gmra.mrb[18].mxu1 %v4829_v30  ;;  %v2392_v25 = vld [vmem:[%s5583_s1 + $0xa40] sm:$0xff] }
  0xba   : > { %3334 = vmatpush3.bf16.msra.mxu1 %v3333_v46  ;;  %3240 = vmatprep.subr.bf16.mxu0 %v3239_v26  ;;  %v2438_v46 = vld [vmem:[%s5583_s1 + $0xbb0] sm:$0xff]  ;;  %v2441_v26 = vld [vmem:[%s5583_s1 + $0xbc8] sm:$0xff]  ;;  %v3255_v20 = vpack.c.bf16 %v2392_v25, %v2389_v24 }
  0xbb   : > { %3336 = vmatprep.subr.bf16.mxu1 %v3335_v31  ;;  %1775 = vmatprep.mubr.f32.mxu1 %v1499_v40  ;;  %v2388_v31 = vld [vmem:[%s5583_s1 + $0xa20] sm:$0xff]  ;;  %v2465_v24 = vld [vmem:[%s5583_s1 + $0xc88] sm:$0xff] }
  0xbc   : > { %1136 = vmatmul.mubr.f32.gmra.mrb[10].mxu0 %v4071_v27  ;;  %v2378_v27 = vld [vmem:[%s5583_s1 + $0x9d0] sm:$0xff]  ;;  %v1340_v25 = vld [vmem:[%s3959_s16 + $0x68] sm:$0x3] }
  0xbd   : > { %3242 = vmatpush1.bf16.msra.mxu0 %v3241_v50  ;;  %1141 = vmatprep.mubr.f32.mxu0 %v3652_v8  ;;  %v3345_v12 = vpack.c.bf16 %v2381_v9, %v2378_v27  ;;  %v2447_v50 = vld [vmem:[%s5583_s1 + $0xbf8] sm:$0xff]  ;;  %v1494_v27 = vrot.slane %v1336_v60, 2 }
  0xbe   : > { %3338 = vmatpush3.bf16.msra.mxu1 %v3337_v41  ;;  %3244 = vmatprep.subr.bf16.mxu0 %v3243_v48  ;;  %v3257_v41 = vpack.c.bf16 %v2391_v32, %v2388_v31  ;;  %v2394_v48 = vld [vmem:[%s5583_s1 + $0xa50] sm:$0xff]  ;;  %v2403_v9 = vld [vmem:[%s5583_s1 + $0xa98] sm:$0xff]  ;;  %v1517_v31 = vrot.slane %v1340_v25, 2 }
  0xbf   : > { %3340 = vmatprep.subr.bf16.mxu1 %v3339_v52  ;;  %v2396_v52 = vld [vmem:[%s5583_s1 + $0xa60] sm:$0xff]  ;;  %v2419_v32 = vld [vmem:[%s5583_s1 + $0xb18] sm:$0xff] }
  0xc0   : > { %1142 = vmatmul.mubr.f32.gmra.mrb[12].mxu0 %v957_v23  ;;  %v2387_v23 = vld [vmem:[%s5583_s1 + $0xa18] sm:$0xff]  ;;  %v3357_v5 = vpack.c.bf16 %v2399_v54, %v2396_v52  ;;  %v2425_v52 = vld [vmem:[%s5583_s1 + $0xb48] sm:$0xff]  ;;  %v2428_v54 = vld [vmem:[%s5583_s1 + $0xb60] sm:$0xff] }
  0xc1   : > { %3246 = vmatpush1.bf16.msra.mxu0 %v3245_v63  ;;  %1147 = vmatprep.mubr.f32.mxu0 %v3652_v8  ;;  %v3349_v29 = vpack.c.bf16 %v2387_v23, %v2384_v21  ;;  %v2450_v63 = vld [vmem:[%s5583_s1 + $0xc10] sm:$0xff]  ;;  %v3267_v21 = vpack.c.bf16 %v2410_v15, %v2407_v13  ;;  %v2413_v23 = vld [vmem:[%s5583_s1 + $0xae8] sm:$0xff]  ;;  %v3279_v60 = vpack.c.bf16 %v2428_v54, %v2425_v52  ;;  %v2440_v15 = vld [vmem:[%s5583_s1 + $0xbc0] sm:$0xff] }
  0xc2   : > { %3342 = vmatpush3.bf16.msra.mxu1 %v3341_v2  ;;  %3248 = vmatprep.subr.bf16.mxu0 %v3247_v3  ;;  %v2453_v2 = vld [vmem:[%s5583_s1 + $0xc28] sm:$0xff]  ;;  %v3261_v3 = vpack.c.bf16 %v2397_v47, %v2394_v48  ;;  %v3371_v47 = vpack.c.bf16 %v2471_v37, %v2468_v36  ;;  %v2451_v36 = vld [vmem:[%s5583_s1 + $0xc18] sm:$0xff]  ;;  %v1513_v37 = vrot.slane %v4764_v49, 2 }
  0xc3   : > { %3344 = vmatprep.subr.bf16.mxu1 %v3343_v7  ;;  %v2400_v7 = vld [vmem:[%s5583_s1 + $0xa80] sm:$0xff]  ;;  %v3359_v10 = vpack.c.bf16 %v2453_v2, %v2450_v63  ;;  %v2421_v48 = vld [vmem:[%s5583_s1 + $0xb28] sm:$0xff]  ;;  %v2427_v2 = vld [vmem:[%s5583_s1 + $0xb58] sm:$0xff] }
  0xc4   : > { %1148 = vmatmul.mubr.f32.gmra.mrb[14].mxu0 %v4829_v30  ;;  %v3351_v30 = vpack.c.bf16 %v2441_v26, %v2438_v46  ;;  %v3269_v46 = vpack.c.bf16 %v2409_v38, %v2406_v19  ;;  %v2412_v26 = vld [vmem:[%s5583_s1 + $0xae0] sm:$0xff]  ;;  %v2433_v13 = vld [vmem:[%s5583_s1 + $0xb88] sm:$0xff]  ;;  %v5168_v52 = vsel %vm1493_vm1, %v1507_v34, %v1513_v37 }
  0xc5   : > { %3250 = vmatpush1.bf16.msra.mxu0 %v3249_v35  ;;  %1597 = vmatprep.mubr.f32.mxu0 %v1499_v40  ;;  %v2444_v40 = vld [vmem:[%s5583_s1 + $0xbe0] sm:$0xff]  ;;  %v2459_v35 = vld [vmem:[%s5583_s1 + $0xc58] sm:$0xff]  ;;  %v2457_v49 = vld [vmem:[%s5583_s1 + $0xc48] sm:$0xff] }
  0xc6   : > { %3346 = vmatpush3.bf16.msra.mxu1 %v3345_v12  ;;  %3252 = vmatprep.subr.bf16.mxu0 %v3251_v18  ;;  %v3355_v55 = vpack.c.bf16 %v2447_v50, %v2444_v40  ;;  %v3265_v12 = vpack.c.bf16 %v2403_v9, %v2400_v7  ;;  %v4997_v18 = vsel %vm1493_vm1, %v1494_v27, %v1495_v53  ;;  %v2462_v53 = vld [vmem:[%s5583_s1 + $0xc70] sm:$0xff]  ;;  %v1515_v50 = vrot.slane %v1339_v33, 2  ;;  %v2424_v63 = vld [vmem:[%s5583_s1 + $0xb40] sm:$0xff]  ;;  %v2461_v54 = vld [vmem:[%s5583_s1 + $0xc68] sm:$0xff] }
  0xc7   : > { %3348 = vmatprep.subr.bf16.mxu1 %v3347_v22  ;;  %v3363_v22 = vpack.c.bf16 %v2459_v35, %v2456_v17  ;;  %v1338_v40 = vld [vmem:[%s3959_s16 + $0x10] sm:$0xfc]  ;;  %v3281_v7 = vpack.c.bf16 %v2427_v2, %v2424_v63  ;;  %v2489_v35 = vld [vmem:[%s5583_s1 + $0xd48] sm:$0xff]  ;;  %v2436_v38 = vld [vmem:[%s5583_s1 + $0xba0] sm:$0xff] }
  0xc8   : > { %v5070_v59 = vsel %vm1493_vm1, %v1509_v6, %v1515_v50  ;;  %v2480_v6 = vld [vmem:[%s5583_s1 + $0xd00] sm:$0xff]  ;;  %v2486_v17 = vld [vmem:[%s5583_s1 + $0xd30] sm:$0xff] }
  0xc9   : > { %3254 = vmatpush1.bf16.msra.mxu0 %v3253_v56  ;;  %v2415_v56 = vld [vmem:[%s5583_s1 + $0xaf8] sm:$0xff]  ;;  %v1341_v50 = vld [vmem:[%s3959_s16 + $0x70] sm:$0x3]  ;;  %s5533_s16 = scalar_lea.hbm %s5587_s5, %s2502_s17 }
  0xca   : > { %3350 = vmatpush3.bf16.msra.mxu1 %v3349_v29  ;;  %3256 = vmatprep.subr.bf16.mxu0 %v3255_v20  ;;  %v3271_v29 = vpack.c.bf16 %v2416_v45, %v2413_v23  ;;  %v3367_v20 = vpack.c.bf16 %v2465_v24, %v2462_v53  ;;  %v3273_v39 = vpack.c.bf16 %v2415_v56, %v2412_v26  ;;  %v2443_v23 = vld [vmem:[%s5583_s1 + $0xbd8] sm:$0xff]  ;;  %v2446_v45 = vld [vmem:[%s5583_s1 + $0xbf0] sm:$0xff]  ;;  %v2492_v53 = vld [vmem:[%s5583_s1 + $0xd60] sm:$0xff] }
  0xcb   : > { %3352 = vmatprep.subr.bf16.mxu1 %v3351_v30  ;;  %v2422_v30 = vld [vmem:[%s5583_s1 + $0xb30] sm:$0xff]  ;;  %v2495_v24 = vld [vmem:[%s5583_s1 + $0xd78] sm:$0xff]  ;;  %v2445_v56 = vld [vmem:[%s5583_s1 + $0xbe8] sm:$0xff] }
  0xcc   : > { %v2442_v26 = vld [vmem:[%s5583_s1 + $0xbd0] sm:$0xff] }
  0xcd   : > { %3258 = vmatpush1.bf16.msra.mxu0 %v3257_v41  ;;  %v2418_v41 = vld [vmem:[%s5583_s1 + $0xb10] sm:$0xff] }
  0xce   : > { %3354 = vmatpush3.bf16.msra.mxu1 %v3353_v51  ;;  %3260 = vmatprep.subr.bf16.mxu0 %v3259_v42  ;;  %v5051_v51 = vsel %vm1493_vm1, %v1511_v1, %v1517_v31  ;;  %v3275_v42 = vpack.c.bf16 %v2422_v30, %v2419_v32  ;;  %v1500_v1 = vrot.slane %v1338_v40, 2  ;;  %v3277_v57 = vpack.c.bf16 %v2421_v48, %v2418_v41  ;;  %v2452_v31 = vld [vmem:[%s5583_s1 + $0xc20] sm:$0xff]  ;;  %v2458_v40 = vld [vmem:[%s5583_s1 + $0xc50] sm:$0xff] }
  0xcf   : > { %3356 = vmatprep.subr.bf16.mxu1 %v3355_v55  ;;  %v2474_v55 = vld [vmem:[%s5583_s1 + $0xcd0] sm:$0xff]  ;;  %v3293_v32 = vpack.c.bf16 %v2445_v56, %v2442_v26  ;;  %v2448_v30 = vld [vmem:[%s5583_s1 + $0xc00] sm:$0xff] }
  0xd0   : > { %v5093_v27 = vsel %vm1493_vm1, %v1500_v1, %v1501_v28  ;;  %v2437_v28 = vld [vmem:[%s5583_s1 + $0xba8] sm:$0xff]  ;;  %v3297_v41 = vpack.c.bf16 %v2451_v36, %v2448_v30  ;;  %v2460_v1 = vld [vmem:[%s5583_s1 + $0xc60] sm:$0xff] }
  0xd1   : > { %3262 = vmatpush1.bf16.msra.mxu0 %v3261_v3  ;;  %v3375_v3 = vpack.c.bf16 %v2477_v61, %v2474_v55  ;;  %v3287_v19 = vpack.c.bf16 %v2440_v15, %v2437_v28  ;;  %v2464_v55 = vld [vmem:[%s5583_s1 + $0xc80] sm:$0xff] }
  0xd2   : > { %3358 = vmatpush3.bf16.msra.mxu1 %v3357_v5  ;;  %3264 = vmatprep.subr.bf16.mxu0 %v3263_v43  ;;  %v2431_v5 = vld [vmem:[%s5583_s1 + $0xb78] sm:$0xff]  ;;  %v3303_v34 = vpack.c.bf16 %v2464_v55, %v2461_v54 }
  0xd3   : > { %3360 = vmatprep.subr.bf16.mxu1 %v3359_v10  ;;  %v2483_v43 = vld [vmem:[%s5583_s1 + $0xd18] sm:$0xff]  ;;  %v3283_v9 = vpack.c.bf16 %v2434_v0, %v2431_v5  ;;  %v2469_v5 = vld [vmem:[%s5583_s1 + $0xca8] sm:$0xff] }
  0xd4   : > { %v3379_v4 = vpack.c.bf16 %v2483_v43, %v2480_v6  ;;  %v2475_v43 = vld [vmem:[%s5583_s1 + $0xcd8] sm:$0xff] }
  0xd5   : > { %1776 = vmatmul.mubr.f32.vlgmr.msra.gmra.mrb[28].mxu1 %v4997_v18  ;;  %3266 = vmatpush1.bf16.msra.mxu0 %v3265_v12 }
  0xd6   : > { %3362 = vmatpush3.bf16.msra.mxu1 %v3359_v10  ;;  %1780 = vmatprep.mubr.f32.mxu1 %v4245_v58  ;;  %v2430_v10 = vld [vmem:[%s5583_s1 + $0xb70] sm:$0xff] }
  0xd7   : > { %3268 = vmatprep.subr.bf16.mxu0 %v3267_v21  ;;  %3364 = vmatprep.subr.bf16.mxu1 %v3363_v22  ;;  %v3285_v12 = vpack.c.bf16 %v2433_v13, %v2430_v10  ;;  %v2439_v21 = vld [vmem:[%s5583_s1 + $0xbb8] sm:$0xff]  ;;  %v2478_v10 = vld [vmem:[%s5583_s1 + $0xcf0] sm:$0xff]  ;;  %v2481_v13 = vld [vmem:[%s5583_s1 + $0xd08] sm:$0xff] }
  0xd8   : > { %v3289_v25 = vpack.c.bf16 %v2439_v21, %v2436_v38  ;;  %v3317_v28 = vpack.c.bf16 %v2481_v13, %v2478_v10  ;;  %v1931_v13 = vld [vmem:[%s5585_s3 + $0x130] sm:$0xff] }
  0xd9   : > { %1781 = vmatmul.mubr.f32.gmra.mrb[30].mxu1 %v4260_v62  ;;  %3270 = vmatpush1.bf16.msra.mxu0 %v3269_v46  ;;  %v3291_v46 = vpack.c.bf16 %v2446_v45, %v2443_v23  ;;  %v2490_v45 = vld [vmem:[%s5583_s1 + $0xd50] sm:$0xff] }
  0xda   : > { %3366 = vmatpush3.bf16.msra.mxu1 %v3363_v22  ;;  %1785 = vmatprep.mubr.f32.mxu1 %v4284_v11  ;;  %v3383_v22 = vpack.c.bf16 %v2489_v35, %v2486_v17  ;;  %v2484_v17 = vld [vmem:[%s5583_s1 + $0xd20] sm:$0xff]  ;;  %v2487_v35 = vld [vmem:[%s5583_s1 + $0xd38] sm:$0xff] }
  0xdb   : > { %3272 = vmatprep.subr.bf16.mxu0 %v3271_v29  ;;  %3368 = vmatprep.subr.bf16.mxu1 %v3367_v20  ;;  %v3387_v29 = vpack.c.bf16 %v2495_v24, %v2492_v53  ;;  %v3321_v21 = vpack.c.bf16 %v2487_v35, %v2484_v17  ;;  %v2493_v53 = vld [vmem:[%s5583_s1 + $0xd68] sm:$0xff] }
  0xdc   : > { %v1934_v17 = vld [vmem:[%s5585_s3 + $0x148] sm:$0xff] }
  0xdd   : > { %1786 = vmatmul.mubr.f32.gmra.mrb[32].mxu1 %v4296_v16  ;;  %3274 = vmatpush1.bf16.msra.mxu0 %v3273_v39  ;;  %v2455_v39 = vld [vmem:[%s5583_s1 + $0xc38] sm:$0xff] }
  0xde   : > { %3370 = vmatpush3.bf16.msra.mxu1 %v3367_v20  ;;  %1790 = vmatprep.mubr.f32.mxu1 %v5051_v51  ;;  %v2449_v20 = vld [vmem:[%s5583_s1 + $0xc08] sm:$0xff]  ;;  %v3299_v48 = vpack.c.bf16 %v2458_v40, %v2455_v39 }
  0xdf   : > { %3276 = vmatprep.subr.bf16.mxu0 %v3275_v42  ;;  %3372 = vmatprep.subr.bf16.mxu1 %v3371_v47  ;;  %v3295_v33 = vpack.c.bf16 %v2452_v31, %v2449_v20  ;;  %v1519_v42 = vrot.slane %v1341_v50, 2  ;;  %v227_v31 = vlaneseq }
  0xe1   : > { %1791 = vmatmul.mubr.f32.gmra.mrb[34].mxu1 %v5070_v59  ;;  %3278 = vmatpush1.bf16.msra.mxu0 %v3277_v57  ;;  %v5180_v14 = vsel %vm1493_vm1, %v1513_v37, %v1519_v42  ;;  %v2463_v57 = vld [vmem:[%s5583_s1 + $0xc78] sm:$0xff] }
  0xe2   : > { %3374 = vmatpush3.bf16.msra.mxu1 %v3371_v47  ;;  %3280 = vmatprep.subr.bf16.mxu0 %v3279_v60  ;;  %v2454_v47 = vld [vmem:[%s5583_s1 + $0xc30] sm:$0xff]  ;;  %v3305_v63 = vpack.c.bf16 %v2463_v57, %v2460_v1  ;;  %v1928_v1 = vld [vmem:[%s5585_s3 + $0x118] sm:$0xff] }
  0xe3   : > { %3376 = vmatprep.subr.bf16.mxu1 %v3375_v3  ;;  %2867 = vmatprep.mubr.f32.mxu1 %v5093_v27  ;;  %v3301_v61 = vpack.c.bf16 %v2457_v49, %v2454_v47  ;;  %v2470_v60 = vld [vmem:[%s5583_s1 + $0xcb0] sm:$0xff]  ;;  %v1925_v47 = vld [vmem:[%s5585_s3 + $0x100] sm:$0xff]  ;;  %v1926_v49 = vld [vmem:[%s5585_s3 + $0x108] sm:$0xff] }
  0xe4   : > { %v5292_v54 = vpack.c.bf16 %v1926_v49, %v1925_v47  ;;  %v1912_v47 = vld [vmem:[%s5585_s3 + $0x98] sm:$0xff] }
  0xe5   : > { %3282 = vmatpush1.bf16.msra.mxu0 %v3281_v7  ;;  %v2479_v7 = vld [vmem:[%s5583_s1 + $0xcf8] sm:$0xff] }
  0xe6   : > { %3378 = vmatpush3.bf16.msra.mxu1 %v3375_v3  ;;  %3284 = vmatprep.subr.bf16.mxu0 %v3283_v9  ;;  %v2466_v3 = vld [vmem:[%s5583_s1 + $0xc90] sm:$0xff] }
  0xe7   : > { %3380 = vmatprep.subr.bf16.mxu1 %v3379_v4  ;;  %v3309_v0 = vpack.c.bf16 %v2469_v5, %v2466_v3 }
  0xe9   : > { %3286 = vmatpush1.bf16.msra.mxu0 %v3285_v12  ;;  %v2491_v12 = vld [vmem:[%s5583_s1 + $0xd58] sm:$0xff] }
  0xea   : > { %3382 = vmatpush3.bf16.msra.mxu1 %v3379_v4  ;;  %3288 = vmatprep.subr.bf16.mxu0 %v3287_v19  ;;  %v2485_v4 = vld [vmem:[%s5583_s1 + $0xd28] sm:$0xff]  ;;  %v2494_v19 = vld [vmem:[%s5583_s1 + $0xd70] sm:$0xff] }
  0xeb   : > { %3384 = vmatprep.subr.bf16.mxu1 %v3383_v22  ;;  %v3323_v23 = vpack.c.bf16 %v2494_v19, %v2491_v12 }
  0xed   : > { %3290 = vmatpush1.bf16.msra.mxu0 %v3289_v25  ;;  %v3325_v25 = vpack.c.bf16 %v2493_v53, %v2490_v45 }
  0xee   : > { %3386 = vmatpush3.bf16.msra.mxu1 %v3383_v22  ;;  %3292 = vmatprep.subr.bf16.mxu0 %v3291_v46 }
  0xef   : > { %3388 = vmatprep.subr.bf16.mxu1 %v3387_v29 }
  0xf1   : > { %3294 = vmatpush1.bf16.msra.mxu0 %v3293_v32  ;;  %v228_v32 = vshrl.u32 %v227_v31, 7 }
  0xf2   : > { %3390 = vmatpush3.bf16.msra.mxu1 %v3387_v29  ;;  %3296 = vmatprep.subr.bf16.mxu0 %v3295_v33 }
  0xf3   : > { %v229_v33 = vsub.s32 0, %v228_v32  ;;  %v233_v30 = vsub.s32 1, %v228_v32 }
  0xf4   : > { %1598 = vmatmul.mubr.f32.vlgmr.msra.gmra.mrb[8].mxu0 %v4997_v18  ;;  %v2467_v18 = vld [vmem:[%s5583_s1 + $0xc98] sm:$0xff] }
  0xf5   : > { %2868 = vmatmul.mubr.f32.vlgmr.msra.gmra.mrb[16].mxu1 %v4441_v44  ;;  %3298 = vmatpush1.bf16.msra.mxu0 %v3297_v41  ;;  %v3307_v2 = vpack.c.bf16 %v2470_v60, %v2467_v18 }
  0xf6   : > { %2870 = vmatprep.mubr.f32.mxu1 %v5168_v52  ;;  %3300 = vmatprep.subr.bf16.mxu0 %v3299_v48 }
  0xf7   : > { %1603 = vmatprep.mubr.f32.mxu0 %v4245_v58  ;;  %v2473_v58 = vld [vmem:[%s5583_s1 + $0xcc8] sm:$0xff] }
  0xf8   : > { %1604 = vmatmul.mubr.f32.gmra.mrb[10].mxu0 %v4260_v62  ;;  %v2476_v62 = vld [vmem:[%s5583_s1 + $0xce0] sm:$0xff] }
  0xf9   : > { %2871 = vmatmul.mubr.f32.gmra.mrb[18].mxu1 %v5180_v14  ;;  %3302 = vmatpush1.bf16.msra.mxu0 %v3301_v61  ;;  %v3311_v6 = vpack.c.bf16 %v2476_v62, %v2473_v58  ;;  %v237_v62 = vsub.s32 2, %v228_v32  ;;  %v1937_v32 = vld [vmem:[%s5585_s3 + $0x160] sm:$0xff] }
  0xfa   : > { %3304 = vmatprep.subr.bf16.mxu0 %v3303_v34  ;;  %1609 = vmatprep.mubr.f32.mxu0 %v4284_v11  ;;  %v2472_v11 = vld [vmem:[%s5583_s1 + $0xcc0] sm:$0xff]  ;;  %v1927_v34 = vld [vmem:[%s5585_s3 + $0x110] sm:$0xff] }
  0xfb   : > { %v5304_v18 = vpack.c.bf16 %v1928_v1, %v1927_v34  ;;  %v1913_v34 = vld [vmem:[%s5585_s3 + $0xa0] sm:$0xff] }
  0xfc   : > { %1610 = vmatmul.mubr.f32.gmra.mrb[12].mxu0 %v4296_v16  ;;  %v2482_v16 = vld [vmem:[%s5583_s1 + $0xd10] sm:$0xff] }
  0xfd   : > { %3306 = vmatpush1.bf16.msra.mxu0 %v3305_v63  ;;  %1615 = vmatprep.mubr.f32.mxu0 %v5051_v51  ;;  %v3313_v51 = vpack.c.bf16 %v2475_v43, %v2472_v11  ;;  %v3315_v9 = vpack.c.bf16 %v2482_v16, %v2479_v7  ;;  %v1930_v11 = vld [vmem:[%s5585_s3 + $0x128] sm:$0xff] }
  0xfe   : > { %3308 = vmatprep.subr.bf16.mxu0 %v3307_v2 }
 0x100   : > { %1616 = vmatmul.mubr.f32.gmra.mrb[14].mxu0 %v5070_v59  ;;  %v2488_v59 = vld [vmem:[%s5583_s1 + $0xd40] sm:$0xff] }
 0x101   : > { %3310 = vmatpush1.bf16.msra.mxu0 %v3309_v0  ;;  %1686 = vmatprep.mubr.f32.mxu0 %v3652_v8  ;;  %v3319_v15 = vpack.c.bf16 %v2488_v59, %v2485_v4  ;;  %v1932_v4 = vld [vmem:[%s5585_s3 + $0x138] sm:$0xff]  ;;  %v1933_v59 = vld [vmem:[%s5585_s3 + $0x140] sm:$0xff] }
 0x102   : > { %3312 = vmatprep.subr.bf16.mxu0 %v3311_v6  ;;  %v1929_v6 = vld [vmem:[%s5585_s3 + $0x120] sm:$0xff] }
 0x103   : > { %v5322_v7 = vpack.c.bf16 %v1930_v11, %v1929_v6  ;;  %v1899_v11 = vld [vmem:[%s5585_s3 + $0x30] sm:$0xff] }
 0x105   : > { %3314 = vmatpush1.bf16.msra.mxu0 %v3313_v51 }
 0x106   : > { %3316 = vmatprep.subr.bf16.mxu0 %v3315_v9 }
 0x108   : > { %v556_v38 = vpop.f32.mrb[0].mxu1 }
 0x109   : > { %3318 = vmatpush1.bf16.msra.mxu0 %v3317_v28  ;;  %v558_v22 = vpop.f32.mrb[1].mxu1 }
 0x10a   : > { %3320 = vmatprep.subr.bf16.mxu0 %v3319_v15  ;;  %v5337_v15 = vpack.c.bf16 %v1932_v4, %v1931_v13 }
 0x10c   : > { %v562_v24 = vpop.f32.mrb[2].mxu1 }
 0x10d   : > { %3322 = vmatpush1.bf16.msra.mxu0 %v3321_v21  ;;  %v564_v46 = vpop.f32.mrb[3].mxu1  ;;  %v1935_v21 = vld [vmem:[%s5585_s3 + $0x150] sm:$0xff] }
 0x10e   : > { %3324 = vmatprep.subr.bf16.mxu0 %v3323_v23 }
 0x110   : > { %v5256_v26 = vpop.f32.mrb[4].mxu1 }
 0x111   : > { %3326 = vmatpush1.bf16.msra.mxu0 %v3325_v25  ;;  %v5258_v56 = vpop.f32.mrb[5].mxu1 }
 0x112   : > { %3424 = vmatprep.subr.bf16.mxu0 %v5292_v54 }
 0x114   : > { %1687 = vmatmul.mubr.f32.vlgmr.msra.gmra.mrb[8].mxu0 %v5093_v27  ;;  %v5261_v29 = vpop.f32.mrb[6].mxu1  ;;  %v225_v27 = vld [vmem:[%s5584_s2] sm:$0x7] }
 0x115   : > { %1692 = vmatprep.mubr.f32.mxu0 %v3652_v8  ;;  %v5264_v20 = vpop.f32.mrb[7].mxu1  ;;  %v5274_v36 = vrot.slane %v225_v27, %v229_v33  ;;  %v5276_v37 = vrot.slane %v225_v27, %v233_v30  ;;  %3426 = vmatpush3.bf16.msra.mxu0 %v5292_v54  ;;  %v5325_v9 = vrot.slane %v225_v27, %v237_v62 }
 0x116   : > { %3428 = vmatprep.subr.bf16.mxu0 %v5304_v18 }
 0x118   : > { %1693 = vmatmul.mubr.f32.gmra.mrb[10].mxu0 %v4441_v44 }
 0x119   : > { %1698 = vmatprep.mubr.f32.mxu0 %v3652_v8  ;;  %3430 = vmatpush3.bf16.msra.mxu0 %v5304_v18 }
 0x11a   : > { %3432 = vmatprep.subr.bf16.mxu0 %v5322_v7 }
 0x11c   : > { %1699 = vmatmul.mubr.f32.gmra.mrb[12].mxu0 %v5168_v52 }
 0x11d   : > { %1704 = vmatprep.mubr.f32.mxu0 %v3652_v8  ;;  %3434 = vmatpush3.bf16.msra.mxu0 %v5322_v7 }
 0x11e   : > { %3436 = vmatprep.subr.bf16.mxu0 %v5337_v15 }
 0x120   : > { %1705 = vmatmul.mubr.f32.gmra.mrb[14].mxu0 %v5180_v14 }
 0x121   : > { %3438 = vmatpush3.bf16.msra.mxu0 %v5337_v15 }
 0x127   : > { %v467_v44 = vpop.f32.mrb[0].mxu0 }
 0x128   : > { %v3471_v39 = vadd.f32 %v467_v44, %v5274_v36  ;;  %v469_v40 = vpop.f32.mrb[1].mxu0  ;;  %v2535_v50 = vpop.f32.mrb[8].mxu1  ;;  %v1910_v44 = vld [vmem:[%s5585_s3 + $0x88] sm:$0xff] }
 0x129   : > { %v3474_v41 = vadd.f32 %v469_v40, %v5276_v37  ;;  %v2536_v8 = vpop.f32.mrb[9].mxu1  ;;  %v1893_v40 = vld [vmem:[%s5585_s3] sm:$0xff] }
 0x12a   : > { %v5280_v48 = vadd.f32 %v3471_v39, %v556_v38  ;;  %v5282_v42 = vadd.f32 %v2536_v8, %v2535_v50  ;;  %v5346_v38 = vpack.c.bf16 %v1934_v17, %v1933_v59  ;;  %v1894_v50 = vld [vmem:[%s5585_s3 + $0x8] sm:$0xff]  ;;  %v1911_v8 = vld [vmem:[%s5585_s3 + $0x90] sm:$0xff]  ;;  %v1901_v59 = vld [vmem:[%s5585_s3 + $0x40] sm:$0xff] }
 0x12b   : > { %v5290_v52 = vadd.f32 %v3474_v41, %v558_v22  ;;  %v1936_v22 = vld [vmem:[%s5585_s3 + $0x158] sm:$0xff]  ;;  %v3393_v41 = vpack.c.bf16 %v1894_v50, %v1893_v40  ;;  %v3395_v49 = vpack.c.bf16 %v1912_v47, %v1911_v8  ;;  %v1919_v17 = vld [vmem:[%s5585_s3 + $0xd0] sm:$0xff] }
 0x12c   : > { %v2538_v55 = vpop.f32.mrb[10].mxu1  ;;  %3440 = vmatprep.subr.bf16.mxu0 %v5346_v38  ;;  %v5364_v25 = vpack.c.bf16 %v1936_v22, %v1935_v21  ;;  %v1903_v22 = vld [vmem:[%s5585_s3 + $0x50] sm:$0xff]  ;;  %v1908_v40 = vld [vmem:[%s5585_s3 + $0x78] sm:$0xff]  ;;  %v3499_v47 = vadd.f32 %v5282_v42, %v5325_v9 }
 0x12d   : > { %v2539_v61 = vpop.f32.mrb[11].mxu1  ;;  %3442 = vmatpush3.bf16.msra.mxu0 %v5346_v38 }
 0x12e   : > { %v5295_v14 = vadd.f32 %v2539_v61, %v2538_v55  ;;  %3444 = vmatprep.subr.bf16.mxu0 %v5364_v25  ;;  %v1895_v55 = vld [vmem:[%s5585_s3 + $0x10] sm:$0xff]  ;;  %v1896_v61 = vld [vmem:[%s5585_s3 + $0x18] sm:$0xff] }
 0x12f   : > { %v473_v57 = vpop.f32.mrb[2].mxu0  ;;  %v3397_v1 = vpack.c.bf16 %v1896_v61, %v1895_v55 }
 0x130   : > { %v3477_v60 = vadd.f32 %v473_v57, %v5274_v36  ;;  %v475_v63 = vpop.f32.mrb[3].mxu0  ;;  %v2541_v2 = vpop.f32.mrb[12].mxu1  ;;  %v1914_v57 = vld [vmem:[%s5585_s3 + $0xa8] sm:$0xff]  ;;  %v3495_v55 = vadd.f32 %v5295_v14, %v5325_v9 }
 0x131   : > { %v3480_v3 = vadd.f32 %v475_v63, %v5276_v37  ;;  %v2542_v5 = vpop.f32.mrb[13].mxu1  ;;  %3446 = vmatpush3.bf16.msra.mxu0 %v5364_v25  ;;  %v1898_v63 = vld [vmem:[%s5585_s3 + $0x28] sm:$0xff] }
 0x132   : > { %v5309_v58 = vadd.f32 %v3477_v60, %v562_v24  ;;  %v5311_v0 = vadd.f32 %v2542_v5, %v2541_v2  ;;  %v1897_v60 = vld [vmem:[%s5585_s3 + $0x20] sm:$0xff]  ;;  %v3399_v2 = vpack.c.bf16 %v1914_v57, %v1913_v34  ;;  %v1916_v5 = vld [vmem:[%s5585_s3 + $0xb8] sm:$0xff] }
 0x133   : > { %v5320_v43 = vadd.f32 %v3480_v3, %v564_v46  ;;  %v1915_v3 = vld [vmem:[%s5585_s3 + $0xb0] sm:$0xff]  ;;  %v3401_v62 = vpack.c.bf16 %v1898_v63, %v1897_v60 }
 0x134   : > { %v2544_v16 = vpop.f32.mrb[14].mxu1  ;;  %v3403_v6 = vpack.c.bf16 %v1916_v5, %v1915_v3  ;;  %v3507_v60 = vadd.f32 %v5311_v0, %v5325_v9 }
 0x135   : > { %v2545_v51 = vpop.f32.mrb[15].mxu1 }
 0x136   : > { %v2546_v10 = vadd.f32 %v2545_v51, %v2544_v16  ;;  %v1900_v16 = vld [vmem:[%s5585_s3 + $0x38] sm:$0xff]  ;;  %v1917_v51 = vld [vmem:[%s5585_s3 + $0xc0] sm:$0xff] }
 0x137   : > { %v479_v28 = vpop.f32.mrb[4].mxu0  ;;  %v3405_v13 = vpack.c.bf16 %v1900_v16, %v1899_v11 }
 0x138   : > { %v3483_v35 = vadd.f32 %v479_v28, %v5274_v36  ;;  %v481_v12 = vpop.f32.mrb[5].mxu0  ;;  %v5344_v19 = vadd.f32 %v2546_v10, %v5325_v9  ;;  %v1918_v10 = vld [vmem:[%s5585_s3 + $0xc8] sm:$0xff] }
 0x139   : > { %v3486_v23 = vadd.f32 %v481_v12, %v5276_v37  ;;  %v3407_v4 = vpack.c.bf16 %v1918_v10, %v1917_v51  ;;  %v1902_v28 = vld [vmem:[%s5585_s3 + $0x48] sm:$0xff]  ;;  %v2496_v51 = vld [vmem:[#allocation2] ss:$0 sm:$0xff]  ;;  %v3653_v10 = vmov 0  }
 0x13a   : > { %v5357_v45 = vadd.f32 %v3483_v35, %v5256_v26  ;;  %v1938_v26 = vld [vmem:[%s5585_s3 + $0x168] sm:$0xff]  ;;  %v1920_v35 = vld [vmem:[%s5585_s3 + $0xd8] sm:$0xff]  ;;  %v3409_v12 = vpack.c.bf16 %v1902_v28, %v1901_v59  ;;  %3587 = vset.pattern.permute.xlu0 %v3653_v10 }
 0x13b   : > { %v5361_v53 = vadd.f32 %v3486_v23, %v5258_v56  ;;  %v485_v24 = vpop.f32.mrb[6].mxu0  ;;  %v5382_v30 = vpack.c.bf16 %v1938_v26, %v1937_v32  ;;  %v3411_v21 = vpack.c.bf16 %v1920_v35, %v1919_v17  ;;  %v1904_v23 = vld [vmem:[%s5585_s3 + $0x58] sm:$0xff]  ;;  %v1905_v26 = vld [vmem:[%s5585_s3 + $0x60] sm:$0xff]  ;;  %1948 = vperm.xlu0 %3587, %v2496_v51  }
 0x13c   : > { %v3489_v46 = vadd.f32 %v485_v24, %v5274_v36  ;;  %v487_v31 = vpop.f32.mrb[7].mxu0  ;;  %v1940_v36 = vld [vmem:[%s5585_s3 + $0x178] sm:$0xff]  ;;  %v1921_v24 = vld [vmem:[%s5585_s3 + $0xe0] sm:$0xff] }
 0x13d   : > { %v3492_v33 = vadd.f32 %v487_v31, %v5276_v37  ;;  %3448 = vmatprep.subr.bf16.mxu0 %v5382_v30  ;;  %v1909_v37 = vld [vmem:[%s5585_s3 + $0x80] sm:$0xff]  ;;  %v3413_v31 = vpack.c.bf16 %v1904_v23, %v1903_v22 }
 0x13e   : > { %v5375_v56 = vadd.f32 %v3489_v46, %v5261_v29  ;;  %3450 = vmatpush3.bf16.msra.mxu0 %v5382_v30  ;;  %v1939_v29 = vld [vmem:[%s5585_s3 + $0x170] sm:$0xff]  ;;  %v3391_v39 = vpack.c.bf16 %v1910_v44, %v1909_v37  ;;  %v1922_v46 = vld [vmem:[%s5585_s3 + $0xe8] sm:$0xff]  ;;  %v1924_v37 = vld [vmem:[%s5585_s3 + $0xf8] sm:$0xff] }
 0x13f   : > { %v5379_v27 = vadd.f32 %v3492_v33, %v5264_v20  ;;  %v5393_v20 = vpack.c.bf16 %v1940_v36, %v1939_v29  ;;  %v3415_v32 = vpack.c.bf16 %v1922_v46, %v1921_v24  ;;  %v1906_v33 = vld [vmem:[%s5585_s3 + $0x68] sm:$0xff]  ;;  %v1923_v36 = vld [vmem:[%s5585_s3 + $0xf0] sm:$0xff] }
 0x140   : > { %3392 = vmatprep.subr.bf16.mxu1 %v3391_v39  ;;  %v3417_v29 = vpack.c.bf16 %v1906_v33, %v1905_v26  ;;  %v3419_v44 = vpack.c.bf16 %v1924_v37, %v1923_v36  ;;  %v1907_v39 = vld [vmem:[%s5585_s3 + $0x70] sm:$0xff] }
 0x141   : > { %3452 = vmatprep.subr.bf16.mxu0 %v5393_v20  ;;  %3394 = vmatpush3.bf16.msra.mxu1 %v3393_v41  ;;  %v3421_v50 = vpack.c.bf16 %v1908_v40, %v1907_v39 }
 0x142   : > { %3454 = vmatpush3.bf16.msra.mxu0 %v5393_v20  ;;  %3396 = vmatprep.subr.bf16.mxu1 %v3395_v49 }
 0x145   : > { %3398 = vmatpush3.bf16.msra.mxu1 %v3397_v1 }
 0x146   : > { %3400 = vmatprep.subr.bf16.mxu1 %v3399_v2 }
 0x149   : > { %3402 = vmatpush3.bf16.msra.mxu1 %v3401_v62 }
 0x14a   : > { %3404 = vmatprep.subr.bf16.mxu1 %v3403_v6 }
 0x14d   : > { %3406 = vmatpush3.bf16.msra.mxu1 %v3405_v13 }
 0x14e   : > { %3408 = vmatprep.subr.bf16.mxu1 %v3407_v4 }
 0x151   : > { %3410 = vmatpush3.bf16.msra.mxu1 %v3409_v12 }
 0x152   : > { %3412 = vmatprep.subr.bf16.mxu1 %v3411_v21 }
 0x155   : > { %3414 = vmatpush3.bf16.msra.mxu1 %v3413_v31 }
 0x156   : > { %3416 = vmatprep.subr.bf16.mxu1 %v3415_v32 }
 0x159   : > { %3418 = vmatpush3.bf16.msra.mxu1 %v3417_v29 }
 0x15a   : > { %3420 = vmatprep.subr.bf16.mxu1 %v3419_v44 }
 0x15d   : > { %3422 = vmatpush3.bf16.msra.mxu1 %v3421_v50 }
 0x15e   : > { %3455 = vmatprep.subr.bf16.mxu1 %v5292_v54 }
 0x168   : > { %v2599_v41 = vpop.f32.mrb[20].mxu1 }
 0x169   : > { %v2600_v8 = vpop.f32.mrb[21].mxu1 }
 0x16a   : > { %v2601_v49 = vadd.f32 %v2600_v8, %v2599_v41 }
 0x16c   : > { %v3500_v61 = vadd.f32 %v3499_v47, %v2601_v49  ;;  %v2602_v34 = vpop.f32.mrb[22].mxu1 }
 0x16d   : > { %v2603_v1 = vpop.f32.mrb[23].mxu1 }
 0x16e   : > { %v2604_v57 = vadd.f32 %v2603_v1, %v2602_v34 }
 0x170   : > { %v3496_v63 = vadd.f32 %v3495_v55, %v2604_v57  ;;  %v2605_v2 = vpop.f32.mrb[24].mxu1 }
 0x171   : > { %v2606_v3 = vpop.f32.mrb[25].mxu1 }
 0x172   : > { %v2607_v5 = vadd.f32 %v2606_v3, %v2605_v2 }
 0x174   : > { %v3508_v62 = vadd.f32 %v3507_v60, %v2607_v5  ;;  %v2608_v6 = vpop.f32.mrb[26].mxu1 }
 0x175   : > { %v2609_v42 = vpop.f32.mrb[27].mxu1 }
 0x176   : > { %v2610_v11 = vadd.f32 %v2609_v42, %v2608_v6 }
 0x178   : > { %v3504_v16 = vadd.f32 %v5344_v19, %v2610_v11 }
 0x1a8   : > { %v2663_v14 = vpop.f32.mrb[28].mxu1 }
 0x1a9   : > { %v2664_v13 = vpop.f32.mrb[29].mxu1 }
 0x1aa   : > { %v2665_v4 = vadd.f32 %v2664_v13, %v2663_v14 }
 0x1ac   : > { %v2666_v59 = vpop.f32.mrb[30].mxu1  ;;  %v3501_v28 = vadd.f32 %v3500_v61, %v2665_v4 }
 0x1ad   : > { %v2667_v0 = vpop.f32.mrb[31].mxu1 }
 0x1ae   : > { %v2668_v9 = vadd.f32 %v2667_v0, %v2666_v59 }
 0x1b0   : > { %v2669_v17 = vpop.f32.mrb[32].mxu1  ;;  %v3497_v35 = vadd.f32 %v3496_v63, %v2668_v9 }
 0x1b1   : > { %v2670_v12 = vpop.f32.mrb[33].mxu1 }
 0x1b2   : > { %v2671_v21 = vadd.f32 %v2670_v12, %v2669_v17 }
 0x1b4   : > { %v2672_v22 = vpop.f32.mrb[34].mxu1  ;;  %v3509_v23 = vadd.f32 %v3508_v62, %v2671_v21 }
 0x1b5   : > { %v2673_v24 = vpop.f32.mrb[35].mxu1 }
 0x1b6   : > { %v2674_v46 = vadd.f32 %v2673_v24, %v2672_v22 }
 0x1b8   : > { %v3505_v19 = vadd.f32 %v3504_v16, %v2674_v46 }
 0x1c8   : > { %v2869_v31 = vpop.f32.mrb[16].mxu1 }
 0x1c9   : > { %v3498_v32 = vadd.f32 %v3497_v35, %v2869_v31  ;;  %v1862_v26 = vpop.f32.mrb[17].mxu1 }
 0x1ca   : > { %v3502_v33 = vadd.f32 %v3501_v28, %v1862_v26 }
 0x1cc   : > { %v2872_v29 = vpop.f32.mrb[18].mxu1  ;;  %2905 = vmatprep.mubr.f32.mxu0 %v3502_v33 }
 0x1cd   : > { %v3506_v36 = vadd.f32 %v3505_v19, %v2872_v29  ;;  %v1872_v37 = vpop.f32.mrb[19].mxu1  ;;  %2906 = vmatmul.mubr.f32.vlgmr.msra.gmra.mrb[16].mxu0 %v3498_v32 }
 0x1ce   : > { %v3510_v44 = vadd.f32 %v3509_v23, %v1872_v37 }
 0x1e7   : > { %v1688_v39 = vpop.f32.mrb[8].mxu0 }
 0x1e8   : > { %v3473_v40 = vadd.f32 %v5280_v48, %v1688_v39  ;;  %v1690_v50 = vpop.f32.mrb[9].mxu0 }
 0x1e9   : > { %v3476_v41 = vadd.f32 %v5290_v52, %v1690_v50 }
 0x1eb   : > { %v1694_v8 = vpop.f32.mrb[10].mxu0  ;;  %2015 = vmatprep.mubr.f32.mxu1 %v3476_v41 }
 0x1ec   : > { %v3479_v47 = vadd.f32 %v5309_v58, %v1694_v8  ;;  %v1696_v49 = vpop.f32.mrb[11].mxu0  ;;  %2016 = vmatmul.mubr.f32.vlgmr.msra.gmra.mrb[36].mxu1 %v3473_v40 }
 0x1ed   : > { %v3482_v55 = vadd.f32 %v5320_v43, %v1696_v49  ;;  %3463 = vmatpush3.bf16.msra.mxu1 %v5292_v54 }
 0x1ee   : > { %3456 = vmatprep.subr.bf16.mxu1 %v5304_v18 }
 0x1ef   : > { %v1700_v61 = vpop.f32.mrb[12].mxu0  ;;  %2020 = vmatprep.mubr.f32.mxu1 %v3482_v55 }
 0x1f0   : > { %v3485_v34 = vadd.f32 %v5357_v45, %v1700_v61  ;;  %v1702_v48 = vpop.f32.mrb[13].mxu0  ;;  %2021 = vmatmul.mubr.f32.gmra.mrb[38].mxu1 %v3479_v47 }
 0x1f1   : > { %v3488_v52 = vadd.f32 %v5361_v53, %v1702_v48  ;;  %3464 = vmatpush3.bf16.msra.mxu1 %v5304_v18  ;;  %v1949_v53 = vpop.permute.xlu0 %1948 }
 0x1f2   : > { %3457 = vmatprep.subr.bf16.mxu1 %v5322_v7 }
 0x1f3   : > { %v1706_v58 = vpop.f32.mrb[14].mxu0  ;;  %2025 = vmatprep.mubr.f32.mxu1 %v3488_v52 }
 0x1f4   : > { %v3491_v43 = vadd.f32 %v5375_v56, %v1706_v58  ;;  %v1708_v1 = vpop.f32.mrb[15].mxu0  ;;  %2026 = vmatmul.mubr.f32.gmra.mrb[40].mxu1 %v3485_v34 }
 0x1f5   : > { %v3494_v54 = vadd.f32 %v5379_v27, %v1708_v1  ;;  %3465 = vmatpush3.bf16.msra.mxu1 %v5322_v7 }
 0x1f6   : > { %3458 = vmatprep.subr.bf16.mxu1 %v5337_v15 }
 0x1f7   : > { %2030 = vmatprep.mubr.f32.mxu1 %v3494_v54 }
 0x1f8   : > { %2031 = vmatmul.mubr.f32.gmra.mrb[42].mxu1 %v3491_v43 }
 0x1f9   : > { %3466 = vmatpush3.bf16.msra.mxu1 %v5337_v15  ;;  %2908 = vmatprep.mubr.f32.mxu1 %v3510_v44 }
 0x1fa   : > { %3459 = vmatprep.subr.bf16.mxu1 %v5346_v38 }
 0x1fd   : > { %3467 = vmatpush3.bf16.msra.mxu1 %v5346_v38 }
 0x1fe   : > { %3460 = vmatprep.subr.bf16.mxu1 %v5364_v25 }
 0x201   : > { %3468 = vmatpush3.bf16.msra.mxu1 %v5364_v25 }
 0x202   : > { %3461 = vmatprep.subr.bf16.mxu1 %v5382_v30 }
 0x205   : > { %3469 = vmatpush3.bf16.msra.mxu1 %v5382_v30 }
 0x206   : > { %3462 = vmatprep.subr.bf16.mxu1 %v5393_v20 }
 0x209   : > { %3470 = vmatpush3.bf16.msra.mxu1 %v5393_v20 }
 0x20c   : > { %2909 = vmatmul.mubr.f32.vlgmr.msra.gmra.mrb[44].mxu1 %v3506_v36 }
 0x2a0   : > { %v2907_v18 = vpop.f32.mrb[16].mxu0 }
 0x2a1   : > { %v2102_v7 = vpop.f32.mrb[17].mxu0 }
 0x2bf   : > { %v2727_v15 = vpop.f32.mrb[36].mxu1 }
 0x2c0   : > { %v2728_v45 = vpop.f32.mrb[37].mxu1 }
 0x2c1   : > { %v2729_v38 = vadd.f32 %v2728_v45, %v2727_v15 }
 0x2c3   : > { %v2018_v56 = vadd.f32 %v2729_v38, %v1949_v53  ;;  %v2730_v25 = vpop.f32.mrb[38].mxu1 }
 0x2c4   : > { %v2731_v27 = vpop.f32.mrb[39].mxu1 }
 0x2c5   : > { %v2103_v30 = vadd.f32 %v2102_v7, %v2018_v56  ;;  %v2732_v57 = vadd.f32 %v2731_v27, %v2730_v25 }
 0x2c7   : > { %v2023_v60 = vadd.f32 %v2732_v57, %v1949_v53  ;;  %2122 = vst.msk [vmem:[%s219_s13] sm:$0xff] %vm2121_vm2, %v2103_v30  ;;  %v2733_v20 = vpop.f32.mrb[40].mxu1 }
 0x2c8   : > { %v2734_v63 = vpop.f32.mrb[41].mxu1 }
 0x2c9   : > { %v2108_v2 = vadd.f32 %v2907_v18, %v2023_v60  ;;  %v2735_v3 = vadd.f32 %v2734_v63, %v2733_v20 }
 0x2cb   : > { %2123 = vst.msk [vmem:[%s219_s13 + $0x8] sm:$0xff] %vm2121_vm2, %v2108_v2  ;;  %v2736_v5 = vpop.f32.mrb[42].mxu1  ;;  %v2028_v16 = vadd.f32 %v2735_v3, %v1949_v53 }
 0x2cc   : > { %v2737_v62 = vpop.f32.mrb[43].mxu1 }
 0x2cd   : > { %v2738_v6 = vadd.f32 %v2737_v62, %v2736_v5 }
 0x2cf   : > { %v2033_v42 = vadd.f32 %v2738_v6, %v1949_v53 }
 0x2df   : > { %v2910_v11 = vpop.f32.mrb[44].mxu1 }
 0x2e0   : > { %v2118_v51 = vadd.f32 %v2910_v11, %v2033_v42  ;;  %v2112_v10 = vpop.f32.mrb[45].mxu1 }
 0x2e1   : > { %v2113_v14 = vadd.f32 %v2112_v10, %v2028_v16 }
 0x2e2   : > { %2125 = vst.msk [vmem:[%s219_s13 + $0x18] sm:$0xff] %vm2121_vm2, %v2118_v51 }
 0x2e3   : > { %2124 = vst.msk [vmem:[%s219_s13 + $0x10] sm:$0xff] %vm2121_vm2, %v2113_v14 }
 0x2e4   : > { %3601 = shalt.err (!%p3598_p3)
}
 0x2e5   : > { %s3602_s15 = scalar_lea.hbm %s5533_s16, 512  ;;  %s3606_s9 = scalar_lea.hbm %s5587_s5, 1024 }
 0x2e6   : > { %p3603_p4 = scmp.ne.s32.totalorder %s5533_s16, %s3602_s15  ;;  %p3607_p9 = scmp.lt.u32.totalorder %s5533_s16, %s5587_s5 }
 0x2e7   : > { %p3608_p10 = scmp.lt.u32.totalorder %s3606_s9, %s3602_s15  ;;  %p3610_p12 = scmp.lt.u32.totalorder %s3602_s15, %s5533_s16 }
 0x2e8   : > { %p3604_p7 = pnand %p3603_p4, %p3728_p5 }
 0x2e9   : > { %p3609_p11 = por %p3608_p10, %p3607_p9 }
 0x2ea   : > { %p3605_p8 = pneg %p3604_p7 }
 0x2eb   : > { %p3611_p13 = por %p3610_p12, %p3609_p11 }
 0x2ed   : > { %p3612_p0 = pnand %p3611_p13, %p3605_p8 }
 0x2ef   : > { %3615 = shalt.err (!%p3612_p0)
}
 0x2f0   : > { %s3655_s12 = smov 128   ;;  %s3656_s13 = smov 8  }
 0x2f1   : > { %3544 = dma.vmem_to_hbm [thread:$0]  (%p3728_p5), %s5535_s18, 512, %s5533_s16, %s5541_s4, %s3655_s12, %s3655_s12, %s3656_s13  }
 0x2f2 PF: > { %p3550_p1 = scmp.ge.s32.totalorder %s3650_s23, 2  ;;  %s2155_s17 = sand.u32 1, %s3638_s20  }
 0x2f3   : > { %s2156_s19 = scalar_lea.sflag [#allocation4], %s2155_s17 }
 0x2f4   : > { %p3547_p2 = pnand %p3550_p1, %p3732_p6 }
 0x2f6   : > { %3633 = dma.done.wait (!%p3547_p2), %s2156_s19, 512  }
 0x2f7   : > { %3635 = vsyncadd (!%p3547_p2), %s2156_s19, 4294966784  ;;  %p17_p3 = scmp.ge.s32.totalorder %s3715_s25, 4   ;;  %s5590_s20 = smov %s3642_s21 }
 0x2f8   : > { %s5591_s21 = smov %s3646_s22  ;;  %s5592_s22 = smov %s3726_s28 }
 0x2f9   : > { %s5593_s23 = smov %s3715_s25  ;;  %19 = sbr.rel (!%p17_p3) target bundleno = 6 (0x6), region = 77 }
 0x300   :  { %2161 = vsyncpa [#allocation4], 1 }
 0x301   :  { %2163 = vsyncpa [#allocation4 + $0x1], 1 }

</bundles_post_ra>
